<compile_context>
chip_gen: v6e
topology: v6e:2x2x1
jax: 0.10.0
libtpu: 0.0.40
codegen_flags: <defaults>
</compile_context>

<pallas_src>
import functools

import jax
import jax.numpy as jnp
from jax.experimental import pallas as pl
from jax.experimental.pallas import tpu as pltpu

# ---------------- hyperparameters (matching the PyTorch module defaults) ----------------
D_MODEL = 64
NHEAD = 4
HEAD_DIM = D_MODEL // NHEAD
NUM_LAYERS = 2
DIM_FF = 128
LN_EPS = 1e-5
ATTN_SCALE = 1.0 / float(HEAD_DIM) ** 0.5
BIAS_W = 256  # width of each row in the packed bias / LayerNorm slab


# ------------------------------- fused forward kernel ------------------------------------
def _fused_transformer_kernel(src_ref, tgt_ref, win_ref, w64_ref, w128_ref, b_ref,
                              out_ref, *, S, T, B, layouts):
    d = D_MODEL
    w64_l, w128_l, b_l = layouts["w64"], layouts["w128"], layouts["bias"]

    # ---- static-slice accessors into the packed parameter slabs (zero-cost ref views) ----
    def w64(name):
        off, w = w64_l[name]
        return w64_ref[:, off:off + w]

    def w128(name):
        off, w = w128_l[name]
        return w128_ref[:, off:off + w]

    def bias(name):
        r, w = b_l[name]
        return b_ref[r:r + 1, :w]

    def layernorm(x, prefix):
        g = bias(prefix + "_g")
        b = bias(prefix + "_b")
        mu = jnp.mean(x, axis=-1, keepdims=True)
        var = jnp.mean(jnp.square(x - mu), axis=-1, keepdims=True)
        return (x - mu) * jax.lax.rsqrt(var + LN_EPS) * g + b

    def batch_mask(nq, nk):
        # rows are seq-major flattened (row = seq * B + batch): tokens may only attend to
        # tokens of the same batch element -> additive -inf-ish mask, hoisted & reused.
        qi = jax.lax.broadcasted_iota(jnp.int32, (nq, nk), 0)
        ki = jax.lax.broadcasted_iota(jnp.int32, (nq, nk), 1)
        return jnp.where((qi % B) == (ki % B), 0.0, -1e30).astype(jnp.float32)

    def sdpa(q, k, v, mask):
        # q: (Nq, d), k/v: (Nk, d); heads statically unrolled, each head is one 2-D Q.K^T
        # over ALL batch rows at once (cross-batch pairs killed by the additive mask).
        outs = []
        for h in range(NHEAD):
            lo, hi = h * HEAD_DIM, (h + 1) * HEAD_DIM
            qh, kh, vh = q[:, lo:hi], k[:, lo:hi], v[:, lo:hi]
            s = jax.lax.dot_general(qh, kh, (((1,), (1,)), ((), ())),
                                    preferred_element_type=jnp.float32)
            s = s * ATTN_SCALE + mask
            s = s - jnp.max(s, axis=-1, keepdims=True)
            e = jnp.exp(s)
            p = e * pl.reciprocal(jnp.sum(e, axis=-1, keepdims=True), approx=True)
            outs.append(jnp.dot(p, vh, preferred_element_type=jnp.float32))
        return jnp.concatenate(outs, axis=-1)

    def self_attention(x, mask, prefix):
        # fused Q|K|V projection: one (N, 192)-wide MXU push (PyTorch in_proj column order)
        qkv = jnp.dot(x, w64(prefix + "_qkv"),
                      preferred_element_type=jnp.float32) + bias(prefix + "_qkv_b")
        attn = sdpa(qkv[:, :d], qkv[:, d:2 * d], qkv[:, 2 * d:], mask)
        return jnp.dot(attn, w64(prefix + "_wo"),
                       preferred_element_type=jnp.float32) + bias(prefix + "_wo_b")

    def cross_attention(y, mem_kv, mask, l):
        pre = f"dec{l}_cross"
        q = jnp.dot(y, w64(pre + "_wq"),
                    preferred_element_type=jnp.float32) + bias(pre + "_wq_b")
        k = mem_kv[:, 2 * l * d:(2 * l + 1) * d]
        v = mem_kv[:, (2 * l + 1) * d:(2 * l + 2) * d]
        attn = sdpa(q, k, v, mask)
        return jnp.dot(attn, w64(pre + "_wo"),
                       preferred_element_type=jnp.float32) + bias(pre + "_wo_b")

    def ffn(x, prefix):
        h1 = jnp.maximum(
            jnp.dot(x, w64(prefix + "_lin1"), preferred_element_type=jnp.float32)
            + bias(prefix + "_lin1_b"), 0.0)
        return jnp.dot(h1, w128(prefix + "_lin2"),
                       preferred_element_type=jnp.float32) + bias(prefix + "_lin2_b")

    ns, nt = S * B, T * B
    mask_ss = batch_mask(ns, ns)
    mask_tt = mask_ss if nt == ns else batch_mask(nt, nt)
    mask_ts = mask_ss if nt == ns else batch_mask(nt, ns)

    # ---- fc_in + input LayerNorms (two small dots; no in-kernel concat of src/tgt) ----
    win = win_ref[...]
    fc_in_b = bias("fc_in_b")
    x = jnp.dot(src_ref[...], win, preferred_element_type=jnp.float32) + fc_in_b
    y = jnp.dot(tgt_ref[...], win, preferred_element_type=jnp.float32) + fc_in_b
    x = layernorm(x, "src_norm")
    y = layernorm(y, "tgt_norm")

    # ---- encoder: 2 post-norm layers + final norm ----
    for l in range(NUM_LAYERS):
        pre = f"enc{l}"
        x = layernorm(x + self_attention(x, mask_ss, pre), pre + "_n1")
        x = layernorm(x + ffn(x, pre), pre + "_n2")
    mem = layernorm(x, "enc_norm")

    # ---- cross-attention K/V of memory for BOTH decoder layers: one 256-wide matmul ----
    mem_kv = jnp.dot(mem, w64("cross_kv"),
                     preferred_element_type=jnp.float32) + bias("cross_kv_b")

    # ---- decoder: 2 post-norm layers + final norm ----
    for l in range(NUM_LAYERS):
        pre = f"dec{l}"
        y = layernorm(y + self_attention(y, mask_tt, pre + "_self"), pre + "_n1")
        y = layernorm(y + cross_attention(y, mem_kv, mask_ts, l), pre + "_n2")
        y = layernorm(y + ffn(y, pre), pre + "_n3")
    y = layernorm(y, "dec_norm")

    # ---- fc_out (rows stay seq-major -> output is directly (T, B, Dout) row order) ----
    out_ref[...] = (jnp.dot(y, w64("fc_out"), preferred_element_type=jnp.float32)
                    + bias("fc_out_b")).astype(out_ref.dtype)


# ---------------------------------- forward wrapper ---------------------------------------
def numeric_transformer_forward(src, tgt, slabs, *, layouts):
    """src: (S, B, input_dim), tgt: (T, B, input_dim) -> (T, B, output_dim)."""
    S, B, Din = src.shape
    T = tgt.shape[0]
    Dout = layouts["w64"]["fc_out"][1]

    # seq-major flattening (row = seq*B + batch): contiguous reshape, zero-cost, no transpose.
    src2d = src.reshape(S * B, Din)
    tgt2d = tgt.reshape(T * B, Din)

    kernel = functools.partial(_fused_transformer_kernel, S=S, T=T, B=B, layouts=layouts)
    out = pl.pallas_call(
        kernel,
        out_shape=jax.ShapeDtypeStruct((T * B, Dout), jnp.float32),
        compiler_params=pltpu.CompilerParams(vmem_limit_bytes=32 * 1024 * 1024),
    )(src2d, tgt2d, slabs["w_in"], slabs["w64"], slabs["w128"], slabs["bias"])

    return out.reshape(T, B, Dout)  # free reshape: rows already in (t, b) order


# ---------------------------------- parameter packing --------------------------------------
def _pad_cols(a, multiple=128):
    pad = (-a.shape[1]) % multiple
    return jnp.pad(a, ((0, 0), (0, pad))) if pad else a


def pack_params(params):
    """Pack the param pytree into 3 contiguous slabs + fc_in weight, with static layouts."""
    d = D_MODEL

    # ---- (64, W) weight slab: every matrix with 64 input rows, 128-lane aligned sections ----
    w64_parts, w64_layout = [], {}
    off = 0

    def add64(name, arr):
        nonlocal off
        w64_layout[name] = (off, arr.shape[1])
        a = _pad_cols(arr)
        w64_parts.append(a)
        off += a.shape[1]

    for l in range(NUM_LAYERS):
        ep = params["enc_layers"][l]
        add64(f"enc{l}_qkv", ep["attn"]["wqkv"])
        add64(f"enc{l}_wo", ep["attn"]["wo"])
        add64(f"enc{l}_lin1", ep["lin1"][0])
    for l in range(NUM_LAYERS):
        dp = params["dec_layers"][l]
        add64(f"dec{l}_self_qkv", dp["self_attn"]["wqkv"])
        add64(f"dec{l}_self_wo", dp["self_attn"]["wo"])
        add64(f"dec{l}_cross_wq", dp["cross_attn"]["wqkv"][:, :d])
        add64(f"dec{l}_cross_wo", dp["cross_attn"]["wo"])
        add64(f"dec{l}_lin1", dp["lin1"][0])
    # both decoder layers' cross-attention K|V weights fused into one 256-wide section
    cross_kv = jnp.concatenate(
        [params["dec_layers"][l]["cross_attn"]["wqkv"][:, d:] for l in range(NUM_LAYERS)], axis=1)
    add64("cross_kv", cross_kv)
    add64("fc_out", params["fc_out"][0])
    w64_slab = jnp.concatenate(w64_parts, axis=1)

    # ---- (128, W) slab: FFN second linears ----
    w128_parts, w128_layout = [], {}
    off = 0

    def add128(name, arr):
        nonlocal off
        w128_layout[name] = (off, arr.shape[1])
        a = _pad_cols(arr)
        w128_parts.append(a)
        off += a.shape[1]

    for l in range(NUM_LAYERS):
        add128(f"enc{l}_lin2", params["enc_layers"][l]["lin2"][0])
    for l in range(NUM_LAYERS):
        add128(f"dec{l}_lin2", params["dec_layers"][l]["lin2"][0])
    w128_slab = jnp.concatenate(w128_parts, axis=1)

    # ---- bias / LayerNorm slab: one zero-padded 256-wide row per vector ----
    b_rows, b_layout = [], {}

    def addb(name, vec):
        vec = vec.reshape(1, -1)
        b_layout[name] = (len(b_rows), vec.shape[1])
        b_rows.append(jnp.pad(vec, ((0, 0), (0, BIAS_W - vec.shape[1]))))

    addb("fc_in_b", params["fc_in"][1])
    addb("fc_out_b", params["fc_out"][1])
    for nm in ("src_norm", "tgt_norm", "enc_norm", "dec_norm"):
        addb(nm + "_g", params[nm][0])
        addb(nm + "_b", params[nm][1])
    for l in range(NUM_LAYERS):
        ep = params["enc_layers"][l]
        addb(f"enc{l}_qkv_b", ep["attn"]["bqkv"])
        addb(f"enc{l}_wo_b", ep["attn"]["bo"])
        addb(f"enc{l}_lin1_b", ep["lin1"][1])
        addb(f"enc{l}_lin2_b", ep["lin2"][1])
        addb(f"enc{l}_n1_g", ep["norm1"][0]); addb(f"enc{l}_n1_b", ep["norm1"][1])
        addb(f"enc{l}_n2_g", ep["norm2"][0]); addb(f"enc{l}_n2_b", ep["norm2"][1])
    for l in range(NUM_LAYERS):
        dp = params["dec_layers"][l]
        addb(f"dec{l}_self_qkv_b", dp["self_attn"]["bqkv"])
        addb(f"dec{l}_self_wo_b", dp["self_attn"]["bo"])
        addb(f"dec{l}_cross_wq_b", dp["cross_attn"]["bqkv"][:, :d])
        addb(f"dec{l}_cross_wo_b", dp["cross_attn"]["bo"])
        addb(f"dec{l}_lin1_b", dp["lin1"][1])
        addb(f"dec{l}_lin2_b", dp["lin2"][1])
        addb(f"dec{l}_n1_g", dp["norm1"][0]); addb(f"dec{l}_n1_b", dp["norm1"][1])
        addb(f"dec{l}_n2_g", dp["norm2"][0]); addb(f"dec{l}_n2_b", dp["norm2"][1])
        addb(f"dec{l}_n3_g", dp["norm3"][0]); addb(f"dec{l}_n3_b", dp["norm3"][1])
    cross_kv_b = jnp.concatenate(
        [params["dec_layers"][l]["cross_attn"]["bqkv"][:, d:] for l in range(NUM_LAYERS)], axis=1)
    addb("cross_kv_b", cross_kv_b)
    bias_slab = jnp.concatenate(b_rows, axis=0)

    slabs = {"w_in": params["fc_in"][0], "w64": w64_slab, "w128": w128_slab, "bias": bias_slab}
    layouts = {"w64": w64_layout, "w128": w128_layout, "bias": b_layout}
    return slabs, layouts


# ---------------------------------- parameter init ----------------------------------------
def _init_linear(key, din, dout, scale=0.05):
    kw, kb = jax.random.split(key)
    w = jax.random.normal(kw, (din, dout), jnp.float32) * scale
    b = jax.random.normal(kb, (1, dout), jnp.float32) * scale
    return (w, b)


def _init_ln(d):
    return (jnp.ones((1, d), jnp.float32), jnp.zeros((1, d), jnp.float32))


def _init_mha(key, d):
    # NOTE: PyTorch in_proj_weight is (3d, d) applied as x @ W^T; here we store the already
    # transposed (d, 3d) matrix with columns in q|k|v order (heads contiguous inside each part).
    kqkv, ko = jax.random.split(key)
    wqkv, bqkv = _init_linear(kqkv, d, 3 * d)
    wo, bo = _init_linear(ko, d, d)
    return {"wqkv": wqkv, "bqkv": bqkv, "wo": wo, "bo": bo}


def init_params(key, input_dim, output_dim):
    keys = iter(jax.random.split(key, 64))
    params = {
        "fc_in": _init_linear(next(keys), input_dim, D_MODEL),
        "fc_out": _init_linear(next(keys), D_MODEL, output_dim),
        "src_norm": _init_ln(D_MODEL),
        "tgt_norm": _init_ln(D_MODEL),
        "enc_norm": _init_ln(D_MODEL),
        "dec_norm": _init_ln(D_MODEL),
        "enc_layers": [],
        "dec_layers": [],
    }
    for _ in range(NUM_LAYERS):
        params["enc_layers"].append({
            "attn": _init_mha(next(keys), D_MODEL),
            "lin1": _init_linear(next(keys), D_MODEL, DIM_FF),
            "lin2": _init_linear(next(keys), DIM_FF, D_MODEL),
            "norm1": _init_ln(D_MODEL),
            "norm2": _init_ln(D_MODEL),
        })
    for _ in range(NUM_LAYERS):
        params["dec_layers"].append({
            "self_attn": _init_mha(next(keys), D_MODEL),
            "cross_attn": _init_mha(next(keys), D_MODEL),
            "lin1": _init_linear(next(keys), D_MODEL, DIM_FF),
            "lin2": _init_linear(next(keys), DIM_FF, D_MODEL),
            "norm1": _init_ln(D_MODEL),
            "norm2": _init_ln(D_MODEL),
            "norm3": _init_ln(D_MODEL),
        })
    return params


# --------------------------------------- main ---------------------------------------------
if __name__ == "__main__":
    INPUT_DIM = 16
    OUTPUT_DIM = 8
    S, T, B = 8, 8, 2

    root = jax.random.PRNGKey(0)
    kp, ks, kt = jax.random.split(root, 3)
    params = init_params(kp, INPUT_DIM, OUTPUT_DIM)
    slabs, layouts = pack_params(params)   # host-side packing, done once

    src = jax.random.normal(ks, (S, B, INPUT_DIM), jnp.float32)
    tgt = jax.random.normal(kt, (T, B, INPUT_DIM), jnp.float32)

    fwd = jax.jit(functools.partial(numeric_transformer_forward, layouts=layouts))
    out = jax.block_until_ready(fwd(src, tgt, slabs))

    assert out.shape == (T, B, OUTPUT_DIM), out.shape
    assert bool(jnp.all(jnp.isfinite(out)))
    print("KERNEL_OK")
</pallas_src>

<mosaic_0001>
module attributes {stable_mosaic.version = 11 : i64} {
  func.func @_fused_transformer_kernel(%arg0: memref<16x16xf32, #tpu.memory_space<vmem>>, %arg1: memref<16x16xf32, #tpu.memory_space<vmem>>, %arg2: memref<16x64xf32, #tpu.memory_space<vmem>>, %arg3: memref<64x2944xf32, #tpu.memory_space<vmem>>, %arg4: memref<128x512xf32, #tpu.memory_space<vmem>>, %arg5: memref<51x256xf32, #tpu.memory_space<vmem>>, %arg6: memref<16x8xf32, #tpu.memory_space<vmem>>) attributes {dimension_semantics = [], scalar_prefetch = 0 : i64, scratch_operands = 0 : i64, tpu.core_type = #tpu.core_type<tc>} {
    %0 = tpu.iota {dimensions = array<i32: 0>} : vector<16x16xi32>
    %1 = tpu.iota {dimensions = array<i32: 1>} : vector<16x16xi32>
    %c2_i32 = arith.constant 2 : i32
    %c0_i32 = arith.constant 0 : i32
    %2 = arith.cmpi eq, %c2_i32, %c0_i32 : i32
    %c1_i32 = arith.constant 1 : i32
    %3 = arith.select %2, %c1_i32, %c2_i32 : i32
    %4 = vector.broadcast %3 : i32 to vector<16x16xi32>
    %5 = arith.remsi %0, %4 : vector<16x16xi32>
    %c0_i32_0 = arith.constant 0 : i32
    %6 = vector.broadcast %c0_i32_0 : i32 to vector<16x16xi32>
    %7 = arith.cmpi ne, %5, %6 : vector<16x16xi32>
    %c0_i32_1 = arith.constant 0 : i32
    %8 = vector.broadcast %c0_i32_1 : i32 to vector<16x16xi32>
    %9 = arith.cmpi slt, %5, %8 : vector<16x16xi32>
    %c0_i32_2 = arith.constant 0 : i32
    %10 = arith.cmpi slt, %3, %c0_i32_2 : i32
    %11 = vector.broadcast %10 : i1 to vector<16x16xi1>
    %12 = vector.broadcast %11 : vector<16x16xi1> to vector<16x16xi1>
    %13 = arith.xori %9, %12 : vector<16x16xi1>
    %14 = arith.andi %13, %7 : vector<16x16xi1>
    %15 = vector.broadcast %3 : i32 to vector<16x16xi32>
    %16 = arith.addi %5, %15 : vector<16x16xi32>
    %17 = arith.select %14, %16, %5 : vector<16x16xi1>, vector<16x16xi32>
    %c2_i32_3 = arith.constant 2 : i32
    %c0_i32_4 = arith.constant 0 : i32
    %18 = arith.cmpi eq, %c2_i32_3, %c0_i32_4 : i32
    %c1_i32_5 = arith.constant 1 : i32
    %19 = arith.select %18, %c1_i32_5, %c2_i32_3 : i32
    %20 = vector.broadcast %19 : i32 to vector<16x16xi32>
    %21 = arith.remsi %1, %20 : vector<16x16xi32>
    %c0_i32_6 = arith.constant 0 : i32
    %22 = vector.broadcast %c0_i32_6 : i32 to vector<16x16xi32>
    %23 = arith.cmpi ne, %21, %22 : vector<16x16xi32>
    %c0_i32_7 = arith.constant 0 : i32
    %24 = vector.broadcast %c0_i32_7 : i32 to vector<16x16xi32>
    %25 = arith.cmpi slt, %21, %24 : vector<16x16xi32>
    %c0_i32_8 = arith.constant 0 : i32
    %26 = arith.cmpi slt, %19, %c0_i32_8 : i32
    %27 = vector.broadcast %26 : i1 to vector<16x16xi1>
    %28 = vector.broadcast %27 : vector<16x16xi1> to vector<16x16xi1>
    %29 = arith.xori %25, %28 : vector<16x16xi1>
    %30 = arith.andi %29, %23 : vector<16x16xi1>
    %31 = vector.broadcast %19 : i32 to vector<16x16xi32>
    %32 = arith.addi %21, %31 : vector<16x16xi32>
    %33 = arith.select %30, %32, %21 : vector<16x16xi1>, vector<16x16xi32>
    %34 = arith.cmpi eq, %17, %33 : vector<16x16xi32>
    %cst = arith.constant 0.000000e+00 : f32
    %cst_9 = arith.constant -1.000000e+30 : f32
    %35 = vector.broadcast %cst : f32 to vector<16x16xf32>
    %36 = vector.broadcast %cst_9 : f32 to vector<16x16xf32>
    %37 = arith.select %34, %35, %36 : vector<16x16xi1>, vector<16x16xf32>
    %c0 = arith.constant 0 : index
    %c0_10 = arith.constant 0 : index
    %38 = vector.load %arg2[%c0, %c0_10] : memref<16x64xf32, #tpu.memory_space<vmem>>, vector<16x64xf32>
    %c0_11 = arith.constant 0 : index
    %c0_12 = arith.constant 0 : index
    %39 = vector.load %arg5[%c0_11, %c0_12] : memref<51x256xf32, #tpu.memory_space<vmem>>, vector<1x64xf32>
    %c0_13 = arith.constant 0 : index
    %c0_14 = arith.constant 0 : index
    %40 = vector.load %arg0[%c0_13, %c0_14] : memref<16x16xf32, #tpu.memory_space<vmem>>, vector<16x16xf32>
    %cst_15 = arith.constant dense<0.000000e+00> : vector<16x64xf32>
    %41 = tpu.matmul %40, %38, %cst_15 {dimension_numbers = #tpu.dot_dimension_numbers<[1], [0], [0], [1], [0, 0, 1, 1], [], []>} : vector<16x16xf32>, vector<16x64xf32>, vector<16x64xf32> -> vector<16x64xf32>
    %42 = vector.broadcast %39 : vector<1x64xf32> to vector<16x64xf32>
    %43 = arith.addf %41, %42 : vector<16x64xf32>
    %c0_16 = arith.constant 0 : index
    %c0_17 = arith.constant 0 : index
    %44 = vector.load %arg1[%c0_16, %c0_17] : memref<16x16xf32, #tpu.memory_space<vmem>>, vector<16x16xf32>
    %cst_18 = arith.constant dense<0.000000e+00> : vector<16x64xf32>
    %45 = tpu.matmul %44, %38, %cst_18 {dimension_numbers = #tpu.dot_dimension_numbers<[1], [0], [0], [1], [0, 0, 1, 1], [], []>} : vector<16x16xf32>, vector<16x64xf32>, vector<16x64xf32> -> vector<16x64xf32>
    %46 = vector.broadcast %39 : vector<1x64xf32> to vector<16x64xf32>
    %47 = arith.addf %45, %46 : vector<16x64xf32>
    %c2 = arith.constant 2 : index
    %c0_19 = arith.constant 0 : index
    %48 = vector.load %arg5[%c2, %c0_19] : memref<51x256xf32, #tpu.memory_space<vmem>>, vector<1x64xf32>
    %c3 = arith.constant 3 : index
    %c0_20 = arith.constant 0 : index
    %49 = vector.load %arg5[%c3, %c0_20] : memref<51x256xf32, #tpu.memory_space<vmem>>, vector<1x64xf32>
    %cst_21 = arith.constant dense<0.000000e+00> : vector<16xf32>
    %50 = vector.multi_reduction <add>, %43, %cst_21 [1] : vector<16x64xf32> to vector<16xf32>
    %51 = vector.shape_cast %50 : vector<16xf32> to vector<16x1xf32>
    %cst_22 = arith.constant 6.400000e+01 : f32
    %52 = vector.broadcast %cst_22 : f32 to vector<16x1xf32>
    %53 = arith.divf %51, %52 : vector<16x1xf32>
    %54 = vector.broadcast %53 : vector<16x1xf32> to vector<16x64xf32>
    %55 = arith.subf %43, %54 : vector<16x64xf32>
    %56 = arith.mulf %55, %55 : vector<16x64xf32>
    %cst_23 = arith.constant dense<0.000000e+00> : vector<16xf32>
    %57 = vector.multi_reduction <add>, %56, %cst_23 [1] : vector<16x64xf32> to vector<16xf32>
    %58 = vector.shape_cast %57 : vector<16xf32> to vector<16x1xf32>
    %cst_24 = arith.constant 6.400000e+01 : f32
    %59 = vector.broadcast %cst_24 : f32 to vector<16x1xf32>
    %60 = arith.divf %58, %59 : vector<16x1xf32>
    %61 = vector.broadcast %53 : vector<16x1xf32> to vector<16x64xf32>
    %62 = arith.subf %43, %61 : vector<16x64xf32>
    %cst_25 = arith.constant 9.99999974E-6 : f32
    %63 = vector.broadcast %cst_25 : f32 to vector<16x1xf32>
    %64 = arith.addf %60, %63 : vector<16x1xf32>
    %65 = math.rsqrt %64 : vector<16x1xf32>
    %66 = vector.broadcast %65 : vector<16x1xf32> to vector<16x64xf32>
    %67 = arith.mulf %62, %66 : vector<16x64xf32>
    %68 = vector.broadcast %48 : vector<1x64xf32> to vector<16x64xf32>
    %69 = arith.mulf %67, %68 : vector<16x64xf32>
    %70 = vector.broadcast %49 : vector<1x64xf32> to vector<16x64xf32>
    %71 = arith.addf %69, %70 : vector<16x64xf32>
    %c4 = arith.constant 4 : index
    %c0_26 = arith.constant 0 : index
    %72 = vector.load %arg5[%c4, %c0_26] : memref<51x256xf32, #tpu.memory_space<vmem>>, vector<1x64xf32>
    %c5 = arith.constant 5 : index
    %c0_27 = arith.constant 0 : index
    %73 = vector.load %arg5[%c5, %c0_27] : memref<51x256xf32, #tpu.memory_space<vmem>>, vector<1x64xf32>
    %cst_28 = arith.constant dense<0.000000e+00> : vector<16xf32>
    %74 = vector.multi_reduction <add>, %47, %cst_28 [1] : vector<16x64xf32> to vector<16xf32>
    %75 = vector.shape_cast %74 : vector<16xf32> to vector<16x1xf32>
    %cst_29 = arith.constant 6.400000e+01 : f32
    %76 = vector.broadcast %cst_29 : f32 to vector<16x1xf32>
    %77 = arith.divf %75, %76 : vector<16x1xf32>
    %78 = vector.broadcast %77 : vector<16x1xf32> to vector<16x64xf32>
    %79 = arith.subf %47, %78 : vector<16x64xf32>
    %80 = arith.mulf %79, %79 : vector<16x64xf32>
    %cst_30 = arith.constant dense<0.000000e+00> : vector<16xf32>
    %81 = vector.multi_reduction <add>, %80, %cst_30 [1] : vector<16x64xf32> to vector<16xf32>
    %82 = vector.shape_cast %81 : vector<16xf32> to vector<16x1xf32>
    %cst_31 = arith.constant 6.400000e+01 : f32
    %83 = vector.broadcast %cst_31 : f32 to vector<16x1xf32>
    %84 = arith.divf %82, %83 : vector<16x1xf32>
    %85 = vector.broadcast %77 : vector<16x1xf32> to vector<16x64xf32>
    %86 = arith.subf %47, %85 : vector<16x64xf32>
    %cst_32 = arith.constant 9.99999974E-6 : f32
    %87 = vector.broadcast %cst_32 : f32 to vector<16x1xf32>
    %88 = arith.addf %84, %87 : vector<16x1xf32>
    %89 = math.rsqrt %88 : vector<16x1xf32>
    %90 = vector.broadcast %89 : vector<16x1xf32> to vector<16x64xf32>
    %91 = arith.mulf %86, %90 : vector<16x64xf32>
    %92 = vector.broadcast %72 : vector<1x64xf32> to vector<16x64xf32>
    %93 = arith.mulf %91, %92 : vector<16x64xf32>
    %94 = vector.broadcast %73 : vector<1x64xf32> to vector<16x64xf32>
    %95 = arith.addf %93, %94 : vector<16x64xf32>
    %c0_33 = arith.constant 0 : index
    %c0_34 = arith.constant 0 : index
    %96 = vector.load %arg3[%c0_33, %c0_34] : memref<64x2944xf32, #tpu.memory_space<vmem>>, vector<64x192xf32>
    %cst_35 = arith.constant dense<0.000000e+00> : vector<16x192xf32>
    %97 = tpu.matmul %71, %96, %cst_35 {dimension_numbers = #tpu.dot_dimension_numbers<[1], [0], [0], [1], [0, 0, 1, 1], [], []>} : vector<16x64xf32>, vector<64x192xf32>, vector<16x192xf32> -> vector<16x192xf32>
    %c10 = arith.constant 10 : index
    %c0_36 = arith.constant 0 : index
    %98 = vector.load %arg5[%c10, %c0_36] : memref<51x256xf32, #tpu.memory_space<vmem>>, vector<1x192xf32>
    %99 = vector.broadcast %98 : vector<1x192xf32> to vector<16x192xf32>
    %100 = arith.addf %97, %99 : vector<16x192xf32>
    %101 = vector.extract_strided_slice %100 {offsets = [0, 0], sizes = [16, 64], strides = [1, 1]} : vector<16x192xf32> to vector<16x64xf32>
    %102 = vector.extract_strided_slice %100 {offsets = [0, 64], sizes = [16, 64], strides = [1, 1]} : vector<16x192xf32> to vector<16x64xf32>
    %103 = vector.extract_strided_slice %100 {offsets = [0, 128], sizes = [16, 64], strides = [1, 1]} : vector<16x192xf32> to vector<16x64xf32>
    %104 = vector.extract_strided_slice %101 {offsets = [0, 0], sizes = [16, 16], strides = [1, 1]} : vector<16x64xf32> to vector<16x16xf32>
    %105 = vector.extract_strided_slice %102 {offsets = [0, 0], sizes = [16, 16], strides = [1, 1]} : vector<16x64xf32> to vector<16x16xf32>
    %106 = vector.extract_strided_slice %103 {offsets = [0, 0], sizes = [16, 16], strides = [1, 1]} : vector<16x64xf32> to vector<16x16xf32>
    %cst_37 = arith.constant dense<0.000000e+00> : vector<16x16xf32>
    %107 = tpu.matmul %104, %105, %cst_37 {dimension_numbers = #tpu.dot_dimension_numbers<[1], [1], [0], [0], [0, 0, 1, 0], [], []>} : vector<16x16xf32>, vector<16x16xf32>, vector<16x16xf32> -> vector<16x16xf32>
    %cst_38 = arith.constant 2.500000e-01 : f32
    %108 = vector.broadcast %cst_38 : f32 to vector<16x16xf32>
    %109 = arith.mulf %107, %108 : vector<16x16xf32>
    %110 = arith.addf %109, %37 : vector<16x16xf32>
    %cst_39 = arith.constant dense<0xFF800000> : vector<16xf32>
    %111 = vector.multi_reduction <maximumf>, %110, %cst_39 [1] : vector<16x16xf32> to vector<16xf32>
    %112 = vector.shape_cast %111 : vector<16xf32> to vector<16x1xf32>
    %113 = vector.broadcast %112 : vector<16x1xf32> to vector<16x16xf32>
    %114 = arith.subf %110, %113 : vector<16x16xf32>
    %115 = math.exp %114 : vector<16x16xf32>
    %cst_40 = arith.constant dense<0.000000e+00> : vector<16xf32>
    %116 = vector.multi_reduction <add>, %115, %cst_40 [1] : vector<16x16xf32> to vector<16xf32>
    %117 = vector.shape_cast %116 : vector<16xf32> to vector<16x1xf32>
    %118 = tpu.reciprocal %117 {approx = true} : vector<16x1xf32> -> vector<16x1xf32>
    %119 = vector.broadcast %118 : vector<16x1xf32> to vector<16x16xf32>
    %120 = arith.mulf %115, %119 : vector<16x16xf32>
    %cst_41 = arith.constant dense<0.000000e+00> : vector<16x16xf32>
    %121 = tpu.matmul %120, %106, %cst_41 {dimension_numbers = #tpu.dot_dimension_numbers<[1], [0], [0], [1], [0, 0, 1, 1], [], []>} : vector<16x16xf32>, vector<16x16xf32>, vector<16x16xf32> -> vector<16x16xf32>
    %122 = vector.extract_strided_slice %101 {offsets = [0, 16], sizes = [16, 16], strides = [1, 1]} : vector<16x64xf32> to vector<16x16xf32>
    %123 = vector.extract_strided_slice %102 {offsets = [0, 16], sizes = [16, 16], strides = [1, 1]} : vector<16x64xf32> to vector<16x16xf32>
    %124 = vector.extract_strided_slice %103 {offsets = [0, 16], sizes = [16, 16], strides = [1, 1]} : vector<16x64xf32> to vector<16x16xf32>
    %cst_42 = arith.constant dense<0.000000e+00> : vector<16x16xf32>
    %125 = tpu.matmul %122, %123, %cst_42 {dimension_numbers = #tpu.dot_dimension_numbers<[1], [1], [0], [0], [0, 0, 1, 0], [], []>} : vector<16x16xf32>, vector<16x16xf32>, vector<16x16xf32> -> vector<16x16xf32>
    %cst_43 = arith.constant 2.500000e-01 : f32
    %126 = vector.broadcast %cst_43 : f32 to vector<16x16xf32>
    %127 = arith.mulf %125, %126 : vector<16x16xf32>
    %128 = arith.addf %127, %37 : vector<16x16xf32>
    %cst_44 = arith.constant dense<0xFF800000> : vector<16xf32>
    %129 = vector.multi_reduction <maximumf>, %128, %cst_44 [1] : vector<16x16xf32> to vector<16xf32>
    %130 = vector.shape_cast %129 : vector<16xf32> to vector<16x1xf32>
    %131 = vector.broadcast %130 : vector<16x1xf32> to vector<16x16xf32>
    %132 = arith.subf %128, %131 : vector<16x16xf32>
    %133 = math.exp %132 : vector<16x16xf32>
    %cst_45 = arith.constant dense<0.000000e+00> : vector<16xf32>
    %134 = vector.multi_reduction <add>, %133, %cst_45 [1] : vector<16x16xf32> to vector<16xf32>
    %135 = vector.shape_cast %134 : vector<16xf32> to vector<16x1xf32>
    %136 = tpu.reciprocal %135 {approx = true} : vector<16x1xf32> -> vector<16x1xf32>
    %137 = vector.broadcast %136 : vector<16x1xf32> to vector<16x16xf32>
    %138 = arith.mulf %133, %137 : vector<16x16xf32>
    %cst_46 = arith.constant dense<0.000000e+00> : vector<16x16xf32>
    %139 = tpu.matmul %138, %124, %cst_46 {dimension_numbers = #tpu.dot_dimension_numbers<[1], [0], [0], [1], [0, 0, 1, 1], [], []>} : vector<16x16xf32>, vector<16x16xf32>, vector<16x16xf32> -> vector<16x16xf32>
    %140 = vector.extract_strided_slice %101 {offsets = [0, 32], sizes = [16, 16], strides = [1, 1]} : vector<16x64xf32> to vector<16x16xf32>
    %141 = vector.extract_strided_slice %102 {offsets = [0, 32], sizes = [16, 16], strides = [1, 1]} : vector<16x64xf32> to vector<16x16xf32>
    %142 = vector.extract_strided_slice %103 {offsets = [0, 32], sizes = [16, 16], strides = [1, 1]} : vector<16x64xf32> to vector<16x16xf32>
    %cst_47 = arith.constant dense<0.000000e+00> : vector<16x16xf32>
    %143 = tpu.matmul %140, %141, %cst_47 {dimension_numbers = #tpu.dot_dimension_numbers<[1], [1], [0], [0], [0, 0, 1, 0], [], []>} : vector<16x16xf32>, vector<16x16xf32>, vector<16x16xf32> -> vector<16x16xf32>
    %cst_48 = arith.constant 2.500000e-01 : f32
    %144 = vector.broadcast %cst_48 : f32 to vector<16x16xf32>
    %145 = arith.mulf %143, %144 : vector<16x16xf32>
    %146 = arith.addf %145, %37 : vector<16x16xf32>
    %cst_49 = arith.constant dense<0xFF800000> : vector<16xf32>
    %147 = vector.multi_reduction <maximumf>, %146, %cst_49 [1] : vector<16x16xf32> to vector<16xf32>
    %148 = vector.shape_cast %147 : vector<16xf32> to vector<16x1xf32>
    %149 = vector.broadcast %148 : vector<16x1xf32> to vector<16x16xf32>
    %150 = arith.subf %146, %149 : vector<16x16xf32>
    %151 = math.exp %150 : vector<16x16xf32>
    %cst_50 = arith.constant dense<0.000000e+00> : vector<16xf32>
    %152 = vector.multi_reduction <add>, %151, %cst_50 [1] : vector<16x16xf32> to vector<16xf32>
    %153 = vector.shape_cast %152 : vector<16xf32> to vector<16x1xf32>
    %154 = tpu.reciprocal %153 {approx = true} : vector<16x1xf32> -> vector<16x1xf32>
    %155 = vector.broadcast %154 : vector<16x1xf32> to vector<16x16xf32>
    %156 = arith.mulf %151, %155 : vector<16x16xf32>
    %cst_51 = arith.constant dense<0.000000e+00> : vector<16x16xf32>
    %157 = tpu.matmul %156, %142, %cst_51 {dimension_numbers = #tpu.dot_dimension_numbers<[1], [0], [0], [1], [0, 0, 1, 1], [], []>} : vector<16x16xf32>, vector<16x16xf32>, vector<16x16xf32> -> vector<16x16xf32>
    %158 = vector.extract_strided_slice %101 {offsets = [0, 48], sizes = [16, 16], strides = [1, 1]} : vector<16x64xf32> to vector<16x16xf32>
    %159 = vector.extract_strided_slice %102 {offsets = [0, 48], sizes = [16, 16], strides = [1, 1]} : vector<16x64xf32> to vector<16x16xf32>
    %160 = vector.extract_strided_slice %103 {offsets = [0, 48], sizes = [16, 16], strides = [1, 1]} : vector<16x64xf32> to vector<16x16xf32>
    %cst_52 = arith.constant dense<0.000000e+00> : vector<16x16xf32>
    %161 = tpu.matmul %158, %159, %cst_52 {dimension_numbers = #tpu.dot_dimension_numbers<[1], [1], [0], [0], [0, 0, 1, 0], [], []>} : vector<16x16xf32>, vector<16x16xf32>, vector<16x16xf32> -> vector<16x16xf32>
    %cst_53 = arith.constant 2.500000e-01 : f32
    %162 = vector.broadcast %cst_53 : f32 to vector<16x16xf32>
    %163 = arith.mulf %161, %162 : vector<16x16xf32>
    %164 = arith.addf %163, %37 : vector<16x16xf32>
    %cst_54 = arith.constant dense<0xFF800000> : vector<16xf32>
    %165 = vector.multi_reduction <maximumf>, %164, %cst_54 [1] : vector<16x16xf32> to vector<16xf32>
    %166 = vector.shape_cast %165 : vector<16xf32> to vector<16x1xf32>
    %167 = vector.broadcast %166 : vector<16x1xf32> to vector<16x16xf32>
    %168 = arith.subf %164, %167 : vector<16x16xf32>
    %169 = math.exp %168 : vector<16x16xf32>
    %cst_55 = arith.constant dense<0.000000e+00> : vector<16xf32>
    %170 = vector.multi_reduction <add>, %169, %cst_55 [1] : vector<16x16xf32> to vector<16xf32>
    %171 = vector.shape_cast %170 : vector<16xf32> to vector<16x1xf32>
    %172 = tpu.reciprocal %171 {approx = true} : vector<16x1xf32> -> vector<16x1xf32>
    %173 = vector.broadcast %172 : vector<16x1xf32> to vector<16x16xf32>
    %174 = arith.mulf %169, %173 : vector<16x16xf32>
    %cst_56 = arith.constant dense<0.000000e+00> : vector<16x16xf32>
    %175 = tpu.matmul %174, %160, %cst_56 {dimension_numbers = #tpu.dot_dimension_numbers<[1], [0], [0], [1], [0, 0, 1, 1], [], []>} : vector<16x16xf32>, vector<16x16xf32>, vector<16x16xf32> -> vector<16x16xf32>
    %176 = tpu.concatenate %121, %139, %157, %175 in 1 : vector<16x16xf32>, vector<16x16xf32>, vector<16x16xf32>, vector<16x16xf32> -> vector<16x64xf32>
    %c0_57 = arith.constant 0 : index
    %c256 = arith.constant 256 : index
    %177 = vector.load %arg3[%c0_57, %c256] : memref<64x2944xf32, #tpu.memory_space<vmem>>, vector<64x64xf32>
    %cst_58 = arith.constant dense<0.000000e+00> : vector<16x64xf32>
    %178 = tpu.matmul %176, %177, %cst_58 {dimension_numbers = #tpu.dot_dimension_numbers<[1], [0], [0], [1], [0, 0, 1, 1], [], []>} : vector<16x64xf32>, vector<64x64xf32>, vector<16x64xf32> -> vector<16x64xf32>
    %c11 = arith.constant 11 : index
    %c0_59 = arith.constant 0 : index
    %179 = vector.load %arg5[%c11, %c0_59] : memref<51x256xf32, #tpu.memory_space<vmem>>, vector<1x64xf32>
    %180 = vector.broadcast %179 : vector<1x64xf32> to vector<16x64xf32>
    %181 = arith.addf %178, %180 : vector<16x64xf32>
    %182 = arith.addf %71, %181 : vector<16x64xf32>
    %c14 = arith.constant 14 : index
    %c0_60 = arith.constant 0 : index
    %183 = vector.load %arg5[%c14, %c0_60] : memref<51x256xf32, #tpu.memory_space<vmem>>, vector<1x64xf32>
    %c15 = arith.constant 15 : index
    %c0_61 = arith.constant 0 : index
    %184 = vector.load %arg5[%c15, %c0_61] : memref<51x256xf32, #tpu.memory_space<vmem>>, vector<1x64xf32>
    %cst_62 = arith.constant dense<0.000000e+00> : vector<16xf32>
    %185 = vector.multi_reduction <add>, %182, %cst_62 [1] : vector<16x64xf32> to vector<16xf32>
    %186 = vector.shape_cast %185 : vector<16xf32> to vector<16x1xf32>
    %cst_63 = arith.constant 6.400000e+01 : f32
    %187 = vector.broadcast %cst_63 : f32 to vector<16x1xf32>
    %188 = arith.divf %186, %187 : vector<16x1xf32>
    %189 = vector.broadcast %188 : vector<16x1xf32> to vector<16x64xf32>
    %190 = arith.subf %182, %189 : vector<16x64xf32>
    %191 = arith.mulf %190, %190 : vector<16x64xf32>
    %cst_64 = arith.constant dense<0.000000e+00> : vector<16xf32>
    %192 = vector.multi_reduction <add>, %191, %cst_64 [1] : vector<16x64xf32> to vector<16xf32>
    %193 = vector.shape_cast %192 : vector<16xf32> to vector<16x1xf32>
    %cst_65 = arith.constant 6.400000e+01 : f32
    %194 = vector.broadcast %cst_65 : f32 to vector<16x1xf32>
    %195 = arith.divf %193, %194 : vector<16x1xf32>
    %196 = vector.broadcast %188 : vector<16x1xf32> to vector<16x64xf32>
    %197 = arith.subf %182, %196 : vector<16x64xf32>
    %cst_66 = arith.constant 9.99999974E-6 : f32
    %198 = vector.broadcast %cst_66 : f32 to vector<16x1xf32>
    %199 = arith.addf %195, %198 : vector<16x1xf32>
    %200 = math.rsqrt %199 : vector<16x1xf32>
    %201 = vector.broadcast %200 : vector<16x1xf32> to vector<16x64xf32>
    %202 = arith.mulf %197, %201 : vector<16x64xf32>
    %203 = vector.broadcast %183 : vector<1x64xf32> to vector<16x64xf32>
    %204 = arith.mulf %202, %203 : vector<16x64xf32>
    %205 = vector.broadcast %184 : vector<1x64xf32> to vector<16x64xf32>
    %206 = arith.addf %204, %205 : vector<16x64xf32>
    %c0_67 = arith.constant 0 : index
    %c384 = arith.constant 384 : index
    %207 = vector.load %arg3[%c0_67, %c384] : memref<64x2944xf32, #tpu.memory_space<vmem>>, vector<64x128xf32>
    %cst_68 = arith.constant dense<0.000000e+00> : vector<16x128xf32>
    %208 = tpu.matmul %206, %207, %cst_68 {dimension_numbers = #tpu.dot_dimension_numbers<[1], [0], [0], [1], [0, 0, 1, 1], [], []>} : vector<16x64xf32>, vector<64x128xf32>, vector<16x128xf32> -> vector<16x128xf32>
    %c12 = arith.constant 12 : index
    %c0_69 = arith.constant 0 : index
    %209 = vector.load %arg5[%c12, %c0_69] : memref<51x256xf32, #tpu.memory_space<vmem>>, vector<1x128xf32>
    %210 = vector.broadcast %209 : vector<1x128xf32> to vector<16x128xf32>
    %211 = arith.addf %208, %210 : vector<16x128xf32>
    %cst_70 = arith.constant 0.000000e+00 : f32
    %212 = vector.broadcast %cst_70 : f32 to vector<16x128xf32>
    %213 = arith.maximumf %211, %212 : vector<16x128xf32>
    %c0_71 = arith.constant 0 : index
    %c0_72 = arith.constant 0 : index
    %214 = vector.load %arg4[%c0_71, %c0_72] : memref<128x512xf32, #tpu.memory_space<vmem>>, vector<128x64xf32>
    %cst_73 = arith.constant dense<0.000000e+00> : vector<16x64xf32>
    %215 = tpu.matmul %213, %214, %cst_73 {dimension_numbers = #tpu.dot_dimension_numbers<[1], [0], [0], [1], [0, 0, 1, 1], [], []>} : vector<16x128xf32>, vector<128x64xf32>, vector<16x64xf32> -> vector<16x64xf32>
    %c13 = arith.constant 13 : index
    %c0_74 = arith.constant 0 : index
    %216 = vector.load %arg5[%c13, %c0_74] : memref<51x256xf32, #tpu.memory_space<vmem>>, vector<1x64xf32>
    %217 = vector.broadcast %216 : vector<1x64xf32> to vector<16x64xf32>
    %218 = arith.addf %215, %217 : vector<16x64xf32>
    %219 = arith.addf %206, %218 : vector<16x64xf32>
    %c16 = arith.constant 16 : index
    %c0_75 = arith.constant 0 : index
    %220 = vector.load %arg5[%c16, %c0_75] : memref<51x256xf32, #tpu.memory_space<vmem>>, vector<1x64xf32>
    %c17 = arith.constant 17 : index
    %c0_76 = arith.constant 0 : index
    %221 = vector.load %arg5[%c17, %c0_76] : memref<51x256xf32, #tpu.memory_space<vmem>>, vector<1x64xf32>
    %cst_77 = arith.constant dense<0.000000e+00> : vector<16xf32>
    %222 = vector.multi_reduction <add>, %219, %cst_77 [1] : vector<16x64xf32> to vector<16xf32>
    %223 = vector.shape_cast %222 : vector<16xf32> to vector<16x1xf32>
    %cst_78 = arith.constant 6.400000e+01 : f32
    %224 = vector.broadcast %cst_78 : f32 to vector<16x1xf32>
    %225 = arith.divf %223, %224 : vector<16x1xf32>
    %226 = vector.broadcast %225 : vector<16x1xf32> to vector<16x64xf32>
    %227 = arith.subf %219, %226 : vector<16x64xf32>
    %228 = arith.mulf %227, %227 : vector<16x64xf32>
    %cst_79 = arith.constant dense<0.000000e+00> : vector<16xf32>
    %229 = vector.multi_reduction <add>, %228, %cst_79 [1] : vector<16x64xf32> to vector<16xf32>
    %230 = vector.shape_cast %229 : vector<16xf32> to vector<16x1xf32>
    %cst_80 = arith.constant 6.400000e+01 : f32
    %231 = vector.broadcast %cst_80 : f32 to vector<16x1xf32>
    %232 = arith.divf %230, %231 : vector<16x1xf32>
    %233 = vector.broadcast %225 : vector<16x1xf32> to vector<16x64xf32>
    %234 = arith.subf %219, %233 : vector<16x64xf32>
    %cst_81 = arith.constant 9.99999974E-6 : f32
    %235 = vector.broadcast %cst_81 : f32 to vector<16x1xf32>
    %236 = arith.addf %232, %235 : vector<16x1xf32>
    %237 = math.rsqrt %236 : vector<16x1xf32>
    %238 = vector.broadcast %237 : vector<16x1xf32> to vector<16x64xf32>
    %239 = arith.mulf %234, %238 : vector<16x64xf32>
    %240 = vector.broadcast %220 : vector<1x64xf32> to vector<16x64xf32>
    %241 = arith.mulf %239, %240 : vector<16x64xf32>
    %242 = vector.broadcast %221 : vector<1x64xf32> to vector<16x64xf32>
    %243 = arith.addf %241, %242 : vector<16x64xf32>
    %c0_82 = arith.constant 0 : index
    %c512 = arith.constant 512 : index
    %244 = vector.load %arg3[%c0_82, %c512] : memref<64x2944xf32, #tpu.memory_space<vmem>>, vector<64x192xf32>
    %cst_83 = arith.constant dense<0.000000e+00> : vector<16x192xf32>
    %245 = tpu.matmul %243, %244, %cst_83 {dimension_numbers = #tpu.dot_dimension_numbers<[1], [0], [0], [1], [0, 0, 1, 1], [], []>} : vector<16x64xf32>, vector<64x192xf32>, vector<16x192xf32> -> vector<16x192xf32>
    %c18 = arith.constant 18 : index
    %c0_84 = arith.constant 0 : index
    %246 = vector.load %arg5[%c18, %c0_84] : memref<51x256xf32, #tpu.memory_space<vmem>>, vector<1x192xf32>
    %247 = vector.broadcast %246 : vector<1x192xf32> to vector<16x192xf32>
    %248 = arith.addf %245, %247 : vector<16x192xf32>
    %249 = vector.extract_strided_slice %248 {offsets = [0, 0], sizes = [16, 64], strides = [1, 1]} : vector<16x192xf32> to vector<16x64xf32>
    %250 = vector.extract_strided_slice %248 {offsets = [0, 64], sizes = [16, 64], strides = [1, 1]} : vector<16x192xf32> to vector<16x64xf32>
    %251 = vector.extract_strided_slice %248 {offsets = [0, 128], sizes = [16, 64], strides = [1, 1]} : vector<16x192xf32> to vector<16x64xf32>
    %252 = vector.extract_strided_slice %249 {offsets = [0, 0], sizes = [16, 16], strides = [1, 1]} : vector<16x64xf32> to vector<16x16xf32>
    %253 = vector.extract_strided_slice %250 {offsets = [0, 0], sizes = [16, 16], strides = [1, 1]} : vector<16x64xf32> to vector<16x16xf32>
    %254 = vector.extract_strided_slice %251 {offsets = [0, 0], sizes = [16, 16], strides = [1, 1]} : vector<16x64xf32> to vector<16x16xf32>
    %cst_85 = arith.constant dense<0.000000e+00> : vector<16x16xf32>
    %255 = tpu.matmul %252, %253, %cst_85 {dimension_numbers = #tpu.dot_dimension_numbers<[1], [1], [0], [0], [0, 0, 1, 0], [], []>} : vector<16x16xf32>, vector<16x16xf32>, vector<16x16xf32> -> vector<16x16xf32>
    %cst_86 = arith.constant 2.500000e-01 : f32
    %256 = vector.broadcast %cst_86 : f32 to vector<16x16xf32>
    %257 = arith.mulf %255, %256 : vector<16x16xf32>
    %258 = arith.addf %257, %37 : vector<16x16xf32>
    %cst_87 = arith.constant dense<0xFF800000> : vector<16xf32>
    %259 = vector.multi_reduction <maximumf>, %258, %cst_87 [1] : vector<16x16xf32> to vector<16xf32>
    %260 = vector.shape_cast %259 : vector<16xf32> to vector<16x1xf32>
    %261 = vector.broadcast %260 : vector<16x1xf32> to vector<16x16xf32>
    %262 = arith.subf %258, %261 : vector<16x16xf32>
    %263 = math.exp %262 : vector<16x16xf32>
    %cst_88 = arith.constant dense<0.000000e+00> : vector<16xf32>
    %264 = vector.multi_reduction <add>, %263, %cst_88 [1] : vector<16x16xf32> to vector<16xf32>
    %265 = vector.shape_cast %264 : vector<16xf32> to vector<16x1xf32>
    %266 = tpu.reciprocal %265 {approx = true} : vector<16x1xf32> -> vector<16x1xf32>
    %267 = vector.broadcast %266 : vector<16x1xf32> to vector<16x16xf32>
    %268 = arith.mulf %263, %267 : vector<16x16xf32>
    %cst_89 = arith.constant dense<0.000000e+00> : vector<16x16xf32>
    %269 = tpu.matmul %268, %254, %cst_89 {dimension_numbers = #tpu.dot_dimension_numbers<[1], [0], [0], [1], [0, 0, 1, 1], [], []>} : vector<16x16xf32>, vector<16x16xf32>, vector<16x16xf32> -> vector<16x16xf32>
    %270 = vector.extract_strided_slice %249 {offsets = [0, 16], sizes = [16, 16], strides = [1, 1]} : vector<16x64xf32> to vector<16x16xf32>
    %271 = vector.extract_strided_slice %250 {offsets = [0, 16], sizes = [16, 16], strides = [1, 1]} : vector<16x64xf32> to vector<16x16xf32>
    %272 = vector.extract_strided_slice %251 {offsets = [0, 16], sizes = [16, 16], strides = [1, 1]} : vector<16x64xf32> to vector<16x16xf32>
    %cst_90 = arith.constant dense<0.000000e+00> : vector<16x16xf32>
    %273 = tpu.matmul %270, %271, %cst_90 {dimension_numbers = #tpu.dot_dimension_numbers<[1], [1], [0], [0], [0, 0, 1, 0], [], []>} : vector<16x16xf32>, vector<16x16xf32>, vector<16x16xf32> -> vector<16x16xf32>
    %cst_91 = arith.constant 2.500000e-01 : f32
    %274 = vector.broadcast %cst_91 : f32 to vector<16x16xf32>
    %275 = arith.mulf %273, %274 : vector<16x16xf32>
    %276 = arith.addf %275, %37 : vector<16x16xf32>
    %cst_92 = arith.constant dense<0xFF800000> : vector<16xf32>
    %277 = vector.multi_reduction <maximumf>, %276, %cst_92 [1] : vector<16x16xf32> to vector<16xf32>
    %278 = vector.shape_cast %277 : vector<16xf32> to vector<16x1xf32>
    %279 = vector.broadcast %278 : vector<16x1xf32> to vector<16x16xf32>
    %280 = arith.subf %276, %279 : vector<16x16xf32>
    %281 = math.exp %280 : vector<16x16xf32>
    %cst_93 = arith.constant dense<0.000000e+00> : vector<16xf32>
    %282 = vector.multi_reduction <add>, %281, %cst_93 [1] : vector<16x16xf32> to vector<16xf32>
    %283 = vector.shape_cast %282 : vector<16xf32> to vector<16x1xf32>
    %284 = tpu.reciprocal %283 {approx = true} : vector<16x1xf32> -> vector<16x1xf32>
    %285 = vector.broadcast %284 : vector<16x1xf32> to vector<16x16xf32>
    %286 = arith.mulf %281, %285 : vector<16x16xf32>
    %cst_94 = arith.constant dense<0.000000e+00> : vector<16x16xf32>
    %287 = tpu.matmul %286, %272, %cst_94 {dimension_numbers = #tpu.dot_dimension_numbers<[1], [0], [0], [1], [0, 0, 1, 1], [], []>} : vector<16x16xf32>, vector<16x16xf32>, vector<16x16xf32> -> vector<16x16xf32>
    %288 = vector.extract_strided_slice %249 {offsets = [0, 32], sizes = [16, 16], strides = [1, 1]} : vector<16x64xf32> to vector<16x16xf32>
    %289 = vector.extract_strided_slice %250 {offsets = [0, 32], sizes = [16, 16], strides = [1, 1]} : vector<16x64xf32> to vector<16x16xf32>
    %290 = vector.extract_strided_slice %251 {offsets = [0, 32], sizes = [16, 16], strides = [1, 1]} : vector<16x64xf32> to vector<16x16xf32>
    %cst_95 = arith.constant dense<0.000000e+00> : vector<16x16xf32>
    %291 = tpu.matmul %288, %289, %cst_95 {dimension_numbers = #tpu.dot_dimension_numbers<[1], [1], [0], [0], [0, 0, 1, 0], [], []>} : vector<16x16xf32>, vector<16x16xf32>, vector<16x16xf32> -> vector<16x16xf32>
    %cst_96 = arith.constant 2.500000e-01 : f32
    %292 = vector.broadcast %cst_96 : f32 to vector<16x16xf32>
    %293 = arith.mulf %291, %292 : vector<16x16xf32>
    %294 = arith.addf %293, %37 : vector<16x16xf32>
    %cst_97 = arith.constant dense<0xFF800000> : vector<16xf32>
    %295 = vector.multi_reduction <maximumf>, %294, %cst_97 [1] : vector<16x16xf32> to vector<16xf32>
    %296 = vector.shape_cast %295 : vector<16xf32> to vector<16x1xf32>
    %297 = vector.broadcast %296 : vector<16x1xf32> to vector<16x16xf32>
    %298 = arith.subf %294, %297 : vector<16x16xf32>
    %299 = math.exp %298 : vector<16x16xf32>
    %cst_98 = arith.constant dense<0.000000e+00> : vector<16xf32>
    %300 = vector.multi_reduction <add>, %299, %cst_98 [1] : vector<16x16xf32> to vector<16xf32>
    %301 = vector.shape_cast %300 : vector<16xf32> to vector<16x1xf32>
    %302 = tpu.reciprocal %301 {approx = true} : vector<16x1xf32> -> vector<16x1xf32>
    %303 = vector.broadcast %302 : vector<16x1xf32> to vector<16x16xf32>
    %304 = arith.mulf %299, %303 : vector<16x16xf32>
    %cst_99 = arith.constant dense<0.000000e+00> : vector<16x16xf32>
    %305 = tpu.matmul %304, %290, %cst_99 {dimension_numbers = #tpu.dot_dimension_numbers<[1], [0], [0], [1], [0, 0, 1, 1], [], []>} : vector<16x16xf32>, vector<16x16xf32>, vector<16x16xf32> -> vector<16x16xf32>
    %306 = vector.extract_strided_slice %249 {offsets = [0, 48], sizes = [16, 16], strides = [1, 1]} : vector<16x64xf32> to vector<16x16xf32>
    %307 = vector.extract_strided_slice %250 {offsets = [0, 48], sizes = [16, 16], strides = [1, 1]} : vector<16x64xf32> to vector<16x16xf32>
    %308 = vector.extract_strided_slice %251 {offsets = [0, 48], sizes = [16, 16], strides = [1, 1]} : vector<16x64xf32> to vector<16x16xf32>
    %cst_100 = arith.constant dense<0.000000e+00> : vector<16x16xf32>
    %309 = tpu.matmul %306, %307, %cst_100 {dimension_numbers = #tpu.dot_dimension_numbers<[1], [1], [0], [0], [0, 0, 1, 0], [], []>} : vector<16x16xf32>, vector<16x16xf32>, vector<16x16xf32> -> vector<16x16xf32>
    %cst_101 = arith.constant 2.500000e-01 : f32
    %310 = vector.broadcast %cst_101 : f32 to vector<16x16xf32>
    %311 = arith.mulf %309, %310 : vector<16x16xf32>
    %312 = arith.addf %311, %37 : vector<16x16xf32>
    %cst_102 = arith.constant dense<0xFF800000> : vector<16xf32>
    %313 = vector.multi_reduction <maximumf>, %312, %cst_102 [1] : vector<16x16xf32> to vector<16xf32>
    %314 = vector.shape_cast %313 : vector<16xf32> to vector<16x1xf32>
    %315 = vector.broadcast %314 : vector<16x1xf32> to vector<16x16xf32>
    %316 = arith.subf %312, %315 : vector<16x16xf32>
    %317 = math.exp %316 : vector<16x16xf32>
    %cst_103 = arith.constant dense<0.000000e+00> : vector<16xf32>
    %318 = vector.multi_reduction <add>, %317, %cst_103 [1] : vector<16x16xf32> to vector<16xf32>
    %319 = vector.shape_cast %318 : vector<16xf32> to vector<16x1xf32>
    %320 = tpu.reciprocal %319 {approx = true} : vector<16x1xf32> -> vector<16x1xf32>
    %321 = vector.broadcast %320 : vector<16x1xf32> to vector<16x16xf32>
    %322 = arith.mulf %317, %321 : vector<16x16xf32>
    %cst_104 = arith.constant dense<0.000000e+00> : vector<16x16xf32>
    %323 = tpu.matmul %322, %308, %cst_104 {dimension_numbers = #tpu.dot_dimension_numbers<[1], [0], [0], [1], [0, 0, 1, 1], [], []>} : vector<16x16xf32>, vector<16x16xf32>, vector<16x16xf32> -> vector<16x16xf32>
    %324 = tpu.concatenate %269, %287, %305, %323 in 1 : vector<16x16xf32>, vector<16x16xf32>, vector<16x16xf32>, vector<16x16xf32> -> vector<16x64xf32>
    %c0_105 = arith.constant 0 : index
    %c768 = arith.constant 768 : index
    %325 = vector.load %arg3[%c0_105, %c768] : memref<64x2944xf32, #tpu.memory_space<vmem>>, vector<64x64xf32>
    %cst_106 = arith.constant dense<0.000000e+00> : vector<16x64xf32>
    %326 = tpu.matmul %324, %325, %cst_106 {dimension_numbers = #tpu.dot_dimension_numbers<[1], [0], [0], [1], [0, 0, 1, 1], [], []>} : vector<16x64xf32>, vector<64x64xf32>, vector<16x64xf32> -> vector<16x64xf32>
    %c19 = arith.constant 19 : index
    %c0_107 = arith.constant 0 : index
    %327 = vector.load %arg5[%c19, %c0_107] : memref<51x256xf32, #tpu.memory_space<vmem>>, vector<1x64xf32>
    %328 = vector.broadcast %327 : vector<1x64xf32> to vector<16x64xf32>
    %329 = arith.addf %326, %328 : vector<16x64xf32>
    %330 = arith.addf %243, %329 : vector<16x64xf32>
    %c22 = arith.constant 22 : index
    %c0_108 = arith.constant 0 : index
    %331 = vector.load %arg5[%c22, %c0_108] : memref<51x256xf32, #tpu.memory_space<vmem>>, vector<1x64xf32>
    %c23 = arith.constant 23 : index
    %c0_109 = arith.constant 0 : index
    %332 = vector.load %arg5[%c23, %c0_109] : memref<51x256xf32, #tpu.memory_space<vmem>>, vector<1x64xf32>
    %cst_110 = arith.constant dense<0.000000e+00> : vector<16xf32>
    %333 = vector.multi_reduction <add>, %330, %cst_110 [1] : vector<16x64xf32> to vector<16xf32>
    %334 = vector.shape_cast %333 : vector<16xf32> to vector<16x1xf32>
    %cst_111 = arith.constant 6.400000e+01 : f32
    %335 = vector.broadcast %cst_111 : f32 to vector<16x1xf32>
    %336 = arith.divf %334, %335 : vector<16x1xf32>
    %337 = vector.broadcast %336 : vector<16x1xf32> to vector<16x64xf32>
    %338 = arith.subf %330, %337 : vector<16x64xf32>
    %339 = arith.mulf %338, %338 : vector<16x64xf32>
    %cst_112 = arith.constant dense<0.000000e+00> : vector<16xf32>
    %340 = vector.multi_reduction <add>, %339, %cst_112 [1] : vector<16x64xf32> to vector<16xf32>
    %341 = vector.shape_cast %340 : vector<16xf32> to vector<16x1xf32>
    %cst_113 = arith.constant 6.400000e+01 : f32
    %342 = vector.broadcast %cst_113 : f32 to vector<16x1xf32>
    %343 = arith.divf %341, %342 : vector<16x1xf32>
    %344 = vector.broadcast %336 : vector<16x1xf32> to vector<16x64xf32>
    %345 = arith.subf %330, %344 : vector<16x64xf32>
    %cst_114 = arith.constant 9.99999974E-6 : f32
    %346 = vector.broadcast %cst_114 : f32 to vector<16x1xf32>
    %347 = arith.addf %343, %346 : vector<16x1xf32>
    %348 = math.rsqrt %347 : vector<16x1xf32>
    %349 = vector.broadcast %348 : vector<16x1xf32> to vector<16x64xf32>
    %350 = arith.mulf %345, %349 : vector<16x64xf32>
    %351 = vector.broadcast %331 : vector<1x64xf32> to vector<16x64xf32>
    %352 = arith.mulf %350, %351 : vector<16x64xf32>
    %353 = vector.broadcast %332 : vector<1x64xf32> to vector<16x64xf32>
    %354 = arith.addf %352, %353 : vector<16x64xf32>
    %c0_115 = arith.constant 0 : index
    %c896 = arith.constant 896 : index
    %355 = vector.load %arg3[%c0_115, %c896] : memref<64x2944xf32, #tpu.memory_space<vmem>>, vector<64x128xf32>
    %cst_116 = arith.constant dense<0.000000e+00> : vector<16x128xf32>
    %356 = tpu.matmul %354, %355, %cst_116 {dimension_numbers = #tpu.dot_dimension_numbers<[1], [0], [0], [1], [0, 0, 1, 1], [], []>} : vector<16x64xf32>, vector<64x128xf32>, vector<16x128xf32> -> vector<16x128xf32>
    %c20 = arith.constant 20 : index
    %c0_117 = arith.constant 0 : index
    %357 = vector.load %arg5[%c20, %c0_117] : memref<51x256xf32, #tpu.memory_space<vmem>>, vector<1x128xf32>
    %358 = vector.broadcast %357 : vector<1x128xf32> to vector<16x128xf32>
    %359 = arith.addf %356, %358 : vector<16x128xf32>
    %cst_118 = arith.constant 0.000000e+00 : f32
    %360 = vector.broadcast %cst_118 : f32 to vector<16x128xf32>
    %361 = arith.maximumf %359, %360 : vector<16x128xf32>
    %c0_119 = arith.constant 0 : index
    %c128 = arith.constant 128 : index
    %362 = vector.load %arg4[%c0_119, %c128] : memref<128x512xf32, #tpu.memory_space<vmem>>, vector<128x64xf32>
    %cst_120 = arith.constant dense<0.000000e+00> : vector<16x64xf32>
    %363 = tpu.matmul %361, %362, %cst_120 {dimension_numbers = #tpu.dot_dimension_numbers<[1], [0], [0], [1], [0, 0, 1, 1], [], []>} : vector<16x128xf32>, vector<128x64xf32>, vector<16x64xf32> -> vector<16x64xf32>
    %c21 = arith.constant 21 : index
    %c0_121 = arith.constant 0 : index
    %364 = vector.load %arg5[%c21, %c0_121] : memref<51x256xf32, #tpu.memory_space<vmem>>, vector<1x64xf32>
    %365 = vector.broadcast %364 : vector<1x64xf32> to vector<16x64xf32>
    %366 = arith.addf %363, %365 : vector<16x64xf32>
    %367 = arith.addf %354, %366 : vector<16x64xf32>
    %c24 = arith.constant 24 : index
    %c0_122 = arith.constant 0 : index
    %368 = vector.load %arg5[%c24, %c0_122] : memref<51x256xf32, #tpu.memory_space<vmem>>, vector<1x64xf32>
    %c25 = arith.constant 25 : index
    %c0_123 = arith.constant 0 : index
    %369 = vector.load %arg5[%c25, %c0_123] : memref<51x256xf32, #tpu.memory_space<vmem>>, vector<1x64xf32>
    %cst_124 = arith.constant dense<0.000000e+00> : vector<16xf32>
    %370 = vector.multi_reduction <add>, %367, %cst_124 [1] : vector<16x64xf32> to vector<16xf32>
    %371 = vector.shape_cast %370 : vector<16xf32> to vector<16x1xf32>
    %cst_125 = arith.constant 6.400000e+01 : f32
    %372 = vector.broadcast %cst_125 : f32 to vector<16x1xf32>
    %373 = arith.divf %371, %372 : vector<16x1xf32>
    %374 = vector.broadcast %373 : vector<16x1xf32> to vector<16x64xf32>
    %375 = arith.subf %367, %374 : vector<16x64xf32>
    %376 = arith.mulf %375, %375 : vector<16x64xf32>
    %cst_126 = arith.constant dense<0.000000e+00> : vector<16xf32>
    %377 = vector.multi_reduction <add>, %376, %cst_126 [1] : vector<16x64xf32> to vector<16xf32>
    %378 = vector.shape_cast %377 : vector<16xf32> to vector<16x1xf32>
    %cst_127 = arith.constant 6.400000e+01 : f32
    %379 = vector.broadcast %cst_127 : f32 to vector<16x1xf32>
    %380 = arith.divf %378, %379 : vector<16x1xf32>
    %381 = vector.broadcast %373 : vector<16x1xf32> to vector<16x64xf32>
    %382 = arith.subf %367, %381 : vector<16x64xf32>
    %cst_128 = arith.constant 9.99999974E-6 : f32
    %383 = vector.broadcast %cst_128 : f32 to vector<16x1xf32>
    %384 = arith.addf %380, %383 : vector<16x1xf32>
    %385 = math.rsqrt %384 : vector<16x1xf32>
    %386 = vector.broadcast %385 : vector<16x1xf32> to vector<16x64xf32>
    %387 = arith.mulf %382, %386 : vector<16x64xf32>
    %388 = vector.broadcast %368 : vector<1x64xf32> to vector<16x64xf32>
    %389 = arith.mulf %387, %388 : vector<16x64xf32>
    %390 = vector.broadcast %369 : vector<1x64xf32> to vector<16x64xf32>
    %391 = arith.addf %389, %390 : vector<16x64xf32>
    %c6 = arith.constant 6 : index
    %c0_129 = arith.constant 0 : index
    %392 = vector.load %arg5[%c6, %c0_129] : memref<51x256xf32, #tpu.memory_space<vmem>>, vector<1x64xf32>
    %c7 = arith.constant 7 : index
    %c0_130 = arith.constant 0 : index
    %393 = vector.load %arg5[%c7, %c0_130] : memref<51x256xf32, #tpu.memory_space<vmem>>, vector<1x64xf32>
    %cst_131 = arith.constant dense<0.000000e+00> : vector<16xf32>
    %394 = vector.multi_reduction <add>, %391, %cst_131 [1] : vector<16x64xf32> to vector<16xf32>
    %395 = vector.shape_cast %394 : vector<16xf32> to vector<16x1xf32>
    %cst_132 = arith.constant 6.400000e+01 : f32
    %396 = vector.broadcast %cst_132 : f32 to vector<16x1xf32>
    %397 = arith.divf %395, %396 : vector<16x1xf32>
    %398 = vector.broadcast %397 : vector<16x1xf32> to vector<16x64xf32>
    %399 = arith.subf %391, %398 : vector<16x64xf32>
    %400 = arith.mulf %399, %399 : vector<16x64xf32>
    %cst_133 = arith.constant dense<0.000000e+00> : vector<16xf32>
    %401 = vector.multi_reduction <add>, %400, %cst_133 [1] : vector<16x64xf32> to vector<16xf32>
    %402 = vector.shape_cast %401 : vector<16xf32> to vector<16x1xf32>
    %cst_134 = arith.constant 6.400000e+01 : f32
    %403 = vector.broadcast %cst_134 : f32 to vector<16x1xf32>
    %404 = arith.divf %402, %403 : vector<16x1xf32>
    %405 = vector.broadcast %397 : vector<16x1xf32> to vector<16x64xf32>
    %406 = arith.subf %391, %405 : vector<16x64xf32>
    %cst_135 = arith.constant 9.99999974E-6 : f32
    %407 = vector.broadcast %cst_135 : f32 to vector<16x1xf32>
    %408 = arith.addf %404, %407 : vector<16x1xf32>
    %409 = math.rsqrt %408 : vector<16x1xf32>
    %410 = vector.broadcast %409 : vector<16x1xf32> to vector<16x64xf32>
    %411 = arith.mulf %406, %410 : vector<16x64xf32>
    %412 = vector.broadcast %392 : vector<1x64xf32> to vector<16x64xf32>
    %413 = arith.mulf %411, %412 : vector<16x64xf32>
    %414 = vector.broadcast %393 : vector<1x64xf32> to vector<16x64xf32>
    %415 = arith.addf %413, %414 : vector<16x64xf32>
    %c0_136 = arith.constant 0 : index
    %c2560 = arith.constant 2560 : index
    %416 = vector.load %arg3[%c0_136, %c2560] : memref<64x2944xf32, #tpu.memory_space<vmem>>, vector<64x256xf32>
    %cst_137 = arith.constant dense<0.000000e+00> : vector<16x256xf32>
    %417 = tpu.matmul %415, %416, %cst_137 {dimension_numbers = #tpu.dot_dimension_numbers<[1], [0], [0], [1], [0, 0, 1, 1], [], []>} : vector<16x64xf32>, vector<64x256xf32>, vector<16x256xf32> -> vector<16x256xf32>
    %c50 = arith.constant 50 : index
    %c0_138 = arith.constant 0 : index
    %418 = vector.load %arg5[%c50, %c0_138] : memref<51x256xf32, #tpu.memory_space<vmem>>, vector<1x256xf32>
    %419 = vector.broadcast %418 : vector<1x256xf32> to vector<16x256xf32>
    %420 = arith.addf %417, %419 : vector<16x256xf32>
    %c0_139 = arith.constant 0 : index
    %c1024 = arith.constant 1024 : index
    %421 = vector.load %arg3[%c0_139, %c1024] : memref<64x2944xf32, #tpu.memory_space<vmem>>, vector<64x192xf32>
    %cst_140 = arith.constant dense<0.000000e+00> : vector<16x192xf32>
    %422 = tpu.matmul %95, %421, %cst_140 {dimension_numbers = #tpu.dot_dimension_numbers<[1], [0], [0], [1], [0, 0, 1, 1], [], []>} : vector<16x64xf32>, vector<64x192xf32>, vector<16x192xf32> -> vector<16x192xf32>
    %c26 = arith.constant 26 : index
    %c0_141 = arith.constant 0 : index
    %423 = vector.load %arg5[%c26, %c0_141] : memref<51x256xf32, #tpu.memory_space<vmem>>, vector<1x192xf32>
    %424 = vector.broadcast %423 : vector<1x192xf32> to vector<16x192xf32>
    %425 = arith.addf %422, %424 : vector<16x192xf32>
    %426 = vector.extract_strided_slice %425 {offsets = [0, 0], sizes = [16, 64], strides = [1, 1]} : vector<16x192xf32> to vector<16x64xf32>
    %427 = vector.extract_strided_slice %425 {offsets = [0, 64], sizes = [16, 64], strides = [1, 1]} : vector<16x192xf32> to vector<16x64xf32>
    %428 = vector.extract_strided_slice %425 {offsets = [0, 128], sizes = [16, 64], strides = [1, 1]} : vector<16x192xf32> to vector<16x64xf32>
    %429 = vector.extract_strided_slice %426 {offsets = [0, 0], sizes = [16, 16], strides = [1, 1]} : vector<16x64xf32> to vector<16x16xf32>
    %430 = vector.extract_strided_slice %427 {offsets = [0, 0], sizes = [16, 16], strides = [1, 1]} : vector<16x64xf32> to vector<16x16xf32>
    %431 = vector.extract_strided_slice %428 {offsets = [0, 0], sizes = [16, 16], strides = [1, 1]} : vector<16x64xf32> to vector<16x16xf32>
    %cst_142 = arith.constant dense<0.000000e+00> : vector<16x16xf32>
    %432 = tpu.matmul %429, %430, %cst_142 {dimension_numbers = #tpu.dot_dimension_numbers<[1], [1], [0], [0], [0, 0, 1, 0], [], []>} : vector<16x16xf32>, vector<16x16xf32>, vector<16x16xf32> -> vector<16x16xf32>
    %cst_143 = arith.constant 2.500000e-01 : f32
    %433 = vector.broadcast %cst_143 : f32 to vector<16x16xf32>
    %434 = arith.mulf %432, %433 : vector<16x16xf32>
    %435 = arith.addf %434, %37 : vector<16x16xf32>
    %cst_144 = arith.constant dense<0xFF800000> : vector<16xf32>
    %436 = vector.multi_reduction <maximumf>, %435, %cst_144 [1] : vector<16x16xf32> to vector<16xf32>
    %437 = vector.shape_cast %436 : vector<16xf32> to vector<16x1xf32>
    %438 = vector.broadcast %437 : vector<16x1xf32> to vector<16x16xf32>
    %439 = arith.subf %435, %438 : vector<16x16xf32>
    %440 = math.exp %439 : vector<16x16xf32>
    %cst_145 = arith.constant dense<0.000000e+00> : vector<16xf32>
    %441 = vector.multi_reduction <add>, %440, %cst_145 [1] : vector<16x16xf32> to vector<16xf32>
    %442 = vector.shape_cast %441 : vector<16xf32> to vector<16x1xf32>
    %443 = tpu.reciprocal %442 {approx = true} : vector<16x1xf32> -> vector<16x1xf32>
    %444 = vector.broadcast %443 : vector<16x1xf32> to vector<16x16xf32>
    %445 = arith.mulf %440, %444 : vector<16x16xf32>
    %cst_146 = arith.constant dense<0.000000e+00> : vector<16x16xf32>
    %446 = tpu.matmul %445, %431, %cst_146 {dimension_numbers = #tpu.dot_dimension_numbers<[1], [0], [0], [1], [0, 0, 1, 1], [], []>} : vector<16x16xf32>, vector<16x16xf32>, vector<16x16xf32> -> vector<16x16xf32>
    %447 = vector.extract_strided_slice %426 {offsets = [0, 16], sizes = [16, 16], strides = [1, 1]} : vector<16x64xf32> to vector<16x16xf32>
    %448 = vector.extract_strided_slice %427 {offsets = [0, 16], sizes = [16, 16], strides = [1, 1]} : vector<16x64xf32> to vector<16x16xf32>
    %449 = vector.extract_strided_slice %428 {offsets = [0, 16], sizes = [16, 16], strides = [1, 1]} : vector<16x64xf32> to vector<16x16xf32>
    %cst_147 = arith.constant dense<0.000000e+00> : vector<16x16xf32>
    %450 = tpu.matmul %447, %448, %cst_147 {dimension_numbers = #tpu.dot_dimension_numbers<[1], [1], [0], [0], [0, 0, 1, 0], [], []>} : vector<16x16xf32>, vector<16x16xf32>, vector<16x16xf32> -> vector<16x16xf32>
    %cst_148 = arith.constant 2.500000e-01 : f32
    %451 = vector.broadcast %cst_148 : f32 to vector<16x16xf32>
    %452 = arith.mulf %450, %451 : vector<16x16xf32>
    %453 = arith.addf %452, %37 : vector<16x16xf32>
    %cst_149 = arith.constant dense<0xFF800000> : vector<16xf32>
    %454 = vector.multi_reduction <maximumf>, %453, %cst_149 [1] : vector<16x16xf32> to vector<16xf32>
    %455 = vector.shape_cast %454 : vector<16xf32> to vector<16x1xf32>
    %456 = vector.broadcast %455 : vector<16x1xf32> to vector<16x16xf32>
    %457 = arith.subf %453, %456 : vector<16x16xf32>
    %458 = math.exp %457 : vector<16x16xf32>
    %cst_150 = arith.constant dense<0.000000e+00> : vector<16xf32>
    %459 = vector.multi_reduction <add>, %458, %cst_150 [1] : vector<16x16xf32> to vector<16xf32>
    %460 = vector.shape_cast %459 : vector<16xf32> to vector<16x1xf32>
    %461 = tpu.reciprocal %460 {approx = true} : vector<16x1xf32> -> vector<16x1xf32>
    %462 = vector.broadcast %461 : vector<16x1xf32> to vector<16x16xf32>
    %463 = arith.mulf %458, %462 : vector<16x16xf32>
    %cst_151 = arith.constant dense<0.000000e+00> : vector<16x16xf32>
    %464 = tpu.matmul %463, %449, %cst_151 {dimension_numbers = #tpu.dot_dimension_numbers<[1], [0], [0], [1], [0, 0, 1, 1], [], []>} : vector<16x16xf32>, vector<16x16xf32>, vector<16x16xf32> -> vector<16x16xf32>
    %465 = vector.extract_strided_slice %426 {offsets = [0, 32], sizes = [16, 16], strides = [1, 1]} : vector<16x64xf32> to vector<16x16xf32>
    %466 = vector.extract_strided_slice %427 {offsets = [0, 32], sizes = [16, 16], strides = [1, 1]} : vector<16x64xf32> to vector<16x16xf32>
    %467 = vector.extract_strided_slice %428 {offsets = [0, 32], sizes = [16, 16], strides = [1, 1]} : vector<16x64xf32> to vector<16x16xf32>
    %cst_152 = arith.constant dense<0.000000e+00> : vector<16x16xf32>
    %468 = tpu.matmul %465, %466, %cst_152 {dimension_numbers = #tpu.dot_dimension_numbers<[1], [1], [0], [0], [0, 0, 1, 0], [], []>} : vector<16x16xf32>, vector<16x16xf32>, vector<16x16xf32> -> vector<16x16xf32>
    %cst_153 = arith.constant 2.500000e-01 : f32
    %469 = vector.broadcast %cst_153 : f32 to vector<16x16xf32>
    %470 = arith.mulf %468, %469 : vector<16x16xf32>
    %471 = arith.addf %470, %37 : vector<16x16xf32>
    %cst_154 = arith.constant dense<0xFF800000> : vector<16xf32>
    %472 = vector.multi_reduction <maximumf>, %471, %cst_154 [1] : vector<16x16xf32> to vector<16xf32>
    %473 = vector.shape_cast %472 : vector<16xf32> to vector<16x1xf32>
    %474 = vector.broadcast %473 : vector<16x1xf32> to vector<16x16xf32>
    %475 = arith.subf %471, %474 : vector<16x16xf32>
    %476 = math.exp %475 : vector<16x16xf32>
    %cst_155 = arith.constant dense<0.000000e+00> : vector<16xf32>
    %477 = vector.multi_reduction <add>, %476, %cst_155 [1] : vector<16x16xf32> to vector<16xf32>
    %478 = vector.shape_cast %477 : vector<16xf32> to vector<16x1xf32>
    %479 = tpu.reciprocal %478 {approx = true} : vector<16x1xf32> -> vector<16x1xf32>
    %480 = vector.broadcast %479 : vector<16x1xf32> to vector<16x16xf32>
    %481 = arith.mulf %476, %480 : vector<16x16xf32>
    %cst_156 = arith.constant dense<0.000000e+00> : vector<16x16xf32>
    %482 = tpu.matmul %481, %467, %cst_156 {dimension_numbers = #tpu.dot_dimension_numbers<[1], [0], [0], [1], [0, 0, 1, 1], [], []>} : vector<16x16xf32>, vector<16x16xf32>, vector<16x16xf32> -> vector<16x16xf32>
    %483 = vector.extract_strided_slice %426 {offsets = [0, 48], sizes = [16, 16], strides = [1, 1]} : vector<16x64xf32> to vector<16x16xf32>
    %484 = vector.extract_strided_slice %427 {offsets = [0, 48], sizes = [16, 16], strides = [1, 1]} : vector<16x64xf32> to vector<16x16xf32>
    %485 = vector.extract_strided_slice %428 {offsets = [0, 48], sizes = [16, 16], strides = [1, 1]} : vector<16x64xf32> to vector<16x16xf32>
    %cst_157 = arith.constant dense<0.000000e+00> : vector<16x16xf32>
    %486 = tpu.matmul %483, %484, %cst_157 {dimension_numbers = #tpu.dot_dimension_numbers<[1], [1], [0], [0], [0, 0, 1, 0], [], []>} : vector<16x16xf32>, vector<16x16xf32>, vector<16x16xf32> -> vector<16x16xf32>
    %cst_158 = arith.constant 2.500000e-01 : f32
    %487 = vector.broadcast %cst_158 : f32 to vector<16x16xf32>
    %488 = arith.mulf %486, %487 : vector<16x16xf32>
    %489 = arith.addf %488, %37 : vector<16x16xf32>
    %cst_159 = arith.constant dense<0xFF800000> : vector<16xf32>
    %490 = vector.multi_reduction <maximumf>, %489, %cst_159 [1] : vector<16x16xf32> to vector<16xf32>
    %491 = vector.shape_cast %490 : vector<16xf32> to vector<16x1xf32>
    %492 = vector.broadcast %491 : vector<16x1xf32> to vector<16x16xf32>
    %493 = arith.subf %489, %492 : vector<16x16xf32>
    %494 = math.exp %493 : vector<16x16xf32>
    %cst_160 = arith.constant dense<0.000000e+00> : vector<16xf32>
    %495 = vector.multi_reduction <add>, %494, %cst_160 [1] : vector<16x16xf32> to vector<16xf32>
    %496 = vector.shape_cast %495 : vector<16xf32> to vector<16x1xf32>
    %497 = tpu.reciprocal %496 {approx = true} : vector<16x1xf32> -> vector<16x1xf32>
    %498 = vector.broadcast %497 : vector<16x1xf32> to vector<16x16xf32>
    %499 = arith.mulf %494, %498 : vector<16x16xf32>
    %cst_161 = arith.constant dense<0.000000e+00> : vector<16x16xf32>
    %500 = tpu.matmul %499, %485, %cst_161 {dimension_numbers = #tpu.dot_dimension_numbers<[1], [0], [0], [1], [0, 0, 1, 1], [], []>} : vector<16x16xf32>, vector<16x16xf32>, vector<16x16xf32> -> vector<16x16xf32>
    %501 = tpu.concatenate %446, %464, %482, %500 in 1 : vector<16x16xf32>, vector<16x16xf32>, vector<16x16xf32>, vector<16x16xf32> -> vector<16x64xf32>
    %c0_162 = arith.constant 0 : index
    %c1280 = arith.constant 1280 : index
    %502 = vector.load %arg3[%c0_162, %c1280] : memref<64x2944xf32, #tpu.memory_space<vmem>>, vector<64x64xf32>
    %cst_163 = arith.constant dense<0.000000e+00> : vector<16x64xf32>
    %503 = tpu.matmul %501, %502, %cst_163 {dimension_numbers = #tpu.dot_dimension_numbers<[1], [0], [0], [1], [0, 0, 1, 1], [], []>} : vector<16x64xf32>, vector<64x64xf32>, vector<16x64xf32> -> vector<16x64xf32>
    %c27 = arith.constant 27 : index
    %c0_164 = arith.constant 0 : index
    %504 = vector.load %arg5[%c27, %c0_164] : memref<51x256xf32, #tpu.memory_space<vmem>>, vector<1x64xf32>
    %505 = vector.broadcast %504 : vector<1x64xf32> to vector<16x64xf32>
    %506 = arith.addf %503, %505 : vector<16x64xf32>
    %507 = arith.addf %95, %506 : vector<16x64xf32>
    %c32 = arith.constant 32 : index
    %c0_165 = arith.constant 0 : index
    %508 = vector.load %arg5[%c32, %c0_165] : memref<51x256xf32, #tpu.memory_space<vmem>>, vector<1x64xf32>
    %c33 = arith.constant 33 : index
    %c0_166 = arith.constant 0 : index
    %509 = vector.load %arg5[%c33, %c0_166] : memref<51x256xf32, #tpu.memory_space<vmem>>, vector<1x64xf32>
    %cst_167 = arith.constant dense<0.000000e+00> : vector<16xf32>
    %510 = vector.multi_reduction <add>, %507, %cst_167 [1] : vector<16x64xf32> to vector<16xf32>
    %511 = vector.shape_cast %510 : vector<16xf32> to vector<16x1xf32>
    %cst_168 = arith.constant 6.400000e+01 : f32
    %512 = vector.broadcast %cst_168 : f32 to vector<16x1xf32>
    %513 = arith.divf %511, %512 : vector<16x1xf32>
    %514 = vector.broadcast %513 : vector<16x1xf32> to vector<16x64xf32>
    %515 = arith.subf %507, %514 : vector<16x64xf32>
    %516 = arith.mulf %515, %515 : vector<16x64xf32>
    %cst_169 = arith.constant dense<0.000000e+00> : vector<16xf32>
    %517 = vector.multi_reduction <add>, %516, %cst_169 [1] : vector<16x64xf32> to vector<16xf32>
    %518 = vector.shape_cast %517 : vector<16xf32> to vector<16x1xf32>
    %cst_170 = arith.constant 6.400000e+01 : f32
    %519 = vector.broadcast %cst_170 : f32 to vector<16x1xf32>
    %520 = arith.divf %518, %519 : vector<16x1xf32>
    %521 = vector.broadcast %513 : vector<16x1xf32> to vector<16x64xf32>
    %522 = arith.subf %507, %521 : vector<16x64xf32>
    %cst_171 = arith.constant 9.99999974E-6 : f32
    %523 = vector.broadcast %cst_171 : f32 to vector<16x1xf32>
    %524 = arith.addf %520, %523 : vector<16x1xf32>
    %525 = math.rsqrt %524 : vector<16x1xf32>
    %526 = vector.broadcast %525 : vector<16x1xf32> to vector<16x64xf32>
    %527 = arith.mulf %522, %526 : vector<16x64xf32>
    %528 = vector.broadcast %508 : vector<1x64xf32> to vector<16x64xf32>
    %529 = arith.mulf %527, %528 : vector<16x64xf32>
    %530 = vector.broadcast %509 : vector<1x64xf32> to vector<16x64xf32>
    %531 = arith.addf %529, %530 : vector<16x64xf32>
    %c0_172 = arith.constant 0 : index
    %c1408 = arith.constant 1408 : index
    %532 = vector.load %arg3[%c0_172, %c1408] : memref<64x2944xf32, #tpu.memory_space<vmem>>, vector<64x64xf32>
    %cst_173 = arith.constant dense<0.000000e+00> : vector<16x64xf32>
    %533 = tpu.matmul %531, %532, %cst_173 {dimension_numbers = #tpu.dot_dimension_numbers<[1], [0], [0], [1], [0, 0, 1, 1], [], []>} : vector<16x64xf32>, vector<64x64xf32>, vector<16x64xf32> -> vector<16x64xf32>
    %c28 = arith.constant 28 : index
    %c0_174 = arith.constant 0 : index
    %534 = vector.load %arg5[%c28, %c0_174] : memref<51x256xf32, #tpu.memory_space<vmem>>, vector<1x64xf32>
    %535 = vector.broadcast %534 : vector<1x64xf32> to vector<16x64xf32>
    %536 = arith.addf %533, %535 : vector<16x64xf32>
    %537 = vector.extract_strided_slice %420 {offsets = [0, 0], sizes = [16, 64], strides = [1, 1]} : vector<16x256xf32> to vector<16x64xf32>
    %538 = vector.extract_strided_slice %420 {offsets = [0, 64], sizes = [16, 64], strides = [1, 1]} : vector<16x256xf32> to vector<16x64xf32>
    %539 = vector.extract_strided_slice %536 {offsets = [0, 0], sizes = [16, 16], strides = [1, 1]} : vector<16x64xf32> to vector<16x16xf32>
    %540 = vector.extract_strided_slice %537 {offsets = [0, 0], sizes = [16, 16], strides = [1, 1]} : vector<16x64xf32> to vector<16x16xf32>
    %541 = vector.extract_strided_slice %538 {offsets = [0, 0], sizes = [16, 16], strides = [1, 1]} : vector<16x64xf32> to vector<16x16xf32>
    %cst_175 = arith.constant dense<0.000000e+00> : vector<16x16xf32>
    %542 = tpu.matmul %539, %540, %cst_175 {dimension_numbers = #tpu.dot_dimension_numbers<[1], [1], [0], [0], [0, 0, 1, 0], [], []>} : vector<16x16xf32>, vector<16x16xf32>, vector<16x16xf32> -> vector<16x16xf32>
    %cst_176 = arith.constant 2.500000e-01 : f32
    %543 = vector.broadcast %cst_176 : f32 to vector<16x16xf32>
    %544 = arith.mulf %542, %543 : vector<16x16xf32>
    %545 = arith.addf %544, %37 : vector<16x16xf32>
    %cst_177 = arith.constant dense<0xFF800000> : vector<16xf32>
    %546 = vector.multi_reduction <maximumf>, %545, %cst_177 [1] : vector<16x16xf32> to vector<16xf32>
    %547 = vector.shape_cast %546 : vector<16xf32> to vector<16x1xf32>
    %548 = vector.broadcast %547 : vector<16x1xf32> to vector<16x16xf32>
    %549 = arith.subf %545, %548 : vector<16x16xf32>
    %550 = math.exp %549 : vector<16x16xf32>
    %cst_178 = arith.constant dense<0.000000e+00> : vector<16xf32>
    %551 = vector.multi_reduction <add>, %550, %cst_178 [1] : vector<16x16xf32> to vector<16xf32>
    %552 = vector.shape_cast %551 : vector<16xf32> to vector<16x1xf32>
    %553 = tpu.reciprocal %552 {approx = true} : vector<16x1xf32> -> vector<16x1xf32>
    %554 = vector.broadcast %553 : vector<16x1xf32> to vector<16x16xf32>
    %555 = arith.mulf %550, %554 : vector<16x16xf32>
    %cst_179 = arith.constant dense<0.000000e+00> : vector<16x16xf32>
    %556 = tpu.matmul %555, %541, %cst_179 {dimension_numbers = #tpu.dot_dimension_numbers<[1], [0], [0], [1], [0, 0, 1, 1], [], []>} : vector<16x16xf32>, vector<16x16xf32>, vector<16x16xf32> -> vector<16x16xf32>
    %557 = vector.extract_strided_slice %536 {offsets = [0, 16], sizes = [16, 16], strides = [1, 1]} : vector<16x64xf32> to vector<16x16xf32>
    %558 = vector.extract_strided_slice %537 {offsets = [0, 16], sizes = [16, 16], strides = [1, 1]} : vector<16x64xf32> to vector<16x16xf32>
    %559 = vector.extract_strided_slice %538 {offsets = [0, 16], sizes = [16, 16], strides = [1, 1]} : vector<16x64xf32> to vector<16x16xf32>
    %cst_180 = arith.constant dense<0.000000e+00> : vector<16x16xf32>
    %560 = tpu.matmul %557, %558, %cst_180 {dimension_numbers = #tpu.dot_dimension_numbers<[1], [1], [0], [0], [0, 0, 1, 0], [], []>} : vector<16x16xf32>, vector<16x16xf32>, vector<16x16xf32> -> vector<16x16xf32>
    %cst_181 = arith.constant 2.500000e-01 : f32
    %561 = vector.broadcast %cst_181 : f32 to vector<16x16xf32>
    %562 = arith.mulf %560, %561 : vector<16x16xf32>
    %563 = arith.addf %562, %37 : vector<16x16xf32>
    %cst_182 = arith.constant dense<0xFF800000> : vector<16xf32>
    %564 = vector.multi_reduction <maximumf>, %563, %cst_182 [1] : vector<16x16xf32> to vector<16xf32>
    %565 = vector.shape_cast %564 : vector<16xf32> to vector<16x1xf32>
    %566 = vector.broadcast %565 : vector<16x1xf32> to vector<16x16xf32>
    %567 = arith.subf %563, %566 : vector<16x16xf32>
    %568 = math.exp %567 : vector<16x16xf32>
    %cst_183 = arith.constant dense<0.000000e+00> : vector<16xf32>
    %569 = vector.multi_reduction <add>, %568, %cst_183 [1] : vector<16x16xf32> to vector<16xf32>
    %570 = vector.shape_cast %569 : vector<16xf32> to vector<16x1xf32>
    %571 = tpu.reciprocal %570 {approx = true} : vector<16x1xf32> -> vector<16x1xf32>
    %572 = vector.broadcast %571 : vector<16x1xf32> to vector<16x16xf32>
    %573 = arith.mulf %568, %572 : vector<16x16xf32>
    %cst_184 = arith.constant dense<0.000000e+00> : vector<16x16xf32>
    %574 = tpu.matmul %573, %559, %cst_184 {dimension_numbers = #tpu.dot_dimension_numbers<[1], [0], [0], [1], [0, 0, 1, 1], [], []>} : vector<16x16xf32>, vector<16x16xf32>, vector<16x16xf32> -> vector<16x16xf32>
    %575 = vector.extract_strided_slice %536 {offsets = [0, 32], sizes = [16, 16], strides = [1, 1]} : vector<16x64xf32> to vector<16x16xf32>
    %576 = vector.extract_strided_slice %537 {offsets = [0, 32], sizes = [16, 16], strides = [1, 1]} : vector<16x64xf32> to vector<16x16xf32>
    %577 = vector.extract_strided_slice %538 {offsets = [0, 32], sizes = [16, 16], strides = [1, 1]} : vector<16x64xf32> to vector<16x16xf32>
    %cst_185 = arith.constant dense<0.000000e+00> : vector<16x16xf32>
    %578 = tpu.matmul %575, %576, %cst_185 {dimension_numbers = #tpu.dot_dimension_numbers<[1], [1], [0], [0], [0, 0, 1, 0], [], []>} : vector<16x16xf32>, vector<16x16xf32>, vector<16x16xf32> -> vector<16x16xf32>
    %cst_186 = arith.constant 2.500000e-01 : f32
    %579 = vector.broadcast %cst_186 : f32 to vector<16x16xf32>
    %580 = arith.mulf %578, %579 : vector<16x16xf32>
    %581 = arith.addf %580, %37 : vector<16x16xf32>
    %cst_187 = arith.constant dense<0xFF800000> : vector<16xf32>
    %582 = vector.multi_reduction <maximumf>, %581, %cst_187 [1] : vector<16x16xf32> to vector<16xf32>
    %583 = vector.shape_cast %582 : vector<16xf32> to vector<16x1xf32>
    %584 = vector.broadcast %583 : vector<16x1xf32> to vector<16x16xf32>
    %585 = arith.subf %581, %584 : vector<16x16xf32>
    %586 = math.exp %585 : vector<16x16xf32>
    %cst_188 = arith.constant dense<0.000000e+00> : vector<16xf32>
    %587 = vector.multi_reduction <add>, %586, %cst_188 [1] : vector<16x16xf32> to vector<16xf32>
    %588 = vector.shape_cast %587 : vector<16xf32> to vector<16x1xf32>
    %589 = tpu.reciprocal %588 {approx = true} : vector<16x1xf32> -> vector<16x1xf32>
    %590 = vector.broadcast %589 : vector<16x1xf32> to vector<16x16xf32>
    %591 = arith.mulf %586, %590 : vector<16x16xf32>
    %cst_189 = arith.constant dense<0.000000e+00> : vector<16x16xf32>
    %592 = tpu.matmul %591, %577, %cst_189 {dimension_numbers = #tpu.dot_dimension_numbers<[1], [0], [0], [1], [0, 0, 1, 1], [], []>} : vector<16x16xf32>, vector<16x16xf32>, vector<16x16xf32> -> vector<16x16xf32>
    %593 = vector.extract_strided_slice %536 {offsets = [0, 48], sizes = [16, 16], strides = [1, 1]} : vector<16x64xf32> to vector<16x16xf32>
    %594 = vector.extract_strided_slice %537 {offsets = [0, 48], sizes = [16, 16], strides = [1, 1]} : vector<16x64xf32> to vector<16x16xf32>
    %595 = vector.extract_strided_slice %538 {offsets = [0, 48], sizes = [16, 16], strides = [1, 1]} : vector<16x64xf32> to vector<16x16xf32>
    %cst_190 = arith.constant dense<0.000000e+00> : vector<16x16xf32>
    %596 = tpu.matmul %593, %594, %cst_190 {dimension_numbers = #tpu.dot_dimension_numbers<[1], [1], [0], [0], [0, 0, 1, 0], [], []>} : vector<16x16xf32>, vector<16x16xf32>, vector<16x16xf32> -> vector<16x16xf32>
    %cst_191 = arith.constant 2.500000e-01 : f32
    %597 = vector.broadcast %cst_191 : f32 to vector<16x16xf32>
    %598 = arith.mulf %596, %597 : vector<16x16xf32>
    %599 = arith.addf %598, %37 : vector<16x16xf32>
    %cst_192 = arith.constant dense<0xFF800000> : vector<16xf32>
    %600 = vector.multi_reduction <maximumf>, %599, %cst_192 [1] : vector<16x16xf32> to vector<16xf32>
    %601 = vector.shape_cast %600 : vector<16xf32> to vector<16x1xf32>
    %602 = vector.broadcast %601 : vector<16x1xf32> to vector<16x16xf32>
    %603 = arith.subf %599, %602 : vector<16x16xf32>
    %604 = math.exp %603 : vector<16x16xf32>
    %cst_193 = arith.constant dense<0.000000e+00> : vector<16xf32>
    %605 = vector.multi_reduction <add>, %604, %cst_193 [1] : vector<16x16xf32> to vector<16xf32>
    %606 = vector.shape_cast %605 : vector<16xf32> to vector<16x1xf32>
    %607 = tpu.reciprocal %606 {approx = true} : vector<16x1xf32> -> vector<16x1xf32>
    %608 = vector.broadcast %607 : vector<16x1xf32> to vector<16x16xf32>
    %609 = arith.mulf %604, %608 : vector<16x16xf32>
    %cst_194 = arith.constant dense<0.000000e+00> : vector<16x16xf32>
    %610 = tpu.matmul %609, %595, %cst_194 {dimension_numbers = #tpu.dot_dimension_numbers<[1], [0], [0], [1], [0, 0, 1, 1], [], []>} : vector<16x16xf32>, vector<16x16xf32>, vector<16x16xf32> -> vector<16x16xf32>
    %611 = tpu.concatenate %556, %574, %592, %610 in 1 : vector<16x16xf32>, vector<16x16xf32>, vector<16x16xf32>, vector<16x16xf32> -> vector<16x64xf32>
    %c0_195 = arith.constant 0 : index
    %c1536 = arith.constant 1536 : index
    %612 = vector.load %arg3[%c0_195, %c1536] : memref<64x2944xf32, #tpu.memory_space<vmem>>, vector<64x64xf32>
    %cst_196 = arith.constant dense<0.000000e+00> : vector<16x64xf32>
    %613 = tpu.matmul %611, %612, %cst_196 {dimension_numbers = #tpu.dot_dimension_numbers<[1], [0], [0], [1], [0, 0, 1, 1], [], []>} : vector<16x64xf32>, vector<64x64xf32>, vector<16x64xf32> -> vector<16x64xf32>
    %c29 = arith.constant 29 : index
    %c0_197 = arith.constant 0 : index
    %614 = vector.load %arg5[%c29, %c0_197] : memref<51x256xf32, #tpu.memory_space<vmem>>, vector<1x64xf32>
    %615 = vector.broadcast %614 : vector<1x64xf32> to vector<16x64xf32>
    %616 = arith.addf %613, %615 : vector<16x64xf32>
    %617 = arith.addf %531, %616 : vector<16x64xf32>
    %c34 = arith.constant 34 : index
    %c0_198 = arith.constant 0 : index
    %618 = vector.load %arg5[%c34, %c0_198] : memref<51x256xf32, #tpu.memory_space<vmem>>, vector<1x64xf32>
    %c35 = arith.constant 35 : index
    %c0_199 = arith.constant 0 : index
    %619 = vector.load %arg5[%c35, %c0_199] : memref<51x256xf32, #tpu.memory_space<vmem>>, vector<1x64xf32>
    %cst_200 = arith.constant dense<0.000000e+00> : vector<16xf32>
    %620 = vector.multi_reduction <add>, %617, %cst_200 [1] : vector<16x64xf32> to vector<16xf32>
    %621 = vector.shape_cast %620 : vector<16xf32> to vector<16x1xf32>
    %cst_201 = arith.constant 6.400000e+01 : f32
    %622 = vector.broadcast %cst_201 : f32 to vector<16x1xf32>
    %623 = arith.divf %621, %622 : vector<16x1xf32>
    %624 = vector.broadcast %623 : vector<16x1xf32> to vector<16x64xf32>
    %625 = arith.subf %617, %624 : vector<16x64xf32>
    %626 = arith.mulf %625, %625 : vector<16x64xf32>
    %cst_202 = arith.constant dense<0.000000e+00> : vector<16xf32>
    %627 = vector.multi_reduction <add>, %626, %cst_202 [1] : vector<16x64xf32> to vector<16xf32>
    %628 = vector.shape_cast %627 : vector<16xf32> to vector<16x1xf32>
    %cst_203 = arith.constant 6.400000e+01 : f32
    %629 = vector.broadcast %cst_203 : f32 to vector<16x1xf32>
    %630 = arith.divf %628, %629 : vector<16x1xf32>
    %631 = vector.broadcast %623 : vector<16x1xf32> to vector<16x64xf32>
    %632 = arith.subf %617, %631 : vector<16x64xf32>
    %cst_204 = arith.constant 9.99999974E-6 : f32
    %633 = vector.broadcast %cst_204 : f32 to vector<16x1xf32>
    %634 = arith.addf %630, %633 : vector<16x1xf32>
    %635 = math.rsqrt %634 : vector<16x1xf32>
    %636 = vector.broadcast %635 : vector<16x1xf32> to vector<16x64xf32>
    %637 = arith.mulf %632, %636 : vector<16x64xf32>
    %638 = vector.broadcast %618 : vector<1x64xf32> to vector<16x64xf32>
    %639 = arith.mulf %637, %638 : vector<16x64xf32>
    %640 = vector.broadcast %619 : vector<1x64xf32> to vector<16x64xf32>
    %641 = arith.addf %639, %640 : vector<16x64xf32>
    %c0_205 = arith.constant 0 : index
    %c1664 = arith.constant 1664 : index
    %642 = vector.load %arg3[%c0_205, %c1664] : memref<64x2944xf32, #tpu.memory_space<vmem>>, vector<64x128xf32>
    %cst_206 = arith.constant dense<0.000000e+00> : vector<16x128xf32>
    %643 = tpu.matmul %641, %642, %cst_206 {dimension_numbers = #tpu.dot_dimension_numbers<[1], [0], [0], [1], [0, 0, 1, 1], [], []>} : vector<16x64xf32>, vector<64x128xf32>, vector<16x128xf32> -> vector<16x128xf32>
    %c30 = arith.constant 30 : index
    %c0_207 = arith.constant 0 : index
    %644 = vector.load %arg5[%c30, %c0_207] : memref<51x256xf32, #tpu.memory_space<vmem>>, vector<1x128xf32>
    %645 = vector.broadcast %644 : vector<1x128xf32> to vector<16x128xf32>
    %646 = arith.addf %643, %645 : vector<16x128xf32>
    %cst_208 = arith.constant 0.000000e+00 : f32
    %647 = vector.broadcast %cst_208 : f32 to vector<16x128xf32>
    %648 = arith.maximumf %646, %647 : vector<16x128xf32>
    %c0_209 = arith.constant 0 : index
    %c256_210 = arith.constant 256 : index
    %649 = vector.load %arg4[%c0_209, %c256_210] : memref<128x512xf32, #tpu.memory_space<vmem>>, vector<128x64xf32>
    %cst_211 = arith.constant dense<0.000000e+00> : vector<16x64xf32>
    %650 = tpu.matmul %648, %649, %cst_211 {dimension_numbers = #tpu.dot_dimension_numbers<[1], [0], [0], [1], [0, 0, 1, 1], [], []>} : vector<16x128xf32>, vector<128x64xf32>, vector<16x64xf32> -> vector<16x64xf32>
    %c31 = arith.constant 31 : index
    %c0_212 = arith.constant 0 : index
    %651 = vector.load %arg5[%c31, %c0_212] : memref<51x256xf32, #tpu.memory_space<vmem>>, vector<1x64xf32>
    %652 = vector.broadcast %651 : vector<1x64xf32> to vector<16x64xf32>
    %653 = arith.addf %650, %652 : vector<16x64xf32>
    %654 = arith.addf %641, %653 : vector<16x64xf32>
    %c36 = arith.constant 36 : index
    %c0_213 = arith.constant 0 : index
    %655 = vector.load %arg5[%c36, %c0_213] : memref<51x256xf32, #tpu.memory_space<vmem>>, vector<1x64xf32>
    %c37 = arith.constant 37 : index
    %c0_214 = arith.constant 0 : index
    %656 = vector.load %arg5[%c37, %c0_214] : memref<51x256xf32, #tpu.memory_space<vmem>>, vector<1x64xf32>
    %cst_215 = arith.constant dense<0.000000e+00> : vector<16xf32>
    %657 = vector.multi_reduction <add>, %654, %cst_215 [1] : vector<16x64xf32> to vector<16xf32>
    %658 = vector.shape_cast %657 : vector<16xf32> to vector<16x1xf32>
    %cst_216 = arith.constant 6.400000e+01 : f32
    %659 = vector.broadcast %cst_216 : f32 to vector<16x1xf32>
    %660 = arith.divf %658, %659 : vector<16x1xf32>
    %661 = vector.broadcast %660 : vector<16x1xf32> to vector<16x64xf32>
    %662 = arith.subf %654, %661 : vector<16x64xf32>
    %663 = arith.mulf %662, %662 : vector<16x64xf32>
    %cst_217 = arith.constant dense<0.000000e+00> : vector<16xf32>
    %664 = vector.multi_reduction <add>, %663, %cst_217 [1] : vector<16x64xf32> to vector<16xf32>
    %665 = vector.shape_cast %664 : vector<16xf32> to vector<16x1xf32>
    %cst_218 = arith.constant 6.400000e+01 : f32
    %666 = vector.broadcast %cst_218 : f32 to vector<16x1xf32>
    %667 = arith.divf %665, %666 : vector<16x1xf32>
    %668 = vector.broadcast %660 : vector<16x1xf32> to vector<16x64xf32>
    %669 = arith.subf %654, %668 : vector<16x64xf32>
    %cst_219 = arith.constant 9.99999974E-6 : f32
    %670 = vector.broadcast %cst_219 : f32 to vector<16x1xf32>
    %671 = arith.addf %667, %670 : vector<16x1xf32>
    %672 = math.rsqrt %671 : vector<16x1xf32>
    %673 = vector.broadcast %672 : vector<16x1xf32> to vector<16x64xf32>
    %674 = arith.mulf %669, %673 : vector<16x64xf32>
    %675 = vector.broadcast %655 : vector<1x64xf32> to vector<16x64xf32>
    %676 = arith.mulf %674, %675 : vector<16x64xf32>
    %677 = vector.broadcast %656 : vector<1x64xf32> to vector<16x64xf32>
    %678 = arith.addf %676, %677 : vector<16x64xf32>
    %c0_220 = arith.constant 0 : index
    %c1792 = arith.constant 1792 : index
    %679 = vector.load %arg3[%c0_220, %c1792] : memref<64x2944xf32, #tpu.memory_space<vmem>>, vector<64x192xf32>
    %cst_221 = arith.constant dense<0.000000e+00> : vector<16x192xf32>
    %680 = tpu.matmul %678, %679, %cst_221 {dimension_numbers = #tpu.dot_dimension_numbers<[1], [0], [0], [1], [0, 0, 1, 1], [], []>} : vector<16x64xf32>, vector<64x192xf32>, vector<16x192xf32> -> vector<16x192xf32>
    %c38 = arith.constant 38 : index
    %c0_222 = arith.constant 0 : index
    %681 = vector.load %arg5[%c38, %c0_222] : memref<51x256xf32, #tpu.memory_space<vmem>>, vector<1x192xf32>
    %682 = vector.broadcast %681 : vector<1x192xf32> to vector<16x192xf32>
    %683 = arith.addf %680, %682 : vector<16x192xf32>
    %684 = vector.extract_strided_slice %683 {offsets = [0, 0], sizes = [16, 64], strides = [1, 1]} : vector<16x192xf32> to vector<16x64xf32>
    %685 = vector.extract_strided_slice %683 {offsets = [0, 64], sizes = [16, 64], strides = [1, 1]} : vector<16x192xf32> to vector<16x64xf32>
    %686 = vector.extract_strided_slice %683 {offsets = [0, 128], sizes = [16, 64], strides = [1, 1]} : vector<16x192xf32> to vector<16x64xf32>
    %687 = vector.extract_strided_slice %684 {offsets = [0, 0], sizes = [16, 16], strides = [1, 1]} : vector<16x64xf32> to vector<16x16xf32>
    %688 = vector.extract_strided_slice %685 {offsets = [0, 0], sizes = [16, 16], strides = [1, 1]} : vector<16x64xf32> to vector<16x16xf32>
    %689 = vector.extract_strided_slice %686 {offsets = [0, 0], sizes = [16, 16], strides = [1, 1]} : vector<16x64xf32> to vector<16x16xf32>
    %cst_223 = arith.constant dense<0.000000e+00> : vector<16x16xf32>
    %690 = tpu.matmul %687, %688, %cst_223 {dimension_numbers = #tpu.dot_dimension_numbers<[1], [1], [0], [0], [0, 0, 1, 0], [], []>} : vector<16x16xf32>, vector<16x16xf32>, vector<16x16xf32> -> vector<16x16xf32>
    %cst_224 = arith.constant 2.500000e-01 : f32
    %691 = vector.broadcast %cst_224 : f32 to vector<16x16xf32>
    %692 = arith.mulf %690, %691 : vector<16x16xf32>
    %693 = arith.addf %692, %37 : vector<16x16xf32>
    %cst_225 = arith.constant dense<0xFF800000> : vector<16xf32>
    %694 = vector.multi_reduction <maximumf>, %693, %cst_225 [1] : vector<16x16xf32> to vector<16xf32>
    %695 = vector.shape_cast %694 : vector<16xf32> to vector<16x1xf32>
    %696 = vector.broadcast %695 : vector<16x1xf32> to vector<16x16xf32>
    %697 = arith.subf %693, %696 : vector<16x16xf32>
    %698 = math.exp %697 : vector<16x16xf32>
    %cst_226 = arith.constant dense<0.000000e+00> : vector<16xf32>
    %699 = vector.multi_reduction <add>, %698, %cst_226 [1] : vector<16x16xf32> to vector<16xf32>
    %700 = vector.shape_cast %699 : vector<16xf32> to vector<16x1xf32>
    %701 = tpu.reciprocal %700 {approx = true} : vector<16x1xf32> -> vector<16x1xf32>
    %702 = vector.broadcast %701 : vector<16x1xf32> to vector<16x16xf32>
    %703 = arith.mulf %698, %702 : vector<16x16xf32>
    %cst_227 = arith.constant dense<0.000000e+00> : vector<16x16xf32>
    %704 = tpu.matmul %703, %689, %cst_227 {dimension_numbers = #tpu.dot_dimension_numbers<[1], [0], [0], [1], [0, 0, 1, 1], [], []>} : vector<16x16xf32>, vector<16x16xf32>, vector<16x16xf32> -> vector<16x16xf32>
    %705 = vector.extract_strided_slice %684 {offsets = [0, 16], sizes = [16, 16], strides = [1, 1]} : vector<16x64xf32> to vector<16x16xf32>
    %706 = vector.extract_strided_slice %685 {offsets = [0, 16], sizes = [16, 16], strides = [1, 1]} : vector<16x64xf32> to vector<16x16xf32>
    %707 = vector.extract_strided_slice %686 {offsets = [0, 16], sizes = [16, 16], strides = [1, 1]} : vector<16x64xf32> to vector<16x16xf32>
    %cst_228 = arith.constant dense<0.000000e+00> : vector<16x16xf32>
    %708 = tpu.matmul %705, %706, %cst_228 {dimension_numbers = #tpu.dot_dimension_numbers<[1], [1], [0], [0], [0, 0, 1, 0], [], []>} : vector<16x16xf32>, vector<16x16xf32>, vector<16x16xf32> -> vector<16x16xf32>
    %cst_229 = arith.constant 2.500000e-01 : f32
    %709 = vector.broadcast %cst_229 : f32 to vector<16x16xf32>
    %710 = arith.mulf %708, %709 : vector<16x16xf32>
    %711 = arith.addf %710, %37 : vector<16x16xf32>
    %cst_230 = arith.constant dense<0xFF800000> : vector<16xf32>
    %712 = vector.multi_reduction <maximumf>, %711, %cst_230 [1] : vector<16x16xf32> to vector<16xf32>
    %713 = vector.shape_cast %712 : vector<16xf32> to vector<16x1xf32>
    %714 = vector.broadcast %713 : vector<16x1xf32> to vector<16x16xf32>
    %715 = arith.subf %711, %714 : vector<16x16xf32>
    %716 = math.exp %715 : vector<16x16xf32>
    %cst_231 = arith.constant dense<0.000000e+00> : vector<16xf32>
    %717 = vector.multi_reduction <add>, %716, %cst_231 [1] : vector<16x16xf32> to vector<16xf32>
    %718 = vector.shape_cast %717 : vector<16xf32> to vector<16x1xf32>
    %719 = tpu.reciprocal %718 {approx = true} : vector<16x1xf32> -> vector<16x1xf32>
    %720 = vector.broadcast %719 : vector<16x1xf32> to vector<16x16xf32>
    %721 = arith.mulf %716, %720 : vector<16x16xf32>
    %cst_232 = arith.constant dense<0.000000e+00> : vector<16x16xf32>
    %722 = tpu.matmul %721, %707, %cst_232 {dimension_numbers = #tpu.dot_dimension_numbers<[1], [0], [0], [1], [0, 0, 1, 1], [], []>} : vector<16x16xf32>, vector<16x16xf32>, vector<16x16xf32> -> vector<16x16xf32>
    %723 = vector.extract_strided_slice %684 {offsets = [0, 32], sizes = [16, 16], strides = [1, 1]} : vector<16x64xf32> to vector<16x16xf32>
    %724 = vector.extract_strided_slice %685 {offsets = [0, 32], sizes = [16, 16], strides = [1, 1]} : vector<16x64xf32> to vector<16x16xf32>
    %725 = vector.extract_strided_slice %686 {offsets = [0, 32], sizes = [16, 16], strides = [1, 1]} : vector<16x64xf32> to vector<16x16xf32>
    %cst_233 = arith.constant dense<0.000000e+00> : vector<16x16xf32>
    %726 = tpu.matmul %723, %724, %cst_233 {dimension_numbers = #tpu.dot_dimension_numbers<[1], [1], [0], [0], [0, 0, 1, 0], [], []>} : vector<16x16xf32>, vector<16x16xf32>, vector<16x16xf32> -> vector<16x16xf32>
    %cst_234 = arith.constant 2.500000e-01 : f32
    %727 = vector.broadcast %cst_234 : f32 to vector<16x16xf32>
    %728 = arith.mulf %726, %727 : vector<16x16xf32>
    %729 = arith.addf %728, %37 : vector<16x16xf32>
    %cst_235 = arith.constant dense<0xFF800000> : vector<16xf32>
    %730 = vector.multi_reduction <maximumf>, %729, %cst_235 [1] : vector<16x16xf32> to vector<16xf32>
    %731 = vector.shape_cast %730 : vector<16xf32> to vector<16x1xf32>
    %732 = vector.broadcast %731 : vector<16x1xf32> to vector<16x16xf32>
    %733 = arith.subf %729, %732 : vector<16x16xf32>
    %734 = math.exp %733 : vector<16x16xf32>
    %cst_236 = arith.constant dense<0.000000e+00> : vector<16xf32>
    %735 = vector.multi_reduction <add>, %734, %cst_236 [1] : vector<16x16xf32> to vector<16xf32>
    %736 = vector.shape_cast %735 : vector<16xf32> to vector<16x1xf32>
    %737 = tpu.reciprocal %736 {approx = true} : vector<16x1xf32> -> vector<16x1xf32>
    %738 = vector.broadcast %737 : vector<16x1xf32> to vector<16x16xf32>
    %739 = arith.mulf %734, %738 : vector<16x16xf32>
    %cst_237 = arith.constant dense<0.000000e+00> : vector<16x16xf32>
    %740 = tpu.matmul %739, %725, %cst_237 {dimension_numbers = #tpu.dot_dimension_numbers<[1], [0], [0], [1], [0, 0, 1, 1], [], []>} : vector<16x16xf32>, vector<16x16xf32>, vector<16x16xf32> -> vector<16x16xf32>
    %741 = vector.extract_strided_slice %684 {offsets = [0, 48], sizes = [16, 16], strides = [1, 1]} : vector<16x64xf32> to vector<16x16xf32>
    %742 = vector.extract_strided_slice %685 {offsets = [0, 48], sizes = [16, 16], strides = [1, 1]} : vector<16x64xf32> to vector<16x16xf32>
    %743 = vector.extract_strided_slice %686 {offsets = [0, 48], sizes = [16, 16], strides = [1, 1]} : vector<16x64xf32> to vector<16x16xf32>
    %cst_238 = arith.constant dense<0.000000e+00> : vector<16x16xf32>
    %744 = tpu.matmul %741, %742, %cst_238 {dimension_numbers = #tpu.dot_dimension_numbers<[1], [1], [0], [0], [0, 0, 1, 0], [], []>} : vector<16x16xf32>, vector<16x16xf32>, vector<16x16xf32> -> vector<16x16xf32>
    %cst_239 = arith.constant 2.500000e-01 : f32
    %745 = vector.broadcast %cst_239 : f32 to vector<16x16xf32>
    %746 = arith.mulf %744, %745 : vector<16x16xf32>
    %747 = arith.addf %746, %37 : vector<16x16xf32>
    %cst_240 = arith.constant dense<0xFF800000> : vector<16xf32>
    %748 = vector.multi_reduction <maximumf>, %747, %cst_240 [1] : vector<16x16xf32> to vector<16xf32>
    %749 = vector.shape_cast %748 : vector<16xf32> to vector<16x1xf32>
    %750 = vector.broadcast %749 : vector<16x1xf32> to vector<16x16xf32>
    %751 = arith.subf %747, %750 : vector<16x16xf32>
    %752 = math.exp %751 : vector<16x16xf32>
    %cst_241 = arith.constant dense<0.000000e+00> : vector<16xf32>
    %753 = vector.multi_reduction <add>, %752, %cst_241 [1] : vector<16x16xf32> to vector<16xf32>
    %754 = vector.shape_cast %753 : vector<16xf32> to vector<16x1xf32>
    %755 = tpu.reciprocal %754 {approx = true} : vector<16x1xf32> -> vector<16x1xf32>
    %756 = vector.broadcast %755 : vector<16x1xf32> to vector<16x16xf32>
    %757 = arith.mulf %752, %756 : vector<16x16xf32>
    %cst_242 = arith.constant dense<0.000000e+00> : vector<16x16xf32>
    %758 = tpu.matmul %757, %743, %cst_242 {dimension_numbers = #tpu.dot_dimension_numbers<[1], [0], [0], [1], [0, 0, 1, 1], [], []>} : vector<16x16xf32>, vector<16x16xf32>, vector<16x16xf32> -> vector<16x16xf32>
    %759 = tpu.concatenate %704, %722, %740, %758 in 1 : vector<16x16xf32>, vector<16x16xf32>, vector<16x16xf32>, vector<16x16xf32> -> vector<16x64xf32>
    %c0_243 = arith.constant 0 : index
    %c2048 = arith.constant 2048 : index
    %760 = vector.load %arg3[%c0_243, %c2048] : memref<64x2944xf32, #tpu.memory_space<vmem>>, vector<64x64xf32>
    %cst_244 = arith.constant dense<0.000000e+00> : vector<16x64xf32>
    %761 = tpu.matmul %759, %760, %cst_244 {dimension_numbers = #tpu.dot_dimension_numbers<[1], [0], [0], [1], [0, 0, 1, 1], [], []>} : vector<16x64xf32>, vector<64x64xf32>, vector<16x64xf32> -> vector<16x64xf32>
    %c39 = arith.constant 39 : index
    %c0_245 = arith.constant 0 : index
    %762 = vector.load %arg5[%c39, %c0_245] : memref<51x256xf32, #tpu.memory_space<vmem>>, vector<1x64xf32>
    %763 = vector.broadcast %762 : vector<1x64xf32> to vector<16x64xf32>
    %764 = arith.addf %761, %763 : vector<16x64xf32>
    %765 = arith.addf %678, %764 : vector<16x64xf32>
    %c44 = arith.constant 44 : index
    %c0_246 = arith.constant 0 : index
    %766 = vector.load %arg5[%c44, %c0_246] : memref<51x256xf32, #tpu.memory_space<vmem>>, vector<1x64xf32>
    %c45 = arith.constant 45 : index
    %c0_247 = arith.constant 0 : index
    %767 = vector.load %arg5[%c45, %c0_247] : memref<51x256xf32, #tpu.memory_space<vmem>>, vector<1x64xf32>
    %cst_248 = arith.constant dense<0.000000e+00> : vector<16xf32>
    %768 = vector.multi_reduction <add>, %765, %cst_248 [1] : vector<16x64xf32> to vector<16xf32>
    %769 = vector.shape_cast %768 : vector<16xf32> to vector<16x1xf32>
    %cst_249 = arith.constant 6.400000e+01 : f32
    %770 = vector.broadcast %cst_249 : f32 to vector<16x1xf32>
    %771 = arith.divf %769, %770 : vector<16x1xf32>
    %772 = vector.broadcast %771 : vector<16x1xf32> to vector<16x64xf32>
    %773 = arith.subf %765, %772 : vector<16x64xf32>
    %774 = arith.mulf %773, %773 : vector<16x64xf32>
    %cst_250 = arith.constant dense<0.000000e+00> : vector<16xf32>
    %775 = vector.multi_reduction <add>, %774, %cst_250 [1] : vector<16x64xf32> to vector<16xf32>
    %776 = vector.shape_cast %775 : vector<16xf32> to vector<16x1xf32>
    %cst_251 = arith.constant 6.400000e+01 : f32
    %777 = vector.broadcast %cst_251 : f32 to vector<16x1xf32>
    %778 = arith.divf %776, %777 : vector<16x1xf32>
    %779 = vector.broadcast %771 : vector<16x1xf32> to vector<16x64xf32>
    %780 = arith.subf %765, %779 : vector<16x64xf32>
    %cst_252 = arith.constant 9.99999974E-6 : f32
    %781 = vector.broadcast %cst_252 : f32 to vector<16x1xf32>
    %782 = arith.addf %778, %781 : vector<16x1xf32>
    %783 = math.rsqrt %782 : vector<16x1xf32>
    %784 = vector.broadcast %783 : vector<16x1xf32> to vector<16x64xf32>
    %785 = arith.mulf %780, %784 : vector<16x64xf32>
    %786 = vector.broadcast %766 : vector<1x64xf32> to vector<16x64xf32>
    %787 = arith.mulf %785, %786 : vector<16x64xf32>
    %788 = vector.broadcast %767 : vector<1x64xf32> to vector<16x64xf32>
    %789 = arith.addf %787, %788 : vector<16x64xf32>
    %c0_253 = arith.constant 0 : index
    %c2176 = arith.constant 2176 : index
    %790 = vector.load %arg3[%c0_253, %c2176] : memref<64x2944xf32, #tpu.memory_space<vmem>>, vector<64x64xf32>
    %cst_254 = arith.constant dense<0.000000e+00> : vector<16x64xf32>
    %791 = tpu.matmul %789, %790, %cst_254 {dimension_numbers = #tpu.dot_dimension_numbers<[1], [0], [0], [1], [0, 0, 1, 1], [], []>} : vector<16x64xf32>, vector<64x64xf32>, vector<16x64xf32> -> vector<16x64xf32>
    %c40 = arith.constant 40 : index
    %c0_255 = arith.constant 0 : index
    %792 = vector.load %arg5[%c40, %c0_255] : memref<51x256xf32, #tpu.memory_space<vmem>>, vector<1x64xf32>
    %793 = vector.broadcast %792 : vector<1x64xf32> to vector<16x64xf32>
    %794 = arith.addf %791, %793 : vector<16x64xf32>
    %795 = vector.extract_strided_slice %420 {offsets = [0, 128], sizes = [16, 64], strides = [1, 1]} : vector<16x256xf32> to vector<16x64xf32>
    %796 = vector.extract_strided_slice %420 {offsets = [0, 192], sizes = [16, 64], strides = [1, 1]} : vector<16x256xf32> to vector<16x64xf32>
    %797 = vector.extract_strided_slice %794 {offsets = [0, 0], sizes = [16, 16], strides = [1, 1]} : vector<16x64xf32> to vector<16x16xf32>
    %798 = vector.extract_strided_slice %795 {offsets = [0, 0], sizes = [16, 16], strides = [1, 1]} : vector<16x64xf32> to vector<16x16xf32>
    %799 = vector.extract_strided_slice %796 {offsets = [0, 0], sizes = [16, 16], strides = [1, 1]} : vector<16x64xf32> to vector<16x16xf32>
    %cst_256 = arith.constant dense<0.000000e+00> : vector<16x16xf32>
    %800 = tpu.matmul %797, %798, %cst_256 {dimension_numbers = #tpu.dot_dimension_numbers<[1], [1], [0], [0], [0, 0, 1, 0], [], []>} : vector<16x16xf32>, vector<16x16xf32>, vector<16x16xf32> -> vector<16x16xf32>
    %cst_257 = arith.constant 2.500000e-01 : f32
    %801 = vector.broadcast %cst_257 : f32 to vector<16x16xf32>
    %802 = arith.mulf %800, %801 : vector<16x16xf32>
    %803 = arith.addf %802, %37 : vector<16x16xf32>
    %cst_258 = arith.constant dense<0xFF800000> : vector<16xf32>
    %804 = vector.multi_reduction <maximumf>, %803, %cst_258 [1] : vector<16x16xf32> to vector<16xf32>
    %805 = vector.shape_cast %804 : vector<16xf32> to vector<16x1xf32>
    %806 = vector.broadcast %805 : vector<16x1xf32> to vector<16x16xf32>
    %807 = arith.subf %803, %806 : vector<16x16xf32>
    %808 = math.exp %807 : vector<16x16xf32>
    %cst_259 = arith.constant dense<0.000000e+00> : vector<16xf32>
    %809 = vector.multi_reduction <add>, %808, %cst_259 [1] : vector<16x16xf32> to vector<16xf32>
    %810 = vector.shape_cast %809 : vector<16xf32> to vector<16x1xf32>
    %811 = tpu.reciprocal %810 {approx = true} : vector<16x1xf32> -> vector<16x1xf32>
    %812 = vector.broadcast %811 : vector<16x1xf32> to vector<16x16xf32>
    %813 = arith.mulf %808, %812 : vector<16x16xf32>
    %cst_260 = arith.constant dense<0.000000e+00> : vector<16x16xf32>
    %814 = tpu.matmul %813, %799, %cst_260 {dimension_numbers = #tpu.dot_dimension_numbers<[1], [0], [0], [1], [0, 0, 1, 1], [], []>} : vector<16x16xf32>, vector<16x16xf32>, vector<16x16xf32> -> vector<16x16xf32>
    %815 = vector.extract_strided_slice %794 {offsets = [0, 16], sizes = [16, 16], strides = [1, 1]} : vector<16x64xf32> to vector<16x16xf32>
    %816 = vector.extract_strided_slice %795 {offsets = [0, 16], sizes = [16, 16], strides = [1, 1]} : vector<16x64xf32> to vector<16x16xf32>
    %817 = vector.extract_strided_slice %796 {offsets = [0, 16], sizes = [16, 16], strides = [1, 1]} : vector<16x64xf32> to vector<16x16xf32>
    %cst_261 = arith.constant dense<0.000000e+00> : vector<16x16xf32>
    %818 = tpu.matmul %815, %816, %cst_261 {dimension_numbers = #tpu.dot_dimension_numbers<[1], [1], [0], [0], [0, 0, 1, 0], [], []>} : vector<16x16xf32>, vector<16x16xf32>, vector<16x16xf32> -> vector<16x16xf32>
    %cst_262 = arith.constant 2.500000e-01 : f32
    %819 = vector.broadcast %cst_262 : f32 to vector<16x16xf32>
    %820 = arith.mulf %818, %819 : vector<16x16xf32>
    %821 = arith.addf %820, %37 : vector<16x16xf32>
    %cst_263 = arith.constant dense<0xFF800000> : vector<16xf32>
    %822 = vector.multi_reduction <maximumf>, %821, %cst_263 [1] : vector<16x16xf32> to vector<16xf32>
    %823 = vector.shape_cast %822 : vector<16xf32> to vector<16x1xf32>
    %824 = vector.broadcast %823 : vector<16x1xf32> to vector<16x16xf32>
    %825 = arith.subf %821, %824 : vector<16x16xf32>
    %826 = math.exp %825 : vector<16x16xf32>
    %cst_264 = arith.constant dense<0.000000e+00> : vector<16xf32>
    %827 = vector.multi_reduction <add>, %826, %cst_264 [1] : vector<16x16xf32> to vector<16xf32>
    %828 = vector.shape_cast %827 : vector<16xf32> to vector<16x1xf32>
    %829 = tpu.reciprocal %828 {approx = true} : vector<16x1xf32> -> vector<16x1xf32>
    %830 = vector.broadcast %829 : vector<16x1xf32> to vector<16x16xf32>
    %831 = arith.mulf %826, %830 : vector<16x16xf32>
    %cst_265 = arith.constant dense<0.000000e+00> : vector<16x16xf32>
    %832 = tpu.matmul %831, %817, %cst_265 {dimension_numbers = #tpu.dot_dimension_numbers<[1], [0], [0], [1], [0, 0, 1, 1], [], []>} : vector<16x16xf32>, vector<16x16xf32>, vector<16x16xf32> -> vector<16x16xf32>
    %833 = vector.extract_strided_slice %794 {offsets = [0, 32], sizes = [16, 16], strides = [1, 1]} : vector<16x64xf32> to vector<16x16xf32>
    %834 = vector.extract_strided_slice %795 {offsets = [0, 32], sizes = [16, 16], strides = [1, 1]} : vector<16x64xf32> to vector<16x16xf32>
    %835 = vector.extract_strided_slice %796 {offsets = [0, 32], sizes = [16, 16], strides = [1, 1]} : vector<16x64xf32> to vector<16x16xf32>
    %cst_266 = arith.constant dense<0.000000e+00> : vector<16x16xf32>
    %836 = tpu.matmul %833, %834, %cst_266 {dimension_numbers = #tpu.dot_dimension_numbers<[1], [1], [0], [0], [0, 0, 1, 0], [], []>} : vector<16x16xf32>, vector<16x16xf32>, vector<16x16xf32> -> vector<16x16xf32>
    %cst_267 = arith.constant 2.500000e-01 : f32
    %837 = vector.broadcast %cst_267 : f32 to vector<16x16xf32>
    %838 = arith.mulf %836, %837 : vector<16x16xf32>
    %839 = arith.addf %838, %37 : vector<16x16xf32>
    %cst_268 = arith.constant dense<0xFF800000> : vector<16xf32>
    %840 = vector.multi_reduction <maximumf>, %839, %cst_268 [1] : vector<16x16xf32> to vector<16xf32>
    %841 = vector.shape_cast %840 : vector<16xf32> to vector<16x1xf32>
    %842 = vector.broadcast %841 : vector<16x1xf32> to vector<16x16xf32>
    %843 = arith.subf %839, %842 : vector<16x16xf32>
    %844 = math.exp %843 : vector<16x16xf32>
    %cst_269 = arith.constant dense<0.000000e+00> : vector<16xf32>
    %845 = vector.multi_reduction <add>, %844, %cst_269 [1] : vector<16x16xf32> to vector<16xf32>
    %846 = vector.shape_cast %845 : vector<16xf32> to vector<16x1xf32>
    %847 = tpu.reciprocal %846 {approx = true} : vector<16x1xf32> -> vector<16x1xf32>
    %848 = vector.broadcast %847 : vector<16x1xf32> to vector<16x16xf32>
    %849 = arith.mulf %844, %848 : vector<16x16xf32>
    %cst_270 = arith.constant dense<0.000000e+00> : vector<16x16xf32>
    %850 = tpu.matmul %849, %835, %cst_270 {dimension_numbers = #tpu.dot_dimension_numbers<[1], [0], [0], [1], [0, 0, 1, 1], [], []>} : vector<16x16xf32>, vector<16x16xf32>, vector<16x16xf32> -> vector<16x16xf32>
    %851 = vector.extract_strided_slice %794 {offsets = [0, 48], sizes = [16, 16], strides = [1, 1]} : vector<16x64xf32> to vector<16x16xf32>
    %852 = vector.extract_strided_slice %795 {offsets = [0, 48], sizes = [16, 16], strides = [1, 1]} : vector<16x64xf32> to vector<16x16xf32>
    %853 = vector.extract_strided_slice %796 {offsets = [0, 48], sizes = [16, 16], strides = [1, 1]} : vector<16x64xf32> to vector<16x16xf32>
    %cst_271 = arith.constant dense<0.000000e+00> : vector<16x16xf32>
    %854 = tpu.matmul %851, %852, %cst_271 {dimension_numbers = #tpu.dot_dimension_numbers<[1], [1], [0], [0], [0, 0, 1, 0], [], []>} : vector<16x16xf32>, vector<16x16xf32>, vector<16x16xf32> -> vector<16x16xf32>
    %cst_272 = arith.constant 2.500000e-01 : f32
    %855 = vector.broadcast %cst_272 : f32 to vector<16x16xf32>
    %856 = arith.mulf %854, %855 : vector<16x16xf32>
    %857 = arith.addf %856, %37 : vector<16x16xf32>
    %cst_273 = arith.constant dense<0xFF800000> : vector<16xf32>
    %858 = vector.multi_reduction <maximumf>, %857, %cst_273 [1] : vector<16x16xf32> to vector<16xf32>
    %859 = vector.shape_cast %858 : vector<16xf32> to vector<16x1xf32>
    %860 = vector.broadcast %859 : vector<16x1xf32> to vector<16x16xf32>
    %861 = arith.subf %857, %860 : vector<16x16xf32>
    %862 = math.exp %861 : vector<16x16xf32>
    %cst_274 = arith.constant dense<0.000000e+00> : vector<16xf32>
    %863 = vector.multi_reduction <add>, %862, %cst_274 [1] : vector<16x16xf32> to vector<16xf32>
    %864 = vector.shape_cast %863 : vector<16xf32> to vector<16x1xf32>
    %865 = tpu.reciprocal %864 {approx = true} : vector<16x1xf32> -> vector<16x1xf32>
    %866 = vector.broadcast %865 : vector<16x1xf32> to vector<16x16xf32>
    %867 = arith.mulf %862, %866 : vector<16x16xf32>
    %cst_275 = arith.constant dense<0.000000e+00> : vector<16x16xf32>
    %868 = tpu.matmul %867, %853, %cst_275 {dimension_numbers = #tpu.dot_dimension_numbers<[1], [0], [0], [1], [0, 0, 1, 1], [], []>} : vector<16x16xf32>, vector<16x16xf32>, vector<16x16xf32> -> vector<16x16xf32>
    %869 = tpu.concatenate %814, %832, %850, %868 in 1 : vector<16x16xf32>, vector<16x16xf32>, vector<16x16xf32>, vector<16x16xf32> -> vector<16x64xf32>
    %c0_276 = arith.constant 0 : index
    %c2304 = arith.constant 2304 : index
    %870 = vector.load %arg3[%c0_276, %c2304] : memref<64x2944xf32, #tpu.memory_space<vmem>>, vector<64x64xf32>
    %cst_277 = arith.constant dense<0.000000e+00> : vector<16x64xf32>
    %871 = tpu.matmul %869, %870, %cst_277 {dimension_numbers = #tpu.dot_dimension_numbers<[1], [0], [0], [1], [0, 0, 1, 1], [], []>} : vector<16x64xf32>, vector<64x64xf32>, vector<16x64xf32> -> vector<16x64xf32>
    %c41 = arith.constant 41 : index
    %c0_278 = arith.constant 0 : index
    %872 = vector.load %arg5[%c41, %c0_278] : memref<51x256xf32, #tpu.memory_space<vmem>>, vector<1x64xf32>
    %873 = vector.broadcast %872 : vector<1x64xf32> to vector<16x64xf32>
    %874 = arith.addf %871, %873 : vector<16x64xf32>
    %875 = arith.addf %789, %874 : vector<16x64xf32>
    %c46 = arith.constant 46 : index
    %c0_279 = arith.constant 0 : index
    %876 = vector.load %arg5[%c46, %c0_279] : memref<51x256xf32, #tpu.memory_space<vmem>>, vector<1x64xf32>
    %c47 = arith.constant 47 : index
    %c0_280 = arith.constant 0 : index
    %877 = vector.load %arg5[%c47, %c0_280] : memref<51x256xf32, #tpu.memory_space<vmem>>, vector<1x64xf32>
    %cst_281 = arith.constant dense<0.000000e+00> : vector<16xf32>
    %878 = vector.multi_reduction <add>, %875, %cst_281 [1] : vector<16x64xf32> to vector<16xf32>
    %879 = vector.shape_cast %878 : vector<16xf32> to vector<16x1xf32>
    %cst_282 = arith.constant 6.400000e+01 : f32
    %880 = vector.broadcast %cst_282 : f32 to vector<16x1xf32>
    %881 = arith.divf %879, %880 : vector<16x1xf32>
    %882 = vector.broadcast %881 : vector<16x1xf32> to vector<16x64xf32>
    %883 = arith.subf %875, %882 : vector<16x64xf32>
    %884 = arith.mulf %883, %883 : vector<16x64xf32>
    %cst_283 = arith.constant dense<0.000000e+00> : vector<16xf32>
    %885 = vector.multi_reduction <add>, %884, %cst_283 [1] : vector<16x64xf32> to vector<16xf32>
    %886 = vector.shape_cast %885 : vector<16xf32> to vector<16x1xf32>
    %cst_284 = arith.constant 6.400000e+01 : f32
    %887 = vector.broadcast %cst_284 : f32 to vector<16x1xf32>
    %888 = arith.divf %886, %887 : vector<16x1xf32>
    %889 = vector.broadcast %881 : vector<16x1xf32> to vector<16x64xf32>
    %890 = arith.subf %875, %889 : vector<16x64xf32>
    %cst_285 = arith.constant 9.99999974E-6 : f32
    %891 = vector.broadcast %cst_285 : f32 to vector<16x1xf32>
    %892 = arith.addf %888, %891 : vector<16x1xf32>
    %893 = math.rsqrt %892 : vector<16x1xf32>
    %894 = vector.broadcast %893 : vector<16x1xf32> to vector<16x64xf32>
    %895 = arith.mulf %890, %894 : vector<16x64xf32>
    %896 = vector.broadcast %876 : vector<1x64xf32> to vector<16x64xf32>
    %897 = arith.mulf %895, %896 : vector<16x64xf32>
    %898 = vector.broadcast %877 : vector<1x64xf32> to vector<16x64xf32>
    %899 = arith.addf %897, %898 : vector<16x64xf32>
    %c0_286 = arith.constant 0 : index
    %c2432 = arith.constant 2432 : index
    %900 = vector.load %arg3[%c0_286, %c2432] : memref<64x2944xf32, #tpu.memory_space<vmem>>, vector<64x128xf32>
    %cst_287 = arith.constant dense<0.000000e+00> : vector<16x128xf32>
    %901 = tpu.matmul %899, %900, %cst_287 {dimension_numbers = #tpu.dot_dimension_numbers<[1], [0], [0], [1], [0, 0, 1, 1], [], []>} : vector<16x64xf32>, vector<64x128xf32>, vector<16x128xf32> -> vector<16x128xf32>
    %c42 = arith.constant 42 : index
    %c0_288 = arith.constant 0 : index
    %902 = vector.load %arg5[%c42, %c0_288] : memref<51x256xf32, #tpu.memory_space<vmem>>, vector<1x128xf32>
    %903 = vector.broadcast %902 : vector<1x128xf32> to vector<16x128xf32>
    %904 = arith.addf %901, %903 : vector<16x128xf32>
    %cst_289 = arith.constant 0.000000e+00 : f32
    %905 = vector.broadcast %cst_289 : f32 to vector<16x128xf32>
    %906 = arith.maximumf %904, %905 : vector<16x128xf32>
    %c0_290 = arith.constant 0 : index
    %c384_291 = arith.constant 384 : index
    %907 = vector.load %arg4[%c0_290, %c384_291] : memref<128x512xf32, #tpu.memory_space<vmem>>, vector<128x64xf32>
    %cst_292 = arith.constant dense<0.000000e+00> : vector<16x64xf32>
    %908 = tpu.matmul %906, %907, %cst_292 {dimension_numbers = #tpu.dot_dimension_numbers<[1], [0], [0], [1], [0, 0, 1, 1], [], []>} : vector<16x128xf32>, vector<128x64xf32>, vector<16x64xf32> -> vector<16x64xf32>
    %c43 = arith.constant 43 : index
    %c0_293 = arith.constant 0 : index
    %909 = vector.load %arg5[%c43, %c0_293] : memref<51x256xf32, #tpu.memory_space<vmem>>, vector<1x64xf32>
    %910 = vector.broadcast %909 : vector<1x64xf32> to vector<16x64xf32>
    %911 = arith.addf %908, %910 : vector<16x64xf32>
    %912 = arith.addf %899, %911 : vector<16x64xf32>
    %c48 = arith.constant 48 : index
    %c0_294 = arith.constant 0 : index
    %913 = vector.load %arg5[%c48, %c0_294] : memref<51x256xf32, #tpu.memory_space<vmem>>, vector<1x64xf32>
    %c49 = arith.constant 49 : index
    %c0_295 = arith.constant 0 : index
    %914 = vector.load %arg5[%c49, %c0_295] : memref<51x256xf32, #tpu.memory_space<vmem>>, vector<1x64xf32>
    %cst_296 = arith.constant dense<0.000000e+00> : vector<16xf32>
    %915 = vector.multi_reduction <add>, %912, %cst_296 [1] : vector<16x64xf32> to vector<16xf32>
    %916 = vector.shape_cast %915 : vector<16xf32> to vector<16x1xf32>
    %cst_297 = arith.constant 6.400000e+01 : f32
    %917 = vector.broadcast %cst_297 : f32 to vector<16x1xf32>
    %918 = arith.divf %916, %917 : vector<16x1xf32>
    %919 = vector.broadcast %918 : vector<16x1xf32> to vector<16x64xf32>
    %920 = arith.subf %912, %919 : vector<16x64xf32>
    %921 = arith.mulf %920, %920 : vector<16x64xf32>
    %cst_298 = arith.constant dense<0.000000e+00> : vector<16xf32>
    %922 = vector.multi_reduction <add>, %921, %cst_298 [1] : vector<16x64xf32> to vector<16xf32>
    %923 = vector.shape_cast %922 : vector<16xf32> to vector<16x1xf32>
    %cst_299 = arith.constant 6.400000e+01 : f32
    %924 = vector.broadcast %cst_299 : f32 to vector<16x1xf32>
    %925 = arith.divf %923, %924 : vector<16x1xf32>
    %926 = vector.broadcast %918 : vector<16x1xf32> to vector<16x64xf32>
    %927 = arith.subf %912, %926 : vector<16x64xf32>
    %cst_300 = arith.constant 9.99999974E-6 : f32
    %928 = vector.broadcast %cst_300 : f32 to vector<16x1xf32>
    %929 = arith.addf %925, %928 : vector<16x1xf32>
    %930 = math.rsqrt %929 : vector<16x1xf32>
    %931 = vector.broadcast %930 : vector<16x1xf32> to vector<16x64xf32>
    %932 = arith.mulf %927, %931 : vector<16x64xf32>
    %933 = vector.broadcast %913 : vector<1x64xf32> to vector<16x64xf32>
    %934 = arith.mulf %932, %933 : vector<16x64xf32>
    %935 = vector.broadcast %914 : vector<1x64xf32> to vector<16x64xf32>
    %936 = arith.addf %934, %935 : vector<16x64xf32>
    %c8 = arith.constant 8 : index
    %c0_301 = arith.constant 0 : index
    %937 = vector.load %arg5[%c8, %c0_301] : memref<51x256xf32, #tpu.memory_space<vmem>>, vector<1x64xf32>
    %c9 = arith.constant 9 : index
    %c0_302 = arith.constant 0 : index
    %938 = vector.load %arg5[%c9, %c0_302] : memref<51x256xf32, #tpu.memory_space<vmem>>, vector<1x64xf32>
    %cst_303 = arith.constant dense<0.000000e+00> : vector<16xf32>
    %939 = vector.multi_reduction <add>, %936, %cst_303 [1] : vector<16x64xf32> to vector<16xf32>
    %940 = vector.shape_cast %939 : vector<16xf32> to vector<16x1xf32>
    %cst_304 = arith.constant 6.400000e+01 : f32
    %941 = vector.broadcast %cst_304 : f32 to vector<16x1xf32>
    %942 = arith.divf %940, %941 : vector<16x1xf32>
    %943 = vector.broadcast %942 : vector<16x1xf32> to vector<16x64xf32>
    %944 = arith.subf %936, %943 : vector<16x64xf32>
    %945 = arith.mulf %944, %944 : vector<16x64xf32>
    %cst_305 = arith.constant dense<0.000000e+00> : vector<16xf32>
    %946 = vector.multi_reduction <add>, %945, %cst_305 [1] : vector<16x64xf32> to vector<16xf32>
    %947 = vector.shape_cast %946 : vector<16xf32> to vector<16x1xf32>
    %cst_306 = arith.constant 6.400000e+01 : f32
    %948 = vector.broadcast %cst_306 : f32 to vector<16x1xf32>
    %949 = arith.divf %947, %948 : vector<16x1xf32>
    %950 = vector.broadcast %942 : vector<16x1xf32> to vector<16x64xf32>
    %951 = arith.subf %936, %950 : vector<16x64xf32>
    %cst_307 = arith.constant 9.99999974E-6 : f32
    %952 = vector.broadcast %cst_307 : f32 to vector<16x1xf32>
    %953 = arith.addf %949, %952 : vector<16x1xf32>
    %954 = math.rsqrt %953 : vector<16x1xf32>
    %955 = vector.broadcast %954 : vector<16x1xf32> to vector<16x64xf32>
    %956 = arith.mulf %951, %955 : vector<16x64xf32>
    %957 = vector.broadcast %937 : vector<1x64xf32> to vector<16x64xf32>
    %958 = arith.mulf %956, %957 : vector<16x64xf32>
    %959 = vector.broadcast %938 : vector<1x64xf32> to vector<16x64xf32>
    %960 = arith.addf %958, %959 : vector<16x64xf32>
    %c0_308 = arith.constant 0 : index
    %c2816 = arith.constant 2816 : index
    %961 = vector.load %arg3[%c0_308, %c2816] : memref<64x2944xf32, #tpu.memory_space<vmem>>, vector<64x8xf32>
    %cst_309 = arith.constant dense<0.000000e+00> : vector<16x8xf32>
    %962 = tpu.matmul %960, %961, %cst_309 {dimension_numbers = #tpu.dot_dimension_numbers<[1], [0], [0], [1], [0, 0, 1, 1], [], []>} : vector<16x64xf32>, vector<64x8xf32>, vector<16x8xf32> -> vector<16x8xf32>
    %c1 = arith.constant 1 : index
    %c0_310 = arith.constant 0 : index
    %963 = vector.load %arg5[%c1, %c0_310] : memref<51x256xf32, #tpu.memory_space<vmem>>, vector<1x8xf32>
    %964 = vector.broadcast %963 : vector<1x8xf32> to vector<16x8xf32>
    %965 = arith.addf %962, %964 : vector<16x8xf32>
    %c0_311 = arith.constant 0 : index
    %c0_312 = arith.constant 0 : index
    %966 = vector.load %arg6[%c0_311, %c0_312] : memref<16x8xf32, #tpu.memory_space<vmem>>, vector<16x8xf32>
    tpu.vector_store %arg6[%c0_311, %c0_312], %965 {strides = array<i32>} : memref<16x8xf32, #tpu.memory_space<vmem>>, vector<16x8xf32>,
    return
  }
}

</mosaic_0001>

<bundles_post_ra>
// kernel: numeric_transformer_forward.1
= control target key start
LH: loop header
LB: loop body
LE: loop exit
PB: predicated region body
PF: predicated region fallthrough
CT: control target
= control target key end

     0   :  { %11 = vsyncpa [#allocation3], 0  ;;  %s10852_s0 = inlined_call_operand.hbm [shape: f32[16,16], index: 0, kind: input, shape index: {}]   ;;  %s10853_s1 = inlined_call_operand.hbm [shape: f32[16,16], index: 1, kind: input, shape index: {}]   ;;  %s10854_s2 = inlined_call_operand.hbm [shape: f32[16,64], index: 2, kind: input, shape index: {}]   ;;  %s10855_s3 = inlined_call_operand.hbm [shape: f32[64,2944], index: 3, kind: input, shape index: {}]   ;;  %s10856_s4 = inlined_call_operand.hbm [shape: f32[128,512], index: 4, kind: input, shape index: {}]   ;;  %s10857_s5 = inlined_call_operand.hbm [shape: f32[51,256], index: 5, kind: input, shape index: {}]   ;;  %s10858_s6 = inlined_call_operand.hbm [shape: f32[16,8], index: 6, kind: output, shape index: {}]  }
   0x1   :  { %12 = vsyncpa [#allocation6], 0 }
   0x2   :  { %13 = vsyncpa [#allocation9], 0 }
   0x3   :  { %14 = vsyncpa [#allocation12], 0 }
   0x4   :  { %15 = vsyncpa [#allocation4], 0  ;;  %s9710_s21 = smov [#allocation5]   ;;  %s9711_s23 = smov [#allocation8]  }
   0x5   :  { %s33_s22 = sshll.u32 %s9710_s21, 4  ;;  %s57_s24 = sshll.u32 %s9711_s23, 4  ;;  %s34_s22 = int_to_ptr.vmem [resolvable:$true] %s33_s22  ;;  %s58_s24 = int_to_ptr.vmem [resolvable:$true] %s57_s24 }
   0x6   :  { %s9568_s25 = scalar_lea.vmem %s34_s22, 256  ;;  %p9573_p1 = scmp.lt.s32.totalorder %s34_s22, %s34_s22 }
   0x7   :  { %p9569_p0 = scmp.ne.s32.totalorder %s34_s22, %s9568_s25  ;;  %p9574_p2 = scmp.lt.s32.totalorder %s9568_s25, %s9568_s25 }
   0x9   :  { %p9575_p3 = por %p9574_p2, %p9573_p1 }
   0xb   :  { %p9576_p4 = pnand %p9575_p3, %p9569_p0 }
   0xd   :  { %9579 = shalt.err (!%p9576_p4)
}
   0xe   :  { %s9712_s26 = smov 128   ;;  %s9713_s27 = smov 8  }
   0xf   :  { %39 = dma.hbm_to_vmem [thread:$0]  %s10853_s1, 256, %s34_s22, [#allocation6], %s9712_s26, %s9712_s26, %s9713_s27  }
  0x10   :  { %s9588_s30 = scalar_lea.vmem %s58_s24, 23552  ;;  %p9593_p6 = scmp.lt.s32.totalorder %s58_s24, %s58_s24 }
  0x11   :  { %p9589_p5 = scmp.ne.s32.totalorder %s58_s24, %s9588_s30  ;;  %p9594_p7 = scmp.lt.s32.totalorder %s9588_s30, %s9588_s30 }
  0x13   :  { %p9595_p8 = por %p9594_p7, %p9593_p6 }
  0x15   :  { %p9596_p9 = pnand %p9595_p8, %p9589_p5 }
  0x17   :  { %9599 = shalt.err (!%p9596_p9)
}
  0x18   :  { %s9714_s7 = smov 2944   ;;  %s9715_s8 = smov 184  }
  0x19   :  { %63 = dma.hbm_to_vmem [thread:$0]  %s10855_s3, 23552, %s58_s24, [#allocation9], %s9714_s7, %s9714_s7, %s9715_s8  }
  0x1a   :  { %s9716_s11 = smov [#allocation2]   ;;  %s9717_s13 = smov [#allocation7]  }
  0x1b   :  { %s21_s12 = sshll.u32 %s9716_s11, 4  ;;  %s45_s14 = sshll.u32 %s9717_s13, 4  ;;  %s22_s12 = int_to_ptr.vmem [resolvable:$true] %s21_s12  ;;  %s46_s14 = int_to_ptr.vmem [resolvable:$true] %s45_s14 }
  0x1c   :  { %s9608_s1 = scalar_lea.vmem %s22_s12, 256  ;;  %p9613_p11 = scmp.lt.s32.totalorder %s22_s12, %s22_s12 }
  0x1d   :  { %p9609_p10 = scmp.ne.s32.totalorder %s22_s12, %s9608_s1  ;;  %p9614_p12 = scmp.lt.s32.totalorder %s9608_s1, %s9608_s1 }
  0x1f   :  { %p9615_p13 = por %p9614_p12, %p9613_p11 }
  0x21   :  { %p9616_p0 = pnand %p9615_p13, %p9609_p10 }
  0x23   :  { %9619 = shalt.err (!%p9616_p0)
}
  0x24   :  { %27 = dma.hbm_to_vmem [thread:$0]  %s10852_s0, 256, %s22_s12, [#allocation3], %s9712_s26, %s9712_s26, %s9713_s27  }
  0x25   :  { %s9628_s3 = scalar_lea.vmem %s46_s14, 256  ;;  %p9633_p2 = scmp.lt.s32.totalorder %s46_s14, %s46_s14 }
  0x26   :  { %p9629_p1 = scmp.ne.s32.totalorder %s46_s14, %s9628_s3  ;;  %p9634_p3 = scmp.lt.s32.totalorder %s9628_s3, %s9628_s3 }
  0x28   :  { %p9635_p4 = por %p9634_p3, %p9633_p2 }
  0x2a   :  { %p9636_p5 = pnand %p9635_p4, %p9629_p1 }
  0x2c   :  { %9639 = shalt.err (!%p9636_p5)
}
  0x2d   :  { %51 = dma.hbm_to_vmem [thread:$0]  %s10854_s2, 256, %s46_s14, [#allocation6], %s9712_s26, %s9712_s26, %s9713_s27  }
  0x2e   :  { %s9718_s19 = smov [#allocation10]  }
  0x2f   :  { %s69_s20 = sshll.u32 %s9718_s19, 4  ;;  %s70_s20 = int_to_ptr.vmem [resolvable:$true] %s69_s20 }
  0x30   :  { %s9648_s21 = scalar_lea.vmem %s70_s20, 8192  ;;  %p9653_p7 = scmp.lt.s32.totalorder %s70_s20, %s70_s20 }
  0x31   :  { %p9649_p6 = scmp.ne.s32.totalorder %s70_s20, %s9648_s21  ;;  %p9654_p8 = scmp.lt.s32.totalorder %s9648_s21, %s9648_s21 }
  0x33   :  { %p9655_p9 = por %p9654_p8, %p9653_p7 }
  0x35   :  { %p9656_p10 = pnand %p9655_p9, %p9649_p6 }
  0x37   :  { %9659 = shalt.err (!%p9656_p10)
}
  0x38   :  { %s9719_s0 = smov 512   ;;  %s9720_s22 = smov 32  }
  0x39   :  { %75 = dma.hbm_to_vmem [thread:$0]  %s10856_s4, 8192, %s70_s20, [#allocation9], %s9719_s0, %s9719_s0, %s9720_s22  }
  0x3a   :  { %s9721_s25 = smov [#allocation11]  }
  0x3b   :  { %s81_s28 = sshll.u32 %s9721_s25, 4  ;;  %s82_s28 = int_to_ptr.vmem [resolvable:$true] %s81_s28 }
  0x3c   :  { %s9668_s2 = scalar_lea.vmem %s82_s28, 1792  ;;  %p9673_p12 = scmp.lt.s32.totalorder %s82_s28, %s82_s28 }
  0x3d   :  { %p9669_p11 = scmp.ne.s32.totalorder %s82_s28, %s9668_s2  ;;  %p9674_p13 = scmp.lt.s32.totalorder %s9668_s2, %s9668_s2 }
  0x3f   :  { %p9675_p0 = por %p9674_p13, %p9673_p12 }
  0x41   :  { %p9676_p1 = pnand %p9675_p0, %p9669_p11 }
  0x43   :  { %9679 = shalt.err (!%p9676_p1)
}
  0x44   :  { %s9722_s29 = smov 256   ;;  %s9723_s30 = smov 16  }
  0x45   :  { %87 = dma.hbm_to_vmem [thread:$0]  %s10857_s5, 1792, %s82_s28, [#allocation12], %s9722_s29, %s9722_s29, %s9723_s30  }
  0x46   :  { %9700 = dma.done.wait [#allocation3], 256  }
  0x47   :  { %9701 = vsyncadd [#allocation3], 4294967040 }
  0x48   :  { %9702 = dma.done.wait [#allocation6], 512  }
  0x49   :  { %9703 = vsyncadd [#allocation6], 4294966784 }
  0x4a   :  { %9704 = dma.done.wait [#allocation9], 31744  }
  0x4b   :  { %9705 = vsyncadd [#allocation9], 4294935552 }
  0x4c   :  { %9706 = dma.done.wait [#allocation12], 1792  }
  0x4d   :  { %9707 = vsyncadd [#allocation12], 4294965504  ;;  %vm156_vm0 = vcmask 130048   ;;  %v152_v0 = vld [vmem:[#allocation7 + $0x8] sm:$0xff]  ;;  %v151_v1 = vld [vmem:[#allocation7] sm:$0xff]  ;;  %vm323_vm1 = vcmask 523264   ;;  %v106_v56 = vlaneseq }
  0x4e   :  { %v154_v2 = vld [vmem:[#allocation2] sm:$0xff]  ;;  %8552 = vmatprep.subr.mxu0 %v152_v0  ;;  %v155_v3 = vld [vmem:[#allocation2 + $0x8] sm:$0xff]  ;;  %8559 = vmatprep.subr.mxu1 %v152_v0  ;;  %v153_v5 = vld [vmem:[#allocation11] ss:$0 sm:$0xff]  ;;  %v9724_v26 = vmov 0.0   ;;  %s9725_s4 = smov 64  }
  0x4f   :  { %8556 = vmatprep.mubr.msk.f32.mxu0 %vm156_vm0, %v154_v2  ;;  %8553 = vmatpush3.msra.mxu0 %v152_v0  ;;  %v402_v21 = vld [vmem:[#allocation8 + $0x510] sm:$0xff]  ;;  %v401_v22 = vld [vmem:[#allocation8 + $0x508] sm:$0xff]  ;;  %v400_v23 = vld [vmem:[#allocation8 + $0x458] sm:$0xff]  ;;  %v107_v57 = vshrl.u32 %v106_v56, 7  ;;  %s9727_s5 = smov 48   ;;  %s9728_s9 = smov 112  }
  0x50   :  { %8554 = vmatprep.subr.mxu0 %v151_v1  ;;  %8560 = vmatpush3.msra.mxu1 %v152_v0  ;;  %v399_v24 = vld [vmem:[#allocation8 + $0x450] sm:$0xff]  ;;  %v398_v25 = vld [vmem:[#allocation8 + $0x3a0] sm:$0xff]  ;;  %v397_v27 = vld [vmem:[#allocation8 + $0x398] sm:$0xff]  ;;  %s9729_s10 = smov 96   ;;  %s9730_s11 = smov 80   ;;  %vm1335_vm4 = vcmask 261120  }
  0x51   :  { %8555 = vmatpush3.msra.mxu0 %v151_v1  ;;  %8561 = vmatprep.subr.mxu1 %v151_v1  ;;  %v396_v28 = vld [vmem:[#allocation8 + $0x2e8] sm:$0xff]  ;;  %v395_v29 = vld [vmem:[#allocation8 + $0x2e0] sm:$0xff]  ;;  %v394_v30 = vld [vmem:[#allocation8 + $0x230] sm:$0xff]  ;;  %v9814_v58 = vsub.s32 0, %v107_v57  ;;  %v9827_v2 = vsub.s32 1, %v107_v57  ;;  %vm1338_vm5 = vcmask 392192  }
  0x52   :  { %8557 = vmatmul.mubr.msk.f32.vlgmr.msra.gmra.mxu0 %vm156_vm0, %v155_v3  ;;  %8562 = vmatpush3.msra.mxu1 %v151_v1  ;;  %v393_v31 = vld [vmem:[#allocation8 + $0x228] sm:$0xff]  ;;  %v392_v32 = vld [vmem:[#allocation8 + $0x178] sm:$0xff]  ;;  %v391_v33 = vld [vmem:[#allocation8 + $0x170] sm:$0xff]  ;;  %vm7943_vm6 = vcmask 64512   ;;  %s9731_s12 = smov [#allocation13]  }
  0x53   :  { %438 = vmatprep.subr.mxu0 %v402_v21  ;;  %486 = vmatprep.mubr.f32.mxu0 %v9724_v26  ;;  %v390_v34 = vld [vmem:[#allocation8 + $0xc0] sm:$0xff]  ;;  %v389_v35 = vld [vmem:[#allocation8 + $0xb8] sm:$0xff]  ;;  %v388_v36 = vld [vmem:[#allocation8 + $0x8] sm:$0xff]  ;;  %s7951_s13 = sshll.u32 %s9731_s12, 4  ;;  %s7952_s13 = int_to_ptr.vmem [resolvable:$true] %s7951_s13 }
  0x54   :  { %439 = vmatpush1.msra.mxu0 %v401_v22  ;;  %v387_v37 = vld [vmem:[#allocation8] sm:$0xff]  ;;  %v239_v55 = vld [vmem:[#allocation5 + $0x8] sm:$0xff]  ;;  %v404_v59 = vld [vmem:[#allocation11 + $0x12] ss:$8 sm:$0x3]  ;;  %s9680_s14 = scalar_lea.vmem %s7952_s13, 256  ;;  %p9685_p3 = scmp.lt.s32.totalorder %s7952_s13, %s7952_s13 }
  0x55   :  { %440 = vmatprep.subr.mxu0 %v400_v23  ;;  %v321_v45 = vld [vmem:[#allocation11 + $0x2] ss:$0 sm:$0xff]  ;;  %v322_v47 = vld [vmem:[#allocation11 + $0x3] ss:$0 sm:$0xff]  ;;  %v409_v60 = vrot.slane %v404_v59, %v9814_v58  ;;  %p9681_p2 = scmp.ne.s32.totalorder %s7952_s13, %s9680_s14  ;;  %p9686_p4 = scmp.lt.s32.totalorder %s9680_s14, %s9680_s14 }
  0x56   :  { %441 = vmatpush1.msra.mxu0 %v399_v24  ;;  %v238_v54 = vld [vmem:[#allocation5] sm:$0xff] }
  0x57   :  { %442 = vmatprep.subr.mxu0 %v398_v25  ;;  %8563 = vmatprep.mubr.msk.f32.mxu1 %vm156_vm0, %v238_v54  ;;  %p9687_p5 = por %p9686_p4, %p9685_p3 }
  0x58   :  { %443 = vmatpush1.msra.mxu0 %v397_v27  ;;  %8564 = vmatmul.mubr.msk.f32.vlgmr.msra.gmra.mxu1 %vm156_vm0, %v239_v55 }
  0x59   :  { %444 = vmatprep.subr.mxu0 %v396_v28  ;;  %p9688_p6 = pnand %p9687_p5, %p9681_p2 }
  0x5a   :  { %445 = vmatpush1.msra.mxu0 %v395_v29 }
  0x5b   :  { %446 = vmatprep.subr.mxu0 %v394_v30 }
  0x5c   :  { %447 = vmatpush1.msra.mxu0 %v393_v31 }
  0x5d   :  { %448 = vmatprep.subr.mxu0 %v392_v32 }
  0x5e   :  { %449 = vmatpush1.msra.mxu0 %v391_v33 }
  0x5f   :  { %450 = vmatprep.subr.mxu0 %v390_v34 }
  0x60   :  { %451 = vmatpush1.msra.mxu0 %v389_v35 }
  0x61   :  { %452 = vmatprep.subr.mxu0 %v388_v36 }
  0x62   :  { %453 = vmatpush1.msra.mxu0 %v387_v37 }
 0x112   :  { %v8558_v4 = vpop.f32.mrf.mxu0 }
 0x113   :  { %v235_v8 = vadd.f32 %v8558_v4, %v153_v5 }
 0x114   :  { %v229_v6 = vpop.f32.mrf.mxu0 }
 0x115   :  { %v230_v7 = vadd.f32 %v229_v6, %v153_v5  ;;  %v327_v10 = vsel %vm323_vm1, %v235_v8, 0.0  ;;  %v413_v6 = vrot.slane %v404_v59, %v9827_v2 }
 0x117   :  { %v324_v9 = vsel %vm323_vm1, %v230_v7, 0.0 }
 0x118   :  { %325 = vadd.xlane.f32.xlu0 %v324_v9  ;;  %v108_v9 = vadd.s32 8, %v107_v57 }
 0x11c   :  { %328 = vadd.xlane.f32.xlu0 %v327_v10  ;;  %v110_v10 = vand.u32 127, %v106_v56 }
 0x1a1   :  { %v326_v11 = vpop.xlane.xlu0 %325 }
 0x1a2   :  { %v331_v12 = vmul.f32 0.015625, %v326_v11  ;;  %v122_v11 = vand.u32 1, %v108_v9 }
 0x1a4   :  { %v333_v13 = vsub.f32 %v230_v7, %v331_v12  ;;  %v139_v12 = vand.u32 1, %v110_v10 }
 0x1a5   :  { %v329_v14 = vpop.xlane.xlu0 %328 }
 0x1a6   :  { %v332_v15 = vmul.f32 0.015625, %v329_v14  ;;  %v335_v16 = vmul.f32 %v333_v13, %v333_v13  ;;  %v115_v14 = vand.u32 1, %v107_v57  ;;  %vm148_vm2 = vcmp.eq.s32.totalorder %v122_v11, %v139_v12 }
 0x1a8   :  { %v334_v17 = vsub.f32 %v235_v8, %v332_v15  ;;  %v337_v18 = vsel %vm323_vm1, %v335_v16, 0.0  ;;  %vm147_vm3 = vcmp.eq.s32.totalorder %v115_v14, %v139_v12  ;;  %v9726_v16 = vmov -1e+30  }
 0x1a9   :  { %338 = vadd.xlane.f32.xlu1 %v337_v18 }
 0x1aa   :  { %v336_v19 = vmul.f32 %v334_v17, %v334_v17 }
 0x1ac   :  { %v340_v20 = vsel %vm323_vm1, %v336_v19, 0.0 }
 0x1ad   :  { %341 = vadd.xlane.f32.xlu1 %v340_v20  ;;  %v9850_v20 = vsel %vm147_vm3, 0.0, %v9726_v16 }
 0x232   :  { %v339_v38 = vpop.xlane.xlu1 %338 }
 0x233   :  { %v343_v39 = vmul.f32 0.015625, %v339_v38 }
 0x235   :  { %v345_v40 = vadd.f32 1e-05, %v343_v39 }
 0x236   :  { %v342_v41 = vpop.xlane.xlu1 %341 }
 0x237   :  { %9311 = vrsqrt.f32 %v345_v40  ;;  %v344_v42 = vmul.f32 0.015625, %v342_v41 }
 0x239   :  { %v346_v43 = vadd.f32 1e-05, %v344_v42 }
 0x23b   :  { %9313 = vrsqrt.f32 %v346_v43 }
 0x244   :  { %v9312_v44 = vpop.eup %9311 }
 0x245   :  { %v349_v46 = vmul.f32 %v9312_v44, %v333_v13  ;;  %v9844_v13 = vpop.f32.mrf.mxu1 }
 0x247   :  { %v351_v48 = vmul.f32 %v349_v46, %v321_v45  ;;  %v9846_v15 = vpop.f32.mrf.mxu1 }
 0x248   :  { %v9314_v49 = vpop.eup %9313 }
 0x249   :  { %v9803_v50 = vadd.f32 %v351_v48, %v322_v47  ;;  %v350_v51 = vmul.f32 %v9314_v49, %v334_v17  ;;  %v9848_v17 = vsel %vm148_vm2, 0.0, %v9726_v16 }
 0x24b   :  { %7970 = vmatmul.mubr.msk.f32.vlgmr.msra.gmra.mxu0 %vm323_vm1, %v9803_v50  ;;  %v352_v52 = vmul.f32 %v350_v51, %v321_v45 }
 0x24c   :  { %492 = vmatprep.mubr.f32.mxu0 %v9724_v26 }
 0x24d   :  { %v9808_v53 = vadd.f32 %v352_v52, %v322_v47 }
 0x24f   :  { %7971 = vmatmul.mubr.msk.f32.gmra.mxu0 %vm323_vm1, %v9808_v53 }
 0x30b   :  { %v488_v61 = vpop.f32.mrf.mxu0 }
 0x30c   :  { %v9817_v62 = vadd.f32 %v488_v61, %v409_v60 }
 0x30d   :  { %v490_v63 = vpop.f32.mrf.mxu0 }
 0x30e   :  { %8570 = vmatprep.mubr.msk.f32.mxu1 %vm156_vm0, %v9817_v62  ;;  %501 = vrot.lane.b32.xlu1 %v9817_v62, %s9725_s4  ;;  %v9837_v8 = vadd.f32 %v490_v63, %v413_v6 }
 0x30f   :  { %v494_v0 = vpop.f32.mrf.mxu0 }
 0x310   :  { %v9823_v1 = vadd.f32 %v494_v0, %v409_v60 }
 0x311   :  { %v496_v4 = vpop.f32.mrf.mxu0 }
 0x312   :  { %503 = vrot.lane.b32.xlu0 %v9823_v1, %s9725_s4  ;;  %v9833_v7 = vadd.f32 %v496_v4, %v413_v6 }
 0x380   :  { %v502_v5 = vpop.permute.xlu1 %501 }
 0x384   :  { %v504_v3 = vpop.permute.xlu0 %503 }
 0x385   :  { %8566 = vmatprep.subr.msk.mxu1 %vm156_vm0, %v504_v3 }
 0x386   :  { %8567 = vmatpush3.xpose.msk.msra.mxu1 %vm156_vm0, %v504_v3 }
 0x387   :  { %8568 = vmatprep.subr.msk.mxu1 %vm156_vm0, %v502_v5 }
 0x38a   :  { %8569 = vmatpush3.xpose.msk.msra.mxu1 %vm156_vm0, %v502_v5 }
 0x38b   :  { %8573 = vmatprep.subr.mxu1 %v9833_v7 }
 0x38d   :  { %8571 = vmatmul.mubr.msk.f32.vlgmr.msra.gmra.mxu1 %vm156_vm0, %v9823_v1 }
 0x38e   :  { %8574 = vmatpush3.msra.mxu1 %v9833_v7 }
 0x38f   :  { %8575 = vmatprep.subr.mxu1 %v9837_v8 }
 0x390   :  { %8576 = vmatpush3.msra.mxu1 %v9837_v8 }
 0x44d   :  { %v8572_v18 = vpop.f32.mrf.mxu1 }
 0x44e   :  { %v589_v19 = vmul.f32 0.25, %v8572_v18 }
 0x44f   :  { %v579_v21 = vpop.f32.mrf.mxu1 }
 0x450   :  { %v588_v22 = vmul.f32 0.25, %v579_v21  ;;  %v591_v23 = vadd.f32 %v589_v19, %v9848_v17 }
 0x452   :  { %v595_v24 = vsel %vm156_vm0, %v591_v23, -inf  ;;  %v590_v25 = vadd.f32 %v588_v22, %v9850_v20 }
 0x453   :  { %596 = vmax.xlane.f32.xlu0 %v595_v24 }
 0x454   :  { %v592_v27 = vsel %vm156_vm0, %v590_v25, -inf }
 0x455   :  { %593 = vmax.xlane.f32.xlu1 %v592_v27 }
 0x4dc   :  { %v597_v28 = vpop.xlane.xlu0 %596 }
 0x4dd   :  { %v599_v29 = vsub.f32 %v591_v23, %v597_v28 }
 0x4de   :  { %v594_v30 = vpop.xlane.xlu1 %593 }
 0x4df   :  { %v602_v31 = vmul.f32 1.442695, %v599_v29  ;;  %v598_v32 = vsub.f32 %v590_v25, %v594_v30 }
 0x4e1   :  { %9315 = vpow2.f32 %v602_v31  ;;  %v600_v33 = vmul.f32 1.442695, %v598_v32 }
 0x4e3   :  { %9317 = vpow2.f32 %v600_v33 }
 0x4ee   :  { %v9316_v34 = vpop.eup %9315 }
 0x4ef   :  { %v607_v35 = vsel %vm156_vm0, %v9316_v34, 0.0 }
 0x4f0   :  { %v9318_v36 = vpop.eup %9317  ;;  %608 = vadd.xlane.f32.xlu1 %v607_v35 }
 0x4f1   :  { %v604_v37 = vsel %vm156_vm0, %v9318_v36, 0.0 }
 0x4f2   :  { %605 = vadd.xlane.f32.xlu0 %v604_v37 }
 0x501   :  { %699 = vrot.lane.b32.xlu1 %v9817_v62, %s9727_s5 }
 0x505   :  { %695 = vrot.lane.b32.xlu1 %v9817_v62, %s9728_s9 }
 0x508   :  { %701 = vrot.lane.b32.xlu0 %v9823_v1, %s9727_s5 }
 0x509   :  { %907 = vrot.lane.b32.xlu1 %v9823_v1, %s9720_s22 }
 0x50c   :  { %697 = vrot.lane.b32.xlu0 %v9823_v1, %s9728_s9 }
 0x50d   :  { %905 = vrot.lane.b32.xlu1 %v9817_v62, %s9720_s22 }
 0x510   :  { %901 = vrot.lane.b32.xlu0 %v9817_v62, %s9729_s10 }
 0x511   :  { %1111 = vrot.lane.b32.xlu1 %v9823_v1, %s9723_s30 }
 0x514   :  { %903 = vrot.lane.b32.xlu0 %v9823_v1, %s9729_s10 }
 0x515   :  { %1109 = vrot.lane.b32.xlu1 %v9817_v62, %s9723_s30 }
 0x518   :  { %1105 = vrot.lane.b32.xlu0 %v9817_v62, %s9730_s11 }
 0x519   :  { %1107 = vrot.lane.b32.xlu1 %v9823_v1, %s9730_s11 }
 0x579   :  { %v609_v38 = vpop.xlane.xlu1 %608 }
 0x57a   :  { %9319 = vrcp.f32 %v609_v38 }
 0x57b   :  { %v606_v39 = vpop.xlane.xlu0 %605 }
 0x57c   :  { %9321 = vrcp.f32 %v606_v39 }
 0x57d   :  { %v700_v41 = vpop.permute.xlu1 %699 }
 0x57f   :  { %v702_v40 = vpop.permute.xlu0 %701 }
 0x580   :  { %8580 = vmatprep.subr.msk.mxu1 %vm156_vm0, %v702_v40 }
 0x581   :  { %v696_v42 = vpop.permute.xlu1 %695 }
 0x583   :  { %v698_v46 = vpop.permute.xlu0 %697 }
 0x585   :  { %v908_v48 = vpop.permute.xlu1 %907 }
 0x587   :  { %v9320_v43 = vpop.eup %9319  ;;  %v902_v49 = vpop.permute.xlu0 %901 }
 0x588   :  { %v613_v47 = vmul.f32 %v9320_v43, %v9316_v34 }
 0x589   :  { %v9322_v44 = vpop.eup %9321  ;;  %v906_v51 = vpop.permute.xlu1 %905 }
 0x58a   :  { %v612_v45 = vmul.f32 %v9322_v44, %v9318_v36 }
 0x58b   :  { %v904_v52 = vpop.permute.xlu0 %903 }
 0x58c   :  { %8577 = vmatprep.mubr.msk.f32.mxu1 %vm156_vm0, %v612_v45 }
 0x58d   :  { %8578 = vmatmul.mubr.msk.f32.vlgmr.msra.gmra.mxu1 %vm156_vm0, %v613_v47  ;;  %v1112_v54 = vpop.permute.xlu1 %1111 }
 0x58e   :  { %8581 = vmatpush3.xpose.msk.msra.mxu1 %vm156_vm0, %v702_v40  ;;  %8584 = vmatprep.mubr.msk.f32.mxu1 %vm156_vm0, %v696_v42 }
 0x58f   :  { %8582 = vmatprep.subr.msk.mxu1 %vm156_vm0, %v700_v41  ;;  %v1106_v55 = vpop.permute.xlu0 %1105 }
 0x591   :  { %v1110_v56 = vpop.permute.xlu1 %1109 }
 0x592   :  { %8583 = vmatpush3.xpose.msk.msra.mxu1 %vm156_vm0, %v700_v41 }
 0x593   :  { %8594 = vmatprep.subr.msk.mxu1 %vm156_vm0, %v908_v48 }
 0x595   :  { %8585 = vmatmul.mubr.msk.f32.vlgmr.msra.gmra.mxu1 %vm156_vm0, %v698_v46  ;;  %v1108_v57 = vpop.permute.xlu1 %1107 }
 0x596   :  { %8595 = vmatpush3.xpose.msk.msra.mxu1 %vm156_vm0, %v908_v48  ;;  %8598 = vmatprep.mubr.msk.f32.mxu1 %vm156_vm0, %v902_v49 }
 0x597   :  { %8596 = vmatprep.subr.msk.mxu1 %vm156_vm0, %v906_v51 }
 0x59a   :  { %8597 = vmatpush3.xpose.msk.msra.mxu1 %vm156_vm0, %v906_v51 }
 0x59b   :  { %8608 = vmatprep.subr.msk.mxu1 %vm156_vm0, %v1112_v54 }
 0x59d   :  { %8599 = vmatmul.mubr.msk.f32.vlgmr.msra.gmra.mxu1 %vm156_vm0, %v904_v52 }
 0x59e   :  { %8609 = vmatpush3.xpose.msk.msra.mxu1 %vm156_vm0, %v1112_v54  ;;  %8612 = vmatprep.mubr.msk.f32.mxu1 %vm156_vm0, %v1106_v55 }
 0x59f   :  { %8610 = vmatprep.subr.msk.mxu1 %vm156_vm0, %v1110_v56 }
 0x5a2   :  { %8611 = vmatpush3.xpose.msk.msra.mxu1 %vm156_vm0, %v1110_v56 }
 0x5a5   :  { %8613 = vmatmul.mubr.msk.f32.vlgmr.msra.gmra.mxu1 %vm156_vm0, %v1108_v57 }
 0x64d   :  { %v9902_v59 = vpop.f32.mrf.mxu1 }
 0x64f   :  { %v9904_v60 = vpop.f32.mrf.mxu1 }
 0x655   :  { %v8586_v61 = vpop.f32.mrf.mxu1 }
 0x656   :  { %v787_v62 = vmul.f32 0.25, %v8586_v61 }
 0x657   :  { %v777_v63 = vpop.f32.mrf.mxu1 }
 0x658   :  { %v786_v0 = vmul.f32 0.25, %v777_v63  ;;  %v789_v1 = vadd.f32 %v787_v62, %v9848_v17 }
 0x65a   :  { %v793_v3 = vsel %vm156_vm0, %v789_v1, -inf  ;;  %v788_v4 = vadd.f32 %v786_v0, %v9850_v20 }
 0x65b   :  { %794 = vmax.xlane.f32.xlu1 %v793_v3 }
 0x65c   :  { %v790_v5 = vsel %vm156_vm0, %v788_v4, -inf }
 0x65d   :  { %791 = vmax.xlane.f32.xlu0 %v790_v5  ;;  %v8600_v6 = vpop.f32.mrf.mxu1 }
 0x65e   :  { %v993_v9 = vmul.f32 0.25, %v8600_v6 }
 0x65f   :  { %v983_v10 = vpop.f32.mrf.mxu1 }
 0x660   :  { %v992_v11 = vmul.f32 0.25, %v983_v10  ;;  %v995_v12 = vadd.f32 %v993_v9, %v9848_v17 }
 0x662   :  { %v999_v14 = vsel %vm156_vm0, %v995_v12, -inf  ;;  %v994_v16 = vadd.f32 %v992_v11, %v9850_v20 }
 0x663   :  { %1000 = vmax.xlane.f32.xlu0 %v999_v14 }
 0x664   :  { %v996_v21 = vsel %vm156_vm0, %v994_v16, -inf }
 0x665   :  { %v8614_v18 = vpop.f32.mrf.mxu1 }
 0x666   :  { %v1197_v19 = vmul.f32 0.25, %v8614_v18 }
 0x667   :  { %997 = vmax.xlane.f32.xlu0 %v996_v21  ;;  %v1187_v22 = vpop.f32.mrf.mxu1 }
 0x668   :  { %v1196_v23 = vmul.f32 0.25, %v1187_v22  ;;  %v1199_v24 = vadd.f32 %v1197_v19, %v9848_v17 }
 0x66a   :  { %v1203_v25 = vsel %vm156_vm0, %v1199_v24, -inf  ;;  %v1198_v27 = vadd.f32 %v1196_v23, %v9850_v20 }
 0x66b   :  { %1204 = vmax.xlane.f32.xlu1 %v1203_v25 }
 0x66c   :  { %v1200_v28 = vsel %vm156_vm0, %v1198_v27, -inf }
 0x66d   :  { %1201 = vmax.xlane.f32.xlu0 %v1200_v28 }
 0x67c   :  { %814 = vrot.lane.b32.xlu1 %v9837_v8, %s9728_s9 }
 0x680   :  { %1020 = vrot.lane.b32.xlu1 %v9833_v7, %s9729_s10 }
 0x683   :  { %816 = vrot.lane.b32.xlu0 %v9833_v7, %s9728_s9 }
 0x684   :  { %1224 = vrot.lane.b32.xlu1 %v9833_v7, %s9730_s11 }
 0x6e4   :  { %v795_v29 = vpop.xlane.xlu1 %794 }
 0x6e5   :  { %v797_v30 = vsub.f32 %v789_v1, %v795_v29 }
 0x6e6   :  { %v792_v31 = vpop.xlane.xlu0 %791 }
 0x6e7   :  { %v800_v32 = vmul.f32 1.442695, %v797_v30  ;;  %v796_v33 = vsub.f32 %v788_v4, %v792_v31  ;;  %v1348_v30 = vld [vmem:[#allocation8 + $0x518] sm:$0xff]  ;;  %v1347_v31 = vld [vmem:[#allocation8 + $0x460] sm:$0xff] }
 0x6e9   :  { %9323 = vpow2.f32 %v800_v32  ;;  %v798_v34 = vmul.f32 1.442695, %v796_v33  ;;  %v1346_v32 = vld [vmem:[#allocation8 + $0x3a8] sm:$0xff]  ;;  %v1345_v33 = vld [vmem:[#allocation8 + $0x2f0] sm:$0xff] }
 0x6eb   :  { %9325 = vpow2.f32 %v798_v34 }
 0x6ec   :  { %v1001_v35 = vpop.xlane.xlu0 %1000 }
 0x6ed   :  { %v1003_v36 = vsub.f32 %v995_v12, %v1001_v35  ;;  %v1344_v35 = vld [vmem:[#allocation8 + $0x238] sm:$0xff] }
 0x6ef   :  { %v1006_v37 = vmul.f32 1.442695, %v1003_v36  ;;  %v1343_v36 = vld [vmem:[#allocation8 + $0x180] sm:$0xff] }
 0x6f0   :  { %v998_v38 = vpop.xlane.xlu0 %997 }
 0x6f1   :  { %9327 = vpow2.f32 %v1006_v37  ;;  %v1002_v39 = vsub.f32 %v994_v16, %v998_v38  ;;  %v1342_v38 = vld [vmem:[#allocation8 + $0xc8] sm:$0xff] }
 0x6f3   :  { %v1004_v40 = vmul.f32 1.442695, %v1002_v39  ;;  %v1341_v39 = vld [vmem:[#allocation8 + $0x10] sm:$0xff] }
 0x6f4   :  { %v1205_v41 = vpop.xlane.xlu1 %1204 }
 0x6f5   :  { %9329 = vpow2.f32 %v1004_v40  ;;  %v1207_v42 = vsub.f32 %v1199_v24, %v1205_v41 }
 0x6f6   :  { %v9324_v43 = vpop.eup %9323  ;;  %v1202_v7 = vpop.xlane.xlu0 %1201 }
 0x6f7   :  { %v1210_v44 = vmul.f32 1.442695, %v1207_v42  ;;  %v1206_v45 = vsub.f32 %v1198_v27, %v1202_v7  ;;  %v805_v46 = vsel %vm156_vm0, %v9324_v43, 0.0 }
 0x6f8   :  { %v9326_v47 = vpop.eup %9325  ;;  %806 = vadd.xlane.f32.xlu1 %v805_v46  ;;  %v815_v48 = vpop.permute.xlu1 %814 }
 0x6f9   :  { %9331 = vpow2.f32 %v1210_v44  ;;  %v1208_v49 = vmul.f32 1.442695, %v1206_v45  ;;  %v802_v51 = vsel %vm156_vm0, %v9326_v47, 0.0 }
 0x6fa   :  { %803 = vadd.xlane.f32.xlu0 %v802_v51  ;;  %v817_v52 = vpop.permute.xlu0 %816 }
 0x6fb   :  { %9333 = vpow2.f32 %v1208_v49  ;;  %8587 = vmatprep.subr.mxu0 %v817_v52 }
 0x6fc   :  { %8588 = vmatpush3.msra.mxu0 %v817_v52  ;;  %v1021_v54 = vpop.permute.xlu1 %1020 }
 0x6fd   :  { %8589 = vmatprep.subr.mxu0 %v815_v48 }
 0x6fe   :  { %v9328_v55 = vpop.eup %9327  ;;  %8590 = vmatpush3.msra.mxu0 %v815_v48 }
 0x6ff   :  { %8601 = vmatprep.subr.mxu0 %v1021_v54  ;;  %v1011_v56 = vsel %vm156_vm0, %v9328_v55, 0.0 }
 0x700   :  { %1012 = vadd.xlane.f32.xlu1 %v1011_v56  ;;  %v1225_v57 = vpop.permute.xlu1 %1224 }
 0x701   :  { %8615 = vmatprep.subr.mxu1 %v1225_v57 }
 0x702   :  { %v9330_v61 = vpop.eup %9329  ;;  %8616 = vmatpush3.msra.mxu1 %v1225_v57  ;;  %v1349_v57 = vld [vmem:[#allocation11 + $0x13] ss:$0 sm:$0xff] }
 0x703   :  { %v1008_v62 = vsel %vm156_vm0, %v9330_v61, 0.0 }
 0x704   :  { %1009 = vadd.xlane.f32.xlu0 %v1008_v62 }
 0x706   :  { %v9332_v63 = vpop.eup %9331 }
 0x707   :  { %v1215_v0 = vsel %vm156_vm0, %v9332_v63, 0.0 }
 0x708   :  { %v9334_v1 = vpop.eup %9333  ;;  %1216 = vadd.xlane.f32.xlu1 %v1215_v0 }
 0x709   :  { %v1212_v3 = vsel %vm156_vm0, %v9334_v1, 0.0 }
 0x70a   :  { %1213 = vadd.xlane.f32.xlu0 %v1212_v3 }
 0x719   :  { %1222 = vrot.lane.b32.xlu1 %v9837_v8, %s9730_s11 }
 0x720   :  { %1018 = vrot.lane.b32.xlu0 %v9837_v8, %s9729_s10 }
 0x781   :  { %v807_v4 = vpop.xlane.xlu1 %806 }
 0x782   :  { %9335 = vrcp.f32 %v807_v4 }
 0x783   :  { %v804_v5 = vpop.xlane.xlu0 %803 }
 0x784   :  { %9337 = vrcp.f32 %v804_v5 }
 0x789   :  { %v1013_v6 = vpop.xlane.xlu1 %1012 }
 0x78a   :  { %9339 = vrcp.f32 %v1013_v6 }
 0x78d   :  { %v1010_v9 = vpop.xlane.xlu0 %1009 }
 0x78e   :  { %9341 = vrcp.f32 %v1010_v9 }
 0x78f   :  { %v9336_v10 = vpop.eup %9335 }
 0x790   :  { %v811_v16 = vmul.f32 %v9336_v10, %v9324_v43 }
 0x791   :  { %v9338_v11 = vpop.eup %9337  ;;  %v1217_v12 = vpop.xlane.xlu1 %1216 }
 0x792   :  { %v810_v14 = vmul.f32 %v9338_v11, %v9326_v47  ;;  %9343 = vrcp.f32 %v1217_v12 }
 0x793   :  { %v1214_v18 = vpop.xlane.xlu0 %1213 }
 0x794   :  { %9345 = vrcp.f32 %v1214_v18  ;;  %8591 = vmatprep.mubr.msk.f32.mxu0 %vm156_vm0, %v810_v14  ;;  %v1471_v18 = vld [vmem:[#allocation8 + $0x468] sm:$0xff] }
 0x795   :  { %8592 = vmatmul.mubr.msk.f32.vlgmr.msra.gmra.mxu0 %vm156_vm0, %v811_v16  ;;  %v1223_v8 = vpop.permute.xlu1 %1222  ;;  %v1472_v16 = vld [vmem:[#allocation8 + $0x520] sm:$0xff] }
 0x796   :  { %8602 = vmatpush3.msra.mxu0 %v1021_v54  ;;  %8617 = vmatprep.subr.mxu1 %v1223_v8 }
 0x797   :  { %v1019_v19 = vpop.permute.xlu0 %1018  ;;  %8618 = vmatpush3.msra.mxu1 %v1223_v8  ;;  %v9340_v21 = vpop.eup %9339  ;;  %v1470_v8 = vld [vmem:[#allocation8 + $0x3b0] sm:$0xff] }
 0x798   :  { %8603 = vmatprep.subr.mxu0 %v1019_v19  ;;  %v1017_v24 = vmul.f32 %v9340_v21, %v9328_v55  ;;  %8622 = vmatprep.subr.mxu1 %v1348_v30  ;;  %v1468_v21 = vld [vmem:[#allocation8 + $0x240] sm:$0xff] }
 0x799   :  { %8604 = vmatpush3.msra.mxu0 %v1019_v19  ;;  %v1469_v19 = vld [vmem:[#allocation8 + $0x2f8] sm:$0xff] }
 0x79a   :  { %8641 = vmatprep.subr.mxu0 %v1472_v16 }
 0x79b   :  { %v9342_v22 = vpop.eup %9341 }
 0x79c   :  { %v1016_v23 = vmul.f32 %v9342_v22, %v9330_v61  ;;  %v1467_v22 = vld [vmem:[#allocation8 + $0x188] sm:$0xff] }
 0x79e   :  { %8605 = vmatprep.mubr.msk.f32.mxu0 %vm156_vm0, %v1016_v23  ;;  %v1466_v23 = vld [vmem:[#allocation8 + $0xd0] sm:$0xff] }
 0x79f   :  { %8606 = vmatmul.mubr.msk.f32.vlgmr.msra.gmra.mxu0 %vm156_vm0, %v1017_v24  ;;  %v9344_v25 = vpop.eup %9343  ;;  %v1465_v24 = vld [vmem:[#allocation8 + $0x18] sm:$0xff] }
 0x7a0   :  { %v1221_v29 = vmul.f32 %v9344_v25, %v9332_v63  ;;  %8642 = vmatpush3.msra.mxu0 %v1472_v16  ;;  %v1572_v25 = vld [vmem:[#allocation10 + $0x1e0] sm:$0xff] }
 0x7a1   :  { %v9346_v27 = vpop.eup %9345  ;;  %8643 = vmatprep.subr.mxu0 %v1471_v18 }
 0x7a2   :  { %v1220_v28 = vmul.f32 %v9346_v27, %v9334_v1  ;;  %8644 = vmatpush3.msra.mxu0 %v1471_v18  ;;  %v1571_v27 = vld [vmem:[#allocation10 + $0x1c0] sm:$0xff] }
 0x7a3   :  { %8645 = vmatprep.subr.mxu0 %v1470_v8 }
 0x7a4   :  { %8619 = vmatprep.mubr.msk.f32.mxu1 %vm156_vm0, %v1220_v28  ;;  %8646 = vmatpush3.msra.mxu0 %v1470_v8  ;;  %v1570_v28 = vld [vmem:[#allocation10 + $0x1a0] sm:$0xff] }
 0x7a5   :  { %8620 = vmatmul.mubr.msk.f32.vlgmr.msra.gmra.mxu1 %vm156_vm0, %v1221_v29  ;;  %8647 = vmatprep.subr.mxu0 %v1469_v19  ;;  %v1569_v29 = vld [vmem:[#allocation10 + $0x180] sm:$0xff] }
 0x7a6   :  { %8623 = vmatpush3.msra.mxu1 %v1348_v30  ;;  %8648 = vmatpush3.msra.mxu0 %v1469_v19  ;;  %v1568_v30 = vld [vmem:[#allocation10 + $0x160] sm:$0xff] }
 0x7a7   :  { %8624 = vmatprep.subr.mxu1 %v1347_v31  ;;  %8649 = vmatprep.subr.mxu0 %v1468_v21 }
 0x7a8   :  { %8625 = vmatpush3.msra.mxu1 %v1347_v31  ;;  %8650 = vmatpush3.msra.mxu0 %v1468_v21  ;;  %v1567_v31 = vld [vmem:[#allocation10 + $0x140] sm:$0xff] }
 0x7a9   :  { %8626 = vmatprep.subr.mxu1 %v1346_v32  ;;  %8651 = vmatprep.subr.mxu0 %v1467_v22 }
 0x7aa   :  { %8627 = vmatpush3.msra.mxu1 %v1346_v32  ;;  %8652 = vmatpush3.msra.mxu0 %v1467_v22  ;;  %v1566_v32 = vld [vmem:[#allocation10 + $0x120] sm:$0xff] }
 0x7ab   :  { %8628 = vmatprep.subr.mxu1 %v1345_v33  ;;  %8653 = vmatprep.subr.mxu0 %v1466_v23 }
 0x7ac   :  { %8629 = vmatpush3.msra.mxu1 %v1345_v33  ;;  %8654 = vmatpush3.msra.mxu0 %v1466_v23  ;;  %v1565_v33 = vld [vmem:[#allocation10 + $0x100] sm:$0xff] }
 0x7ad   :  { %8630 = vmatprep.subr.mxu1 %v1344_v35  ;;  %8655 = vmatprep.subr.mxu0 %v1465_v24 }
 0x7ae   :  { %8631 = vmatpush3.msra.mxu1 %v1344_v35  ;;  %8656 = vmatpush3.msra.mxu0 %v1465_v24  ;;  %v1563_v35 = vld [vmem:[#allocation10 + $0xc0] sm:$0xff] }
 0x7af   :  { %8632 = vmatprep.subr.mxu1 %v1343_v36 }
 0x7b0   :  { %8633 = vmatpush3.msra.mxu1 %v1343_v36  ;;  %v1562_v36 = vld [vmem:[#allocation10 + $0xa0] sm:$0xff] }
 0x7b1   :  { %8634 = vmatprep.subr.mxu1 %v1342_v38 }
 0x7b2   :  { %8635 = vmatpush3.msra.mxu1 %v1342_v38 }
 0x7b3   :  { %8636 = vmatprep.subr.mxu1 %v1341_v39 }
 0x7b4   :  { %8637 = vmatpush3.msra.mxu1 %v1341_v39 }
 0x7b5   :  { %8660 = vmatprep.subr.mxu1 %v1572_v25 }
 0x855   :  { %v8593_v34 = vpop.f32.mrf.mxu0 }
 0x856   :  { %1313 = vrot.lane.b32.xlu1 %v8593_v34, %s9723_s30  ;;  %v1564_v34 = vld [vmem:[#allocation10 + $0xe0] sm:$0xff] }
 0x857   :  { %v892_v37 = vpop.f32.mrf.mxu0 }
 0x858   :  { %1311 = vrot.lane.b32.xlu0 %v892_v37, %s9723_s30  ;;  %v1561_v37 = vld [vmem:[#allocation10 + $0x80] sm:$0xff] }
 0x85f   :  { %v8607_v40 = vpop.f32.mrf.mxu0 }
 0x860   :  { %1321 = vrot.lane.b32.xlu1 %v8607_v40, %s9720_s22 }
 0x861   :  { %v1096_v41 = vpop.f32.mrf.mxu0 }
 0x862   :  { %1319 = vrot.lane.b32.xlu0 %v1096_v41, %s9720_s22 }
 0x865   :  { %v8621_v42 = vpop.f32.mrf.mxu1 }
 0x866   :  { %1329 = vrot.lane.b32.xlu1 %v8621_v42, %s9727_s5 }
 0x867   :  { %v1300_v43 = vpop.f32.mrf.mxu1 }
 0x868   :  { %1327 = vrot.lane.b32.xlu0 %v1300_v43, %s9727_s5 }
 0x8c8   :  { %v1314_v7 = vpop.permute.xlu1 %1313 }
 0x8c9   :  { %v1334_v49 = vsel %vm156_vm0, %v9902_v59, %v1314_v7 }
 0x8ca   :  { %v1312_v44 = vpop.permute.xlu0 %1311 }
 0x8cb   :  { %v1333_v47 = vsel %vm156_vm0, %v9904_v60, %v1312_v44  ;;  %v1433_v44 = vld [vmem:[#allocation11 + $0x16] ss:$0 sm:$0xff] }
 0x8d2   :  { %v1322_v45 = vpop.permute.xlu1 %1321 }
 0x8d3   :  { %v1337_v54 = vsel %vm1335_vm4, %v1334_v49, %v1322_v45 }
 0x8d4   :  { %v1320_v46 = vpop.permute.xlu0 %1319 }
 0x8d5   :  { %v1336_v51 = vsel %vm1335_vm4, %v1333_v47, %v1320_v46  ;;  %v1434_v46 = vld [vmem:[#allocation11 + $0x17] ss:$0 sm:$0xff] }
 0x8d8   :  { %v1330_v48 = vpop.permute.xlu1 %1329 }
 0x8d9   :  { %v1340_v56 = vsel %vm1338_vm5, %v1337_v54, %v1330_v48 }
 0x8da   :  { %v1328_v52 = vpop.permute.xlu0 %1327 }
 0x8db   :  { %v1339_v55 = vsel %vm1338_vm5, %v1336_v51, %v1328_v52 }
 0x8dc   :  { %8638 = vmatprep.mubr.msk.f32.mxu1 %vm323_vm1, %v1339_v55  ;;  %v1560_v55 = vld [vmem:[#allocation10 + $0x60] sm:$0xff] }
 0x8dd   :  { %8639 = vmatmul.mubr.msk.f32.vlgmr.msra.gmra.mxu1 %vm323_vm1, %v1340_v56  ;;  %v1559_v56 = vld [vmem:[#allocation10 + $0x40] sm:$0xff] }
 0x8de   :  { %8661 = vmatpush3.msra.mxu1 %v1572_v25 }
 0x8df   :  { %8662 = vmatprep.subr.mxu1 %v1571_v27 }
 0x8e0   :  { %8663 = vmatpush3.msra.mxu1 %v1571_v27  ;;  %v1698_v27 = vld [vmem:[#allocation8 + $0x530] sm:$0xff] }
 0x8e1   :  { %8664 = vmatprep.subr.mxu1 %v1570_v28  ;;  %1734 = vmatprep.subr.mxu0 %v1698_v27 }
 0x8e2   :  { %8665 = vmatpush3.msra.mxu1 %v1570_v28  ;;  %v1697_v28 = vld [vmem:[#allocation8 + $0x528] sm:$0xff] }
 0x8e3   :  { %8666 = vmatprep.subr.mxu1 %v1569_v29 }
 0x8e4   :  { %8667 = vmatpush3.msra.mxu1 %v1569_v29  ;;  %v1696_v29 = vld [vmem:[#allocation8 + $0x478] sm:$0xff] }
 0x8e5   :  { %8668 = vmatprep.subr.mxu1 %v1568_v30 }
 0x8e6   :  { %8669 = vmatpush3.msra.mxu1 %v1568_v30  ;;  %v1695_v30 = vld [vmem:[#allocation8 + $0x470] sm:$0xff] }
 0x8e7   :  { %8670 = vmatprep.subr.mxu1 %v1567_v31 }
 0x8e8   :  { %8671 = vmatpush3.msra.mxu1 %v1567_v31  ;;  %v1694_v31 = vld [vmem:[#allocation8 + $0x3c0] sm:$0xff] }
 0x8e9   :  { %8672 = vmatprep.subr.mxu1 %v1566_v32 }
 0x8ea   :  { %8673 = vmatpush3.msra.mxu1 %v1566_v32  ;;  %v1693_v32 = vld [vmem:[#allocation8 + $0x3b8] sm:$0xff] }
 0x8eb   :  { %8674 = vmatprep.subr.mxu1 %v1565_v33 }
 0x8ec   :  { %8675 = vmatpush3.msra.mxu1 %v1565_v33  ;;  %v1692_v33 = vld [vmem:[#allocation8 + $0x308] sm:$0xff] }
 0x8ed   :  { %8676 = vmatprep.subr.mxu1 %v1564_v34 }
 0x8ee   :  { %8677 = vmatpush3.msra.mxu1 %v1564_v34  ;;  %v1691_v34 = vld [vmem:[#allocation8 + $0x300] sm:$0xff] }
 0x8ef   :  { %8678 = vmatprep.subr.mxu1 %v1563_v35 }
 0x8f0   :  { %8679 = vmatpush3.msra.mxu1 %v1563_v35  ;;  %v1690_v35 = vld [vmem:[#allocation8 + $0x250] sm:$0xff] }
 0x8f1   :  { %8680 = vmatprep.subr.mxu1 %v1562_v36 }
 0x8f2   :  { %8681 = vmatpush3.msra.mxu1 %v1562_v36  ;;  %v1689_v36 = vld [vmem:[#allocation8 + $0x248] sm:$0xff] }
 0x8f3   :  { %8682 = vmatprep.subr.mxu1 %v1561_v37 }
 0x8f4   :  { %8683 = vmatpush3.msra.mxu1 %v1561_v37  ;;  %v1688_v37 = vld [vmem:[#allocation8 + $0x198] sm:$0xff] }
 0x8f5   :  { %8684 = vmatprep.subr.mxu1 %v1560_v55 }
 0x8f6   :  { %8685 = vmatpush3.msra.mxu1 %v1560_v55 }
 0x8f7   :  { %8686 = vmatprep.subr.mxu1 %v1559_v56 }
 0x8f8   :  { %8687 = vmatpush3.msra.mxu1 %v1559_v56  ;;  %v1652_v56 = vld [vmem:[#allocation11 + $0x21] ss:$0 sm:$0xff] }
 0x99d   :  { %v8640_v60 = vpop.f32.mrf.mxu1 }
 0x99e   :  { %v1428_v61 = vadd.f32 %v8640_v60, %v1349_v57  ;;  %v1557_v60 = vld [vmem:[#allocation10] sm:$0xff] }
 0x99f   :  { %v1422_v62 = vpop.f32.mrf.mxu1 }
 0x9a0   :  { %v1423_v63 = vadd.f32 %v1422_v62, %v1349_v57  ;;  %v1432_v59 = vadd.f32 %v1428_v61, %v9808_v53  ;;  %v1558_v57 = vld [vmem:[#allocation10 + $0x20] sm:$0xff]  ;;  %v1473_v61 = vld [vmem:[#allocation11 + $0x14] ss:$0 sm:$0xff] }
 0x9a1   :  { %8688 = vmatprep.subr.mxu1 %v1558_v57 }
 0x9a2   :  { %v1438_v0 = vsel %vm323_vm1, %v1432_v59, 0.0  ;;  %v1431_v1 = vadd.f32 %v1423_v63, %v9803_v50  ;;  %8689 = vmatpush3.msra.mxu1 %v1558_v57 }
 0x9a3   :  { %1439 = vadd.xlane.f32.xlu1 %v1438_v0  ;;  %8690 = vmatprep.subr.mxu1 %v1557_v60 }
 0x9a4   :  { %v1435_v3 = vsel %vm323_vm1, %v1431_v1, 0.0  ;;  %8691 = vmatpush3.msra.mxu1 %v1557_v60 }
 0x9a5   :  { %1436 = vadd.xlane.f32.xlu0 %v1435_v3 }
 0xa2c   :  { %v1440_v4 = vpop.xlane.xlu1 %1439 }
 0xa2d   :  { %v1442_v5 = vmul.f32 0.015625, %v1440_v4  ;;  %v1573_v4 = vld [vmem:[#allocation11 + $0x15] ss:$0 sm:$0xff] }
 0xa2e   :  { %v1437_v6 = vpop.xlane.xlu0 %1436 }
 0xa2f   :  { %v1441_v9 = vmul.f32 0.015625, %v1437_v6  ;;  %v9962_v10 = vsub.f32 %v1432_v59, %v1442_v5 }
 0xa31   :  { %v9964_v11 = vsub.f32 %v1431_v1, %v1441_v9  ;;  %v1446_v50 = vmul.f32 %v9962_v10, %v9962_v10 }
 0xa33   :  { %v1445_v12 = vmul.f32 %v9964_v11, %v9964_v11  ;;  %v1450_v14 = vsel %vm323_vm1, %v1446_v50, 0.0 }
 0xa35   :  { %v1447_v53 = vsel %vm323_vm1, %v1445_v12, 0.0 }
 0xa36   :  { %1448 = vadd.xlane.f32.xlu0 %v1447_v53 }
 0xa3a   :  { %1451 = vadd.xlane.f32.xlu0 %v1450_v14 }
 0xabf   :  { %v1449_v38 = vpop.xlane.xlu0 %1448 }
 0xac0   :  { %v1453_v39 = vmul.f32 0.015625, %v1449_v38  ;;  %v1687_v38 = vld [vmem:[#allocation8 + $0x190] sm:$0xff] }
 0xac2   :  { %v1455_v40 = vadd.f32 1e-05, %v1453_v39  ;;  %v1686_v39 = vld [vmem:[#allocation8 + $0xe0] sm:$0xff] }
 0xac3   :  { %v1452_v41 = vpop.xlane.xlu0 %1451 }
 0xac4   :  { %9347 = vrsqrt.f32 %v1455_v40  ;;  %v1454_v42 = vmul.f32 0.015625, %v1452_v41  ;;  %v1685_v40 = vld [vmem:[#allocation8 + $0xd8] sm:$0xff]  ;;  %v1684_v41 = vld [vmem:[#allocation8 + $0x28] sm:$0xff] }
 0xac6   :  { %v1456_v43 = vadd.f32 1e-05, %v1454_v42  ;;  %v1683_v42 = vld [vmem:[#allocation8 + $0x20] sm:$0xff] }
 0xac8   :  { %9349 = vrsqrt.f32 %v1456_v43 }
 0xad1   :  { %v9348_v7 = vpop.eup %9347 }
 0xad2   :  { %v1459_v45 = vmul.f32 %v9348_v7, %v9964_v11 }
 0xad4   :  { %v1461_v47 = vmul.f32 %v1459_v45, %v1433_v44 }
 0xad5   :  { %v9350_v48 = vpop.eup %9349 }
 0xad6   :  { %v1460_v49 = vmul.f32 %v9350_v48, %v9962_v10  ;;  %v1463_v51 = vadd.f32 %v1461_v47, %v1434_v46 }
 0xad8   :  { %v1462_v52 = vmul.f32 %v1460_v49, %v1433_v44  ;;  %8657 = vmatprep.mubr.msk.f32.mxu0 %vm323_vm1, %v1463_v51 }
 0xada   :  { %v1464_v54 = vadd.f32 %v1462_v52, %v1434_v46 }
 0xadc   :  { %8658 = vmatmul.mubr.msk.f32.vlgmr.msra.gmra.mxu0 %vm323_vm1, %v1464_v54 }
 0xadd   :  { %1782 = vmatprep.mubr.f32.mxu0 %v9724_v26  ;;  %1735 = vmatpush1.msra.mxu0 %v1697_v28 }
 0xade   :  { %1736 = vmatprep.subr.mxu0 %v1696_v29 }
 0xadf   :  { %1737 = vmatpush1.msra.mxu0 %v1695_v30 }
 0xae0   :  { %1738 = vmatprep.subr.mxu0 %v1694_v31 }
 0xae1   :  { %1739 = vmatpush1.msra.mxu0 %v1693_v32 }
 0xae2   :  { %1740 = vmatprep.subr.mxu0 %v1692_v33 }
 0xae3   :  { %1741 = vmatpush1.msra.mxu0 %v1691_v34 }
 0xae4   :  { %1742 = vmatprep.subr.mxu0 %v1690_v35 }
 0xae5   :  { %1743 = vmatpush1.msra.mxu0 %v1689_v36 }
 0xae6   :  { %1744 = vmatprep.subr.mxu0 %v1688_v37 }
 0xae7   :  { %1745 = vmatpush1.msra.mxu0 %v1687_v38 }
 0xae8   :  { %1746 = vmatprep.subr.mxu0 %v1686_v39 }
 0xae9   :  { %1747 = vmatpush1.msra.mxu0 %v1685_v40 }
 0xaea   :  { %1748 = vmatprep.subr.mxu0 %v1684_v41 }
 0xaeb   :  { %1749 = vmatpush1.msra.mxu0 %v1683_v42 }
 0xb9c   :  { %v8659_v62 = vpop.f32.mrf.mxu0 }
 0xb9d   :  { %v1552_v63 = vadd.f32 %v8659_v62, %v1473_v61  ;;  %v1700_v62 = vld [vmem:[#allocation11 + $0x22] ss:$8 sm:$0x3] }
 0xb9e   :  { %v1546_v59 = vpop.f32.mrf.mxu0 }
 0xb9f   :  { %v1547_v0 = vadd.f32 %v1546_v59, %v1473_v61  ;;  %v1556_v3 = vmax.f32 %v1552_v63, 0.0  ;;  %v1705_v63 = vrot.slane %v1700_v62, %v9814_v58 }
 0xba1   :  { %v1555_v1 = vmax.f32 %v1547_v0, 0.0 }
 0xba3   :  { %8692 = vmatprep.mubr.f32.mxu1 %v1555_v1 }
 0xba4   :  { %8693 = vmatmul.mubr.f32.vlgmr.msra.gmra.mxu1 %v1556_v3 }
 0xc64   :  { %v8694_v5 = vpop.f32.mrf.mxu1 }
 0xc65   :  { %v1646_v6 = vadd.f32 %v8694_v5, %v1573_v4 }
 0xc66   :  { %v1640_v9 = vpop.f32.mrf.mxu1 }
 0xc67   :  { %v1641_v10 = vadd.f32 %v1640_v9, %v1573_v4  ;;  %v1650_v11 = vadd.f32 %v1646_v6, %v1464_v54  ;;  %v1651_v54 = vld [vmem:[#allocation11 + $0x20] ss:$0 sm:$0xff] }
 0xc69   :  { %v1656_v12 = vsel %vm323_vm1, %v1650_v11, 0.0  ;;  %v1649_v53 = vadd.f32 %v1641_v10, %v1463_v51  ;;  %v1709_v10 = vrot.slane %v1700_v62, %v9827_v2 }
 0xc6a   :  { %1657 = vadd.xlane.f32.xlu1 %v1656_v12 }
 0xc6b   :  { %v1653_v50 = vsel %vm323_vm1, %v1649_v53, 0.0 }
 0xc6c   :  { %1654 = vadd.xlane.f32.xlu0 %v1653_v50 }
 0xcf3   :  { %v1658_v14 = vpop.xlane.xlu1 %1657 }
 0xcf4   :  { %v1660_v16 = vmul.f32 0.015625, %v1658_v14 }
 0xcf5   :  { %v1655_v18 = vpop.xlane.xlu0 %1654 }
 0xcf6   :  { %v1662_v8 = vsub.f32 %v1650_v11, %v1660_v16  ;;  %v1659_v19 = vmul.f32 0.015625, %v1655_v18 }
 0xcf8   :  { %v1661_v21 = vsub.f32 %v1649_v53, %v1659_v19  ;;  %v1664_v22 = vmul.f32 %v1662_v8, %v1662_v8 }
 0xcfa   :  { %v1668_v23 = vsel %vm323_vm1, %v1664_v22, 0.0  ;;  %v1663_v24 = vmul.f32 %v1661_v21, %v1661_v21 }
 0xcfb   :  { %1669 = vadd.xlane.f32.xlu1 %v1668_v23 }
 0xcfc   :  { %v1665_v25 = vsel %vm323_vm1, %v1663_v24, 0.0 }
 0xcfd   :  { %1666 = vadd.xlane.f32.xlu0 %v1665_v25 }
 0xd84   :  { %v1670_v43 = vpop.xlane.xlu1 %1669 }
 0xd85   :  { %v1672_v7 = vmul.f32 0.015625, %v1670_v43 }
 0xd86   :  { %v1667_v44 = vpop.xlane.xlu0 %1666 }
 0xd87   :  { %v1674_v45 = vadd.f32 1e-05, %v1672_v7  ;;  %v1671_v46 = vmul.f32 0.015625, %v1667_v44 }
 0xd89   :  { %9351 = vrsqrt.f32 %v1674_v45  ;;  %v1673_v47 = vadd.f32 1e-05, %v1671_v46 }
 0xd8b   :  { %9353 = vrsqrt.f32 %v1673_v47 }
 0xd96   :  { %v9352_v48 = vpop.eup %9351 }
 0xd97   :  { %v1678_v52 = vmul.f32 %v9352_v48, %v1662_v8 }
 0xd98   :  { %v9354_v49 = vpop.eup %9353 }
 0xd99   :  { %v1677_v51 = vmul.f32 %v9354_v49, %v1661_v21  ;;  %v1680_v60 = vmul.f32 %v1678_v52, %v1651_v54 }
 0xd9b   :  { %v1679_v55 = vmul.f32 %v1677_v51, %v1651_v54  ;;  %v9986_v61 = vadd.f32 %v1680_v60, %v1652_v56 }
 0xd9d   :  { %v9981_v57 = vadd.f32 %v1679_v55, %v1652_v56 }
 0xd9f   :  { %8000 = vmatmul.mubr.msk.f32.vlgmr.msra.gmra.mxu0 %vm323_vm1, %v9981_v57 }
 0xda0   :  { %1788 = vmatprep.mubr.f32.mxu0 %v9724_v26 }
 0xda3   :  { %8001 = vmatmul.mubr.msk.f32.gmra.mxu0 %vm323_vm1, %v9986_v61 }
 0xe5f   :  { %v1784_v59 = vpop.f32.mrf.mxu0 }
 0xe60   :  { %v9991_v0 = vadd.f32 %v1784_v59, %v1705_v63 }
 0xe61   :  { %v1786_v1 = vpop.f32.mrf.mxu0 }
 0xe62   :  { %1797 = vrot.lane.b32.xlu1 %v9991_v0, %s9725_s4  ;;  %8699 = vmatprep.mubr.msk.f32.mxu0 %vm156_vm0, %v9991_v0  ;;  %v10009_v12 = vadd.f32 %v1786_v1, %v1709_v10 }
 0xe63   :  { %v1790_v3 = vpop.f32.mrf.mxu0 }
 0xe64   :  { %v9997_v4 = vadd.f32 %v1790_v3, %v1705_v63 }
 0xe65   :  { %v1792_v6 = vpop.f32.mrf.mxu0 }
 0xe66   :  { %1799 = vrot.lane.b32.xlu0 %v9997_v4, %s9725_s4  ;;  %v10005_v11 = vadd.f32 %v1792_v6, %v1709_v10 }
 0xed4   :  { %v1798_v9 = vpop.permute.xlu1 %1797 }
 0xed8   :  { %v1800_v5 = vpop.permute.xlu0 %1799 }
 0xed9   :  { %8695 = vmatprep.subr.msk.mxu0 %vm156_vm0, %v1800_v5 }
 0xeda   :  { %8696 = vmatpush3.xpose.msk.msra.mxu0 %vm156_vm0, %v1800_v5 }
 0xedb   :  { %8697 = vmatprep.subr.msk.mxu0 %vm156_vm0, %v1798_v9 }
 0xede   :  { %8698 = vmatpush3.xpose.msk.msra.mxu0 %vm156_vm0, %v1798_v9 }
 0xedf   :  { %8702 = vmatprep.subr.mxu0 %v10005_v11 }
 0xee1   :  { %8700 = vmatmul.mubr.msk.f32.vlgmr.msra.gmra.mxu0 %vm156_vm0, %v9997_v4 }
 0xee2   :  { %8703 = vmatpush3.msra.mxu0 %v10005_v11 }
 0xee3   :  { %8704 = vmatprep.subr.mxu0 %v10009_v12 }
 0xee4   :  { %8705 = vmatpush3.msra.mxu0 %v10009_v12 }
 0xfa1   :  { %v8701_v53 = vpop.f32.mrf.mxu0 }
 0xfa2   :  { %v1885_v50 = vmul.f32 0.25, %v8701_v53 }
 0xfa3   :  { %v1875_v14 = vpop.f32.mrf.mxu0 }
 0xfa4   :  { %v1884_v16 = vmul.f32 0.25, %v1875_v14  ;;  %v1887_v18 = vadd.f32 %v1885_v50, %v9848_v17 }
 0xfa6   :  { %v1891_v8 = vsel %vm156_vm0, %v1887_v18, -inf  ;;  %v1886_v19 = vadd.f32 %v1884_v16, %v9850_v20 }
 0xfa7   :  { %1892 = vmax.xlane.f32.xlu0 %v1891_v8 }
 0xfa8   :  { %v1888_v21 = vsel %vm156_vm0, %v1886_v19, -inf }
 0xfa9   :  { %1889 = vmax.xlane.f32.xlu1 %v1888_v21 }
0x1030   :  { %v1893_v22 = vpop.xlane.xlu0 %1892 }
0x1031   :  { %v1895_v23 = vsub.f32 %v1887_v18, %v1893_v22 }
0x1032   :  { %v1890_v24 = vpop.xlane.xlu1 %1889 }
0x1033   :  { %v1898_v25 = vmul.f32 1.442695, %v1895_v23  ;;  %v1894_v27 = vsub.f32 %v1886_v19, %v1890_v24 }
0x1035   :  { %9355 = vpow2.f32 %v1898_v25  ;;  %v1896_v28 = vmul.f32 1.442695, %v1894_v27 }
0x1037   :  { %9357 = vpow2.f32 %v1896_v28 }
0x1042   :  { %v9356_v29 = vpop.eup %9355 }
0x1043   :  { %v1903_v30 = vsel %vm156_vm0, %v9356_v29, 0.0 }
0x1044   :  { %v9358_v31 = vpop.eup %9357  ;;  %1904 = vadd.xlane.f32.xlu1 %v1903_v30 }
0x1045   :  { %v1900_v32 = vsel %vm156_vm0, %v9358_v31, 0.0 }
0x1046   :  { %1901 = vadd.xlane.f32.xlu0 %v1900_v32 }
0x1055   :  { %1995 = vrot.lane.b32.xlu1 %v9991_v0, %s9727_s5 }
0x1059   :  { %1991 = vrot.lane.b32.xlu1 %v9991_v0, %s9728_s9 }
0x105c   :  { %1997 = vrot.lane.b32.xlu0 %v9997_v4, %s9727_s5 }
0x105d   :  { %1993 = vrot.lane.b32.xlu1 %v9997_v4, %s9728_s9 }
0x10cd   :  { %v1905_v33 = vpop.xlane.xlu1 %1904 }
0x10ce   :  { %9359 = vrcp.f32 %v1905_v33 }
0x10cf   :  { %v1902_v34 = vpop.xlane.xlu0 %1901 }
0x10d0   :  { %9361 = vrcp.f32 %v1902_v34 }
0x10d1   :  { %v1996_v36 = vpop.permute.xlu1 %1995 }
0x10d3   :  { %v1998_v35 = vpop.permute.xlu0 %1997 }
0x10d4   :  { %8709 = vmatprep.subr.msk.mxu0 %vm156_vm0, %v1998_v35 }
0x10d5   :  { %v1992_v41 = vpop.permute.xlu1 %1991 }
0x10d9   :  { %v1994_v42 = vpop.permute.xlu1 %1993 }
0x10db   :  { %v9360_v37 = vpop.eup %9359 }
0x10dc   :  { %v1909_v40 = vmul.f32 %v9360_v37, %v9356_v29 }
0x10dd   :  { %v9362_v38 = vpop.eup %9361 }
0x10de   :  { %v1908_v39 = vmul.f32 %v9362_v38, %v9358_v31 }
0x10e0   :  { %8706 = vmatprep.mubr.msk.f32.mxu0 %vm156_vm0, %v1908_v39 }
0x10e1   :  { %8707 = vmatmul.mubr.msk.f32.vlgmr.msra.gmra.mxu0 %vm156_vm0, %v1909_v40 }
0x10e2   :  { %8710 = vmatpush3.xpose.msk.msra.mxu0 %vm156_vm0, %v1998_v35  ;;  %8713 = vmatprep.mubr.msk.f32.mxu0 %vm156_vm0, %v1992_v41 }
0x10e3   :  { %8711 = vmatprep.subr.msk.mxu0 %vm156_vm0, %v1996_v36 }
0x10e6   :  { %8712 = vmatpush3.xpose.msk.msra.mxu0 %vm156_vm0, %v1996_v36 }
0x10e9   :  { %8714 = vmatmul.mubr.msk.f32.vlgmr.msra.gmra.mxu0 %vm156_vm0, %v1994_v42 }
0x11a1   :  { %v10038_v43 = vpop.f32.mrf.mxu0 }
0x11a3   :  { %v10040_v7 = vpop.f32.mrf.mxu0 }
0x11a9   :  { %v8715_v44 = vpop.f32.mrf.mxu0 }
0x11aa   :  { %v2083_v45 = vmul.f32 0.25, %v8715_v44 }
0x11ab   :  { %v2073_v46 = vpop.f32.mrf.mxu0 }
0x11ac   :  { %v2082_v47 = vmul.f32 0.25, %v2073_v46  ;;  %v2085_v48 = vadd.f32 %v2083_v45, %v9848_v17 }
0x11ae   :  { %v2089_v49 = vsel %vm156_vm0, %v2085_v48, -inf  ;;  %v2084_v51 = vadd.f32 %v2082_v47, %v9850_v20 }
0x11af   :  { %2090 = vmax.xlane.f32.xlu1 %v2089_v49 }
0x11b0   :  { %v2086_v52 = vsel %vm156_vm0, %v2084_v51, -inf }
0x11b1   :  { %2087 = vmax.xlane.f32.xlu0 %v2086_v52 }
0x11c0   :  { %2110 = vrot.lane.b32.xlu1 %v10009_v12, %s9728_s9 }
0x11c4   :  { %2203 = vrot.lane.b32.xlu1 %v9997_v4, %s9720_s22 }
0x11c8   :  { %2201 = vrot.lane.b32.xlu1 %v9991_v0, %s9720_s22 }
0x11cc   :  { %2199 = vrot.lane.b32.xlu1 %v9997_v4, %s9729_s10 }
0x1238   :  { %v2091_v54 = vpop.xlane.xlu1 %2090 }
0x1239   :  { %v2093_v55 = vsub.f32 %v2085_v48, %v2091_v54 }
0x123a   :  { %v2088_v56 = vpop.xlane.xlu0 %2087 }
0x123b   :  { %v2096_v60 = vmul.f32 1.442695, %v2093_v55  ;;  %v2092_v62 = vsub.f32 %v2084_v51, %v2088_v56 }
0x123c   :  { %v2111_v10 = vpop.permute.xlu1 %2110 }
0x123d   :  { %9363 = vpow2.f32 %v2096_v60  ;;  %v2094_v63 = vmul.f32 1.442695, %v2092_v62 }
0x123f   :  { %9365 = vpow2.f32 %v2094_v63 }
0x1240   :  { %v2204_v50 = vpop.permute.xlu1 %2203 }
0x1244   :  { %v2202_v21 = vpop.permute.xlu1 %2201 }
0x1248   :  { %v2200_v22 = vpop.permute.xlu1 %2199 }
0x124a   :  { %v9364_v59 = vpop.eup %9363 }
0x124b   :  { %v2101_v1 = vsel %vm156_vm0, %v9364_v59, 0.0 }
0x124c   :  { %v9366_v3 = vpop.eup %9365  ;;  %2102 = vadd.xlane.f32.xlu0 %v2101_v1 }
0x124d   :  { %v2098_v5 = vsel %vm156_vm0, %v9366_v3, 0.0 }
0x1250   :  { %2099 = vadd.xlane.f32.xlu0 %v2098_v5 }
0x1266   :  { %2112 = vrot.lane.b32.xlu0 %v10005_v11, %s9728_s9 }
0x126a   :  { %2197 = vrot.lane.b32.xlu0 %v9991_v0, %s9729_s10 }
0x12d5   :  { %v2103_v6 = vpop.xlane.xlu0 %2102 }
0x12d6   :  { %9367 = vrcp.f32 %v2103_v6 }
0x12d9   :  { %v2100_v9 = vpop.xlane.xlu0 %2099 }
0x12da   :  { %9369 = vrcp.f32 %v2100_v9 }
0x12dd   :  { %v2113_v53 = vpop.permute.xlu0 %2112 }
0x12de   :  { %8716 = vmatprep.subr.mxu1 %v2113_v53 }
0x12df   :  { %8717 = vmatpush3.msra.mxu1 %v2113_v53 }
0x12e0   :  { %8718 = vmatprep.subr.mxu1 %v2111_v10 }
0x12e1   :  { %8719 = vmatpush3.msra.mxu1 %v2111_v10  ;;  %v2198_v19 = vpop.permute.xlu0 %2197 }
0x12e2   :  { %8723 = vmatprep.subr.msk.mxu1 %vm156_vm0, %v2204_v50 }
0x12e3   :  { %v9368_v14 = vpop.eup %9367 }
0x12e4   :  { %v2107_v8 = vmul.f32 %v9368_v14, %v9364_v59 }
0x12e7   :  { %v9370_v16 = vpop.eup %9369 }
0x12e8   :  { %v2106_v18 = vmul.f32 %v9370_v16, %v9366_v3 }
0x12ea   :  { %8720 = vmatprep.mubr.msk.f32.mxu1 %vm156_vm0, %v2106_v18 }
0x12eb   :  { %8721 = vmatmul.mubr.msk.f32.vlgmr.msra.gmra.mxu1 %vm156_vm0, %v2107_v8 }
0x12ec   :  { %8724 = vmatpush3.xpose.msk.msra.mxu1 %vm156_vm0, %v2204_v50  ;;  %8727 = vmatprep.mubr.msk.f32.mxu1 %vm156_vm0, %v2198_v19 }
0x12ed   :  { %8725 = vmatprep.subr.msk.mxu1 %vm156_vm0, %v2202_v21 }
0x12f0   :  { %8726 = vmatpush3.xpose.msk.msra.mxu1 %vm156_vm0, %v2202_v21 }
0x12f3   :  { %8728 = vmatmul.mubr.msk.f32.vlgmr.msra.gmra.mxu1 %vm156_vm0, %v2200_v22 }
0x13ab   :  { %v10068_v23 = vpop.f32.mrf.mxu1 }
0x13ad   :  { %v10070_v24 = vpop.f32.mrf.mxu1 }
0x13b3   :  { %v8729_v25 = vpop.f32.mrf.mxu1 }
0x13b4   :  { %v2289_v27 = vmul.f32 0.25, %v8729_v25 }
0x13b5   :  { %v2279_v28 = vpop.f32.mrf.mxu1 }
0x13b6   :  { %v2288_v29 = vmul.f32 0.25, %v2279_v28  ;;  %v2291_v30 = vadd.f32 %v2289_v27, %v9848_v17 }
0x13b8   :  { %v2295_v31 = vsel %vm156_vm0, %v2291_v30, -inf  ;;  %v2290_v32 = vadd.f32 %v2288_v29, %v9850_v20 }
0x13b9   :  { %2296 = vmax.xlane.f32.xlu1 %v2295_v31 }
0x13ba   :  { %v2292_v33 = vsel %vm156_vm0, %v2290_v32, -inf }
0x13bb   :  { %2293 = vmax.xlane.f32.xlu0 %v2292_v33  ;;  %v2640_v33 = vld [vmem:[#allocation8 + $0x3c8] sm:$0xff] }
0x13ca   :  { %2314 = vrot.lane.b32.xlu1 %v10009_v12, %s9729_s10 }
0x13ce   :  { %2407 = vrot.lane.b32.xlu1 %v9997_v4, %s9723_s30 }
0x13d2   :  { %2405 = vrot.lane.b32.xlu1 %v9991_v0, %s9723_s30 }
0x13d6   :  { %2403 = vrot.lane.b32.xlu1 %v9997_v4, %s9730_s11 }
0x1442   :  { %v2297_v34 = vpop.xlane.xlu1 %2296 }
0x1443   :  { %v2299_v35 = vsub.f32 %v2291_v30, %v2297_v34  ;;  %v2639_v34 = vld [vmem:[#allocation8 + $0x310] sm:$0xff] }
0x1444   :  { %v2294_v36 = vpop.xlane.xlu0 %2293 }
0x1445   :  { %v2302_v37 = vmul.f32 1.442695, %v2299_v35  ;;  %v2298_v38 = vsub.f32 %v2290_v32, %v2294_v36  ;;  %v2641_v32 = vld [vmem:[#allocation8 + $0x480] sm:$0xff]  ;;  %v2638_v35 = vld [vmem:[#allocation8 + $0x258] sm:$0xff] }
0x1446   :  { %v2315_v46 = vpop.permute.xlu1 %2314  ;;  %v2637_v36 = vld [vmem:[#allocation8 + $0x1a0] sm:$0xff] }
0x1447   :  { %9371 = vpow2.f32 %v2302_v37  ;;  %v2300_v39 = vmul.f32 1.442695, %v2298_v38  ;;  %v2636_v37 = vld [vmem:[#allocation8 + $0xe8] sm:$0xff]  ;;  %v2635_v38 = vld [vmem:[#allocation8 + $0x30] sm:$0xff] }
0x1449   :  { %9373 = vpow2.f32 %v2300_v39 }
0x144a   :  { %v2408_v48 = vpop.permute.xlu1 %2407 }
0x144e   :  { %v2406_v55 = vpop.permute.xlu1 %2405 }
0x1452   :  { %v2404_v56 = vpop.permute.xlu1 %2403 }
0x1454   :  { %v9372_v40 = vpop.eup %9371 }
0x1455   :  { %v2307_v41 = vsel %vm156_vm0, %v9372_v40, 0.0 }
0x1456   :  { %v9374_v42 = vpop.eup %9373  ;;  %2308 = vadd.xlane.f32.xlu0 %v2307_v41 }
0x1457   :  { %v2304_v44 = vsel %vm156_vm0, %v9374_v42, 0.0 }
0x145a   :  { %2305 = vadd.xlane.f32.xlu0 %v2304_v44 }
0x1470   :  { %2316 = vrot.lane.b32.xlu0 %v10005_v11, %s9729_s10 }
0x1474   :  { %2401 = vrot.lane.b32.xlu0 %v9991_v0, %s9730_s11 }
0x14df   :  { %v2309_v4 = vpop.xlane.xlu0 %2308 }
0x14e0   :  { %9375 = vrcp.f32 %v2309_v4 }
0x14e3   :  { %v2306_v45 = vpop.xlane.xlu0 %2305 }
0x14e4   :  { %9377 = vrcp.f32 %v2306_v45 }
0x14e7   :  { %v2317_v47 = vpop.permute.xlu0 %2316 }
0x14e8   :  { %8730 = vmatprep.subr.mxu0 %v2317_v47 }
0x14e9   :  { %8731 = vmatpush3.msra.mxu0 %v2317_v47 }
0x14ea   :  { %8732 = vmatprep.subr.mxu0 %v2315_v46 }
0x14eb   :  { %8733 = vmatpush3.msra.mxu0 %v2315_v46  ;;  %v2402_v0 = vpop.permute.xlu0 %2401 }
0x14ec   :  { %8737 = vmatprep.subr.msk.mxu0 %vm156_vm0, %v2408_v48 }
0x14ed   :  { %v9376_v49 = vpop.eup %9375 }
0x14ee   :  { %v2313_v54 = vmul.f32 %v9376_v49, %v9372_v40 }
0x14f1   :  { %v9378_v51 = vpop.eup %9377 }
0x14f2   :  { %v2312_v52 = vmul.f32 %v9378_v51, %v9374_v42 }
0x14f4   :  { %8734 = vmatprep.mubr.msk.f32.mxu0 %vm156_vm0, %v2312_v52 }
0x14f5   :  { %8735 = vmatmul.mubr.msk.f32.vlgmr.msra.gmra.mxu0 %vm156_vm0, %v2313_v54 }
0x14f6   :  { %8738 = vmatpush3.xpose.msk.msra.mxu0 %vm156_vm0, %v2408_v48  ;;  %8741 = vmatprep.mubr.msk.f32.mxu0 %vm156_vm0, %v2402_v0  ;;  %v2643_v0 = vld [vmem:[#allocation11 + $0x23] ss:$0 sm:$0xff] }
0x14f7   :  { %8739 = vmatprep.subr.msk.mxu0 %vm156_vm0, %v2406_v55 }
0x14fa   :  { %8740 = vmatpush3.xpose.msk.msra.mxu0 %vm156_vm0, %v2406_v55 }
0x14fd   :  { %8742 = vmatmul.mubr.msk.f32.vlgmr.msra.gmra.mxu0 %vm156_vm0, %v2404_v56 }
0x15b5   :  { %v8736_v60 = vpop.f32.mrf.mxu0 }
0x15b7   :  { %v2392_v62 = vpop.f32.mrf.mxu0 }
0x15bd   :  { %v8743_v63 = vpop.f32.mrf.mxu0 }
0x15be   :  { %v2493_v59 = vmul.f32 0.25, %v8743_v63 }
0x15bf   :  { %v2483_v1 = vpop.f32.mrf.mxu0 }
0x15c0   :  { %v2492_v3 = vmul.f32 0.25, %v2483_v1  ;;  %v2495_v5 = vadd.f32 %v2493_v59, %v9848_v17 }
0x15c2   :  { %v2499_v6 = vsel %vm156_vm0, %v2495_v5, -inf  ;;  %v2494_v9 = vadd.f32 %v2492_v3, %v9850_v20 }
0x15c3   :  { %2500 = vmax.xlane.f32.xlu1 %v2499_v6 }
0x15c4   :  { %v2496_v10 = vsel %vm156_vm0, %v2494_v9, -inf }
0x15c5   :  { %2497 = vmax.xlane.f32.xlu0 %v2496_v10 }
0x15d4   :  { %2518 = vrot.lane.b32.xlu1 %v10009_v12, %s9730_s11 }
0x15d8   :  { %2607 = vrot.lane.b32.xlu1 %v10070_v24, %s9723_s30 }
0x15dc   :  { %2609 = vrot.lane.b32.xlu1 %v10068_v23, %s9723_s30 }
0x15e0   :  { %2617 = vrot.lane.b32.xlu1 %v8736_v60, %s9720_s22 }
0x164c   :  { %v2501_v53 = vpop.xlane.xlu1 %2500 }
0x164d   :  { %v2503_v50 = vsub.f32 %v2495_v5, %v2501_v53 }
0x164e   :  { %v2498_v14 = vpop.xlane.xlu0 %2497 }
0x164f   :  { %v2506_v16 = vmul.f32 1.442695, %v2503_v50  ;;  %v2502_v18 = vsub.f32 %v2494_v9, %v2498_v14  ;;  %v2766_v14 = vld [vmem:[#allocation8 + $0x540] sm:$0xff] }
0x1650   :  { %v2519_v27 = vpop.permute.xlu1 %2518  ;;  %8770 = vmatprep.subr.mxu0 %v2766_v14 }
0x1651   :  { %9379 = vpow2.f32 %v2506_v16  ;;  %v2504_v8 = vmul.f32 1.442695, %v2502_v18  ;;  %v2765_v16 = vld [vmem:[#allocation8 + $0x488] sm:$0xff]  ;;  %8771 = vmatpush3.msra.mxu0 %v2766_v14  ;;  %v2764_v18 = vld [vmem:[#allocation8 + $0x3d0] sm:$0xff] }
0x1652   :  { %8772 = vmatprep.subr.mxu0 %v2765_v16 }
0x1653   :  { %9381 = vpow2.f32 %v2504_v8  ;;  %8773 = vmatpush3.msra.mxu0 %v2765_v16  ;;  %v2763_v8 = vld [vmem:[#allocation8 + $0x318] sm:$0xff] }
0x1654   :  { %v2608_v41 = vpop.permute.xlu1 %2607  ;;  %8774 = vmatprep.subr.mxu0 %v2764_v18 }
0x1655   :  { %v2629_v45 = vsel %vm156_vm0, %v10040_v7, %v2608_v41  ;;  %8775 = vmatpush3.msra.mxu0 %v2764_v18 }
0x1656   :  { %8776 = vmatprep.subr.mxu0 %v2763_v8 }
0x1657   :  { %8777 = vmatpush3.msra.mxu0 %v2763_v8 }
0x1658   :  { %v2610_v42 = vpop.permute.xlu1 %2609 }
0x1659   :  { %v2630_v47 = vsel %vm156_vm0, %v10038_v43, %v2610_v42  ;;  %v2727_v42 = vld [vmem:[#allocation11 + $0x26] ss:$0 sm:$0xff] }
0x165c   :  { %v2618_v44 = vpop.permute.xlu1 %2617 }
0x165d   :  { %v2632_v51 = vsel %vm1335_vm4, %v2630_v47, %v2618_v44 }
0x165e   :  { %v9380_v19 = vpop.eup %9379 }
0x165f   :  { %v2511_v21 = vsel %vm156_vm0, %v9380_v19, 0.0 }
0x1660   :  { %v9382_v12 = vpop.eup %9381  ;;  %2512 = vadd.xlane.f32.xlu0 %v2511_v21  ;;  %v2761_v21 = vld [vmem:[#allocation8 + $0x1a8] sm:$0xff] }
0x1661   :  { %v2508_v22 = vsel %vm156_vm0, %v9382_v12, 0.0 }
0x1664   :  { %2509 = vadd.xlane.f32.xlu0 %v2508_v22  ;;  %v2759_v22 = vld [vmem:[#allocation8 + $0x38] sm:$0xff] }
0x167a   :  { %2520 = vrot.lane.b32.xlu0 %v10005_v11, %s9730_s11  ;;  %v2642_v11 = vld [vmem:[#allocation8 + $0x538] sm:$0xff] }
0x167e   :  { %2615 = vrot.lane.b32.xlu0 %v2392_v62, %s9720_s22 }
0x16e9   :  { %v2513_v23 = vpop.xlane.xlu0 %2512 }
0x16ea   :  { %9383 = vrcp.f32 %v2513_v23  ;;  %v2866_v23 = vld [vmem:[#allocation10 + $0x1e8] sm:$0xff] }
0x16ed   :  { %v2510_v24 = vpop.xlane.xlu0 %2509 }
0x16ee   :  { %9385 = vrcp.f32 %v2510_v24  ;;  %v2865_v24 = vld [vmem:[#allocation10 + $0x1c8] sm:$0xff] }
0x16f1   :  { %v2521_v25 = vpop.permute.xlu0 %2520 }
0x16f2   :  { %8744 = vmatprep.subr.mxu1 %v2521_v25 }
0x16f3   :  { %8745 = vmatpush3.msra.mxu1 %v2521_v25  ;;  %v2864_v25 = vld [vmem:[#allocation10 + $0x1a8] sm:$0xff] }
0x16f4   :  { %8746 = vmatprep.subr.mxu1 %v2519_v27 }
0x16f5   :  { %8747 = vmatpush3.msra.mxu1 %v2519_v27  ;;  %v2616_v4 = vpop.permute.xlu0 %2615  ;;  %v2863_v27 = vld [vmem:[#allocation10 + $0x188] sm:$0xff] }
0x16f6   :  { %8751 = vmatprep.subr.mxu1 %v2642_v11  ;;  %v2631_v48 = vsel %vm1335_vm4, %v2629_v45, %v2616_v4  ;;  %v2728_v4 = vld [vmem:[#allocation11 + $0x27] ss:$0 sm:$0xff] }
0x16f7   :  { %v9384_v28 = vpop.eup %9383 }
0x16f8   :  { %v2517_v31 = vmul.f32 %v9384_v28, %v9380_v19  ;;  %v2762_v19 = vld [vmem:[#allocation8 + $0x260] sm:$0xff]  ;;  %v2862_v28 = vld [vmem:[#allocation10 + $0x168] sm:$0xff] }
0x16f9   :  { %8778 = vmatprep.subr.mxu0 %v2762_v19 }
0x16fa   :  { %8779 = vmatpush3.msra.mxu0 %v2762_v19 }
0x16fb   :  { %v9386_v29 = vpop.eup %9385  ;;  %8780 = vmatprep.subr.mxu0 %v2761_v21 }
0x16fc   :  { %v2516_v30 = vmul.f32 %v9386_v29, %v9382_v12  ;;  %v2760_v12 = vld [vmem:[#allocation8 + $0xf0] sm:$0xff]  ;;  %8781 = vmatpush3.msra.mxu0 %v2761_v21  ;;  %v2861_v29 = vld [vmem:[#allocation10 + $0x148] sm:$0xff] }
0x16fd   :  { %8782 = vmatprep.subr.mxu0 %v2760_v12 }
0x16fe   :  { %8748 = vmatprep.mubr.msk.f32.mxu1 %vm156_vm0, %v2516_v30  ;;  %8783 = vmatpush3.msra.mxu0 %v2760_v12  ;;  %v2860_v30 = vld [vmem:[#allocation10 + $0x128] sm:$0xff] }
0x16ff   :  { %8749 = vmatmul.mubr.msk.f32.vlgmr.msra.gmra.mxu1 %vm156_vm0, %v2517_v31  ;;  %8784 = vmatprep.subr.mxu0 %v2759_v22  ;;  %v2859_v31 = vld [vmem:[#allocation10 + $0x108] sm:$0xff] }
0x1700   :  { %8752 = vmatpush3.msra.mxu1 %v2642_v11  ;;  %8785 = vmatpush3.msra.mxu0 %v2759_v22  ;;  %v2858_v11 = vld [vmem:[#allocation10 + $0xe8] sm:$0xff] }
0x1701   :  { %8753 = vmatprep.subr.mxu1 %v2641_v32 }
0x1702   :  { %8754 = vmatpush3.msra.mxu1 %v2641_v32  ;;  %v2857_v32 = vld [vmem:[#allocation10 + $0xc8] sm:$0xff] }
0x1703   :  { %8755 = vmatprep.subr.mxu1 %v2640_v33 }
0x1704   :  { %8756 = vmatpush3.msra.mxu1 %v2640_v33  ;;  %v2856_v33 = vld [vmem:[#allocation10 + $0xa8] sm:$0xff] }
0x1705   :  { %8757 = vmatprep.subr.mxu1 %v2639_v34 }
0x1706   :  { %8758 = vmatpush3.msra.mxu1 %v2639_v34  ;;  %v2855_v34 = vld [vmem:[#allocation10 + $0x88] sm:$0xff] }
0x1707   :  { %8759 = vmatprep.subr.mxu1 %v2638_v35 }
0x1708   :  { %8760 = vmatpush3.msra.mxu1 %v2638_v35 }
0x1709   :  { %8761 = vmatprep.subr.mxu1 %v2637_v36 }
0x170a   :  { %8762 = vmatpush3.msra.mxu1 %v2637_v36 }
0x170b   :  { %8763 = vmatprep.subr.mxu1 %v2636_v37 }
0x170c   :  { %8764 = vmatpush3.msra.mxu1 %v2636_v37 }
0x170d   :  { %8765 = vmatprep.subr.mxu1 %v2635_v38 }
0x170e   :  { %8766 = vmatpush3.msra.mxu1 %v2635_v38 }
0x170f   :  { %8789 = vmatprep.subr.mxu1 %v2866_v23 }
0x17bf   :  { %v8750_v39 = vpop.f32.mrf.mxu1 }
0x17c0   :  { %2625 = vrot.lane.b32.xlu1 %v8750_v39, %s9727_s5 }
0x17c1   :  { %v2596_v40 = vpop.f32.mrf.mxu1 }
0x17c2   :  { %2623 = vrot.lane.b32.xlu0 %v2596_v40, %s9727_s5 }
0x1832   :  { %v2626_v46 = vpop.permute.xlu1 %2625 }
0x1833   :  { %v2634_v54 = vsel %vm1338_vm5, %v2632_v51, %v2626_v46 }
0x1834   :  { %v2624_v49 = vpop.permute.xlu0 %2623 }
0x1835   :  { %v2633_v52 = vsel %vm1338_vm5, %v2631_v48, %v2624_v49 }
0x1836   :  { %8767 = vmatprep.mubr.msk.f32.mxu1 %vm323_vm1, %v2633_v52  ;;  %v2854_v52 = vld [vmem:[#allocation10 + $0x68] sm:$0xff] }
0x1837   :  { %8768 = vmatmul.mubr.msk.f32.vlgmr.msra.gmra.mxu1 %vm323_vm1, %v2634_v54  ;;  %v2853_v54 = vld [vmem:[#allocation10 + $0x48] sm:$0xff] }
0x1838   :  { %8790 = vmatpush3.msra.mxu1 %v2866_v23 }
0x1839   :  { %8791 = vmatprep.subr.mxu1 %v2865_v24 }
0x183a   :  { %8792 = vmatpush3.msra.mxu1 %v2865_v24 }
0x183b   :  { %8793 = vmatprep.subr.mxu1 %v2864_v25 }
0x183c   :  { %8794 = vmatpush3.msra.mxu1 %v2864_v25 }
0x183d   :  { %8795 = vmatprep.subr.mxu1 %v2863_v27 }
0x183e   :  { %8796 = vmatpush3.msra.mxu1 %v2863_v27 }
0x183f   :  { %8797 = vmatprep.subr.mxu1 %v2862_v28 }
0x1840   :  { %8798 = vmatpush3.msra.mxu1 %v2862_v28 }
0x1841   :  { %8799 = vmatprep.subr.mxu1 %v2861_v29 }
0x1842   :  { %8800 = vmatpush3.msra.mxu1 %v2861_v29 }
0x1843   :  { %8801 = vmatprep.subr.mxu1 %v2860_v30 }
0x1844   :  { %8802 = vmatpush3.msra.mxu1 %v2860_v30 }
0x1845   :  { %8803 = vmatprep.subr.mxu1 %v2859_v31 }
0x1846   :  { %8804 = vmatpush3.msra.mxu1 %v2859_v31 }
0x1847   :  { %8805 = vmatprep.subr.mxu1 %v2858_v11 }
0x1848   :  { %8806 = vmatpush3.msra.mxu1 %v2858_v11  ;;  %v2945_v11 = vld [vmem:[#allocation11 + $0x30] ss:$0 sm:$0xff] }
0x1849   :  { %8807 = vmatprep.subr.mxu1 %v2857_v32 }
0x184a   :  { %8808 = vmatpush3.msra.mxu1 %v2857_v32 }
0x184b   :  { %8809 = vmatprep.subr.mxu1 %v2856_v33 }
0x184c   :  { %8810 = vmatpush3.msra.mxu1 %v2856_v33 }
0x184d   :  { %8811 = vmatprep.subr.mxu1 %v2855_v34 }
0x184e   :  { %8812 = vmatpush3.msra.mxu1 %v2855_v34  ;;  %v2946_v34 = vld [vmem:[#allocation11 + $0x31] ss:$0 sm:$0xff] }
0x184f   :  { %8813 = vmatprep.subr.mxu1 %v2854_v52 }
0x1850   :  { %8814 = vmatpush3.msra.mxu1 %v2854_v52 }
0x1851   :  { %8815 = vmatprep.subr.mxu1 %v2853_v54 }
0x1852   :  { %8816 = vmatpush3.msra.mxu1 %v2853_v54 }
0x18f7   :  { %v8769_v55 = vpop.f32.mrf.mxu1 }
0x18f8   :  { %v2722_v7 = vadd.f32 %v8769_v55, %v2643_v0  ;;  %v2851_v55 = vld [vmem:[#allocation10 + $0x8] sm:$0xff] }
0x18f9   :  { %v2716_v56 = vpop.f32.mrf.mxu1 }
0x18fa   :  { %v2726_v60 = vadd.f32 %v2722_v7, %v9986_v61  ;;  %v2717_v43 = vadd.f32 %v2716_v56, %v2643_v0  ;;  %v2852_v0 = vld [vmem:[#allocation10 + $0x28] sm:$0xff]  ;;  %v2767_v7 = vld [vmem:[#allocation11 + $0x24] ss:$0 sm:$0xff] }
0x18fb   :  { %8817 = vmatprep.subr.mxu1 %v2852_v0 }
0x18fc   :  { %v2732_v62 = vsel %vm323_vm1, %v2726_v60, 0.0  ;;  %v2725_v63 = vadd.f32 %v2717_v43, %v9981_v57  ;;  %8818 = vmatpush3.msra.mxu1 %v2852_v0 }
0x18fd   :  { %2733 = vadd.xlane.f32.xlu1 %v2732_v62  ;;  %8819 = vmatprep.subr.mxu1 %v2851_v55 }
0x18fe   :  { %v2729_v59 = vsel %vm323_vm1, %v2725_v63, 0.0  ;;  %8820 = vmatpush3.msra.mxu1 %v2851_v55 }
0x18ff   :  { %2730 = vadd.xlane.f32.xlu0 %v2729_v59 }
0x1986   :  { %v2734_v1 = vpop.xlane.xlu1 %2733 }
0x1987   :  { %v2736_v3 = vmul.f32 0.015625, %v2734_v1  ;;  %v2867_v1 = vld [vmem:[#allocation11 + $0x25] ss:$0 sm:$0xff] }
0x1988   :  { %v2731_v5 = vpop.xlane.xlu0 %2730 }
0x1989   :  { %v2735_v6 = vmul.f32 0.015625, %v2731_v5  ;;  %v10132_v9 = vsub.f32 %v2726_v60, %v2736_v3 }
0x198b   :  { %v10134_v10 = vsub.f32 %v2725_v63, %v2735_v6  ;;  %v2740_v57 = vmul.f32 %v10132_v9, %v10132_v9 }
0x198d   :  { %v2739_v61 = vmul.f32 %v10134_v10, %v10134_v10  ;;  %v2744_v50 = vsel %vm323_vm1, %v2740_v57, 0.0 }
0x198f   :  { %v2741_v53 = vsel %vm323_vm1, %v2739_v61, 0.0 }
0x1990   :  { %2742 = vadd.xlane.f32.xlu0 %v2741_v53 }
0x1994   :  { %2745 = vadd.xlane.f32.xlu0 %v2744_v50 }
0x1a19   :  { %v2743_v35 = vpop.xlane.xlu0 %2742 }
0x1a1a   :  { %v2747_v36 = vmul.f32 0.015625, %v2743_v35 }
0x1a1c   :  { %v2749_v37 = vadd.f32 1e-05, %v2747_v36 }
0x1a1d   :  { %v2746_v38 = vpop.xlane.xlu0 %2745 }
0x1a1e   :  { %9387 = vrsqrt.f32 %v2749_v37  ;;  %v2748_v39 = vmul.f32 0.015625, %v2746_v38 }
0x1a20   :  { %v2750_v40 = vadd.f32 1e-05, %v2748_v39  ;;  %v9559_v39 = vld [vmem:[#allocation11] ss:$0 sm:$0xff] }
0x1a22   :  { %9389 = vrsqrt.f32 %v2750_v40  ;;  %v318_v40 = vadd.f32 %v9559_v39, %v9844_v13 }
0x1a2b   :  { %v9388_v41 = vpop.eup %9387 }
0x1a2c   :  { %v2753_v44 = vmul.f32 %v9388_v41, %v10134_v10 }
0x1a2e   :  { %v2755_v45 = vmul.f32 %v2753_v44, %v2727_v42  ;;  %v313_v44 = vadd.f32 %v9559_v39, %v9846_v15 }
0x1a2f   :  { %v9390_v46 = vpop.eup %9389 }
0x1a30   :  { %v2754_v47 = vmul.f32 %v9390_v46, %v10132_v9  ;;  %v2757_v48 = vadd.f32 %v2755_v45, %v2728_v4  ;;  %v360_v45 = vsel %vm323_vm1, %v318_v40, 0.0  ;;  %v357_v46 = vsel %vm323_vm1, %v313_v44, 0.0 }
0x1a32   :  { %v2756_v49 = vmul.f32 %v2754_v47, %v2727_v42  ;;  %8786 = vmatprep.mubr.msk.f32.mxu0 %vm323_vm1, %v2757_v48 }
0x1a34   :  { %v2758_v51 = vadd.f32 %v2756_v49, %v2728_v4 }
0x1a36   :  { %8787 = vmatmul.mubr.msk.f32.vlgmr.msra.gmra.mxu0 %vm323_vm1, %v2758_v51 }
0x1a37   :  { %3108 = vmatprep.mubr.f32.mxu0 %v9724_v26 }
0x1af6   :  { %v8788_v56 = vpop.f32.mrf.mxu0 }
0x1af7   :  { %v2846_v60 = vadd.f32 %v8788_v56, %v2767_v7 }
0x1af8   :  { %v2840_v43 = vpop.f32.mrf.mxu0 }
0x1af9   :  { %v2841_v62 = vadd.f32 %v2840_v43, %v2767_v7  ;;  %v2850_v59 = vmax.f32 %v2846_v60, 0.0 }
0x1afb   :  { %v2849_v63 = vmax.f32 %v2841_v62, 0.0 }
0x1afd   :  { %8821 = vmatprep.mubr.f32.mxu1 %v2849_v63 }
0x1afe   :  { %8822 = vmatmul.mubr.f32.vlgmr.msra.gmra.mxu1 %v2850_v59 }
0x1bbe   :  { %v8823_v3 = vpop.f32.mrf.mxu1 }
0x1bbf   :  { %v2940_v5 = vadd.f32 %v8823_v3, %v2867_v1 }
0x1bc0   :  { %v2934_v6 = vpop.f32.mrf.mxu1 }
0x1bc1   :  { %v2944_v9 = vadd.f32 %v2940_v5, %v2758_v51  ;;  %v2935_v10 = vadd.f32 %v2934_v6, %v2867_v1  ;;  %v3024_v6 = vld [vmem:[#allocation8 + $0x5b0] sm:$0xff] }
0x1bc2   :  { %3060 = vmatprep.subr.mxu0 %v3024_v6 }
0x1bc3   :  { %v2943_v61 = vadd.f32 %v2935_v10, %v2757_v48  ;;  %v2950_v53 = vsel %vm323_vm1, %v2944_v9, 0.0  ;;  %v3022_v10 = vld [vmem:[#allocation8 + $0x4f8] sm:$0xff] }
0x1bc4   :  { %2951 = vadd.xlane.f32.xlu1 %v2950_v53  ;;  %v3020_v53 = vld [vmem:[#allocation8 + $0x440] sm:$0xff] }
0x1bc5   :  { %v2947_v57 = vsel %vm323_vm1, %v2943_v61, 0.0 }
0x1bc6   :  { %2948 = vadd.xlane.f32.xlu0 %v2947_v57  ;;  %v3019_v57 = vld [vmem:[#allocation8 + $0x438] sm:$0xff] }
0x1c4d   :  { %v2952_v50 = vpop.xlane.xlu1 %2951 }
0x1c4e   :  { %v2954_v14 = vmul.f32 0.015625, %v2952_v50  ;;  %v3018_v50 = vld [vmem:[#allocation8 + $0x388] sm:$0xff] }
0x1c4f   :  { %v2949_v16 = vpop.xlane.xlu0 %2948 }
0x1c50   :  { %v2956_v18 = vsub.f32 %v2944_v9, %v2954_v14  ;;  %v2953_v8 = vmul.f32 0.015625, %v2949_v16  ;;  %v3023_v9 = vld [vmem:[#allocation8 + $0x5a8] sm:$0xff]  ;;  %v3017_v14 = vld [vmem:[#allocation8 + $0x380] sm:$0xff]  ;;  %v3016_v16 = vld [vmem:[#allocation8 + $0x2d0] sm:$0xff] }
0x1c51   :  { %3061 = vmatpush1.msra.mxu0 %v3023_v9  ;;  %v3122_v9 = vld [vmem:[#allocation8 + $0x48] sm:$0xff] }
0x1c52   :  { %v2955_v19 = vsub.f32 %v2943_v61, %v2953_v8  ;;  %v2958_v21 = vmul.f32 %v2956_v18, %v2956_v18  ;;  %3062 = vmatprep.subr.mxu0 %v3022_v10  ;;  %v3021_v61 = vld [vmem:[#allocation8 + $0x4f0] sm:$0xff]  ;;  %v3014_v8 = vld [vmem:[#allocation8 + $0x218] sm:$0xff]  ;;  %v3121_v10 = vld [vmem:[#allocation8 + $0x40] sm:$0xff] }
0x1c53   :  { %3063 = vmatpush1.msra.mxu0 %v3021_v61 }
0x1c54   :  { %v2962_v12 = vsel %vm323_vm1, %v2958_v21, 0.0  ;;  %v2957_v22 = vmul.f32 %v2955_v19, %v2955_v19  ;;  %3064 = vmatprep.subr.mxu0 %v3020_v53  ;;  %v3012_v21 = vld [vmem:[#allocation8 + $0x160] sm:$0xff] }
0x1c55   :  { %2963 = vadd.xlane.f32.xlu1 %v2962_v12  ;;  %3065 = vmatpush1.msra.mxu0 %v3019_v57  ;;  %v3011_v12 = vld [vmem:[#allocation8 + $0x158] sm:$0xff] }
0x1c56   :  { %v2959_v23 = vsel %vm323_vm1, %v2957_v22, 0.0  ;;  %3066 = vmatprep.subr.mxu0 %v3018_v50  ;;  %v3010_v22 = vld [vmem:[#allocation8 + $0xa8] sm:$0xff] }
0x1c57   :  { %2960 = vadd.xlane.f32.xlu0 %v2959_v23  ;;  %3067 = vmatpush1.msra.mxu0 %v3017_v14  ;;  %v3009_v23 = vld [vmem:[#allocation8 + $0xa0] sm:$0xff] }
0x1c58   :  { %3068 = vmatprep.subr.mxu0 %v3016_v16 }
0x1cde   :  { %v2964_v24 = vpop.xlane.xlu1 %2963 }
0x1cdf   :  { %v2966_v25 = vmul.f32 0.015625, %v2964_v24  ;;  %v3136_v24 = vld [vmem:[#allocation8 + $0x550] sm:$0xff] }
0x1ce0   :  { %v2961_v27 = vpop.xlane.xlu0 %2960 }
0x1ce1   :  { %v2968_v28 = vadd.f32 1e-05, %v2966_v25  ;;  %v2965_v29 = vmul.f32 0.015625, %v2961_v27 }
0x1ce3   :  { %9391 = vrsqrt.f32 %v2968_v28  ;;  %v2967_v30 = vadd.f32 1e-05, %v2965_v29 }
0x1ce5   :  { %9393 = vrsqrt.f32 %v2967_v30 }
0x1cf0   :  { %v9392_v31 = vpop.eup %9391 }
0x1cf1   :  { %v2972_v32 = vmul.f32 %v9392_v31, %v2956_v18  ;;  %v3015_v18 = vld [vmem:[#allocation8 + $0x2c8] sm:$0xff] }
0x1cf2   :  { %v9394_v33 = vpop.eup %9393  ;;  %3069 = vmatpush1.msra.mxu0 %v3015_v18 }
0x1cf3   :  { %v2974_v35 = vmul.f32 %v2972_v32, %v2945_v11  ;;  %v2971_v36 = vmul.f32 %v9394_v33, %v2955_v19  ;;  %3070 = vmatprep.subr.mxu0 %v3014_v8  ;;  %v3013_v19 = vld [vmem:[#allocation8 + $0x210] sm:$0xff] }
0x1cf4   :  { %3071 = vmatpush1.msra.mxu0 %v3013_v19 }
0x1cf5   :  { %v2976_v37 = vadd.f32 %v2974_v35, %v2946_v34  ;;  %v2973_v38 = vmul.f32 %v2971_v36, %v2945_v11  ;;  %3072 = vmatprep.subr.mxu0 %v3012_v21 }
0x1cf6   :  { %3073 = vmatpush1.msra.mxu0 %v3011_v12  ;;  %v3138_v12 = vld [vmem:[#allocation11 + $0x32] ss:$8 sm:$0x3] }
0x1cf7   :  { %v2982_v41 = vsel %vm323_vm1, %v2976_v37, 0.0  ;;  %v2975_v42 = vadd.f32 %v2973_v38, %v2946_v34  ;;  %3074 = vmatprep.subr.mxu0 %v3010_v22  ;;  %v3143_v22 = vrot.slane %v3138_v12, %v9814_v58 }
0x1cf8   :  { %2983 = vadd.xlane.f32.xlu1 %v2982_v41  ;;  %3075 = vmatpush1.msra.mxu0 %v3009_v23  ;;  %v2977_v41 = vld [vmem:[#allocation11 + $0x6] ss:$0 sm:$0xff] }
0x1cf9   :  { %v2979_v4 = vsel %vm323_vm1, %v2975_v42, 0.0  ;;  %3172 = vmatprep.subr.mxu0 %v3136_v24 }
0x1cfa   :  { %2980 = vadd.xlane.f32.xlu0 %v2979_v4 }
0x1cfc   :  { %361 = vadd.xlane.f32.xlu1 %v360_v45  ;;  %v3135_v45 = vld [vmem:[#allocation8 + $0x548] sm:$0xff] }
0x1cfe   :  { %358 = vadd.xlane.f32.xlu0 %v357_v46 }
0x1d81   :  { %v2984_v47 = vpop.xlane.xlu1 %2983 }
0x1d82   :  { %v2986_v48 = vmul.f32 0.015625, %v2984_v47  ;;  %v3134_v47 = vld [vmem:[#allocation8 + $0x498] sm:$0xff] }
0x1d83   :  { %v2981_v49 = vpop.xlane.xlu0 %2980 }
0x1d84   :  { %v10157_v51 = vsub.f32 %v2976_v37, %v2986_v48  ;;  %v2985_v13 = vmul.f32 0.015625, %v2981_v49  ;;  %v3133_v48 = vld [vmem:[#allocation8 + $0x490] sm:$0xff]  ;;  %v3132_v49 = vld [vmem:[#allocation8 + $0x3e0] sm:$0xff] }
0x1d85   :  { %v362_v52 = vpop.xlane.xlu1 %361 }
0x1d86   :  { %v10159_v54 = vsub.f32 %v2975_v42, %v2985_v13  ;;  %v364_v0 = vmul.f32 0.015625, %v362_v52  ;;  %v2990_v15 = vmul.f32 %v10157_v51, %v10157_v51  ;;  %v3131_v52 = vld [vmem:[#allocation8 + $0x3d8] sm:$0xff] }
0x1d87   :  { %v359_v55 = vpop.xlane.xlu0 %358 }
0x1d88   :  { %v10163_v7 = vsub.f32 %v318_v40, %v364_v0  ;;  %v363_v56 = vmul.f32 0.015625, %v359_v55  ;;  %v2994_v60 = vsel %vm323_vm1, %v2990_v15, 0.0  ;;  %v2989_v43 = vmul.f32 %v10159_v54, %v10159_v54  ;;  %v3129_v0 = vld [vmem:[#allocation8 + $0x320] sm:$0xff]  ;;  %v3128_v15 = vld [vmem:[#allocation8 + $0x270] sm:$0xff] }
0x1d89   :  { %2995 = vadd.xlane.f32.xlu1 %v2994_v60 }
0x1d8a   :  { %v10168_v62 = vsub.f32 %v313_v44, %v363_v56  ;;  %v2991_v63 = vsel %vm323_vm1, %v2989_v43, 0.0  ;;  %v368_v59 = vmul.f32 %v10163_v7, %v10163_v7  ;;  %v2978_v44 = vld [vmem:[#allocation11 + $0x7] ss:$0 sm:$0xff]  ;;  %v3127_v56 = vld [vmem:[#allocation8 + $0x268] sm:$0xff]  ;;  %v3126_v43 = vld [vmem:[#allocation8 + $0x1b8] sm:$0xff] }
0x1d8b   :  { %2992 = vadd.xlane.f32.xlu0 %v2991_v63  ;;  %v3125_v63 = vld [vmem:[#allocation8 + $0x1b0] sm:$0xff] }
0x1d8c   :  { %v372_v1 = vsel %vm323_vm1, %v368_v59, 0.0  ;;  %v367_v3 = vmul.f32 %v10168_v62, %v10168_v62  ;;  %v355_v59 = vld [vmem:[#allocation11 + $0x4] ss:$0 sm:$0xff] }
0x1d8d   :  { %373 = vadd.xlane.f32.xlu1 %v372_v1  ;;  %v3124_v1 = vld [vmem:[#allocation8 + $0x100] sm:$0xff] }
0x1d8e   :  { %v369_v5 = vsel %vm323_vm1, %v367_v3, 0.0 }
0x1d8f   :  { %370 = vadd.xlane.f32.xlu0 %v369_v5  ;;  %v3123_v5 = vld [vmem:[#allocation8 + $0xf8] sm:$0xff] }
0x1e12   :  { %v2996_v25 = vpop.xlane.xlu1 %2995 }
0x1e13   :  { %v2998_v27 = vmul.f32 0.015625, %v2996_v25 }
0x1e14   :  { %v2993_v28 = vpop.xlane.xlu0 %2992 }
0x1e15   :  { %v3000_v29 = vadd.f32 1e-05, %v2998_v27  ;;  %v2997_v30 = vmul.f32 0.015625, %v2993_v28 }
0x1e16   :  { %v374_v33 = vpop.xlane.xlu1 %373 }
0x1e17   :  { %9395 = vrsqrt.f32 %v3000_v29  ;;  %v2999_v31 = vadd.f32 1e-05, %v2997_v30  ;;  %v376_v34 = vmul.f32 0.015625, %v374_v33  ;;  %v3147_v29 = vrot.slane %v3138_v12, %v9827_v2 }
0x1e18   :  { %v371_v11 = vpop.xlane.xlu0 %370 }
0x1e19   :  { %9397 = vrsqrt.f32 %v2999_v31  ;;  %v375_v32 = vmul.f32 0.015625, %v371_v11  ;;  %v378_v36 = vadd.f32 1e-05, %v376_v34 }
0x1e1b   :  { %v377_v35 = vadd.f32 1e-05, %v375_v32 }
0x1e1d   :  { %9399 = vrsqrt.f32 %v377_v35 }
0x1e1e   :  { %9401 = vrsqrt.f32 %v378_v36 }
0x1e24   :  { %v9396_v37 = vpop.eup %9395 }
0x1e25   :  { %v3004_v40 = vmul.f32 %v9396_v37, %v10157_v51  ;;  %v3130_v51 = vld [vmem:[#allocation8 + $0x328] sm:$0xff] }
0x1e26   :  { %v9398_v38 = vpop.eup %9397 }
0x1e27   :  { %v3003_v39 = vmul.f32 %v9398_v38, %v10159_v54  ;;  %v3006_v46 = vmul.f32 %v3004_v40, %v2977_v41 }
0x1e29   :  { %v3005_v42 = vmul.f32 %v3003_v39, %v2977_v41  ;;  %v3008_v13 = vadd.f32 %v3006_v46, %v2978_v44 }
0x1e2a   :  { %v9400_v54 = vpop.eup %9399 }
0x1e2b   :  { %v3007_v4 = vadd.f32 %v3005_v42, %v2978_v44  ;;  %v381_v55 = vmul.f32 %v9400_v54, %v10168_v62  ;;  %v9402_v60 = vpop.eup %9401  ;;  %v356_v62 = vld [vmem:[#allocation11 + $0x5] ss:$0 sm:$0xff] }
0x1e2c   :  { %v382_v6 = vmul.f32 %v9402_v60, %v10163_v7  ;;  %v3026_v7 = vld [vmem:[#allocation11 + $0x62] ss:$8 sm:$0x3] }
0x1e2d   :  { %8030 = vmatmul.mubr.msk.f32.vlgmr.msra.gmra.mxu0 %vm323_vm1, %v3007_v4  ;;  %v383_v3 = vmul.f32 %v381_v55, %v355_v59  ;;  %v10195_v50 = vrot.slane %v3026_v7, %v9814_v58  ;;  %v10198_v14 = vrot.slane %v3026_v7, %v9827_v2 }
0x1e2e   :  { %3173 = vmatpush1.msra.mxu0 %v3135_v45  ;;  %3114 = vmatprep.mubr.f32.mxu0 %v9724_v26  ;;  %v384_v53 = vmul.f32 %v382_v6, %v355_v59 }
0x1e2f   :  { %3174 = vmatprep.subr.mxu0 %v3134_v47  ;;  %v10185_v61 = vadd.f32 %v383_v3, %v356_v62 }
0x1e30   :  { %3175 = vmatpush1.msra.mxu0 %v3133_v48  ;;  %v10190_v57 = vadd.f32 %v384_v53, %v356_v62 }
0x1e31   :  { %3176 = vmatprep.subr.mxu0 %v3132_v49  ;;  %8031 = vmatmul.mubr.msk.f32.gmra.mxu0 %vm323_vm1, %v3008_v13 }
0x1e32   :  { %3177 = vmatpush1.msra.mxu0 %v3131_v52  ;;  %3220 = vmatprep.mubr.f32.mxu0 %v9724_v26 }
0x1e33   :  { %3178 = vmatprep.subr.mxu0 %v3130_v51 }
0x1e34   :  { %3179 = vmatpush1.msra.mxu0 %v3129_v0 }
0x1e35   :  { %3180 = vmatprep.subr.mxu0 %v3128_v15 }
0x1e36   :  { %3181 = vmatpush1.msra.mxu0 %v3127_v56 }
0x1e37   :  { %3182 = vmatprep.subr.mxu0 %v3126_v43 }
0x1e38   :  { %3183 = vmatpush1.msra.mxu0 %v3125_v63 }
0x1e39   :  { %3184 = vmatprep.subr.mxu0 %v3124_v1 }
0x1e3a   :  { %3185 = vmatpush1.msra.mxu0 %v3123_v5 }
0x1e3b   :  { %3186 = vmatprep.subr.mxu0 %v3122_v9 }
0x1e3c   :  { %3187 = vmatpush1.msra.mxu0 %v3121_v10 }
0x1e3d   :  { %8032 = vmatmul.mubr.msk.f32.vlgmr.msra.gmra.mxu0 %vm323_vm1, %v10185_v61 }
0x1e3e   :  { %3226 = vmatprep.mubr.f32.mxu0 %v9724_v26 }
0x1e41   :  { %8033 = vmatmul.mubr.msk.f32.gmra.mxu0 %vm323_vm1, %v10190_v57 }
0x1eed   :  { %v3110_v16 = vpop.f32.mrf.mxu0 }
0x1eee   :  { %v10201_v18 = vadd.f32 %v3110_v16, %v10195_v50 }
0x1eef   :  { %v3112_v8 = vpop.f32.mrf.mxu0 }
0x1ef0   :  { %v10204_v19 = vadd.f32 %v3112_v8, %v10198_v14 }
0x1ef1   :  { %v10206_v21 = vpop.f32.mrf.mxu0 }
0x1ef3   :  { %v10209_v23 = vpop.f32.mrf.mxu0 }
0x1efd   :  { %v3222_v24 = vpop.f32.mrf.mxu0 }
0x1efe   :  { %v10211_v25 = vadd.f32 %v3222_v24, %v3143_v22 }
0x1eff   :  { %v3224_v27 = vpop.f32.mrf.mxu0 }
0x1f00   :  { %3235 = vrot.lane.b32.xlu1 %v10211_v25, %s9725_s4  ;;  %8828 = vmatprep.mubr.msk.f32.mxu1 %vm156_vm0, %v10211_v25  ;;  %v10226_v32 = vadd.f32 %v3224_v27, %v3147_v29 }
0x1f01   :  { %v3228_v28 = vpop.f32.mrf.mxu0 }
0x1f02   :  { %v10218_v30 = vadd.f32 %v3228_v28, %v3143_v22 }
0x1f03   :  { %v3230_v31 = vpop.f32.mrf.mxu0 }
0x1f04   :  { %v10220_v11 = vadd.f32 %v3230_v31, %v3147_v29  ;;  %3237 = vrot.lane.b32.xlu0 %v10218_v30, %s9725_s4  ;;  %3435 = vrot.lane.b32.xlu1 %v10218_v30, %s9727_s5 }
0x1f06   :  { %8831 = vmatprep.subr.mxu0 %v10220_v11 }
0x1f07   :  { %8832 = vmatpush3.msra.mxu0 %v10220_v11 }
0x1f08   :  { %8833 = vmatprep.subr.mxu0 %v10226_v32  ;;  %3429 = vrot.lane.b32.xlu0 %v10211_v25, %s9728_s9 }
0x1f09   :  { %3433 = vrot.lane.b32.xlu1 %v10211_v25, %s9727_s5  ;;  %8834 = vmatpush3.msra.mxu0 %v10226_v32 }
0x1f0d   :  { %3431 = vrot.lane.b32.xlu1 %v10218_v30, %s9728_s9 }
0x1f72   :  { %v3236_v33 = vpop.permute.xlu1 %3235 }
0x1f76   :  { %v3238_v34 = vpop.permute.xlu0 %3237  ;;  %v3436_v35 = vpop.permute.xlu1 %3435 }
0x1f77   :  { %8824 = vmatprep.subr.msk.mxu1 %vm156_vm0, %v3238_v34 }
0x1f78   :  { %8825 = vmatpush3.xpose.msk.msra.mxu1 %vm156_vm0, %v3238_v34 }
0x1f79   :  { %8826 = vmatprep.subr.msk.mxu1 %vm156_vm0, %v3236_v33 }
0x1f7a   :  { %v3430_v36 = vpop.permute.xlu0 %3429 }
0x1f7b   :  { %v3434_v37 = vpop.permute.xlu1 %3433 }
0x1f7c   :  { %8827 = vmatpush3.xpose.msk.msra.mxu1 %vm156_vm0, %v3236_v33 }
0x1f7d   :  { %8838 = vmatprep.subr.msk.mxu1 %vm156_vm0, %v3436_v35 }
0x1f7f   :  { %8829 = vmatmul.mubr.msk.f32.vlgmr.msra.gmra.mxu1 %vm156_vm0, %v10218_v30  ;;  %v3432_v38 = vpop.permute.xlu1 %3431 }
0x1f80   :  { %8839 = vmatpush3.xpose.msk.msra.mxu1 %vm156_vm0, %v3436_v35  ;;  %8842 = vmatprep.mubr.msk.f32.mxu1 %vm156_vm0, %v3430_v36 }
0x1f81   :  { %8840 = vmatprep.subr.msk.mxu1 %vm156_vm0, %v3434_v37 }
0x1f84   :  { %8841 = vmatpush3.xpose.msk.msra.mxu1 %vm156_vm0, %v3434_v37 }
0x1f87   :  { %8843 = vmatmul.mubr.msk.f32.vlgmr.msra.gmra.mxu1 %vm156_vm0, %v3432_v38 }
0x203f   :  { %v8830_v39 = vpop.f32.mrf.mxu1 }
0x2040   :  { %v3323_v40 = vmul.f32 0.25, %v8830_v39 }
0x2041   :  { %v3313_v41 = vpop.f32.mrf.mxu1 }
0x2042   :  { %v3325_v42 = vadd.f32 %v3323_v40, %v9848_v17  ;;  %v3322_v44 = vmul.f32 0.25, %v3313_v41 }
0x2044   :  { %v3324_v4 = vadd.f32 %v3322_v44, %v9850_v20  ;;  %v3329_v45 = vsel %vm156_vm0, %v3325_v42, -inf }
0x2045   :  { %3330 = vmax.xlane.f32.xlu1 %v3329_v45 }
0x2046   :  { %v3326_v46 = vsel %vm156_vm0, %v3324_v4, -inf }
0x2047   :  { %v8844_v47 = vpop.f32.mrf.mxu1  ;;  %3327 = vmax.xlane.f32.xlu0 %v3326_v46 }
0x2048   :  { %v3521_v49 = vmul.f32 0.25, %v8844_v47 }
0x2049   :  { %v3511_v48 = vpop.f32.mrf.mxu1 }
0x204a   :  { %v3520_v13 = vmul.f32 0.25, %v3511_v48  ;;  %v3523_v54 = vadd.f32 %v3521_v49, %v9848_v17 }
0x204c   :  { %v3522_v52 = vadd.f32 %v3520_v13, %v9850_v20  ;;  %v3527_v0 = vsel %vm156_vm0, %v3523_v54, -inf }
0x204e   :  { %v3524_v51 = vsel %vm156_vm0, %v3522_v52, -inf }
0x204f   :  { %3525 = vmax.xlane.f32.xlu0 %v3524_v51 }
0x2053   :  { %3528 = vmax.xlane.f32.xlu0 %v3527_v0 }
0x20ce   :  { %v3331_v15 = vpop.xlane.xlu1 %3330 }
0x20cf   :  { %v3333_v55 = vsub.f32 %v3325_v42, %v3331_v15 }
0x20d0   :  { %v3328_v56 = vpop.xlane.xlu0 %3327 }
0x20d1   :  { %v3336_v60 = vmul.f32 1.442695, %v3333_v55  ;;  %v3332_v43 = vsub.f32 %v3324_v4, %v3328_v56 }
0x20d3   :  { %9403 = vpow2.f32 %v3336_v60  ;;  %v3334_v63 = vmul.f32 1.442695, %v3332_v43 }
0x20d5   :  { %9405 = vpow2.f32 %v3334_v63 }
0x20d8   :  { %v3526_v59 = vpop.xlane.xlu0 %3525 }
0x20d9   :  { %v3530_v1 = vsub.f32 %v3522_v52, %v3526_v59 }
0x20db   :  { %v3532_v3 = vmul.f32 1.442695, %v3530_v1 }
0x20dc   :  { %v3529_v5 = vpop.xlane.xlu0 %3528 }
0x20dd   :  { %9407 = vpow2.f32 %v3532_v3  ;;  %v3531_v6 = vsub.f32 %v3523_v54, %v3529_v5 }
0x20df   :  { %v3534_v9 = vmul.f32 1.442695, %v3531_v6 }
0x20e0   :  { %v9404_v10 = vpop.eup %9403 }
0x20e1   :  { %9409 = vpow2.f32 %v3534_v9  ;;  %v3341_v62 = vsel %vm156_vm0, %v9404_v10, 0.0 }
0x20e2   :  { %v9406_v53 = vpop.eup %9405  ;;  %3342 = vadd.xlane.f32.xlu1 %v3341_v62 }
0x20e3   :  { %v3338_v7 = vsel %vm156_vm0, %v9406_v53, 0.0 }
0x20e4   :  { %3339 = vadd.xlane.f32.xlu0 %v3338_v7 }
0x20ea   :  { %v9408_v16 = vpop.eup %9407 }
0x20eb   :  { %v3536_v8 = vsel %vm156_vm0, %v9408_v16, 0.0 }
0x20ec   :  { %3537 = vadd.xlane.f32.xlu0 %v3536_v8 }
0x20ee   :  { %v9410_v12 = vpop.eup %9409 }
0x20ef   :  { %v3539_v22 = vsel %vm156_vm0, %v9410_v12, 0.0 }
0x20f0   :  { %3540 = vadd.xlane.f32.xlu1 %v3539_v22 }
0x2101   :  { %3548 = vrot.lane.b32.xlu1 %v10226_v32, %s9728_s9 }
0x2102   :  { %3550 = vrot.lane.b32.xlu0 %v10220_v11, %s9728_s9 }
0x2105   :  { %3641 = vrot.lane.b32.xlu1 %v10218_v30, %s9720_s22 }
0x2106   :  { %3635 = vrot.lane.b32.xlu0 %v10211_v25, %s9729_s10 }
0x2109   :  { %3639 = vrot.lane.b32.xlu1 %v10211_v25, %s9720_s22 }
0x210d   :  { %3637 = vrot.lane.b32.xlu1 %v10218_v30, %s9729_s10 }
0x216b   :  { %v3343_v24 = vpop.xlane.xlu1 %3342 }
0x216c   :  { %9411 = vrcp.f32 %v3343_v24 }
0x216d   :  { %v3340_v27 = vpop.xlane.xlu0 %3339 }
0x216e   :  { %9413 = vrcp.f32 %v3340_v27 }
0x2175   :  { %v3538_v28 = vpop.xlane.xlu0 %3537 }
0x2176   :  { %9415 = vrcp.f32 %v3538_v28 }
0x2179   :  { %v3541_v29 = vpop.xlane.xlu1 %3540  ;;  %v3551_v31 = vpop.permute.xlu0 %3550 }
0x217a   :  { %v9412_v33 = vpop.eup %9411  ;;  %9417 = vrcp.f32 %v3541_v29  ;;  %8845 = vmatprep.subr.mxu0 %v3551_v31 }
0x217b   :  { %v9414_v34 = vpop.eup %9413  ;;  %v3347_v36 = vmul.f32 %v9412_v33, %v9404_v10 }
0x217c   :  { %v3346_v35 = vmul.f32 %v9414_v34, %v9406_v53 }
0x217d   :  { %v3549_v37 = vpop.permute.xlu1 %3548  ;;  %v3636_v44 = vpop.permute.xlu0 %3635 }
0x217e   :  { %8835 = vmatprep.mubr.msk.f32.mxu0 %vm156_vm0, %v3346_v35 }
0x217f   :  { %8836 = vmatmul.mubr.msk.f32.vlgmr.msra.gmra.mxu0 %vm156_vm0, %v3347_v36 }
0x2180   :  { %8846 = vmatpush3.msra.mxu0 %v3551_v31 }
0x2181   :  { %8847 = vmatprep.subr.mxu0 %v3549_v37  ;;  %v3642_v38 = vpop.permute.xlu1 %3641 }
0x2182   :  { %8848 = vmatpush3.msra.mxu0 %v3549_v37 }
0x2183   :  { %v9416_v39 = vpop.eup %9415  ;;  %8852 = vmatprep.subr.msk.mxu0 %vm156_vm0, %v3642_v38 }
0x2184   :  { %v3544_v40 = vmul.f32 %v9416_v39, %v9408_v16 }
0x2185   :  { %v3640_v4 = vpop.permute.xlu1 %3639 }
0x2186   :  { %8849 = vmatprep.mubr.msk.f32.mxu0 %vm156_vm0, %v3544_v40 }
0x2187   :  { %v9418_v41 = vpop.eup %9417 }
0x2188   :  { %v3545_v42 = vmul.f32 %v9418_v41, %v9410_v12 }
0x2189   :  { %v3638_v45 = vpop.permute.xlu1 %3637 }
0x218a   :  { %8850 = vmatmul.mubr.msk.f32.vlgmr.msra.gmra.mxu0 %vm156_vm0, %v3545_v42 }
0x218b   :  { %8853 = vmatpush3.xpose.msk.msra.mxu0 %vm156_vm0, %v3642_v38  ;;  %8856 = vmatprep.mubr.msk.f32.mxu0 %vm156_vm0, %v3636_v44 }
0x218c   :  { %8854 = vmatprep.subr.msk.mxu0 %vm156_vm0, %v3640_v4 }
0x218f   :  { %8855 = vmatpush3.xpose.msk.msra.mxu0 %vm156_vm0, %v3640_v4 }
0x2192   :  { %8857 = vmatmul.mubr.msk.f32.vlgmr.msra.gmra.mxu0 %vm156_vm0, %v3638_v45 }
0x223f   :  { %v10284_v46 = vpop.f32.mrf.mxu0 }
0x2241   :  { %v10286_v47 = vpop.f32.mrf.mxu0 }
0x224a   :  { %v10288_v48 = vpop.f32.mrf.mxu0 }
0x224c   :  { %v10290_v49 = vpop.f32.mrf.mxu0 }
0x2252   :  { %v8858_v13 = vpop.f32.mrf.mxu0 }
0x2253   :  { %v3727_v52 = vmul.f32 0.25, %v8858_v13 }
0x2254   :  { %v3717_v54 = vpop.f32.mrf.mxu0 }
0x2255   :  { %v3729_v51 = vadd.f32 %v3727_v52, %v9848_v17  ;;  %v3726_v0 = vmul.f32 0.25, %v3717_v54 }
0x2257   :  { %v3728_v15 = vadd.f32 %v3726_v0, %v9850_v20  ;;  %v3733_v55 = vsel %vm156_vm0, %v3729_v51, -inf }
0x2258   :  { %3734 = vmax.xlane.f32.xlu1 %v3733_v55  ;;  %v4080_v55 = vld [vmem:[#allocation8 + $0x558] sm:$0xff] }
0x2259   :  { %v3730_v56 = vsel %vm156_vm0, %v3728_v15, -inf }
0x225a   :  { %3731 = vmax.xlane.f32.xlu0 %v3730_v56 }
0x2269   :  { %3752 = vrot.lane.b32.xlu1 %v10226_v32, %s9729_s10 }
0x226d   :  { %3845 = vrot.lane.b32.xlu1 %v10218_v30, %s9723_s30 }
0x2271   :  { %3843 = vrot.lane.b32.xlu1 %v10211_v25, %s9723_s30 }
0x2275   :  { %3841 = vrot.lane.b32.xlu1 %v10218_v30, %s9730_s11 }
0x22e1   :  { %v3735_v60 = vpop.xlane.xlu1 %3734 }
0x22e2   :  { %v3737_v43 = vsub.f32 %v3729_v51, %v3735_v60 }
0x22e3   :  { %v3732_v63 = vpop.xlane.xlu0 %3731 }
0x22e4   :  { %v3740_v59 = vmul.f32 1.442695, %v3737_v43  ;;  %v3736_v1 = vsub.f32 %v3728_v15, %v3732_v63 }
0x22e5   :  { %v3753_v53 = vpop.permute.xlu1 %3752 }
0x22e6   :  { %9419 = vpow2.f32 %v3740_v59  ;;  %v3738_v3 = vmul.f32 1.442695, %v3736_v1  ;;  %v4078_v59 = vld [vmem:[#allocation8 + $0x3e8] sm:$0xff]  ;;  %v4077_v1 = vld [vmem:[#allocation8 + $0x330] sm:$0xff] }
0x22e8   :  { %9421 = vpow2.f32 %v3738_v3  ;;  %v4076_v3 = vld [vmem:[#allocation8 + $0x278] sm:$0xff] }
0x22e9   :  { %v3846_v16 = vpop.permute.xlu1 %3845 }
0x22ed   :  { %v3844_v27 = vpop.permute.xlu1 %3843 }
0x22f1   :  { %v3842_v28 = vpop.permute.xlu1 %3841 }
0x22f3   :  { %v9420_v5 = vpop.eup %9419 }
0x22f4   :  { %v3745_v6 = vsel %vm156_vm0, %v9420_v5, 0.0 }
0x22f5   :  { %v9422_v9 = vpop.eup %9421  ;;  %3746 = vadd.xlane.f32.xlu0 %v3745_v6  ;;  %v4074_v6 = vld [vmem:[#allocation8 + $0x108] sm:$0xff] }
0x22f6   :  { %v3742_v10 = vsel %vm156_vm0, %v9422_v9, 0.0 }
0x22f9   :  { %3743 = vadd.xlane.f32.xlu0 %v3742_v10  ;;  %v10338_v10 = vadd.f32 %v10206_v21, %v10195_v50 }
0x230f   :  { %3754 = vrot.lane.b32.xlu0 %v10220_v11, %s9729_s10 }
0x2313   :  { %3839 = vrot.lane.b32.xlu0 %v10211_v25, %s9730_s11 }
0x237e   :  { %v3747_v30 = vpop.xlane.xlu0 %3746 }
0x237f   :  { %9423 = vrcp.f32 %v3747_v30 }
0x2382   :  { %v3744_v62 = vpop.xlane.xlu0 %3743 }
0x2383   :  { %9425 = vrcp.f32 %v3744_v62 }
0x2386   :  { %v3755_v7 = vpop.permute.xlu0 %3754 }
0x2387   :  { %8859 = vmatprep.subr.mxu1 %v3755_v7 }
0x2388   :  { %8860 = vmatpush3.msra.mxu1 %v3755_v7 }
0x2389   :  { %8861 = vmatprep.subr.mxu1 %v3753_v53 }
0x238a   :  { %8862 = vmatpush3.msra.mxu1 %v3753_v53  ;;  %v3840_v25 = vpop.permute.xlu0 %3839 }
0x238b   :  { %8866 = vmatprep.subr.msk.mxu1 %vm156_vm0, %v3846_v16 }
0x238c   :  { %v9424_v8 = vpop.eup %9423 }
0x238d   :  { %v3751_v24 = vmul.f32 %v9424_v8, %v9420_v5  ;;  %v4075_v5 = vld [vmem:[#allocation8 + $0x1c0] sm:$0xff] }
0x2390   :  { %v9426_v12 = vpop.eup %9425 }
0x2391   :  { %v3750_v22 = vmul.f32 %v9426_v12, %v9422_v9  ;;  %v4073_v9 = vld [vmem:[#allocation8 + $0x50] sm:$0xff] }
0x2393   :  { %8863 = vmatprep.mubr.msk.f32.mxu1 %vm156_vm0, %v3750_v22 }
0x2394   :  { %8864 = vmatmul.mubr.msk.f32.vlgmr.msra.gmra.mxu1 %vm156_vm0, %v3751_v24 }
0x2395   :  { %8867 = vmatpush3.xpose.msk.msra.mxu1 %vm156_vm0, %v3846_v16  ;;  %8870 = vmatprep.mubr.msk.f32.mxu1 %vm156_vm0, %v3840_v25 }
0x2396   :  { %8868 = vmatprep.subr.msk.mxu1 %vm156_vm0, %v3844_v27 }
0x2399   :  { %8869 = vmatpush3.xpose.msk.msra.mxu1 %vm156_vm0, %v3844_v27 }
0x239c   :  { %8871 = vmatmul.mubr.msk.f32.vlgmr.msra.gmra.mxu1 %vm156_vm0, %v3842_v28 }
0x2454   :  { %v8865_v29 = vpop.f32.mrf.mxu1 }
0x2456   :  { %v3830_v31 = vpop.f32.mrf.mxu1 }
0x245c   :  { %v8872_v33 = vpop.f32.mrf.mxu1 }
0x245d   :  { %v3931_v34 = vmul.f32 0.25, %v8872_v33 }
0x245e   :  { %v3921_v35 = vpop.f32.mrf.mxu1 }
0x245f   :  { %v3933_v36 = vadd.f32 %v3931_v34, %v9848_v17  ;;  %v3930_v37 = vmul.f32 0.25, %v3921_v35 }
0x2461   :  { %v3932_v38 = vadd.f32 %v3930_v37, %v9850_v20  ;;  %v3937_v39 = vsel %vm156_vm0, %v3933_v36, -inf }
0x2462   :  { %3938 = vmax.xlane.f32.xlu1 %v3937_v39 }
0x2463   :  { %v3934_v40 = vsel %vm156_vm0, %v3932_v38, -inf }
0x2464   :  { %3935 = vmax.xlane.f32.xlu0 %v3934_v40 }
0x2473   :  { %3956 = vrot.lane.b32.xlu1 %v10226_v32, %s9730_s11 }
0x2477   :  { %4045 = vrot.lane.b32.xlu1 %v10290_v49, %s9723_s30 }
0x247b   :  { %4047 = vrot.lane.b32.xlu1 %v10288_v48, %s9723_s30 }
0x247f   :  { %4055 = vrot.lane.b32.xlu1 %v8865_v29, %s9720_s22 }
0x24eb   :  { %v3939_v41 = vpop.xlane.xlu1 %3938 }
0x24ec   :  { %v3941_v42 = vsub.f32 %v3933_v36, %v3939_v41 }
0x24ed   :  { %v3936_v44 = vpop.xlane.xlu0 %3935 }
0x24ee   :  { %v3944_v4 = vmul.f32 1.442695, %v3941_v42  ;;  %v3940_v45 = vsub.f32 %v3932_v38, %v3936_v44 }
0x24ef   :  { %v3957_v15 = vpop.permute.xlu1 %3956 }
0x24f0   :  { %9427 = vpow2.f32 %v3944_v4  ;;  %v3942_v13 = vmul.f32 1.442695, %v3940_v45 }
0x24f2   :  { %9429 = vpow2.f32 %v3942_v13 }
0x24f3   :  { %v4046_v53 = vpop.permute.xlu1 %4045 }
0x24f4   :  { %v4067_v12 = vsel %vm156_vm0, %v10286_v47, %v4046_v53 }
0x24f7   :  { %v4048_v7 = vpop.permute.xlu1 %4047 }
0x24f8   :  { %v4068_v21 = vsel %vm156_vm0, %v10284_v46, %v4048_v7  ;;  %v4081_v46 = vld [vmem:[#allocation11 + $0x33] ss:$0 sm:$0xff] }
0x24fb   :  { %v4056_v16 = vpop.permute.xlu1 %4055 }
0x24fc   :  { %v4070_v25 = vsel %vm1335_vm4, %v4068_v21, %v4056_v16  ;;  %v4205_v16 = vld [vmem:[#allocation11 + $0x34] ss:$0 sm:$0xff] }
0x24fd   :  { %v9428_v52 = vpop.eup %9427 }
0x24fe   :  { %v3949_v54 = vsel %vm156_vm0, %v9428_v52, 0.0 }
0x24ff   :  { %v9430_v32 = vpop.eup %9429  ;;  %3950 = vadd.xlane.f32.xlu0 %v3949_v54  ;;  %v4202_v54 = vld [vmem:[#allocation8 + $0x3f0] sm:$0xff] }
0x2500   :  { %v3946_v49 = vsel %vm156_vm0, %v9430_v32, 0.0 }
0x2503   :  { %3947 = vadd.xlane.f32.xlu0 %v3946_v49  ;;  %v4200_v49 = vld [vmem:[#allocation8 + $0x280] sm:$0xff] }
0x2519   :  { %3958 = vrot.lane.b32.xlu0 %v10220_v11, %s9730_s11  ;;  %v4079_v11 = vld [vmem:[#allocation8 + $0x4a0] sm:$0xff] }
0x251d   :  { %4053 = vrot.lane.b32.xlu0 %v3830_v31, %s9720_s22 }
0x2588   :  { %v3951_v48 = vpop.xlane.xlu0 %3950 }
0x2589   :  { %9431 = vrcp.f32 %v3951_v48  ;;  %v4199_v48 = vld [vmem:[#allocation8 + $0x1c8] sm:$0xff] }
0x258c   :  { %v3948_v51 = vpop.xlane.xlu0 %3947 }
0x258d   :  { %9433 = vrcp.f32 %v3948_v51  ;;  %v4198_v51 = vld [vmem:[#allocation8 + $0x110] sm:$0xff] }
0x2590   :  { %v3959_v0 = vpop.permute.xlu0 %3958 }
0x2591   :  { %8873 = vmatprep.subr.mxu0 %v3959_v0 }
0x2592   :  { %8874 = vmatpush3.msra.mxu0 %v3959_v0  ;;  %v4197_v0 = vld [vmem:[#allocation8 + $0x58] sm:$0xff] }
0x2593   :  { %8875 = vmatprep.subr.mxu0 %v3957_v15 }
0x2594   :  { %8876 = vmatpush3.msra.mxu0 %v3957_v15  ;;  %v4054_v8 = vpop.permute.xlu0 %4053 }
0x2595   :  { %8880 = vmatprep.subr.mxu0 %v4080_v55  ;;  %v4069_v22 = vsel %vm1335_vm4, %v4067_v12, %v4054_v8 }
0x2596   :  { %v9432_v56 = vpop.eup %9431 }
0x2597   :  { %v3955_v63 = vmul.f32 %v9432_v56, %v9428_v52  ;;  %v4203_v52 = vld [vmem:[#allocation8 + $0x4a8] sm:$0xff] }
0x259a   :  { %v9434_v60 = vpop.eup %9433 }
0x259b   :  { %v3954_v43 = vmul.f32 %v9434_v60, %v9430_v32  ;;  %v4201_v32 = vld [vmem:[#allocation8 + $0x338] sm:$0xff] }
0x259d   :  { %8877 = vmatprep.mubr.msk.f32.mxu0 %vm156_vm0, %v3954_v43 }
0x259e   :  { %8878 = vmatmul.mubr.msk.f32.vlgmr.msra.gmra.mxu0 %vm156_vm0, %v3955_v63 }
0x259f   :  { %8881 = vmatpush3.msra.mxu0 %v4080_v55 }
0x25a0   :  { %8882 = vmatprep.subr.mxu0 %v4079_v11 }
0x25a1   :  { %8883 = vmatpush3.msra.mxu0 %v4079_v11 }
0x25a2   :  { %8884 = vmatprep.subr.mxu0 %v4078_v59 }
0x25a3   :  { %8885 = vmatpush3.msra.mxu0 %v4078_v59  ;;  %v4165_v59 = vld [vmem:[#allocation11 + $0x40] ss:$0 sm:$0xff] }
0x25a4   :  { %8886 = vmatprep.subr.mxu0 %v4077_v1 }
0x25a5   :  { %8887 = vmatpush3.msra.mxu0 %v4077_v1 }
0x25a6   :  { %8888 = vmatprep.subr.mxu0 %v4076_v3 }
0x25a7   :  { %8889 = vmatpush3.msra.mxu0 %v4076_v3  ;;  %v4166_v3 = vld [vmem:[#allocation11 + $0x41] ss:$0 sm:$0xff] }
0x25a8   :  { %8890 = vmatprep.subr.mxu0 %v4075_v5 }
0x25a9   :  { %8891 = vmatpush3.msra.mxu0 %v4075_v5 }
0x25aa   :  { %8892 = vmatprep.subr.mxu0 %v4074_v6 }
0x25ab   :  { %8893 = vmatpush3.msra.mxu0 %v4074_v6 }
0x25ac   :  { %8894 = vmatprep.subr.mxu0 %v4073_v9 }
0x25ad   :  { %8895 = vmatpush3.msra.mxu0 %v4073_v9 }
0x25ae   :  { %8918 = vmatprep.subr.msk.mxu0 %vm156_vm0, %v10338_v10 }
0x265e   :  { %v8879_v30 = vpop.f32.mrf.mxu0 }
0x265f   :  { %4063 = vrot.lane.b32.xlu1 %v8879_v30, %s9727_s5 }
0x2660   :  { %v4034_v62 = vpop.f32.mrf.mxu0 }
0x2661   :  { %4061 = vrot.lane.b32.xlu0 %v4034_v62, %s9727_s5 }
0x26d1   :  { %v4064_v50 = vpop.permute.xlu1 %4063 }
0x26d2   :  { %v4072_v28 = vsel %vm1338_vm5, %v4070_v25, %v4064_v50 }
0x26d3   :  { %v4062_v24 = vpop.permute.xlu0 %4061 }
0x26d4   :  { %v4071_v27 = vsel %vm1338_vm5, %v4069_v22, %v4062_v24 }
0x26d5   :  { %8896 = vmatprep.mubr.msk.f32.mxu0 %vm323_vm1, %v4071_v27 }
0x26d6   :  { %8897 = vmatmul.mubr.msk.f32.vlgmr.msra.gmra.mxu0 %vm323_vm1, %v4072_v28 }
0x26d7   :  { %8919 = vmatpush3.xpose.msk.msra.mxu0 %vm156_vm0, %v10338_v10 }
0x26d8   :  { %8920 = vmatprep.subr.msk.mxu0 %vm156_vm0, %v10201_v18 }
0x26db   :  { %8921 = vmatpush3.xpose.msk.msra.mxu0 %vm156_vm0, %v10201_v18 }
0x2796   :  { %v8898_v47 = vpop.f32.mrf.mxu0 }
0x2797   :  { %v4160_v29 = vadd.f32 %v8898_v47, %v4081_v46 }
0x2798   :  { %v4154_v31 = vpop.f32.mrf.mxu0 }
0x2799   :  { %v4164_v33 = vadd.f32 %v4160_v29, %v10190_v57  ;;  %v4155_v34 = vadd.f32 %v4154_v31, %v4081_v46 }
0x279b   :  { %v4163_v35 = vadd.f32 %v4155_v34, %v10185_v61  ;;  %v4170_v36 = vsel %vm323_vm1, %v4164_v33, 0.0  ;;  %v4204_v61 = vld [vmem:[#allocation8 + $0x560] sm:$0xff] }
0x279c   :  { %4171 = vadd.xlane.f32.xlu1 %v4170_v36  ;;  %8899 = vmatprep.subr.mxu1 %v4204_v61 }
0x279d   :  { %v4167_v37 = vsel %vm323_vm1, %v4163_v35, 0.0  ;;  %8900 = vmatpush3.msra.mxu1 %v4204_v61 }
0x279e   :  { %4168 = vadd.xlane.f32.xlu0 %v4167_v37  ;;  %8901 = vmatprep.subr.mxu1 %v4203_v52 }
0x279f   :  { %8902 = vmatpush3.msra.mxu1 %v4203_v52 }
0x27a0   :  { %8903 = vmatprep.subr.mxu1 %v4202_v54 }
0x27a1   :  { %8904 = vmatpush3.msra.mxu1 %v4202_v54 }
0x27a2   :  { %8905 = vmatprep.subr.mxu1 %v4201_v32 }
0x27a3   :  { %8906 = vmatpush3.msra.mxu1 %v4201_v32 }
0x27a4   :  { %8907 = vmatprep.subr.mxu1 %v4200_v49 }
0x27a5   :  { %8908 = vmatpush3.msra.mxu1 %v4200_v49 }
0x27a6   :  { %8909 = vmatprep.subr.mxu1 %v4199_v48 }
0x27a7   :  { %8910 = vmatpush3.msra.mxu1 %v4199_v48 }
0x27a8   :  { %8911 = vmatprep.subr.mxu1 %v4198_v51 }
0x27a9   :  { %8912 = vmatpush3.msra.mxu1 %v4198_v51 }
0x27aa   :  { %8913 = vmatprep.subr.mxu1 %v4197_v0 }
0x27ab   :  { %8914 = vmatpush3.msra.mxu1 %v4197_v0 }
0x2825   :  { %v4172_v38 = vpop.xlane.xlu1 %4171 }
0x2826   :  { %v4174_v39 = vmul.f32 0.015625, %v4172_v38 }
0x2827   :  { %v4169_v40 = vpop.xlane.xlu0 %4168 }
0x2828   :  { %v4173_v41 = vmul.f32 0.015625, %v4169_v40  ;;  %v4176_v42 = vsub.f32 %v4164_v33, %v4174_v39 }
0x282a   :  { %v4175_v44 = vsub.f32 %v4163_v35, %v4173_v41  ;;  %v4178_v13 = vmul.f32 %v4176_v42, %v4176_v42 }
0x282c   :  { %v4177_v4 = vmul.f32 %v4175_v44, %v4175_v44  ;;  %v4182_v57 = vsel %vm323_vm1, %v4178_v13, 0.0 }
0x282e   :  { %v4179_v45 = vsel %vm323_vm1, %v4177_v4, 0.0 }
0x282f   :  { %4180 = vadd.xlane.f32.xlu0 %v4179_v45 }
0x2833   :  { %4183 = vadd.xlane.f32.xlu0 %v4182_v57 }
0x28b8   :  { %v4181_v15 = vpop.xlane.xlu0 %4180 }
0x28b9   :  { %v4185_v55 = vmul.f32 0.015625, %v4181_v15 }
0x28bb   :  { %v4187_v56 = vadd.f32 1e-05, %v4185_v55 }
0x28bc   :  { %v4184_v60 = vpop.xlane.xlu0 %4183 }
0x28bd   :  { %9435 = vrsqrt.f32 %v4187_v56  ;;  %v4186_v43 = vmul.f32 0.015625, %v4184_v60 }
0x28bf   :  { %v4188_v63 = vadd.f32 1e-05, %v4186_v43 }
0x28c1   :  { %9437 = vrsqrt.f32 %v4188_v63 }
0x28ca   :  { %v9436_v11 = vpop.eup %9435 }
0x28cb   :  { %v4191_v1 = vmul.f32 %v9436_v11, %v4175_v44 }
0x28cd   :  { %v4193_v5 = vmul.f32 %v4191_v1, %v4165_v59 }
0x28ce   :  { %v9438_v6 = vpop.eup %9437 }
0x28cf   :  { %v4192_v9 = vmul.f32 %v9438_v6, %v4176_v42  ;;  %v10366_v30 = vadd.f32 %v4193_v5, %v4166_v3 }
0x28d1   :  { %v4194_v62 = vmul.f32 %v4192_v9, %v4165_v59  ;;  %8915 = vmatprep.mubr.msk.f32.mxu1 %vm323_vm1, %v10366_v30 }
0x28d3   :  { %v10370_v53 = vadd.f32 %v4194_v62, %v4166_v3 }
0x28d5   :  { %8916 = vmatmul.mubr.msk.f32.vlgmr.msra.gmra.mxu1 %vm323_vm1, %v10370_v53 }
0x2995   :  { %v8917_v7 = vpop.f32.mrf.mxu1 }
0x2996   :  { %v10376_v50 = vadd.f32 %v8917_v7, %v4205_v16 }
0x2997   :  { %v4278_v8 = vpop.f32.mrf.mxu1 }
0x2998   :  { %v10374_v12 = vadd.f32 %v4278_v8, %v4205_v16 }
0x299a   :  { %8922 = vmatprep.mubr.msk.f32.mxu0 %vm156_vm0, %v10374_v12 }
0x299b   :  { %8923 = vmatmul.mubr.msk.f32.vlgmr.msra.gmra.mxu0 %vm156_vm0, %v10376_v50 }
0x2a5b   :  { %v8924_v21 = vpop.f32.mrf.mxu0 }
0x2a5c   :  { %v4375_v22 = vmul.f32 0.25, %v8924_v21 }
0x2a5d   :  { %v4365_v24 = vpop.f32.mrf.mxu0 }
0x2a5e   :  { %v4377_v25 = vadd.f32 %v4375_v22, %v9848_v17  ;;  %v4374_v27 = vmul.f32 0.25, %v4365_v24 }
0x2a60   :  { %v4376_v28 = vadd.f32 %v4374_v27, %v9850_v20  ;;  %v4381_v46 = vsel %vm156_vm0, %v4377_v25, -inf }
0x2a61   :  { %4382 = vmax.xlane.f32.xlu1 %v4381_v46 }
0x2a62   :  { %v4378_v47 = vsel %vm156_vm0, %v4376_v28, -inf }
0x2a63   :  { %4379 = vmax.xlane.f32.xlu0 %v4378_v47 }
0x2aea   :  { %v4383_v29 = vpop.xlane.xlu1 %4382 }
0x2aeb   :  { %v4385_v31 = vsub.f32 %v4377_v25, %v4383_v29 }
0x2aec   :  { %v4380_v33 = vpop.xlane.xlu0 %4379 }
0x2aed   :  { %v4388_v34 = vmul.f32 1.442695, %v4385_v31  ;;  %v4384_v35 = vsub.f32 %v4376_v28, %v4380_v33 }
0x2aef   :  { %9439 = vpow2.f32 %v4388_v34  ;;  %v4386_v36 = vmul.f32 1.442695, %v4384_v35 }
0x2af1   :  { %9441 = vpow2.f32 %v4386_v36 }
0x2afc   :  { %v9440_v37 = vpop.eup %9439 }
0x2afd   :  { %v4393_v38 = vsel %vm156_vm0, %v9440_v37, 0.0 }
0x2afe   :  { %v9442_v39 = vpop.eup %9441  ;;  %4394 = vadd.xlane.f32.xlu1 %v4393_v38 }
0x2aff   :  { %v4390_v40 = vsel %vm156_vm0, %v9442_v39, 0.0 }
0x2b00   :  { %4391 = vadd.xlane.f32.xlu0 %v4390_v40 }
0x2b0f   :  { %4400 = vrot.lane.b32.xlu1 %v10201_v18, %s9725_s4 }
0x2b13   :  { %4493 = vrot.lane.b32.xlu1 %v10338_v10, %s9728_s9 }
0x2b16   :  { %4402 = vrot.lane.b32.xlu0 %v10338_v10, %s9725_s4 }
0x2b17   :  { %4491 = vrot.lane.b32.xlu1 %v10201_v18, %s9728_s9 }
0x2b1a   :  { %4487 = vrot.lane.b32.xlu0 %v10374_v12, %s9728_s9 }
0x2b1b   :  { %4489 = vrot.lane.b32.xlu1 %v10376_v50, %s9728_s9 }
0x2b87   :  { %v4395_v41 = vpop.xlane.xlu1 %4394 }
0x2b88   :  { %9443 = vrcp.f32 %v4395_v41 }
0x2b89   :  { %v4392_v42 = vpop.xlane.xlu0 %4391 }
0x2b8a   :  { %9445 = vrcp.f32 %v4392_v42 }
0x2b8b   :  { %v4401_v44 = vpop.permute.xlu1 %4400 }
0x2b8d   :  { %v4403_v4 = vpop.permute.xlu0 %4402 }
0x2b8e   :  { %8925 = vmatprep.subr.mxu1 %v4403_v4 }
0x2b8f   :  { %8926 = vmatpush3.msra.mxu1 %v4403_v4  ;;  %v4494_v45 = vpop.permute.xlu1 %4493 }
0x2b90   :  { %8927 = vmatprep.subr.mxu1 %v4401_v44 }
0x2b91   :  { %8928 = vmatpush3.msra.mxu1 %v4401_v44  ;;  %v4488_v54 = vpop.permute.xlu0 %4487 }
0x2b92   :  { %8932 = vmatprep.subr.msk.mxu1 %vm156_vm0, %v4494_v45 }
0x2b93   :  { %v4492_v32 = vpop.permute.xlu1 %4491 }
0x2b95   :  { %v9444_v13 = vpop.eup %9443 }
0x2b96   :  { %v4399_v52 = vmul.f32 %v9444_v13, %v9440_v37 }
0x2b97   :  { %v9446_v57 = vpop.eup %9445  ;;  %v4490_v49 = vpop.permute.xlu1 %4489 }
0x2b98   :  { %v4398_v61 = vmul.f32 %v9446_v57, %v9442_v39 }
0x2b9a   :  { %8929 = vmatprep.mubr.msk.f32.mxu1 %vm156_vm0, %v4398_v61 }
0x2b9b   :  { %8930 = vmatmul.mubr.msk.f32.vlgmr.msra.gmra.mxu1 %vm156_vm0, %v4399_v52 }
0x2b9c   :  { %8933 = vmatpush3.xpose.msk.msra.mxu1 %vm156_vm0, %v4494_v45  ;;  %8936 = vmatprep.mubr.msk.f32.mxu1 %vm156_vm0, %v4488_v54 }
0x2b9d   :  { %8934 = vmatprep.subr.msk.mxu1 %vm156_vm0, %v4492_v32 }
0x2ba0   :  { %8935 = vmatpush3.xpose.msk.msra.mxu1 %vm156_vm0, %v4492_v32 }
0x2ba3   :  { %8937 = vmatmul.mubr.msk.f32.vlgmr.msra.gmra.mxu1 %vm156_vm0, %v4490_v49 }
0x2c5b   :  { %v10408_v48 = vpop.f32.mrf.mxu1 }
0x2c5d   :  { %v10410_v51 = vpop.f32.mrf.mxu1 }
0x2c63   :  { %v8938_v0 = vpop.f32.mrf.mxu1 }
0x2c64   :  { %v4579_v15 = vmul.f32 0.25, %v8938_v0 }
0x2c65   :  { %v4569_v55 = vpop.f32.mrf.mxu1 }
0x2c66   :  { %v4581_v56 = vadd.f32 %v4579_v15, %v9848_v17  ;;  %v4578_v60 = vmul.f32 0.25, %v4569_v55 }
0x2c68   :  { %v4580_v43 = vadd.f32 %v4578_v60, %v9850_v20  ;;  %v4585_v63 = vsel %vm156_vm0, %v4581_v56, -inf }
0x2c69   :  { %4586 = vmax.xlane.f32.xlu1 %v4585_v63 }
0x2c6a   :  { %v4582_v11 = vsel %vm156_vm0, %v4580_v43, -inf }
0x2c6b   :  { %4583 = vmax.xlane.f32.xlu0 %v4582_v11 }
0x2c7a   :  { %4604 = vrot.lane.b32.xlu1 %v10201_v18, %s9727_s5 }
0x2c7e   :  { %4697 = vrot.lane.b32.xlu1 %v10338_v10, %s9729_s10 }
0x2c82   :  { %4695 = vrot.lane.b32.xlu1 %v10201_v18, %s9729_s10 }
0x2c86   :  { %4693 = vrot.lane.b32.xlu1 %v10376_v50, %s9729_s10 }
0x2cf2   :  { %v4587_v59 = vpop.xlane.xlu1 %4586 }
0x2cf3   :  { %v4589_v1 = vsub.f32 %v4581_v56, %v4587_v59 }
0x2cf4   :  { %v4584_v3 = vpop.xlane.xlu0 %4583 }
0x2cf5   :  { %v4592_v5 = vmul.f32 1.442695, %v4589_v1  ;;  %v4588_v6 = vsub.f32 %v4580_v43, %v4584_v3 }
0x2cf6   :  { %v4605_v24 = vpop.permute.xlu1 %4604 }
0x2cf7   :  { %9447 = vpow2.f32 %v4592_v5  ;;  %v4590_v9 = vmul.f32 1.442695, %v4588_v6 }
0x2cf9   :  { %9449 = vpow2.f32 %v4590_v9 }
0x2cfa   :  { %v4698_v27 = vpop.permute.xlu1 %4697 }
0x2cfe   :  { %v4696_v33 = vpop.permute.xlu1 %4695 }
0x2d02   :  { %v4694_v34 = vpop.permute.xlu1 %4693 }
0x2d04   :  { %v9448_v62 = vpop.eup %9447 }
0x2d05   :  { %v4597_v7 = vsel %vm156_vm0, %v9448_v62, 0.0 }
0x2d06   :  { %v9450_v16 = vpop.eup %9449  ;;  %4598 = vadd.xlane.f32.xlu0 %v4597_v7 }
0x2d07   :  { %v4594_v8 = vsel %vm156_vm0, %v9450_v16, 0.0 }
0x2d0a   :  { %4595 = vadd.xlane.f32.xlu0 %v4594_v8 }
0x2d20   :  { %4606 = vrot.lane.b32.xlu0 %v10338_v10, %s9727_s5 }
0x2d24   :  { %4691 = vrot.lane.b32.xlu0 %v10374_v12, %s9729_s10 }
0x2d8f   :  { %v4599_v21 = vpop.xlane.xlu0 %4598 }
0x2d90   :  { %9451 = vrcp.f32 %v4599_v21 }
0x2d93   :  { %v4596_v22 = vpop.xlane.xlu0 %4595 }
0x2d94   :  { %9453 = vrcp.f32 %v4596_v22 }
0x2d97   :  { %v4607_v25 = vpop.permute.xlu0 %4606 }
0x2d98   :  { %8939 = vmatprep.subr.mxu0 %v4607_v25 }
0x2d99   :  { %8940 = vmatpush3.msra.mxu0 %v4607_v25 }
0x2d9a   :  { %8941 = vmatprep.subr.mxu0 %v4605_v24 }
0x2d9b   :  { %8942 = vmatpush3.msra.mxu0 %v4605_v24  ;;  %v4692_v31 = vpop.permute.xlu0 %4691 }
0x2d9c   :  { %8946 = vmatprep.subr.msk.mxu0 %vm156_vm0, %v4698_v27 }
0x2d9d   :  { %v9452_v28 = vpop.eup %9451 }
0x2d9e   :  { %v4603_v29 = vmul.f32 %v9452_v28, %v9448_v62 }
0x2da1   :  { %v9454_v46 = vpop.eup %9453 }
0x2da2   :  { %v4602_v47 = vmul.f32 %v9454_v46, %v9450_v16 }
0x2da4   :  { %8943 = vmatprep.mubr.msk.f32.mxu0 %vm156_vm0, %v4602_v47 }
0x2da5   :  { %8944 = vmatmul.mubr.msk.f32.vlgmr.msra.gmra.mxu0 %vm156_vm0, %v4603_v29 }
0x2da6   :  { %8947 = vmatpush3.xpose.msk.msra.mxu0 %vm156_vm0, %v4698_v27  ;;  %8950 = vmatprep.mubr.msk.f32.mxu0 %vm156_vm0, %v4692_v31 }
0x2da7   :  { %8948 = vmatprep.subr.msk.mxu0 %vm156_vm0, %v4696_v33 }
0x2daa   :  { %8949 = vmatpush3.xpose.msk.msra.mxu0 %vm156_vm0, %v4696_v33 }
0x2dad   :  { %8951 = vmatmul.mubr.msk.f32.vlgmr.msra.gmra.mxu0 %vm156_vm0, %v4694_v34 }
0x2e65   :  { %v10438_v35 = vpop.f32.mrf.mxu0 }
0x2e67   :  { %v10440_v36 = vpop.f32.mrf.mxu0 }
0x2e6d   :  { %v8952_v37 = vpop.f32.mrf.mxu0 }
0x2e6e   :  { %v4783_v38 = vmul.f32 0.25, %v8952_v37 }
0x2e6f   :  { %v4773_v39 = vpop.f32.mrf.mxu0 }
0x2e70   :  { %v4785_v40 = vadd.f32 %v4783_v38, %v9848_v17  ;;  %v4782_v41 = vmul.f32 0.25, %v4773_v39 }
0x2e72   :  { %v4784_v42 = vadd.f32 %v4782_v41, %v9850_v20  ;;  %v4789_v44 = vsel %vm156_vm0, %v4785_v40, -inf }
0x2e73   :  { %4790 = vmax.xlane.f32.xlu1 %v4789_v44 }
0x2e74   :  { %v4786_v4 = vsel %vm156_vm0, %v4784_v42, -inf }
0x2e75   :  { %4787 = vmax.xlane.f32.xlu0 %v4786_v4  ;;  %v5135_v4 = vld [vmem:[#allocation8 + $0x4b0] sm:$0xff] }
0x2e84   :  { %4808 = vrot.lane.b32.xlu1 %v10201_v18, %s9720_s22 }
0x2e88   :  { %4901 = vrot.lane.b32.xlu1 %v10338_v10, %s9730_s11 }
0x2e8c   :  { %4899 = vrot.lane.b32.xlu1 %v10201_v18, %s9730_s11 }
0x2e90   :  { %4897 = vrot.lane.b32.xlu1 %v10376_v50, %s9730_s11 }
0x2efc   :  { %v4791_v45 = vpop.xlane.xlu1 %4790 }
0x2efd   :  { %v4793_v13 = vsub.f32 %v4785_v40, %v4791_v45  ;;  %v5134_v45 = vld [vmem:[#allocation8 + $0x3f8] sm:$0xff] }
0x2efe   :  { %v4788_v57 = vpop.xlane.xlu0 %4787 }
0x2eff   :  { %v4796_v61 = vmul.f32 1.442695, %v4793_v13  ;;  %v4792_v52 = vsub.f32 %v4784_v42, %v4788_v57  ;;  %v5133_v13 = vld [vmem:[#allocation8 + $0x340] sm:$0xff]  ;;  %v5132_v57 = vld [vmem:[#allocation8 + $0x288] sm:$0xff] }
0x2f00   :  { %v4809_v56 = vpop.permute.xlu1 %4808 }
0x2f01   :  { %9455 = vpow2.f32 %v4796_v61  ;;  %v4794_v54 = vmul.f32 1.442695, %v4792_v52  ;;  %v5131_v61 = vld [vmem:[#allocation8 + $0x1d0] sm:$0xff]  ;;  %v5130_v52 = vld [vmem:[#allocation8 + $0x118] sm:$0xff] }
0x2f03   :  { %9457 = vpow2.f32 %v4794_v54  ;;  %v5129_v54 = vld [vmem:[#allocation8 + $0x60] sm:$0xff] }
0x2f04   :  { %v4902_v43 = vpop.permute.xlu1 %4901 }
0x2f08   :  { %v4900_v3 = vpop.permute.xlu1 %4899 }
0x2f0c   :  { %v4898_v5 = vpop.permute.xlu1 %4897 }
0x2f0e   :  { %v9456_v32 = vpop.eup %9455 }
0x2f0f   :  { %v4801_v49 = vsel %vm156_vm0, %v9456_v32, 0.0 }
0x2f10   :  { %v9458_v0 = vpop.eup %9457  ;;  %4802 = vadd.xlane.f32.xlu0 %v4801_v49 }
0x2f11   :  { %v4798_v15 = vsel %vm156_vm0, %v9458_v0, 0.0 }
0x2f14   :  { %4799 = vadd.xlane.f32.xlu0 %v4798_v15 }
0x2f2a   :  { %4810 = vrot.lane.b32.xlu0 %v10338_v10, %s9720_s22 }
0x2f2e   :  { %4895 = vrot.lane.b32.xlu0 %v10374_v12, %s9730_s11 }
0x2f99   :  { %v4803_v50 = vpop.xlane.xlu0 %4802 }
0x2f9a   :  { %9459 = vrcp.f32 %v4803_v50 }
0x2f9d   :  { %v4800_v55 = vpop.xlane.xlu0 %4799 }
0x2f9e   :  { %9461 = vrcp.f32 %v4800_v55 }
0x2fa1   :  { %v4811_v60 = vpop.permute.xlu0 %4810 }
0x2fa2   :  { %8953 = vmatprep.subr.mxu1 %v4811_v60 }
0x2fa3   :  { %8954 = vmatpush3.msra.mxu1 %v4811_v60 }
0x2fa4   :  { %8955 = vmatprep.subr.mxu1 %v4809_v56 }
0x2fa5   :  { %8956 = vmatpush3.msra.mxu1 %v4809_v56  ;;  %v4896_v12 = vpop.permute.xlu0 %4895 }
0x2fa6   :  { %8960 = vmatprep.subr.msk.mxu1 %vm156_vm0, %v4902_v43 }
0x2fa7   :  { %v9460_v63 = vpop.eup %9459 }
0x2fa8   :  { %v4807_v1 = vmul.f32 %v9460_v63, %v9456_v32 }
0x2fab   :  { %v9462_v11 = vpop.eup %9461 }
0x2fac   :  { %v4806_v59 = vmul.f32 %v9462_v11, %v9458_v0 }
0x2fae   :  { %8957 = vmatprep.mubr.msk.f32.mxu1 %vm156_vm0, %v4806_v59 }
0x2faf   :  { %8958 = vmatmul.mubr.msk.f32.vlgmr.msra.gmra.mxu1 %vm156_vm0, %v4807_v1 }
0x2fb0   :  { %8961 = vmatpush3.xpose.msk.msra.mxu1 %vm156_vm0, %v4902_v43  ;;  %8964 = vmatprep.mubr.msk.f32.mxu1 %vm156_vm0, %v4896_v12 }
0x2fb1   :  { %8962 = vmatprep.subr.msk.mxu1 %vm156_vm0, %v4900_v3 }
0x2fb4   :  { %8963 = vmatpush3.xpose.msk.msra.mxu1 %vm156_vm0, %v4900_v3  ;;  %v5137_v3 = vld [vmem:[#allocation11 + $0x35] ss:$0 sm:$0xff] }
0x2fb7   :  { %8965 = vmatmul.mubr.msk.f32.vlgmr.msra.gmra.mxu1 %vm156_vm0, %v4898_v5 }
0x306f   :  { %v8959_v6 = vpop.f32.mrf.mxu1 }
0x3071   :  { %v4886_v9 = vpop.f32.mrf.mxu1 }
0x3077   :  { %v8966_v62 = vpop.f32.mrf.mxu1 }
0x3078   :  { %v4987_v7 = vmul.f32 0.25, %v8966_v62 }
0x3079   :  { %v4977_v16 = vpop.f32.mrf.mxu1 }
0x307a   :  { %v4989_v8 = vadd.f32 %v4987_v7, %v9848_v17  ;;  %v4986_v21 = vmul.f32 0.25, %v4977_v16 }
0x307c   :  { %v4988_v22 = vadd.f32 %v4986_v21, %v9850_v20  ;;  %v4993_v24 = vsel %vm156_vm0, %v4989_v8, -inf }
0x307d   :  { %4994 = vmax.xlane.f32.xlu1 %v4993_v24 }
0x307e   :  { %v4990_v25 = vsel %vm156_vm0, %v4988_v22, -inf }
0x307f   :  { %4991 = vmax.xlane.f32.xlu0 %v4990_v25 }
0x308e   :  { %5012 = vrot.lane.b32.xlu1 %v10201_v18, %s9723_s30 }
0x3092   :  { %5101 = vrot.lane.b32.xlu1 %v10440_v36, %s9723_s30 }
0x3096   :  { %5103 = vrot.lane.b32.xlu1 %v10438_v35, %s9723_s30 }
0x309a   :  { %5111 = vrot.lane.b32.xlu1 %v8959_v6, %s9720_s22 }
0x3106   :  { %v4995_v27 = vpop.xlane.xlu1 %4994 }
0x3107   :  { %v4997_v28 = vsub.f32 %v4989_v8, %v4995_v27 }
0x3108   :  { %v4992_v46 = vpop.xlane.xlu0 %4991 }
0x3109   :  { %v5000_v47 = vmul.f32 1.442695, %v4997_v28  ;;  %v4996_v29 = vsub.f32 %v4988_v22, %v4992_v46 }
0x310a   :  { %v5013_v39 = vpop.permute.xlu1 %5012 }
0x310b   :  { %9463 = vpow2.f32 %v5000_v47  ;;  %v4998_v31 = vmul.f32 1.442695, %v4996_v29  ;;  %v5260_v47 = vld [vmem:[#allocation8 + $0x570] sm:$0xff]  ;;  %v5259_v29 = vld [vmem:[#allocation8 + $0x4b8] sm:$0xff] }
0x310c   :  { %8993 = vmatprep.subr.mxu1 %v5260_v47 }
0x310d   :  { %9465 = vpow2.f32 %v4998_v31  ;;  %8994 = vmatpush3.msra.mxu1 %v5260_v47  ;;  %v5258_v31 = vld [vmem:[#allocation8 + $0x400] sm:$0xff] }
0x310e   :  { %v5102_v0 = vpop.permute.xlu1 %5101  ;;  %8995 = vmatprep.subr.mxu1 %v5259_v29 }
0x310f   :  { %v5123_v56 = vsel %vm156_vm0, %v10410_v51, %v5102_v0  ;;  %8996 = vmatpush3.msra.mxu1 %v5259_v29 }
0x3110   :  { %8997 = vmatprep.subr.mxu1 %v5258_v31 }
0x3111   :  { %8998 = vmatpush3.msra.mxu1 %v5258_v31 }
0x3112   :  { %v5104_v15 = vpop.permute.xlu1 %5103 }
0x3113   :  { %v5124_v43 = vsel %vm156_vm0, %v10408_v48, %v5104_v15 }
0x3116   :  { %v5112_v50 = vpop.permute.xlu1 %5111 }
0x3117   :  { %v5126_v59 = vsel %vm1335_vm4, %v5124_v43, %v5112_v50  ;;  %v5221_v50 = vld [vmem:[#allocation11 + $0x42] ss:$0 sm:$0xff] }
0x3118   :  { %v9464_v33 = vpop.eup %9463 }
0x3119   :  { %v5005_v34 = vsel %vm156_vm0, %v9464_v33, 0.0 }
0x311a   :  { %v9466_v18 = vpop.eup %9465  ;;  %5006 = vadd.xlane.f32.xlu0 %v5005_v34  ;;  %v5256_v34 = vld [vmem:[#allocation8 + $0x290] sm:$0xff] }
0x311b   :  { %v5002_v36 = vsel %vm156_vm0, %v9466_v18, 0.0 }
0x311e   :  { %5003 = vadd.xlane.f32.xlu0 %v5002_v36  ;;  %v5254_v36 = vld [vmem:[#allocation8 + $0x120] sm:$0xff] }
0x3134   :  { %5014 = vrot.lane.b32.xlu0 %v10338_v10, %s9723_s30  ;;  %v5136_v10 = vld [vmem:[#allocation8 + $0x568] sm:$0xff] }
0x3138   :  { %5109 = vrot.lane.b32.xlu0 %v4886_v9, %s9720_s22 }
0x31a3   :  { %v5007_v35 = vpop.xlane.xlu0 %5006 }
0x31a4   :  { %9467 = vrcp.f32 %v5007_v35  ;;  %v5253_v35 = vld [vmem:[#allocation8 + $0x68] sm:$0xff] }
0x31a7   :  { %v5004_v37 = vpop.xlane.xlu0 %5003 }
0x31a8   :  { %9469 = vrcp.f32 %v5004_v37  ;;  %v5360_v37 = vld [vmem:[#allocation10 + $0x1f0] sm:$0xff] }
0x31ab   :  { %v5015_v38 = vpop.permute.xlu0 %5014 }
0x31ac   :  { %8967 = vmatprep.subr.mxu0 %v5015_v38 }
0x31ad   :  { %8968 = vmatpush3.msra.mxu0 %v5015_v38  ;;  %v5359_v38 = vld [vmem:[#allocation10 + $0x1d0] sm:$0xff] }
0x31ae   :  { %8969 = vmatprep.subr.mxu0 %v5013_v39 }
0x31af   :  { %8970 = vmatpush3.msra.mxu0 %v5013_v39  ;;  %v5110_v55 = vpop.permute.xlu0 %5109  ;;  %v5358_v39 = vld [vmem:[#allocation10 + $0x1b0] sm:$0xff] }
0x31b0   :  { %8974 = vmatprep.subr.mxu0 %v5136_v10  ;;  %v5125_v63 = vsel %vm1335_vm4, %v5123_v56, %v5110_v55  ;;  %v5222_v56 = vld [vmem:[#allocation11 + $0x43] ss:$0 sm:$0xff] }
0x31b1   :  { %v9468_v40 = vpop.eup %9467 }
0x31b2   :  { %v5011_v44 = vmul.f32 %v9468_v40, %v9464_v33  ;;  %v5257_v33 = vld [vmem:[#allocation8 + $0x348] sm:$0xff]  ;;  %v5357_v40 = vld [vmem:[#allocation10 + $0x190] sm:$0xff] }
0x31b3   :  { %8999 = vmatprep.subr.mxu1 %v5257_v33 }
0x31b4   :  { %9000 = vmatpush3.msra.mxu1 %v5257_v33 }
0x31b5   :  { %v9470_v41 = vpop.eup %9469  ;;  %9001 = vmatprep.subr.mxu1 %v5256_v34 }
0x31b6   :  { %v5010_v42 = vmul.f32 %v9470_v41, %v9466_v18  ;;  %v5255_v18 = vld [vmem:[#allocation8 + $0x1d8] sm:$0xff]  ;;  %9002 = vmatpush3.msra.mxu1 %v5256_v34  ;;  %v5356_v41 = vld [vmem:[#allocation10 + $0x170] sm:$0xff] }
0x31b7   :  { %9003 = vmatprep.subr.mxu1 %v5255_v18 }
0x31b8   :  { %8971 = vmatprep.mubr.msk.f32.mxu0 %vm156_vm0, %v5010_v42  ;;  %9004 = vmatpush3.msra.mxu1 %v5255_v18  ;;  %v5355_v42 = vld [vmem:[#allocation10 + $0x150] sm:$0xff] }
0x31b9   :  { %8972 = vmatmul.mubr.msk.f32.vlgmr.msra.gmra.mxu0 %vm156_vm0, %v5011_v44  ;;  %9005 = vmatprep.subr.mxu1 %v5254_v36  ;;  %v5354_v44 = vld [vmem:[#allocation10 + $0x130] sm:$0xff] }
0x31ba   :  { %8975 = vmatpush3.msra.mxu0 %v5136_v10  ;;  %9006 = vmatpush3.msra.mxu1 %v5254_v36  ;;  %v5353_v10 = vld [vmem:[#allocation10 + $0x110] sm:$0xff] }
0x31bb   :  { %8976 = vmatprep.subr.mxu0 %v5135_v4  ;;  %9007 = vmatprep.subr.mxu1 %v5253_v35 }
0x31bc   :  { %8977 = vmatpush3.msra.mxu0 %v5135_v4  ;;  %9008 = vmatpush3.msra.mxu1 %v5253_v35  ;;  %v5352_v4 = vld [vmem:[#allocation10 + $0xf0] sm:$0xff] }
0x31bd   :  { %8978 = vmatprep.subr.mxu0 %v5134_v45 }
0x31be   :  { %8979 = vmatpush3.msra.mxu0 %v5134_v45  ;;  %v5351_v45 = vld [vmem:[#allocation10 + $0xd0] sm:$0xff] }
0x31bf   :  { %8980 = vmatprep.subr.mxu0 %v5133_v13 }
0x31c0   :  { %8981 = vmatpush3.msra.mxu0 %v5133_v13  ;;  %v5350_v13 = vld [vmem:[#allocation10 + $0xb0] sm:$0xff] }
0x31c1   :  { %8982 = vmatprep.subr.mxu0 %v5132_v57 }
0x31c2   :  { %8983 = vmatpush3.msra.mxu0 %v5132_v57  ;;  %v5349_v57 = vld [vmem:[#allocation10 + $0x90] sm:$0xff] }
0x31c3   :  { %8984 = vmatprep.subr.mxu0 %v5131_v61 }
0x31c4   :  { %8985 = vmatpush3.msra.mxu0 %v5131_v61 }
0x31c5   :  { %8986 = vmatprep.subr.mxu0 %v5130_v52 }
0x31c6   :  { %8987 = vmatpush3.msra.mxu0 %v5130_v52 }
0x31c7   :  { %8988 = vmatprep.subr.mxu0 %v5129_v54 }
0x31c8   :  { %8989 = vmatpush3.msra.mxu0 %v5129_v54 }
0x31c9   :  { %9012 = vmatprep.subr.mxu0 %v5360_v37 }
0x3279   :  { %v8973_v32 = vpop.f32.mrf.mxu0 }
0x327a   :  { %5119 = vrot.lane.b32.xlu1 %v8973_v32, %s9727_s5 }
0x327b   :  { %v5090_v49 = vpop.f32.mrf.mxu0 }
0x327c   :  { %5117 = vrot.lane.b32.xlu0 %v5090_v49, %s9727_s5 }
0x32ec   :  { %v5120_v60 = vpop.permute.xlu1 %5119 }
0x32ed   :  { %v5128_v12 = vsel %vm1338_vm5, %v5126_v59, %v5120_v60 }
0x32ee   :  { %v5118_v11 = vpop.permute.xlu0 %5117 }
0x32ef   :  { %v5127_v1 = vsel %vm1338_vm5, %v5125_v63, %v5118_v11 }
0x32f0   :  { %8990 = vmatprep.mubr.msk.f32.mxu0 %vm323_vm1, %v5127_v1 }
0x32f1   :  { %8991 = vmatmul.mubr.msk.f32.vlgmr.msra.gmra.mxu0 %vm323_vm1, %v5128_v12  ;;  %v5348_v12 = vld [vmem:[#allocation10 + $0x70] sm:$0xff] }
0x32f2   :  { %9013 = vmatpush3.msra.mxu0 %v5360_v37 }
0x32f3   :  { %9014 = vmatprep.subr.mxu0 %v5359_v38 }
0x32f4   :  { %9015 = vmatpush3.msra.mxu0 %v5359_v38 }
0x32f5   :  { %9016 = vmatprep.subr.mxu0 %v5358_v39 }
0x32f6   :  { %9017 = vmatpush3.msra.mxu0 %v5358_v39  ;;  %v5486_v39 = vld [vmem:[#allocation8 + $0x580] sm:$0xff] }
0x32f7   :  { %9018 = vmatprep.subr.mxu0 %v5357_v40  ;;  %5522 = vmatprep.subr.mxu1 %v5486_v39 }
0x32f8   :  { %9019 = vmatpush3.msra.mxu0 %v5357_v40  ;;  %v5485_v40 = vld [vmem:[#allocation8 + $0x578] sm:$0xff] }
0x32f9   :  { %9020 = vmatprep.subr.mxu0 %v5356_v41 }
0x32fa   :  { %9021 = vmatpush3.msra.mxu0 %v5356_v41  ;;  %v5484_v41 = vld [vmem:[#allocation8 + $0x4c8] sm:$0xff] }
0x32fb   :  { %9022 = vmatprep.subr.mxu0 %v5355_v42 }
0x32fc   :  { %9023 = vmatpush3.msra.mxu0 %v5355_v42  ;;  %v5483_v42 = vld [vmem:[#allocation8 + $0x4c0] sm:$0xff] }
0x32fd   :  { %9024 = vmatprep.subr.mxu0 %v5354_v44 }
0x32fe   :  { %9025 = vmatpush3.msra.mxu0 %v5354_v44  ;;  %v5482_v44 = vld [vmem:[#allocation8 + $0x410] sm:$0xff] }
0x32ff   :  { %9026 = vmatprep.subr.mxu0 %v5353_v10 }
0x3300   :  { %9027 = vmatpush3.msra.mxu0 %v5353_v10  ;;  %v5481_v10 = vld [vmem:[#allocation8 + $0x408] sm:$0xff] }
0x3301   :  { %9028 = vmatprep.subr.mxu0 %v5352_v4 }
0x3302   :  { %9029 = vmatpush3.msra.mxu0 %v5352_v4  ;;  %v5480_v4 = vld [vmem:[#allocation8 + $0x358] sm:$0xff] }
0x3303   :  { %9030 = vmatprep.subr.mxu0 %v5351_v45 }
0x3304   :  { %9031 = vmatpush3.msra.mxu0 %v5351_v45  ;;  %v5479_v45 = vld [vmem:[#allocation8 + $0x350] sm:$0xff] }
0x3305   :  { %9032 = vmatprep.subr.mxu0 %v5350_v13 }
0x3306   :  { %9033 = vmatpush3.msra.mxu0 %v5350_v13  ;;  %v5478_v13 = vld [vmem:[#allocation8 + $0x2a0] sm:$0xff] }
0x3307   :  { %9034 = vmatprep.subr.mxu0 %v5349_v57 }
0x3308   :  { %9035 = vmatpush3.msra.mxu0 %v5349_v57  ;;  %v5477_v57 = vld [vmem:[#allocation8 + $0x298] sm:$0xff] }
0x3309   :  { %9036 = vmatprep.subr.mxu0 %v5348_v12 }
0x330a   :  { %9037 = vmatpush3.msra.mxu0 %v5348_v12  ;;  %v5439_v12 = vld [vmem:[#allocation11 + $0x44] ss:$0 sm:$0xff] }
0x33b1   :  { %v8992_v5 = vpop.f32.mrf.mxu0 }
0x33b2   :  { %v5216_v51 = vadd.f32 %v8992_v5, %v5137_v3  ;;  %v5346_v5 = vld [vmem:[#allocation10 + $0x30] sm:$0xff] }
0x33b3   :  { %v5210_v6 = vpop.f32.mrf.mxu0 }
0x33b4   :  { %v5220_v9 = vadd.f32 %v5216_v51, %v10370_v53  ;;  %v5211_v48 = vadd.f32 %v5210_v6, %v5137_v3  ;;  %v5347_v3 = vld [vmem:[#allocation10 + $0x50] sm:$0xff] }
0x33b5   :  { %9038 = vmatprep.subr.mxu0 %v5347_v3  ;;  %v5345_v51 = vld [vmem:[#allocation10 + $0x10] sm:$0xff] }
0x33b6   :  { %v5219_v62 = vadd.f32 %v5211_v48, %v10366_v30  ;;  %v5226_v7 = vsel %vm323_vm1, %v5220_v9, 0.0  ;;  %9039 = vmatpush3.msra.mxu0 %v5347_v3  ;;  %v5261_v6 = vld [vmem:[#allocation11 + $0x36] ss:$0 sm:$0xff] }
0x33b7   :  { %5227 = vadd.xlane.f32.xlu1 %v5226_v7  ;;  %9040 = vmatprep.subr.mxu0 %v5346_v5 }
0x33b8   :  { %v5223_v16 = vsel %vm323_vm1, %v5219_v62, 0.0  ;;  %9041 = vmatpush3.msra.mxu0 %v5346_v5  ;;  %v5440_v5 = vld [vmem:[#allocation11 + $0x45] ss:$0 sm:$0xff] }
0x33b9   :  { %5224 = vadd.xlane.f32.xlu0 %v5223_v16  ;;  %9042 = vmatprep.subr.mxu0 %v5345_v51 }
0x33ba   :  { %9043 = vmatpush3.msra.mxu0 %v5345_v51 }
0x3440   :  { %v5228_v8 = vpop.xlane.xlu1 %5227 }
0x3441   :  { %v5230_v21 = vmul.f32 0.015625, %v5228_v8 }
0x3442   :  { %v5225_v22 = vpop.xlane.xlu0 %5224 }
0x3443   :  { %v5229_v24 = vmul.f32 0.015625, %v5225_v22  ;;  %v10502_v25 = vsub.f32 %v5220_v9, %v5230_v21  ;;  %v5361_v21 = vld [vmem:[#allocation11 + $0x37] ss:$0 sm:$0xff] }
0x3445   :  { %v10504_v27 = vsub.f32 %v5219_v62, %v5229_v24  ;;  %v5234_v30 = vmul.f32 %v10502_v25, %v10502_v25 }
0x3447   :  { %v5233_v53 = vmul.f32 %v10504_v27, %v10504_v27  ;;  %v5238_v46 = vsel %vm323_vm1, %v5234_v30, 0.0 }
0x3449   :  { %v5235_v28 = vsel %vm323_vm1, %v5233_v53, 0.0 }
0x344a   :  { %5236 = vadd.xlane.f32.xlu0 %v5235_v28 }
0x344e   :  { %5239 = vadd.xlane.f32.xlu0 %v5238_v46 }
0x34d3   :  { %v5237_v61 = vpop.xlane.xlu0 %5236 }
0x34d4   :  { %v5241_v52 = vmul.f32 0.015625, %v5237_v61  ;;  %v5476_v61 = vld [vmem:[#allocation8 + $0x1e8] sm:$0xff] }
0x34d6   :  { %v5243_v54 = vadd.f32 1e-05, %v5241_v52  ;;  %v5475_v52 = vld [vmem:[#allocation8 + $0x1e0] sm:$0xff] }
0x34d7   :  { %v5240_v32 = vpop.xlane.xlu0 %5239 }
0x34d8   :  { %9471 = vrsqrt.f32 %v5243_v54  ;;  %v5242_v49 = vmul.f32 0.015625, %v5240_v32  ;;  %v5474_v54 = vld [vmem:[#allocation8 + $0x130] sm:$0xff]  ;;  %v5473_v32 = vld [vmem:[#allocation8 + $0x128] sm:$0xff] }
0x34da   :  { %v5244_v0 = vadd.f32 1e-05, %v5242_v49  ;;  %v5472_v49 = vld [vmem:[#allocation8 + $0x78] sm:$0xff] }
0x34dc   :  { %9473 = vrsqrt.f32 %v5244_v0  ;;  %v5471_v0 = vld [vmem:[#allocation8 + $0x70] sm:$0xff] }
0x34e5   :  { %v9472_v15 = vpop.eup %9471 }
0x34e6   :  { %v5247_v55 = vmul.f32 %v9472_v15, %v10504_v27 }
0x34e8   :  { %v5249_v60 = vmul.f32 %v5247_v55, %v5221_v50 }
0x34e9   :  { %v9474_v43 = vpop.eup %9473 }
0x34ea   :  { %v5248_v63 = vmul.f32 %v9474_v43, %v10502_v25  ;;  %v5251_v11 = vadd.f32 %v5249_v60, %v5222_v56 }
0x34ec   :  { %v5250_v59 = vmul.f32 %v5248_v63, %v5221_v50  ;;  %9009 = vmatprep.mubr.msk.f32.mxu1 %vm323_vm1, %v5251_v11 }
0x34ee   :  { %v5252_v1 = vadd.f32 %v5250_v59, %v5222_v56 }
0x34f0   :  { %9010 = vmatmul.mubr.msk.f32.vlgmr.msra.gmra.mxu1 %vm323_vm1, %v5252_v1 }
0x34f1   :  { %5570 = vmatprep.mubr.f32.mxu1 %v9724_v26  ;;  %5523 = vmatpush1.msra.mxu1 %v5485_v40 }
0x34f2   :  { %5524 = vmatprep.subr.mxu1 %v5484_v41 }
0x34f3   :  { %5525 = vmatpush1.msra.mxu1 %v5483_v42 }
0x34f4   :  { %5526 = vmatprep.subr.mxu1 %v5482_v44 }
0x34f5   :  { %5527 = vmatpush1.msra.mxu1 %v5481_v10 }
0x34f6   :  { %5528 = vmatprep.subr.mxu1 %v5480_v4 }
0x34f7   :  { %5529 = vmatpush1.msra.mxu1 %v5479_v45 }
0x34f8   :  { %5530 = vmatprep.subr.mxu1 %v5478_v13 }
0x34f9   :  { %5531 = vmatpush1.msra.mxu1 %v5477_v57 }
0x34fa   :  { %5532 = vmatprep.subr.mxu1 %v5476_v61 }
0x34fb   :  { %5533 = vmatpush1.msra.mxu1 %v5475_v52 }
0x34fc   :  { %5534 = vmatprep.subr.mxu1 %v5474_v54 }
0x34fd   :  { %5535 = vmatpush1.msra.mxu1 %v5473_v32 }
0x34fe   :  { %5536 = vmatprep.subr.mxu1 %v5472_v49 }
0x34ff   :  { %5537 = vmatpush1.msra.mxu1 %v5471_v0 }
0x35b0   :  { %v9011_v9 = vpop.f32.mrf.mxu1 }
0x35b1   :  { %v5340_v48 = vadd.f32 %v9011_v9, %v5261_v6 }
0x35b2   :  { %v5334_v62 = vpop.f32.mrf.mxu1 }
0x35b3   :  { %v5335_v7 = vadd.f32 %v5334_v62, %v5261_v6  ;;  %v5344_v8 = vmax.f32 %v5340_v48, 0.0  ;;  %v5488_v48 = vld [vmem:[#allocation11 + $0x46] ss:$8 sm:$0x3] }
0x35b4   :  { %v5493_v62 = vrot.slane %v5488_v48, %v9814_v58 }
0x35b5   :  { %v5343_v16 = vmax.f32 %v5335_v7, 0.0 }
0x35b7   :  { %9044 = vmatprep.mubr.f32.mxu0 %v5343_v16 }
0x35b8   :  { %9045 = vmatmul.mubr.f32.vlgmr.msra.gmra.mxu0 %v5344_v8 }
0x3678   :  { %v9046_v22 = vpop.f32.mrf.mxu0 }
0x3679   :  { %v5434_v24 = vadd.f32 %v9046_v22, %v5361_v21 }
0x367a   :  { %v5428_v25 = vpop.f32.mrf.mxu0 }
0x367b   :  { %v5438_v27 = vadd.f32 %v5434_v24, %v5252_v1  ;;  %v5429_v53 = vadd.f32 %v5428_v25, %v5361_v21  ;;  %v5497_v25 = vrot.slane %v5488_v48, %v9827_v2 }
0x367d   :  { %v5437_v28 = vadd.f32 %v5429_v53, %v5251_v11  ;;  %v5444_v30 = vsel %vm323_vm1, %v5438_v27, 0.0 }
0x367e   :  { %5445 = vadd.xlane.f32.xlu1 %v5444_v30 }
0x367f   :  { %v5441_v46 = vsel %vm323_vm1, %v5437_v28, 0.0 }
0x3680   :  { %5442 = vadd.xlane.f32.xlu0 %v5441_v46 }
0x3707   :  { %v5446_v47 = vpop.xlane.xlu1 %5445 }
0x3708   :  { %v5448_v29 = vmul.f32 0.015625, %v5446_v47 }
0x3709   :  { %v5443_v31 = vpop.xlane.xlu0 %5442 }
0x370a   :  { %v5450_v33 = vsub.f32 %v5438_v27, %v5448_v29  ;;  %v5447_v34 = vmul.f32 0.015625, %v5443_v31 }
0x370c   :  { %v5449_v18 = vsub.f32 %v5437_v28, %v5447_v34  ;;  %v5452_v36 = vmul.f32 %v5450_v33, %v5450_v33 }
0x370e   :  { %v5456_v35 = vsel %vm323_vm1, %v5452_v36, 0.0  ;;  %v5451_v37 = vmul.f32 %v5449_v18, %v5449_v18 }
0x370f   :  { %5457 = vadd.xlane.f32.xlu1 %v5456_v35 }
0x3710   :  { %v5453_v38 = vsel %vm323_vm1, %v5451_v37, 0.0 }
0x3711   :  { %5454 = vadd.xlane.f32.xlu0 %v5453_v38 }
0x3798   :  { %v5458_v15 = vpop.xlane.xlu1 %5457 }
0x3799   :  { %v5460_v50 = vmul.f32 0.015625, %v5458_v15 }
0x379a   :  { %v5455_v55 = vpop.xlane.xlu0 %5454 }
0x379b   :  { %v5462_v56 = vadd.f32 1e-05, %v5460_v50  ;;  %v5459_v60 = vmul.f32 0.015625, %v5455_v55 }
0x379d   :  { %9475 = vrsqrt.f32 %v5462_v56  ;;  %v5461_v43 = vadd.f32 1e-05, %v5459_v60 }
0x379f   :  { %9477 = vrsqrt.f32 %v5461_v43 }
0x37aa   :  { %v9476_v63 = vpop.eup %9475 }
0x37ab   :  { %v5466_v1 = vmul.f32 %v9476_v63, %v5450_v33 }
0x37ac   :  { %v9478_v11 = vpop.eup %9477 }
0x37ad   :  { %v5465_v59 = vmul.f32 %v9478_v11, %v5449_v18  ;;  %v5468_v6 = vmul.f32 %v5466_v1, %v5439_v12 }
0x37af   :  { %v5467_v3 = vmul.f32 %v5465_v59, %v5439_v12  ;;  %v10526_v9 = vadd.f32 %v5468_v6, %v5440_v5 }
0x37b1   :  { %v10521_v51 = vadd.f32 %v5467_v3, %v5440_v5 }
0x37b3   :  { %8090 = vmatmul.mubr.msk.f32.vlgmr.msra.gmra.mxu1 %vm323_vm1, %v10521_v51 }
0x37b4   :  { %5576 = vmatprep.mubr.f32.mxu1 %v9724_v26 }
0x37b7   :  { %8091 = vmatmul.mubr.msk.f32.gmra.mxu1 %vm323_vm1, %v10526_v9 }
0x3873   :  { %v5572_v7 = vpop.f32.mrf.mxu1 }
0x3874   :  { %v10531_v16 = vadd.f32 %v5572_v7, %v5493_v62 }
0x3875   :  { %v5574_v8 = vpop.f32.mrf.mxu1 }
0x3876   :  { %5585 = vrot.lane.b32.xlu1 %v10531_v16, %s9725_s4  ;;  %9051 = vmatprep.mubr.msk.f32.mxu1 %vm156_vm0, %v10531_v16  ;;  %v10549_v53 = vadd.f32 %v5574_v8, %v5497_v25 }
0x3877   :  { %v5578_v21 = vpop.f32.mrf.mxu1 }
0x3878   :  { %v10537_v26 = vadd.f32 %v5578_v21, %v5493_v62 }
0x3879   :  { %v5580_v58 = vpop.f32.mrf.mxu1 }
0x387a   :  { %5587 = vrot.lane.b32.xlu0 %v10537_v26, %s9725_s4  ;;  %v10545_v27 = vadd.f32 %v5580_v58, %v5497_v25 }
0x38e8   :  { %v5586_v24 = vpop.permute.xlu1 %5585 }
0x38ec   :  { %v5588_v22 = vpop.permute.xlu0 %5587 }
0x38ed   :  { %9047 = vmatprep.subr.msk.mxu1 %vm156_vm0, %v5588_v22 }
0x38ee   :  { %9048 = vmatpush3.xpose.msk.msra.mxu1 %vm156_vm0, %v5588_v22 }
0x38ef   :  { %9049 = vmatprep.subr.msk.mxu1 %vm156_vm0, %v5586_v24 }
0x38f2   :  { %9050 = vmatpush3.xpose.msk.msra.mxu1 %vm156_vm0, %v5586_v24 }
0x38f3   :  { %9054 = vmatprep.subr.mxu1 %v10545_v27 }
0x38f5   :  { %9052 = vmatmul.mubr.msk.f32.vlgmr.msra.gmra.mxu1 %vm156_vm0, %v10537_v26 }
0x38f6   :  { %9055 = vmatpush3.msra.mxu1 %v10545_v27 }
0x38f7   :  { %9056 = vmatprep.subr.mxu1 %v10549_v53 }
0x38f8   :  { %9057 = vmatpush3.msra.mxu1 %v10549_v53 }
0x39b5   :  { %v9053_v2 = vpop.f32.mrf.mxu1 }
0x39b6   :  { %v5673_v28 = vmul.f32 0.25, %v9053_v2 }
0x39b7   :  { %v5663_v30 = vpop.f32.mrf.mxu1 }
0x39b8   :  { %v5675_v46 = vadd.f32 %v5673_v28, %v9848_v17  ;;  %v5672_v47 = vmul.f32 0.25, %v5663_v30 }
0x39ba   :  { %v5674_v29 = vadd.f32 %v5672_v47, %v9850_v20  ;;  %v5679_v31 = vsel %vm156_vm0, %v5675_v46, -inf }
0x39bb   :  { %5680 = vmax.xlane.f32.xlu0 %v5679_v31 }
0x39bc   :  { %v5676_v33 = vsel %vm156_vm0, %v5674_v29, -inf }
0x39bd   :  { %5677 = vmax.xlane.f32.xlu1 %v5676_v33 }
0x3a44   :  { %v5681_v34 = vpop.xlane.xlu0 %5680 }
0x3a45   :  { %v5683_v18 = vsub.f32 %v5675_v46, %v5681_v34 }
0x3a46   :  { %v5678_v36 = vpop.xlane.xlu1 %5677 }
0x3a47   :  { %v5686_v35 = vmul.f32 1.442695, %v5683_v18  ;;  %v5682_v37 = vsub.f32 %v5674_v29, %v5678_v36 }
0x3a49   :  { %9479 = vpow2.f32 %v5686_v35  ;;  %v5684_v38 = vmul.f32 1.442695, %v5682_v37 }
0x3a4b   :  { %9481 = vpow2.f32 %v5684_v38 }
0x3a56   :  { %v9480_v39 = vpop.eup %9479 }
0x3a57   :  { %v5691_v40 = vsel %vm156_vm0, %v9480_v39, 0.0 }
0x3a58   :  { %v9482_v41 = vpop.eup %9481  ;;  %5692 = vadd.xlane.f32.xlu1 %v5691_v40 }
0x3a59   :  { %v5688_v42 = vsel %vm156_vm0, %v9482_v41, 0.0 }
0x3a5a   :  { %5689 = vadd.xlane.f32.xlu0 %v5688_v42 }
0x3a69   :  { %5783 = vrot.lane.b32.xlu1 %v10531_v16, %s9727_s5 }
0x3a6d   :  { %5779 = vrot.lane.b32.xlu1 %v10531_v16, %s9728_s9 }
0x3a70   :  { %5785 = vrot.lane.b32.xlu0 %v10537_v26, %s9727_s5 }
0x3a71   :  { %5781 = vrot.lane.b32.xlu1 %v10537_v26, %s9728_s9 }
0x3ae1   :  { %v5693_v44 = vpop.xlane.xlu1 %5692 }
0x3ae2   :  { %9483 = vrcp.f32 %v5693_v44 }
0x3ae3   :  { %v5690_v10 = vpop.xlane.xlu0 %5689 }
0x3ae4   :  { %9485 = vrcp.f32 %v5690_v10 }
0x3ae5   :  { %v5784_v45 = vpop.permute.xlu1 %5783 }
0x3ae7   :  { %v5786_v4 = vpop.permute.xlu0 %5785 }
0x3ae8   :  { %9061 = vmatprep.subr.msk.mxu1 %vm156_vm0, %v5786_v4 }
0x3ae9   :  { %v5780_v54 = vpop.permute.xlu1 %5779 }
0x3aed   :  { %v5782_v32 = vpop.permute.xlu1 %5781 }
0x3aef   :  { %v9484_v13 = vpop.eup %9483 }
0x3af0   :  { %v5697_v52 = vmul.f32 %v9484_v13, %v9480_v39 }
0x3af1   :  { %v9486_v57 = vpop.eup %9485 }
0x3af2   :  { %v5696_v61 = vmul.f32 %v9486_v57, %v9482_v41 }
0x3af4   :  { %9058 = vmatprep.mubr.msk.f32.mxu1 %vm156_vm0, %v5696_v61 }
0x3af5   :  { %9059 = vmatmul.mubr.msk.f32.vlgmr.msra.gmra.mxu1 %vm156_vm0, %v5697_v52 }
0x3af6   :  { %9062 = vmatpush3.xpose.msk.msra.mxu1 %vm156_vm0, %v5786_v4  ;;  %9065 = vmatprep.mubr.msk.f32.mxu1 %vm156_vm0, %v5780_v54 }
0x3af7   :  { %9063 = vmatprep.subr.msk.mxu1 %vm156_vm0, %v5784_v45 }
0x3afa   :  { %9064 = vmatpush3.xpose.msk.msra.mxu1 %vm156_vm0, %v5784_v45 }
0x3afd   :  { %9066 = vmatmul.mubr.msk.f32.vlgmr.msra.gmra.mxu1 %vm156_vm0, %v5782_v32 }
0x3bb5   :  { %v10578_v49 = vpop.f32.mrf.mxu1 }
0x3bb7   :  { %v10580_v0 = vpop.f32.mrf.mxu1 }
0x3bbd   :  { %v9067_v15 = vpop.f32.mrf.mxu1 }
0x3bbe   :  { %v5871_v50 = vmul.f32 0.25, %v9067_v15 }
0x3bbf   :  { %v5861_v55 = vpop.f32.mrf.mxu1 }
0x3bc0   :  { %v5873_v56 = vadd.f32 %v5871_v50, %v9848_v17  ;;  %v5870_v60 = vmul.f32 0.25, %v5861_v55 }
0x3bc2   :  { %v5872_v43 = vadd.f32 %v5870_v60, %v9850_v20  ;;  %v5877_v63 = vsel %vm156_vm0, %v5873_v56, -inf }
0x3bc3   :  { %5878 = vmax.xlane.f32.xlu1 %v5877_v63 }
0x3bc4   :  { %v5874_v11 = vsel %vm156_vm0, %v5872_v43, -inf }
0x3bc5   :  { %5875 = vmax.xlane.f32.xlu0 %v5874_v11 }
0x3bd4   :  { %5898 = vrot.lane.b32.xlu1 %v10549_v53, %s9728_s9 }
0x3bd8   :  { %5991 = vrot.lane.b32.xlu1 %v10537_v26, %s9720_s22 }
0x3bdc   :  { %5989 = vrot.lane.b32.xlu1 %v10531_v16, %s9720_s22 }
0x3be0   :  { %5987 = vrot.lane.b32.xlu1 %v10537_v26, %s9729_s10 }
0x3c4c   :  { %v5879_v59 = vpop.xlane.xlu1 %5878 }
0x3c4d   :  { %v5881_v1 = vsub.f32 %v5873_v56, %v5879_v59 }
0x3c4e   :  { %v5876_v12 = vpop.xlane.xlu0 %5875 }
0x3c4f   :  { %v5884_v3 = vmul.f32 1.442695, %v5881_v1  ;;  %v5880_v5 = vsub.f32 %v5872_v43, %v5876_v12 }
0x3c50   :  { %v5899_v58 = vpop.permute.xlu1 %5898 }
0x3c51   :  { %9487 = vpow2.f32 %v5884_v3  ;;  %v5882_v6 = vmul.f32 1.442695, %v5880_v5 }
0x3c53   :  { %9489 = vpow2.f32 %v5882_v6 }
0x3c54   :  { %v5992_v25 = vpop.permute.xlu1 %5991 }
0x3c58   :  { %v5990_v29 = vpop.permute.xlu1 %5989 }
0x3c5c   :  { %v5988_v31 = vpop.permute.xlu1 %5987 }
0x3c5e   :  { %v9488_v48 = vpop.eup %9487 }
0x3c5f   :  { %v5889_v62 = vsel %vm156_vm0, %v9488_v48, 0.0 }
0x3c60   :  { %v9490_v7 = vpop.eup %9489  ;;  %5890 = vadd.xlane.f32.xlu0 %v5889_v62 }
0x3c61   :  { %v5886_v8 = vsel %vm156_vm0, %v9490_v7, 0.0 }
0x3c64   :  { %5887 = vadd.xlane.f32.xlu0 %v5886_v8 }
0x3c7a   :  { %5900 = vrot.lane.b32.xlu0 %v10545_v27, %s9728_s9 }
0x3c7e   :  { %5985 = vrot.lane.b32.xlu0 %v10531_v16, %s9729_s10 }
0x3ce9   :  { %v5891_v21 = vpop.xlane.xlu0 %5890 }
0x3cea   :  { %9491 = vrcp.f32 %v5891_v21 }
0x3ced   :  { %v5888_v22 = vpop.xlane.xlu0 %5887 }
0x3cee   :  { %9493 = vrcp.f32 %v5888_v22 }
0x3cf1   :  { %v5901_v24 = vpop.permute.xlu0 %5900 }
0x3cf2   :  { %9068 = vmatprep.subr.mxu0 %v5901_v24 }
0x3cf3   :  { %9069 = vmatpush3.msra.mxu0 %v5901_v24 }
0x3cf4   :  { %9070 = vmatprep.subr.mxu0 %v5899_v58 }
0x3cf5   :  { %9071 = vmatpush3.msra.mxu0 %v5899_v58  ;;  %v5986_v47 = vpop.permute.xlu0 %5985 }
0x3cf6   :  { %9075 = vmatprep.subr.msk.mxu0 %vm156_vm0, %v5992_v25 }
0x3cf7   :  { %v9492_v2 = vpop.eup %9491 }
0x3cf8   :  { %v5895_v46 = vmul.f32 %v9492_v2, %v9488_v48 }
0x3cfb   :  { %v9494_v28 = vpop.eup %9493 }
0x3cfc   :  { %v5894_v30 = vmul.f32 %v9494_v28, %v9490_v7 }
0x3cfe   :  { %9072 = vmatprep.mubr.msk.f32.mxu0 %vm156_vm0, %v5894_v30 }
0x3cff   :  { %9073 = vmatmul.mubr.msk.f32.vlgmr.msra.gmra.mxu0 %vm156_vm0, %v5895_v46 }
0x3d00   :  { %9076 = vmatpush3.xpose.msk.msra.mxu0 %vm156_vm0, %v5992_v25  ;;  %9079 = vmatprep.mubr.msk.f32.mxu0 %vm156_vm0, %v5986_v47 }
0x3d01   :  { %9077 = vmatprep.subr.msk.mxu0 %vm156_vm0, %v5990_v29 }
0x3d04   :  { %9078 = vmatpush3.xpose.msk.msra.mxu0 %vm156_vm0, %v5990_v29 }
0x3d07   :  { %9080 = vmatmul.mubr.msk.f32.vlgmr.msra.gmra.mxu0 %vm156_vm0, %v5988_v31 }
0x3dbf   :  { %v10608_v33 = vpop.f32.mrf.mxu0 }
0x3dc1   :  { %v10610_v34 = vpop.f32.mrf.mxu0 }
0x3dc7   :  { %v9081_v18 = vpop.f32.mrf.mxu0 }
0x3dc8   :  { %v6077_v36 = vmul.f32 0.25, %v9081_v18  ;;  %v6430_v18 = vld [vmem:[#allocation8 + $0x588] sm:$0xff] }
0x3dc9   :  { %v6067_v35 = vpop.f32.mrf.mxu0 }
0x3dca   :  { %v6079_v37 = vadd.f32 %v6077_v36, %v9848_v17  ;;  %v6076_v38 = vmul.f32 0.25, %v6067_v35 }
0x3dcc   :  { %v6078_v39 = vadd.f32 %v6076_v38, %v9850_v20  ;;  %v6083_v40 = vsel %vm156_vm0, %v6079_v37, -inf }
0x3dcd   :  { %6084 = vmax.xlane.f32.xlu1 %v6083_v40  ;;  %v6427_v40 = vld [vmem:[#allocation8 + $0x360] sm:$0xff] }
0x3dce   :  { %v6080_v41 = vsel %vm156_vm0, %v6078_v39, -inf }
0x3dcf   :  { %6081 = vmax.xlane.f32.xlu0 %v6080_v41  ;;  %v6426_v41 = vld [vmem:[#allocation8 + $0x2a8] sm:$0xff] }
0x3dde   :  { %6102 = vrot.lane.b32.xlu1 %v10549_v53, %s9729_s10 }
0x3de2   :  { %6195 = vrot.lane.b32.xlu1 %v10537_v26, %s9723_s30 }
0x3de6   :  { %6193 = vrot.lane.b32.xlu1 %v10531_v16, %s9723_s30 }
0x3dea   :  { %6191 = vrot.lane.b32.xlu1 %v10537_v26, %s9730_s11 }
0x3e56   :  { %v6085_v42 = vpop.xlane.xlu1 %6084 }
0x3e57   :  { %v6087_v44 = vsub.f32 %v6079_v37, %v6085_v42  ;;  %v6425_v42 = vld [vmem:[#allocation8 + $0x1f0] sm:$0xff] }
0x3e58   :  { %v6082_v10 = vpop.xlane.xlu0 %6081 }
0x3e59   :  { %v6090_v4 = vmul.f32 1.442695, %v6087_v44  ;;  %v6086_v45 = vsub.f32 %v6078_v39, %v6082_v10  ;;  %v6428_v39 = vld [vmem:[#allocation8 + $0x418] sm:$0xff]  ;;  %v6423_v10 = vld [vmem:[#allocation8 + $0x80] sm:$0xff] }
0x3e5a   :  { %v6103_v15 = vpop.permute.xlu1 %6102  ;;  %v6424_v44 = vld [vmem:[#allocation8 + $0x138] sm:$0xff] }
0x3e5b   :  { %9495 = vpow2.f32 %v6090_v4  ;;  %v6088_v13 = vmul.f32 1.442695, %v6086_v45  ;;  %v10658_v4 = vadd.f32 %v10209_v23, %v10198_v14 }
0x3e5d   :  { %9497 = vpow2.f32 %v6088_v13 }
0x3e5e   :  { %v6196_v55 = vpop.permute.xlu1 %6195 }
0x3e62   :  { %v6194_v11 = vpop.permute.xlu1 %6193 }
0x3e66   :  { %v6192_v59 = vpop.permute.xlu1 %6191 }
0x3e68   :  { %v9496_v57 = vpop.eup %9495 }
0x3e69   :  { %v6095_v61 = vsel %vm156_vm0, %v9496_v57, 0.0 }
0x3e6a   :  { %v9498_v52 = vpop.eup %9497  ;;  %6096 = vadd.xlane.f32.xlu0 %v6095_v61 }
0x3e6b   :  { %v6092_v54 = vsel %vm156_vm0, %v9498_v52, 0.0 }
0x3e6e   :  { %6093 = vadd.xlane.f32.xlu0 %v6092_v54 }
0x3e84   :  { %6104 = vrot.lane.b32.xlu0 %v10545_v27, %s9729_s10 }
0x3e88   :  { %6189 = vrot.lane.b32.xlu0 %v10531_v16, %s9730_s11 }
0x3ef3   :  { %v6097_v26 = vpop.xlane.xlu0 %6096 }
0x3ef4   :  { %9499 = vrcp.f32 %v6097_v26 }
0x3ef7   :  { %v6094_v32 = vpop.xlane.xlu0 %6093 }
0x3ef8   :  { %9501 = vrcp.f32 %v6094_v32 }
0x3efb   :  { %v6105_v50 = vpop.permute.xlu0 %6104 }
0x3efc   :  { %9082 = vmatprep.subr.mxu1 %v6105_v50 }
0x3efd   :  { %9083 = vmatpush3.msra.mxu1 %v6105_v50 }
0x3efe   :  { %9084 = vmatprep.subr.mxu1 %v6103_v15 }
0x3eff   :  { %9085 = vmatpush3.msra.mxu1 %v6103_v15  ;;  %v6190_v16 = vpop.permute.xlu0 %6189 }
0x3f00   :  { %9089 = vmatprep.subr.msk.mxu1 %vm156_vm0, %v6196_v55 }
0x3f01   :  { %v9500_v56 = vpop.eup %9499 }
0x3f02   :  { %v6101_v63 = vmul.f32 %v9500_v56, %v9496_v57 }
0x3f05   :  { %v9502_v60 = vpop.eup %9501 }
0x3f06   :  { %v6100_v43 = vmul.f32 %v9502_v60, %v9498_v52 }
0x3f08   :  { %9086 = vmatprep.mubr.msk.f32.mxu1 %vm156_vm0, %v6100_v43 }
0x3f09   :  { %9087 = vmatmul.mubr.msk.f32.vlgmr.msra.gmra.mxu1 %vm156_vm0, %v6101_v63 }
0x3f0a   :  { %9090 = vmatpush3.xpose.msk.msra.mxu1 %vm156_vm0, %v6196_v55  ;;  %9093 = vmatprep.mubr.msk.f32.mxu1 %vm156_vm0, %v6190_v16 }
0x3f0b   :  { %9091 = vmatprep.subr.msk.mxu1 %vm156_vm0, %v6194_v11 }
0x3f0e   :  { %9092 = vmatpush3.xpose.msk.msra.mxu1 %vm156_vm0, %v6194_v11 }
0x3f11   :  { %9094 = vmatmul.mubr.msk.f32.vlgmr.msra.gmra.mxu1 %vm156_vm0, %v6192_v59 }
0x3fc9   :  { %v9088_v1 = vpop.f32.mrf.mxu1 }
0x3fcb   :  { %v6180_v12 = vpop.f32.mrf.mxu1 }
0x3fd1   :  { %v9095_v3 = vpop.f32.mrf.mxu1 }
0x3fd2   :  { %v6281_v5 = vmul.f32 0.25, %v9095_v3 }
0x3fd3   :  { %v6271_v6 = vpop.f32.mrf.mxu1 }
0x3fd4   :  { %v6283_v48 = vadd.f32 %v6281_v5, %v9848_v17  ;;  %v6280_v62 = vmul.f32 0.25, %v6271_v6 }
0x3fd6   :  { %v6282_v7 = vadd.f32 %v6280_v62, %v9850_v20  ;;  %v6287_v8 = vsel %vm156_vm0, %v6283_v48, -inf }
0x3fd7   :  { %6288 = vmax.xlane.f32.xlu1 %v6287_v8 }
0x3fd8   :  { %v6284_v21 = vsel %vm156_vm0, %v6282_v7, -inf }
0x3fd9   :  { %6285 = vmax.xlane.f32.xlu0 %v6284_v21 }
0x3fe8   :  { %6306 = vrot.lane.b32.xlu1 %v10549_v53, %s9730_s11 }
0x3fec   :  { %6395 = vrot.lane.b32.xlu1 %v10610_v34, %s9723_s30 }
0x3ff0   :  { %6397 = vrot.lane.b32.xlu1 %v10608_v33, %s9723_s30 }
0x3ff4   :  { %6405 = vrot.lane.b32.xlu1 %v9088_v1, %s9720_s22 }
0x4060   :  { %v6289_v22 = vpop.xlane.xlu1 %6288 }
0x4061   :  { %v6291_v58 = vsub.f32 %v6283_v48, %v6289_v22  ;;  %v6553_v22 = vld [vmem:[#allocation8 + $0x4d8] sm:$0xff] }
0x4062   :  { %v6286_v24 = vpop.xlane.xlu0 %6285 }
0x4063   :  { %v6294_v25 = vmul.f32 1.442695, %v6291_v58  ;;  %v6290_v2 = vsub.f32 %v6282_v7, %v6286_v24  ;;  %v6552_v58 = vld [vmem:[#allocation8 + $0x420] sm:$0xff]  ;;  %v6551_v24 = vld [vmem:[#allocation8 + $0x368] sm:$0xff] }
0x4064   :  { %v6307_v34 = vpop.permute.xlu1 %6306 }
0x4065   :  { %9503 = vpow2.f32 %v6294_v25  ;;  %v6292_v28 = vmul.f32 1.442695, %v6290_v2  ;;  %v6550_v25 = vld [vmem:[#allocation8 + $0x2b0] sm:$0xff]  ;;  %v6549_v2 = vld [vmem:[#allocation8 + $0x1f8] sm:$0xff] }
0x4067   :  { %9505 = vpow2.f32 %v6292_v28  ;;  %v6548_v28 = vld [vmem:[#allocation8 + $0x140] sm:$0xff] }
0x4068   :  { %v6396_v57 = vpop.permute.xlu1 %6395 }
0x4069   :  { %v6417_v26 = vsel %vm156_vm0, %v10580_v0, %v6396_v57 }
0x406c   :  { %v6398_v61 = vpop.permute.xlu1 %6397 }
0x406d   :  { %v6418_v23 = vsel %vm156_vm0, %v10578_v49, %v6398_v61  ;;  %v6431_v49 = vld [vmem:[#allocation11 + $0x47] ss:$0 sm:$0xff] }
0x4070   :  { %v6406_v52 = vpop.permute.xlu1 %6405 }
0x4071   :  { %v6420_v50 = vsel %vm1335_vm4, %v6418_v23, %v6406_v52 }
0x4072   :  { %v9504_v30 = vpop.eup %9503 }
0x4073   :  { %v6299_v46 = vsel %vm156_vm0, %v9504_v30, 0.0 }
0x4074   :  { %v9506_v53 = vpop.eup %9505  ;;  %6300 = vadd.xlane.f32.xlu0 %v6299_v46 }
0x4075   :  { %v6296_v47 = vsel %vm156_vm0, %v9506_v53, 0.0 }
0x4078   :  { %6297 = vadd.xlane.f32.xlu0 %v6296_v47 }
0x408e   :  { %6308 = vrot.lane.b32.xlu0 %v10545_v27, %s9730_s11  ;;  %v6429_v27 = vld [vmem:[#allocation8 + $0x4d0] sm:$0xff] }
0x4092   :  { %6403 = vrot.lane.b32.xlu0 %v6180_v12, %s9720_s22 }
0x40fd   :  { %v6301_v29 = vpop.xlane.xlu0 %6300 }
0x40fe   :  { %9507 = vrcp.f32 %v6301_v29 }
0x4101   :  { %v6298_v31 = vpop.xlane.xlu0 %6297 }
0x4102   :  { %9509 = vrcp.f32 %v6298_v31 }
0x4105   :  { %v6309_v33 = vpop.permute.xlu0 %6308 }
0x4106   :  { %9096 = vmatprep.subr.mxu0 %v6309_v33 }
0x4107   :  { %9097 = vmatpush3.msra.mxu0 %v6309_v33 }
0x4108   :  { %9098 = vmatprep.subr.mxu0 %v6307_v34 }
0x4109   :  { %9099 = vmatpush3.msra.mxu0 %v6307_v34  ;;  %v6404_v54 = vpop.permute.xlu0 %6403 }
0x410a   :  { %9103 = vmatprep.subr.mxu0 %v6430_v18  ;;  %v6419_v32 = vsel %vm1335_vm4, %v6417_v26, %v6404_v54 }
0x410b   :  { %v9508_v36 = vpop.eup %9507 }
0x410c   :  { %v6305_v38 = vmul.f32 %v9508_v36, %v9504_v30  ;;  %v6547_v30 = vld [vmem:[#allocation8 + $0x88] sm:$0xff] }
0x410f   :  { %v9510_v35 = vpop.eup %9509 }
0x4110   :  { %v6304_v37 = vmul.f32 %v9510_v35, %v9506_v53  ;;  %v6516_v35 = vld [vmem:[#allocation11 + $0x55] ss:$0 sm:$0xff] }
0x4112   :  { %9100 = vmatprep.mubr.msk.f32.mxu0 %vm156_vm0, %v6304_v37 }
0x4113   :  { %9101 = vmatmul.mubr.msk.f32.vlgmr.msra.gmra.mxu0 %vm156_vm0, %v6305_v38 }
0x4114   :  { %9104 = vmatpush3.msra.mxu0 %v6430_v18  ;;  %v6515_v18 = vld [vmem:[#allocation11 + $0x54] ss:$0 sm:$0xff] }
0x4115   :  { %9105 = vmatprep.subr.mxu0 %v6429_v27 }
0x4116   :  { %9106 = vmatpush3.msra.mxu0 %v6429_v27 }
0x4117   :  { %9107 = vmatprep.subr.mxu0 %v6428_v39 }
0x4118   :  { %9108 = vmatpush3.msra.mxu0 %v6428_v39 }
0x4119   :  { %9109 = vmatprep.subr.mxu0 %v6427_v40 }
0x411a   :  { %9110 = vmatpush3.msra.mxu0 %v6427_v40 }
0x411b   :  { %9111 = vmatprep.subr.mxu0 %v6426_v41 }
0x411c   :  { %9112 = vmatpush3.msra.mxu0 %v6426_v41 }
0x411d   :  { %9113 = vmatprep.subr.mxu0 %v6425_v42 }
0x411e   :  { %9114 = vmatpush3.msra.mxu0 %v6425_v42 }
0x411f   :  { %9115 = vmatprep.subr.mxu0 %v6424_v44 }
0x4120   :  { %9116 = vmatpush3.msra.mxu0 %v6424_v44  ;;  %v6555_v44 = vld [vmem:[#allocation11 + $0x50] ss:$0 sm:$0xff] }
0x4121   :  { %9117 = vmatprep.subr.mxu0 %v6423_v10 }
0x4122   :  { %9118 = vmatpush3.msra.mxu0 %v6423_v10 }
0x4123   :  { %9141 = vmatprep.subr.msk.mxu0 %vm156_vm0, %v10658_v4 }
0x41d3   :  { %v9102_v45 = vpop.f32.mrf.mxu0 }
0x41d4   :  { %6413 = vrot.lane.b32.xlu1 %v9102_v45, %s9727_s5 }
0x41d5   :  { %v6384_v13 = vpop.f32.mrf.mxu0 }
0x41d6   :  { %6411 = vrot.lane.b32.xlu0 %v6384_v13, %s9727_s5 }
0x4246   :  { %v6414_v14 = vpop.permute.xlu1 %6413 }
0x4247   :  { %v6422_v56 = vsel %vm1338_vm5, %v6420_v50, %v6414_v14 }
0x4248   :  { %v6412_v15 = vpop.permute.xlu0 %6411 }
0x4249   :  { %v6421_v55 = vsel %vm1338_vm5, %v6419_v32, %v6412_v15 }
0x424a   :  { %9119 = vmatprep.mubr.msk.f32.mxu0 %vm323_vm1, %v6421_v55 }
0x424b   :  { %9120 = vmatmul.mubr.msk.f32.vlgmr.msra.gmra.mxu0 %vm323_vm1, %v6422_v56 }
0x424c   :  { %9142 = vmatpush3.xpose.msk.msra.mxu0 %vm156_vm0, %v10658_v4 }
0x424d   :  { %9143 = vmatprep.subr.msk.mxu0 %vm156_vm0, %v10204_v19 }
0x4250   :  { %9144 = vmatpush3.xpose.msk.msra.mxu0 %vm156_vm0, %v10204_v19 }
0x430b   :  { %v9121_v0 = vpop.f32.mrf.mxu0 }
0x430c   :  { %v6510_v60 = vadd.f32 %v9121_v0, %v6431_v49 }
0x430d   :  { %v6504_v43 = vpop.f32.mrf.mxu0 }
0x430e   :  { %v6514_v63 = vadd.f32 %v6510_v60, %v10526_v9  ;;  %v6505_v16 = vadd.f32 %v6504_v43, %v6431_v49 }
0x4310   :  { %v6513_v11 = vadd.f32 %v6505_v16, %v10521_v51  ;;  %v6520_v59 = vsel %vm323_vm1, %v6514_v63, 0.0  ;;  %v6554_v51 = vld [vmem:[#allocation8 + $0x590] sm:$0xff] }
0x4311   :  { %6521 = vadd.xlane.f32.xlu1 %v6520_v59  ;;  %9122 = vmatprep.subr.mxu1 %v6554_v51 }
0x4312   :  { %v6517_v1 = vsel %vm323_vm1, %v6513_v11, 0.0  ;;  %9123 = vmatpush3.msra.mxu1 %v6554_v51 }
0x4313   :  { %6518 = vadd.xlane.f32.xlu0 %v6517_v1  ;;  %9124 = vmatprep.subr.mxu1 %v6553_v22 }
0x4314   :  { %9125 = vmatpush3.msra.mxu1 %v6553_v22 }
0x4315   :  { %9126 = vmatprep.subr.mxu1 %v6552_v58 }
0x4316   :  { %9127 = vmatpush3.msra.mxu1 %v6552_v58 }
0x4317   :  { %9128 = vmatprep.subr.mxu1 %v6551_v24 }
0x4318   :  { %9129 = vmatpush3.msra.mxu1 %v6551_v24 }
0x4319   :  { %9130 = vmatprep.subr.mxu1 %v6550_v25 }
0x431a   :  { %9131 = vmatpush3.msra.mxu1 %v6550_v25 }
0x431b   :  { %9132 = vmatprep.subr.mxu1 %v6549_v2 }
0x431c   :  { %9133 = vmatpush3.msra.mxu1 %v6549_v2 }
0x431d   :  { %9134 = vmatprep.subr.mxu1 %v6548_v28 }
0x431e   :  { %9135 = vmatpush3.msra.mxu1 %v6548_v28 }
0x431f   :  { %9136 = vmatprep.subr.mxu1 %v6547_v30 }
0x4320   :  { %9137 = vmatpush3.msra.mxu1 %v6547_v30 }
0x439a   :  { %v6522_v12 = vpop.xlane.xlu1 %6521 }
0x439b   :  { %v6524_v3 = vmul.f32 0.015625, %v6522_v12 }
0x439c   :  { %v6519_v5 = vpop.xlane.xlu0 %6518 }
0x439d   :  { %v6523_v6 = vmul.f32 0.015625, %v6519_v5  ;;  %v6526_v48 = vsub.f32 %v6514_v63, %v6524_v3 }
0x439f   :  { %v6525_v62 = vsub.f32 %v6513_v11, %v6523_v6  ;;  %v6528_v21 = vmul.f32 %v6526_v48, %v6526_v48 }
0x43a1   :  { %v6527_v7 = vmul.f32 %v6525_v62, %v6525_v62  ;;  %v6532_v9 = vsel %vm323_vm1, %v6528_v21, 0.0 }
0x43a3   :  { %v6529_v8 = vsel %vm323_vm1, %v6527_v7, 0.0 }
0x43a4   :  { %6530 = vadd.xlane.f32.xlu0 %v6529_v8 }
0x43a8   :  { %6533 = vadd.xlane.f32.xlu0 %v6532_v9 }
0x442d   :  { %v6531_v46 = vpop.xlane.xlu0 %6530 }
0x442e   :  { %v6535_v53 = vmul.f32 0.015625, %v6531_v46 }
0x4430   :  { %v6537_v47 = vadd.f32 1e-05, %v6535_v53 }
0x4431   :  { %v6534_v29 = vpop.xlane.xlu0 %6533 }
0x4432   :  { %9511 = vrsqrt.f32 %v6537_v47  ;;  %v6536_v31 = vmul.f32 0.015625, %v6534_v29 }
0x4434   :  { %v6538_v33 = vadd.f32 1e-05, %v6536_v31 }
0x4436   :  { %9513 = vrsqrt.f32 %v6538_v33 }
0x443f   :  { %v9512_v34 = vpop.eup %9511 }
0x4440   :  { %v6541_v36 = vmul.f32 %v9512_v34, %v6525_v62 }
0x4442   :  { %v6543_v37 = vmul.f32 %v6541_v36, %v6515_v18 }
0x4443   :  { %v9514_v38 = vpop.eup %9513 }
0x4444   :  { %v6542_v27 = vmul.f32 %v9514_v38, %v6526_v48  ;;  %v10686_v39 = vadd.f32 %v6543_v37, %v6516_v35 }
0x4446   :  { %v6544_v40 = vmul.f32 %v6542_v27, %v6515_v18  ;;  %9138 = vmatprep.mubr.msk.f32.mxu1 %vm323_vm1, %v10686_v39 }
0x4448   :  { %v10690_v41 = vadd.f32 %v6544_v40, %v6516_v35 }
0x444a   :  { %9139 = vmatmul.mubr.msk.f32.vlgmr.msra.gmra.mxu1 %vm323_vm1, %v10690_v41 }
0x450a   :  { %v9140_v42 = vpop.f32.mrf.mxu1 }
0x450b   :  { %v10696_v13 = vadd.f32 %v9140_v42, %v6555_v44 }
0x450c   :  { %v6628_v10 = vpop.f32.mrf.mxu1 }
0x450d   :  { %v10694_v45 = vadd.f32 %v6628_v10, %v6555_v44 }
0x450f   :  { %9145 = vmatprep.mubr.msk.f32.mxu0 %vm156_vm0, %v10694_v45 }
0x4510   :  { %9146 = vmatmul.mubr.msk.f32.vlgmr.msra.gmra.mxu0 %vm156_vm0, %v10696_v13 }
0x45d0   :  { %v9147_v57 = vpop.f32.mrf.mxu0 }
0x45d1   :  { %v6725_v61 = vmul.f32 0.25, %v9147_v57 }
0x45d2   :  { %v6715_v52 = vpop.f32.mrf.mxu0 }
0x45d3   :  { %v6727_v54 = vadd.f32 %v6725_v61, %v9848_v17  ;;  %v6724_v26 = vmul.f32 0.25, %v6715_v52 }
0x45d5   :  { %v6726_v14 = vadd.f32 %v6724_v26, %v9850_v20  ;;  %v6731_v23 = vsel %vm156_vm0, %v6727_v54, -inf }
0x45d6   :  { %6732 = vmax.xlane.f32.xlu1 %v6731_v23 }
0x45d7   :  { %v6728_v32 = vsel %vm156_vm0, %v6726_v14, -inf }
0x45d8   :  { %6729 = vmax.xlane.f32.xlu0 %v6728_v32 }
0x465f   :  { %v6733_v15 = vpop.xlane.xlu1 %6732 }
0x4660   :  { %v6735_v50 = vsub.f32 %v6727_v54, %v6733_v15 }
0x4661   :  { %v6730_v55 = vpop.xlane.xlu0 %6729 }
0x4662   :  { %v6738_v56 = vmul.f32 1.442695, %v6735_v50  ;;  %v6734_v49 = vsub.f32 %v6726_v14, %v6730_v55 }
0x4664   :  { %9515 = vpow2.f32 %v6738_v56  ;;  %v6736_v0 = vmul.f32 1.442695, %v6734_v49 }
0x4666   :  { %9517 = vpow2.f32 %v6736_v0 }
0x4671   :  { %v9516_v60 = vpop.eup %9515 }
0x4672   :  { %v6743_v43 = vsel %vm156_vm0, %v9516_v60, 0.0 }
0x4673   :  { %v9518_v63 = vpop.eup %9517  ;;  %6744 = vadd.xlane.f32.xlu1 %v6743_v43 }
0x4674   :  { %v6740_v16 = vsel %vm156_vm0, %v9518_v63, 0.0 }
0x4675   :  { %6741 = vadd.xlane.f32.xlu0 %v6740_v16 }
0x4684   :  { %6750 = vrot.lane.b32.xlu1 %v10204_v19, %s9725_s4 }
0x4688   :  { %6843 = vrot.lane.b32.xlu1 %v10658_v4, %s9728_s9 }
0x468b   :  { %6752 = vrot.lane.b32.xlu0 %v10658_v4, %s9725_s4 }
0x468c   :  { %6841 = vrot.lane.b32.xlu1 %v10204_v19, %s9728_s9 }
0x468f   :  { %6837 = vrot.lane.b32.xlu0 %v10694_v45, %s9728_s9 }
0x4690   :  { %6839 = vrot.lane.b32.xlu1 %v10696_v13, %s9728_s9 }
0x46fc   :  { %v6745_v11 = vpop.xlane.xlu1 %6744 }
0x46fd   :  { %9519 = vrcp.f32 %v6745_v11 }
0x46fe   :  { %v6742_v59 = vpop.xlane.xlu0 %6741 }
0x46ff   :  { %9521 = vrcp.f32 %v6742_v59 }
0x4700   :  { %v6751_v1 = vpop.permute.xlu1 %6750 }
0x4702   :  { %v6753_v12 = vpop.permute.xlu0 %6752 }
0x4703   :  { %9148 = vmatprep.subr.mxu1 %v6753_v12 }
0x4704   :  { %9149 = vmatpush3.msra.mxu1 %v6753_v12  ;;  %v6844_v3 = vpop.permute.xlu1 %6843 }
0x4705   :  { %9150 = vmatprep.subr.mxu1 %v6751_v1 }
0x4706   :  { %9151 = vmatpush3.msra.mxu1 %v6751_v1  ;;  %v6838_v7 = vpop.permute.xlu0 %6837 }
0x4707   :  { %9155 = vmatprep.subr.msk.mxu1 %vm156_vm0, %v6844_v3 }
0x4708   :  { %v6842_v8 = vpop.permute.xlu1 %6841 }
0x470a   :  { %v9520_v5 = vpop.eup %9519 }
0x470b   :  { %v6749_v62 = vmul.f32 %v9520_v5, %v9516_v60 }
0x470c   :  { %v9522_v6 = vpop.eup %9521  ;;  %v6840_v21 = vpop.permute.xlu1 %6839 }
0x470d   :  { %v6748_v48 = vmul.f32 %v9522_v6, %v9518_v63 }
0x470f   :  { %9152 = vmatprep.mubr.msk.f32.mxu1 %vm156_vm0, %v6748_v48 }
0x4710   :  { %9153 = vmatmul.mubr.msk.f32.vlgmr.msra.gmra.mxu1 %vm156_vm0, %v6749_v62 }
0x4711   :  { %9156 = vmatpush3.xpose.msk.msra.mxu1 %vm156_vm0, %v6844_v3  ;;  %9159 = vmatprep.mubr.msk.f32.mxu1 %vm156_vm0, %v6838_v7 }
0x4712   :  { %9157 = vmatprep.subr.msk.mxu1 %vm156_vm0, %v6842_v8 }
0x4715   :  { %9158 = vmatpush3.xpose.msk.msra.mxu1 %vm156_vm0, %v6842_v8 }
0x4718   :  { %9160 = vmatmul.mubr.msk.f32.vlgmr.msra.gmra.mxu1 %vm156_vm0, %v6840_v21 }
0x47d0   :  { %v10728_v9 = vpop.f32.mrf.mxu1 }
0x47d2   :  { %v10730_v51 = vpop.f32.mrf.mxu1 }
0x47d8   :  { %v9161_v22 = vpop.f32.mrf.mxu1 }
0x47d9   :  { %v6929_v58 = vmul.f32 0.25, %v9161_v22 }
0x47da   :  { %v6919_v24 = vpop.f32.mrf.mxu1 }
0x47db   :  { %v6931_v25 = vadd.f32 %v6929_v58, %v9848_v17  ;;  %v6928_v2 = vmul.f32 0.25, %v6919_v24 }
0x47dd   :  { %v6930_v28 = vadd.f32 %v6928_v2, %v9850_v20  ;;  %v6935_v30 = vsel %vm156_vm0, %v6931_v25, -inf }
0x47de   :  { %6936 = vmax.xlane.f32.xlu1 %v6935_v30 }
0x47df   :  { %v6932_v46 = vsel %vm156_vm0, %v6930_v28, -inf }
0x47e0   :  { %6933 = vmax.xlane.f32.xlu0 %v6932_v46 }
0x47ef   :  { %6954 = vrot.lane.b32.xlu1 %v10204_v19, %s9727_s5 }
0x47f3   :  { %7047 = vrot.lane.b32.xlu1 %v10658_v4, %s9729_s10 }
0x47f7   :  { %7045 = vrot.lane.b32.xlu1 %v10204_v19, %s9729_s10 }
0x47fb   :  { %7043 = vrot.lane.b32.xlu1 %v10696_v13, %s9729_s10 }
0x4867   :  { %v6937_v53 = vpop.xlane.xlu1 %6936 }
0x4868   :  { %v6939_v47 = vsub.f32 %v6931_v25, %v6937_v53 }
0x4869   :  { %v6934_v29 = vpop.xlane.xlu0 %6933 }
0x486a   :  { %v6942_v31 = vmul.f32 1.442695, %v6939_v47  ;;  %v6938_v33 = vsub.f32 %v6930_v28, %v6934_v29 }
0x486b   :  { %v6955_v40 = vpop.permute.xlu1 %6954 }
0x486c   :  { %9523 = vpow2.f32 %v6942_v31  ;;  %v6940_v34 = vmul.f32 1.442695, %v6938_v33 }
0x486e   :  { %9525 = vpow2.f32 %v6940_v34 }
0x486f   :  { %v7048_v44 = vpop.permute.xlu1 %7047 }
0x4873   :  { %v7046_v26 = vpop.permute.xlu1 %7045 }
0x4877   :  { %v7044_v14 = vpop.permute.xlu1 %7043 }
0x4879   :  { %v9524_v18 = vpop.eup %9523 }
0x487a   :  { %v6947_v36 = vsel %vm156_vm0, %v9524_v18, 0.0 }
0x487b   :  { %v9526_v35 = vpop.eup %9525  ;;  %6948 = vadd.xlane.f32.xlu0 %v6947_v36 }
0x487c   :  { %v6944_v37 = vsel %vm156_vm0, %v9526_v35, 0.0 }
0x487f   :  { %6945 = vadd.xlane.f32.xlu0 %v6944_v37 }
0x4895   :  { %6956 = vrot.lane.b32.xlu0 %v10658_v4, %s9727_s5 }
0x4899   :  { %7041 = vrot.lane.b32.xlu0 %v10694_v45, %s9729_s10 }
0x4904   :  { %v6949_v38 = vpop.xlane.xlu0 %6948 }
0x4905   :  { %9527 = vrcp.f32 %v6949_v38 }
0x4908   :  { %v6946_v27 = vpop.xlane.xlu0 %6945 }
0x4909   :  { %9529 = vrcp.f32 %v6946_v27 }
0x490c   :  { %v6957_v42 = vpop.permute.xlu0 %6956 }
0x490d   :  { %9162 = vmatprep.subr.mxu0 %v6957_v42 }
0x490e   :  { %9163 = vmatpush3.msra.mxu0 %v6957_v42 }
0x490f   :  { %9164 = vmatprep.subr.mxu0 %v6955_v40 }
0x4910   :  { %9165 = vmatpush3.msra.mxu0 %v6955_v40  ;;  %v7042_v54 = vpop.permute.xlu0 %7041 }
0x4911   :  { %9169 = vmatprep.subr.msk.mxu0 %vm156_vm0, %v7048_v44 }
0x4912   :  { %v9528_v10 = vpop.eup %9527 }
0x4913   :  { %v6953_v52 = vmul.f32 %v9528_v10, %v9524_v18 }
0x4916   :  { %v9530_v57 = vpop.eup %9529 }
0x4917   :  { %v6952_v61 = vmul.f32 %v9530_v57, %v9526_v35 }
0x4919   :  { %9166 = vmatprep.mubr.msk.f32.mxu0 %vm156_vm0, %v6952_v61 }
0x491a   :  { %9167 = vmatmul.mubr.msk.f32.vlgmr.msra.gmra.mxu0 %vm156_vm0, %v6953_v52 }
0x491b   :  { %9170 = vmatpush3.xpose.msk.msra.mxu0 %vm156_vm0, %v7048_v44  ;;  %9173 = vmatprep.mubr.msk.f32.mxu0 %vm156_vm0, %v7042_v54 }
0x491c   :  { %9171 = vmatprep.subr.msk.mxu0 %vm156_vm0, %v7046_v26 }
0x491f   :  { %9172 = vmatpush3.xpose.msk.msra.mxu0 %vm156_vm0, %v7046_v26 }
0x4922   :  { %9174 = vmatmul.mubr.msk.f32.vlgmr.msra.gmra.mxu0 %vm156_vm0, %v7044_v14 }
0x49da   :  { %v10758_v23 = vpop.f32.mrf.mxu0 }
0x49dc   :  { %v10760_v32 = vpop.f32.mrf.mxu0 }
0x49e2   :  { %v9175_v15 = vpop.f32.mrf.mxu0 }
0x49e3   :  { %v7133_v50 = vmul.f32 0.25, %v9175_v15  ;;  %v7484_v15 = vld [vmem:[#allocation8 + $0x428] sm:$0xff] }
0x49e4   :  { %v7123_v55 = vpop.f32.mrf.mxu0 }
0x49e5   :  { %v7135_v56 = vadd.f32 %v7133_v50, %v9848_v17  ;;  %v7132_v49 = vmul.f32 0.25, %v7123_v55  ;;  %v7483_v50 = vld [vmem:[#allocation8 + $0x370] sm:$0xff]  ;;  %v7482_v55 = vld [vmem:[#allocation8 + $0x2b8] sm:$0xff] }
0x49e7   :  { %v7134_v0 = vadd.f32 %v7132_v49, %v9850_v20  ;;  %v7139_v60 = vsel %vm156_vm0, %v7135_v56, -inf  ;;  %v7480_v49 = vld [vmem:[#allocation8 + $0x148] sm:$0xff] }
0x49e8   :  { %7140 = vmax.xlane.f32.xlu1 %v7139_v60 }
0x49e9   :  { %v7136_v43 = vsel %vm156_vm0, %v7134_v0, -inf }
0x49ea   :  { %7137 = vmax.xlane.f32.xlu0 %v7136_v43 }
0x49f9   :  { %7158 = vrot.lane.b32.xlu1 %v10204_v19, %s9720_s22 }
0x49fd   :  { %7251 = vrot.lane.b32.xlu1 %v10658_v4, %s9730_s11 }
0x4a01   :  { %7249 = vrot.lane.b32.xlu1 %v10204_v19, %s9730_s11 }
0x4a05   :  { %7247 = vrot.lane.b32.xlu1 %v10696_v13, %s9730_s11 }
0x4a71   :  { %v7141_v63 = vpop.xlane.xlu1 %7140 }
0x4a72   :  { %v7143_v16 = vsub.f32 %v7135_v56, %v7141_v63  ;;  %v7481_v56 = vld [vmem:[#allocation8 + $0x200] sm:$0xff] }
0x4a73   :  { %v7138_v11 = vpop.xlane.xlu0 %7137 }
0x4a74   :  { %v7146_v59 = vmul.f32 1.442695, %v7143_v16  ;;  %v7142_v1 = vsub.f32 %v7134_v0, %v7138_v11  ;;  %v7479_v0 = vld [vmem:[#allocation8 + $0x90] sm:$0xff] }
0x4a75   :  { %v7159_v7 = vpop.permute.xlu1 %7158 }
0x4a76   :  { %9531 = vpow2.f32 %v7146_v59  ;;  %v7144_v12 = vmul.f32 1.442695, %v7142_v1 }
0x4a78   :  { %9533 = vpow2.f32 %v7144_v12 }
0x4a79   :  { %v7252_v21 = vpop.permute.xlu1 %7251 }
0x4a7d   :  { %v7250_v2 = vpop.permute.xlu1 %7249 }
0x4a81   :  { %v7248_v28 = vpop.permute.xlu1 %7247 }
0x4a83   :  { %v9532_v3 = vpop.eup %9531 }
0x4a84   :  { %v7151_v5 = vsel %vm156_vm0, %v9532_v3, 0.0 }
0x4a85   :  { %v9534_v6 = vpop.eup %9533  ;;  %7152 = vadd.xlane.f32.xlu0 %v7151_v5 }
0x4a86   :  { %v7148_v48 = vsel %vm156_vm0, %v9534_v6, 0.0 }
0x4a89   :  { %7149 = vadd.xlane.f32.xlu0 %v7148_v48 }
0x4a9f   :  { %7160 = vrot.lane.b32.xlu0 %v10658_v4, %s9720_s22 }
0x4aa3   :  { %7245 = vrot.lane.b32.xlu0 %v10694_v45, %s9730_s11 }
0x4b0e   :  { %v7153_v13 = vpop.xlane.xlu0 %7152 }
0x4b0f   :  { %9535 = vrcp.f32 %v7153_v13 }
0x4b12   :  { %v7150_v62 = vpop.xlane.xlu0 %7149 }
0x4b13   :  { %9537 = vrcp.f32 %v7150_v62 }
0x4b16   :  { %v7161_v8 = vpop.permute.xlu0 %7160 }
0x4b17   :  { %9176 = vmatprep.subr.mxu1 %v7161_v8 }
0x4b18   :  { %9177 = vmatpush3.msra.mxu1 %v7161_v8 }
0x4b19   :  { %9178 = vmatprep.subr.mxu1 %v7159_v7 }
0x4b1a   :  { %9179 = vmatpush3.msra.mxu1 %v7159_v7  ;;  %v7246_v45 = vpop.permute.xlu0 %7245  ;;  %v7487_v7 = vld [vmem:[#allocation11 + $0x51] ss:$0 sm:$0xff] }
0x4b1b   :  { %9183 = vmatprep.subr.msk.mxu1 %vm156_vm0, %v7252_v21 }
0x4b1c   :  { %v9536_v22 = vpop.eup %9535 }
0x4b1d   :  { %v7157_v25 = vmul.f32 %v9536_v22, %v9532_v3 }
0x4b20   :  { %v9538_v58 = vpop.eup %9537 }
0x4b21   :  { %v7156_v24 = vmul.f32 %v9538_v58, %v9534_v6 }
0x4b23   :  { %9180 = vmatprep.mubr.msk.f32.mxu1 %vm156_vm0, %v7156_v24 }
0x4b24   :  { %9181 = vmatmul.mubr.msk.f32.vlgmr.msra.gmra.mxu1 %vm156_vm0, %v7157_v25 }
0x4b25   :  { %9184 = vmatpush3.xpose.msk.msra.mxu1 %vm156_vm0, %v7252_v21  ;;  %9187 = vmatprep.mubr.msk.f32.mxu1 %vm156_vm0, %v7246_v45 }
0x4b26   :  { %9185 = vmatprep.subr.msk.mxu1 %vm156_vm0, %v7250_v2 }
0x4b29   :  { %9186 = vmatpush3.xpose.msk.msra.mxu1 %vm156_vm0, %v7250_v2 }
0x4b2c   :  { %9188 = vmatmul.mubr.msk.f32.vlgmr.msra.gmra.mxu1 %vm156_vm0, %v7248_v28 }
0x4be4   :  { %v9182_v30 = vpop.f32.mrf.mxu1 }
0x4be6   :  { %v7236_v46 = vpop.f32.mrf.mxu1 }
0x4bec   :  { %v9189_v53 = vpop.f32.mrf.mxu1 }
0x4bed   :  { %v7337_v47 = vmul.f32 0.25, %v9189_v53 }
0x4bee   :  { %v7327_v29 = vpop.f32.mrf.mxu1 }
0x4bef   :  { %v7339_v31 = vadd.f32 %v7337_v47, %v9848_v17  ;;  %v7336_v33 = vmul.f32 0.25, %v7327_v29 }
0x4bf1   :  { %v7338_v34 = vadd.f32 %v7336_v33, %v9850_v20  ;;  %v7343_v18 = vsel %vm156_vm0, %v7339_v31, -inf  ;;  %v7609_v33 = vld [vmem:[#allocation8 + $0x4e8] sm:$0xff] }
0x4bf2   :  { %7344 = vmax.xlane.f32.xlu1 %v7343_v18  ;;  %v7607_v18 = vld [vmem:[#allocation8 + $0x378] sm:$0xff] }
0x4bf3   :  { %v7340_v36 = vsel %vm156_vm0, %v7338_v34, -inf }
0x4bf4   :  { %7341 = vmax.xlane.f32.xlu0 %v7340_v36  ;;  %v7606_v36 = vld [vmem:[#allocation8 + $0x2c0] sm:$0xff] }
0x4c03   :  { %7362 = vrot.lane.b32.xlu1 %v10204_v19, %s9723_s30 }
0x4c07   :  { %7451 = vrot.lane.b32.xlu1 %v10760_v32, %s9723_s30  ;;  %v7485_v32 = vld [vmem:[#allocation8 + $0x4e0] sm:$0xff] }
0x4c0b   :  { %7453 = vrot.lane.b32.xlu1 %v10758_v23, %s9723_s30 }
0x4c0f   :  { %7461 = vrot.lane.b32.xlu1 %v9182_v30, %s9720_s22 }
0x4c7b   :  { %v7345_v17 = vpop.xlane.xlu1 %7344 }
0x4c7c   :  { %v7347_v35 = vsub.f32 %v7339_v31, %v7345_v17  ;;  %v7610_v31 = vld [vmem:[#allocation8 + $0x5a0] sm:$0xff]  ;;  %v7605_v17 = vld [vmem:[#allocation8 + $0x208] sm:$0xff] }
0x4c7d   :  { %v7342_v20 = vpop.xlane.xlu0 %7341  ;;  %9216 = vmatprep.subr.mxu1 %v7610_v31 }
0x4c7e   :  { %v7350_v37 = vmul.f32 1.442695, %v7347_v35  ;;  %v7346_v38 = vsub.f32 %v7338_v34, %v7342_v20  ;;  %9217 = vmatpush3.msra.mxu1 %v7610_v31  ;;  %v7608_v34 = vld [vmem:[#allocation8 + $0x430] sm:$0xff]  ;;  %v7603_v20 = vld [vmem:[#allocation8 + $0x98] sm:$0xff] }
0x4c7f   :  { %v7363_v52 = vpop.permute.xlu1 %7362  ;;  %9218 = vmatprep.subr.mxu1 %v7609_v33  ;;  %v7604_v35 = vld [vmem:[#allocation8 + $0x150] sm:$0xff] }
0x4c80   :  { %9539 = vpow2.f32 %v7350_v37  ;;  %v7348_v27 = vmul.f32 1.442695, %v7346_v38  ;;  %9219 = vmatpush3.msra.mxu1 %v7609_v33  ;;  %v7710_v37 = vld [vmem:[#allocation10 + $0x1f8] sm:$0xff] }
0x4c81   :  { %9220 = vmatprep.subr.mxu1 %v7608_v34  ;;  %v7709_v38 = vld [vmem:[#allocation10 + $0x1d8] sm:$0xff] }
0x4c82   :  { %9541 = vpow2.f32 %v7348_v27  ;;  %9221 = vmatpush3.msra.mxu1 %v7608_v34  ;;  %v7708_v27 = vld [vmem:[#allocation10 + $0x1b8] sm:$0xff] }
0x4c83   :  { %v7452_v63 = vpop.permute.xlu1 %7451  ;;  %9222 = vmatprep.subr.mxu1 %v7607_v18 }
0x4c84   :  { %v7473_v1 = vsel %vm156_vm0, %v10730_v51, %v7452_v63  ;;  %9223 = vmatpush3.msra.mxu1 %v7607_v18 }
0x4c85   :  { %9224 = vmatprep.subr.mxu1 %v7606_v36 }
0x4c86   :  { %9225 = vmatpush3.msra.mxu1 %v7606_v36 }
0x4c87   :  { %v7454_v16 = vpop.permute.xlu1 %7453  ;;  %9226 = vmatprep.subr.mxu1 %v7605_v17 }
0x4c88   :  { %v7474_v3 = vsel %vm156_vm0, %v10728_v9, %v7454_v16  ;;  %9227 = vmatpush3.msra.mxu1 %v7605_v17 }
0x4c89   :  { %9228 = vmatprep.subr.mxu1 %v7604_v35 }
0x4c8a   :  { %9229 = vmatpush3.msra.mxu1 %v7604_v35 }
0x4c8b   :  { %v7462_v11 = vpop.permute.xlu1 %7461  ;;  %9230 = vmatprep.subr.mxu1 %v7603_v20 }
0x4c8c   :  { %v7476_v48 = vsel %vm1335_vm4, %v7474_v3, %v7462_v11  ;;  %9231 = vmatpush3.msra.mxu1 %v7603_v20  ;;  %v7695_v3 = vld [vmem:[#allocation10 + $0x18] sm:$0xff] }
0x4c8d   :  { %v9540_v40 = vpop.eup %9539 }
0x4c8e   :  { %v7355_v42 = vsel %vm156_vm0, %v9540_v40, 0.0 }
0x4c8f   :  { %v9542_v19 = vpop.eup %9541  ;;  %7356 = vadd.xlane.f32.xlu0 %v7355_v42  ;;  %v7706_v42 = vld [vmem:[#allocation10 + $0x178] sm:$0xff] }
0x4c90   :  { %v7352_v44 = vsel %vm156_vm0, %v9542_v19, 0.0 }
0x4c93   :  { %7353 = vadd.xlane.f32.xlu0 %v7352_v44  ;;  %v7704_v44 = vld [vmem:[#allocation10 + $0x138] sm:$0xff] }
0x4ca9   :  { %7364 = vrot.lane.b32.xlu0 %v10658_v4, %s9723_s30  ;;  %v7486_v4 = vld [vmem:[#allocation8 + $0x598] sm:$0xff] }
0x4cad   :  { %7459 = vrot.lane.b32.xlu0 %v7236_v46, %s9720_s22 }
0x4d18   :  { %v7357_v10 = vpop.xlane.xlu0 %7356 }
0x4d19   :  { %9543 = vrcp.f32 %v7357_v10  ;;  %v7703_v10 = vld [vmem:[#allocation10 + $0x118] sm:$0xff] }
0x4d1c   :  { %v7354_v57 = vpop.xlane.xlu0 %7353 }
0x4d1d   :  { %9545 = vrcp.f32 %v7354_v57  ;;  %v7702_v57 = vld [vmem:[#allocation10 + $0xf8] sm:$0xff] }
0x4d20   :  { %v7365_v61 = vpop.permute.xlu0 %7364 }
0x4d21   :  { %9190 = vmatprep.subr.mxu0 %v7365_v61 }
0x4d22   :  { %9191 = vmatpush3.msra.mxu0 %v7365_v61  ;;  %v7701_v61 = vld [vmem:[#allocation10 + $0xd8] sm:$0xff] }
0x4d23   :  { %9192 = vmatprep.subr.mxu0 %v7363_v52 }
0x4d24   :  { %9193 = vmatpush3.msra.mxu0 %v7363_v52  ;;  %v7460_v59 = vpop.permute.xlu0 %7459  ;;  %v7700_v52 = vld [vmem:[#allocation10 + $0xb8] sm:$0xff] }
0x4d25   :  { %9197 = vmatprep.subr.mxu0 %v7486_v4  ;;  %v7475_v5 = vsel %vm1335_vm4, %v7473_v1, %v7460_v59  ;;  %v7698_v59 = vld [vmem:[#allocation10 + $0x78] sm:$0xff] }
0x4d26   :  { %v9544_v54 = vpop.eup %9543  ;;  %v7697_v1 = vld [vmem:[#allocation10 + $0x58] sm:$0xff] }
0x4d27   :  { %v7361_v23 = vmul.f32 %v9544_v54, %v9540_v40  ;;  %v7707_v40 = vld [vmem:[#allocation10 + $0x198] sm:$0xff] }
0x4d28   :  { %v7699_v54 = vld [vmem:[#allocation10 + $0x98] sm:$0xff] }
0x4d2a   :  { %v9546_v26 = vpop.eup %9545 }
0x4d2b   :  { %v7360_v14 = vmul.f32 %v9546_v26, %v9542_v19  ;;  %v7705_v19 = vld [vmem:[#allocation10 + $0x158] sm:$0xff] }
0x4d2d   :  { %9194 = vmatprep.mubr.msk.f32.mxu0 %vm156_vm0, %v7360_v14 }
0x4d2e   :  { %9195 = vmatmul.mubr.msk.f32.vlgmr.msra.gmra.mxu0 %vm156_vm0, %v7361_v23 }
0x4d2f   :  { %9198 = vmatpush3.msra.mxu0 %v7486_v4 }
0x4d30   :  { %9199 = vmatprep.subr.mxu0 %v7485_v32 }
0x4d31   :  { %9200 = vmatpush3.msra.mxu0 %v7485_v32 }
0x4d32   :  { %9201 = vmatprep.subr.mxu0 %v7484_v15 }
0x4d33   :  { %9202 = vmatpush3.msra.mxu0 %v7484_v15 }
0x4d34   :  { %9203 = vmatprep.subr.mxu0 %v7483_v50 }
0x4d35   :  { %9204 = vmatpush3.msra.mxu0 %v7483_v50 }
0x4d36   :  { %9205 = vmatprep.subr.mxu0 %v7482_v55 }
0x4d37   :  { %9206 = vmatpush3.msra.mxu0 %v7482_v55  ;;  %v7571_v55 = vld [vmem:[#allocation11 + $0x56] ss:$0 sm:$0xff] }
0x4d38   :  { %9207 = vmatprep.subr.mxu0 %v7481_v56 }
0x4d39   :  { %9208 = vmatpush3.msra.mxu0 %v7481_v56 }
0x4d3a   :  { %9209 = vmatprep.subr.mxu0 %v7480_v49 }
0x4d3b   :  { %9210 = vmatpush3.msra.mxu0 %v7480_v49  ;;  %v7572_v49 = vld [vmem:[#allocation11 + $0x57] ss:$0 sm:$0xff] }
0x4d3c   :  { %9211 = vmatprep.subr.mxu0 %v7479_v0 }
0x4d3d   :  { %9212 = vmatpush3.msra.mxu0 %v7479_v0 }
0x4d3e   :  { %9235 = vmatprep.subr.mxu0 %v7710_v37 }
0x4dee   :  { %v9196_v60 = vpop.f32.mrf.mxu0 }
0x4def   :  { %7469 = vrot.lane.b32.xlu1 %v9196_v60, %s9727_s5 }
0x4df0   :  { %v7440_v43 = vpop.f32.mrf.mxu0 }
0x4df1   :  { %7467 = vrot.lane.b32.xlu0 %v7440_v43, %s9727_s5 }
0x4e61   :  { %v7470_v12 = vpop.permute.xlu1 %7469 }
0x4e62   :  { %v7478_v62 = vsel %vm1338_vm5, %v7476_v48, %v7470_v12  ;;  %v7696_v12 = vld [vmem:[#allocation10 + $0x38] sm:$0xff] }
0x4e63   :  { %v7468_v6 = vpop.permute.xlu0 %7467 }
0x4e64   :  { %v7477_v13 = vsel %vm1338_vm5, %v7475_v5, %v7468_v6  ;;  %v7611_v5 = vld [vmem:[#allocation11 + $0x52] ss:$0 sm:$0xff] }
0x4e65   :  { %9213 = vmatprep.mubr.msk.f32.mxu0 %vm323_vm1, %v7477_v13 }
0x4e66   :  { %9214 = vmatmul.mubr.msk.f32.vlgmr.msra.gmra.mxu0 %vm323_vm1, %v7478_v62 }
0x4e67   :  { %9236 = vmatpush3.msra.mxu0 %v7710_v37 }
0x4e68   :  { %9237 = vmatprep.subr.mxu0 %v7709_v38 }
0x4e69   :  { %9238 = vmatpush3.msra.mxu0 %v7709_v38  ;;  %v7789_v38 = vld [vmem:[#allocation11 + $0x60] ss:$0 sm:$0xff] }
0x4e6a   :  { %9239 = vmatprep.subr.mxu0 %v7708_v27 }
0x4e6b   :  { %9240 = vmatpush3.msra.mxu0 %v7708_v27 }
0x4e6c   :  { %9241 = vmatprep.subr.mxu0 %v7707_v40 }
0x4e6d   :  { %9242 = vmatpush3.msra.mxu0 %v7707_v40 }
0x4e6e   :  { %9243 = vmatprep.subr.mxu0 %v7706_v42 }
0x4e6f   :  { %9244 = vmatpush3.msra.mxu0 %v7706_v42  ;;  %v7790_v42 = vld [vmem:[#allocation11 + $0x61] ss:$0 sm:$0xff] }
0x4e70   :  { %9245 = vmatprep.subr.mxu0 %v7705_v19 }
0x4e71   :  { %9246 = vmatpush3.msra.mxu0 %v7705_v19 }
0x4e72   :  { %9247 = vmatprep.subr.mxu0 %v7704_v44 }
0x4e73   :  { %9248 = vmatpush3.msra.mxu0 %v7704_v44 }
0x4e74   :  { %9249 = vmatprep.subr.mxu0 %v7703_v10 }
0x4e75   :  { %9250 = vmatpush3.msra.mxu0 %v7703_v10 }
0x4e76   :  { %9251 = vmatprep.subr.mxu0 %v7702_v57 }
0x4e77   :  { %9252 = vmatpush3.msra.mxu0 %v7702_v57 }
0x4e78   :  { %9253 = vmatprep.subr.mxu0 %v7701_v61 }
0x4e79   :  { %9254 = vmatpush3.msra.mxu0 %v7701_v61 }
0x4e7a   :  { %9255 = vmatprep.subr.mxu0 %v7700_v52 }
0x4e7b   :  { %9256 = vmatpush3.msra.mxu0 %v7700_v52 }
0x4e7c   :  { %9257 = vmatprep.subr.mxu0 %v7699_v54 }
0x4e7d   :  { %9258 = vmatpush3.msra.mxu0 %v7699_v54 }
0x4e7e   :  { %9259 = vmatprep.subr.mxu0 %v7698_v59 }
0x4e7f   :  { %9260 = vmatpush3.msra.mxu0 %v7698_v59  ;;  %v7854_v59 = vld [vmem:[#allocation8 + $0x168] sm:$0xff] }
0x4e80   :  { %9261 = vmatprep.subr.mxu0 %v7697_v1 }
0x4e81   :  { %9262 = vmatpush3.msra.mxu0 %v7697_v1  ;;  %v7853_v1 = vld [vmem:[#allocation8 + $0xb0] sm:$0xff] }
0x4e82   :  { %9263 = vmatprep.subr.mxu0 %v7696_v12 }
0x4e83   :  { %9264 = vmatpush3.msra.mxu0 %v7696_v12 }
0x4e84   :  { %9265 = vmatprep.subr.mxu0 %v7695_v3 }
0x4e85   :  { %9266 = vmatpush3.msra.mxu0 %v7695_v3 }
0x4f26   :  { %v9215_v8 = vpop.f32.mrf.mxu0 }
0x4f27   :  { %v7566_v51 = vadd.f32 %v9215_v8, %v7487_v7 }
0x4f28   :  { %v7560_v21 = vpop.f32.mrf.mxu0 }
0x4f29   :  { %v7570_v22 = vadd.f32 %v7566_v51, %v10690_v41  ;;  %v7561_v9 = vadd.f32 %v7560_v21, %v7487_v7  ;;  %v7711_v51 = vld [vmem:[#allocation11 + $0x53] ss:$0 sm:$0xff] }
0x4f2b   :  { %v7569_v58 = vadd.f32 %v7561_v9, %v10686_v39  ;;  %v7576_v24 = vsel %vm323_vm1, %v7570_v22, 0.0 }
0x4f2c   :  { %7577 = vadd.xlane.f32.xlu1 %v7576_v24 }
0x4f2d   :  { %v7573_v25 = vsel %vm323_vm1, %v7569_v58, 0.0 }
0x4f2e   :  { %7574 = vadd.xlane.f32.xlu0 %v7573_v25 }
0x4fb5   :  { %v7578_v45 = vpop.xlane.xlu1 %7577 }
0x4fb6   :  { %v7580_v2 = vmul.f32 0.015625, %v7578_v45 }
0x4fb7   :  { %v7575_v28 = vpop.xlane.xlu0 %7574 }
0x4fb8   :  { %v7579_v30 = vmul.f32 0.015625, %v7575_v28  ;;  %v10822_v46 = vsub.f32 %v7570_v22, %v7580_v2 }
0x4fba   :  { %v10824_v53 = vsub.f32 %v7569_v58, %v7579_v30  ;;  %v7584_v39 = vmul.f32 %v10822_v46, %v10822_v46 }
0x4fbc   :  { %v7583_v41 = vmul.f32 %v10824_v53, %v10824_v53  ;;  %v7588_v29 = vsel %vm323_vm1, %v7584_v39, 0.0 }
0x4fbe   :  { %v7585_v47 = vsel %vm323_vm1, %v7583_v41, 0.0 }
0x4fbf   :  { %7586 = vadd.xlane.f32.xlu0 %v7585_v47 }
0x4fc3   :  { %7589 = vadd.xlane.f32.xlu0 %v7588_v29 }
0x5048   :  { %v7587_v26 = vpop.xlane.xlu0 %7586 }
0x5049   :  { %v7591_v14 = vmul.f32 0.015625, %v7587_v26 }
0x504b   :  { %v7593_v23 = vadd.f32 1e-05, %v7591_v14 }
0x504c   :  { %v7590_v4 = vpop.xlane.xlu0 %7589 }
0x504d   :  { %9547 = vrsqrt.f32 %v7593_v23  ;;  %v7592_v32 = vmul.f32 0.015625, %v7590_v4 }
0x504f   :  { %v7594_v15 = vadd.f32 1e-05, %v7592_v32 }
0x5051   :  { %9549 = vrsqrt.f32 %v7594_v15 }
0x505a   :  { %v9548_v50 = vpop.eup %9547 }
0x505b   :  { %v7597_v56 = vmul.f32 %v9548_v50, %v10824_v53 }
0x505d   :  { %v7599_v0 = vmul.f32 %v7597_v56, %v7571_v55 }
0x505e   :  { %v9550_v60 = vpop.eup %9549 }
0x505f   :  { %v7598_v43 = vmul.f32 %v9550_v60, %v10822_v46  ;;  %v7601_v63 = vadd.f32 %v7599_v0, %v7572_v49  ;;  %v7860_v0 = vld [vmem:[#allocation8 + $0x5b8] sm:$0xff]  ;;  %v7859_v60 = vld [vmem:[#allocation8 + $0x500] sm:$0xff] }
0x5060   :  { %9270 = vmatprep.subr.mxu1 %v7860_v0 }
0x5061   :  { %v7600_v16 = vmul.f32 %v7598_v43, %v7571_v55  ;;  %9232 = vmatprep.mubr.msk.f32.mxu1 %vm323_vm1, %v7601_v63  ;;  %v7858_v43 = vld [vmem:[#allocation8 + $0x448] sm:$0xff] }
0x5063   :  { %v7602_v11 = vadd.f32 %v7600_v16, %v7572_v49  ;;  %v7856_v16 = vld [vmem:[#allocation8 + $0x2d8] sm:$0xff] }
0x5065   :  { %9233 = vmatmul.mubr.msk.f32.vlgmr.msra.gmra.mxu1 %vm323_vm1, %v7602_v11 }
0x5066   :  { %9271 = vmatpush3.msra.mxu1 %v7860_v0 }
0x5067   :  { %9272 = vmatprep.subr.mxu1 %v7859_v60 }
0x5068   :  { %9273 = vmatpush3.msra.mxu1 %v7859_v60 }
0x5069   :  { %9274 = vmatprep.subr.mxu1 %v7858_v43 }
0x506a   :  { %9275 = vmatpush3.msra.mxu1 %v7858_v43 }
0x5125   :  { %v9234_v6 = vpop.f32.mrf.mxu1 }
0x5126   :  { %v7690_v48 = vadd.f32 %v9234_v6, %v7611_v5 }
0x5127   :  { %v7684_v13 = vpop.f32.mrf.mxu1 }
0x5128   :  { %v7685_v62 = vadd.f32 %v7684_v13, %v7611_v5  ;;  %v7694_v8 = vmax.f32 %v7690_v48, 0.0 }
0x512a   :  { %v7693_v7 = vmax.f32 %v7685_v62, 0.0 }
0x512c   :  { %9267 = vmatprep.mubr.f32.mxu0 %v7693_v7  ;;  %v7821_v7 = vld [vmem:[#allocation11 + $0x10] ss:$0 sm:$0xff] }
0x512d   :  { %9268 = vmatmul.mubr.f32.vlgmr.msra.gmra.mxu0 %v7694_v8 }
0x51ed   :  { %v9269_v21 = vpop.f32.mrf.mxu0 }
0x51ee   :  { %v7784_v22 = vadd.f32 %v9269_v21, %v7711_v51 }
0x51ef   :  { %v7778_v9 = vpop.f32.mrf.mxu0 }
0x51f0   :  { %v7788_v58 = vadd.f32 %v7784_v22, %v7602_v11  ;;  %v7779_v24 = vadd.f32 %v7778_v9, %v7711_v51  ;;  %v7855_v11 = vld [vmem:[#allocation8 + $0x220] sm:$0xff]  ;;  %v7822_v9 = vld [vmem:[#allocation11 + $0x11] ss:$0 sm:$0xff] }
0x51f2   :  { %v7787_v25 = vadd.f32 %v7779_v24, %v7601_v63  ;;  %v7794_v45 = vsel %vm323_vm1, %v7788_v58, 0.0  ;;  %v7857_v63 = vld [vmem:[#allocation8 + $0x390] sm:$0xff] }
0x51f3   :  { %7795 = vadd.xlane.f32.xlu1 %v7794_v45  ;;  %9276 = vmatprep.subr.mxu1 %v7857_v63  ;;  %v7861_v45 = vld [vmem:[#allocation11 + $0x1] ss:$0 sm:$0xff] }
0x51f4   :  { %v7791_v2 = vsel %vm323_vm1, %v7787_v25, 0.0  ;;  %9277 = vmatpush3.msra.mxu1 %v7857_v63 }
0x51f5   :  { %7792 = vadd.xlane.f32.xlu0 %v7791_v2  ;;  %9278 = vmatprep.subr.mxu1 %v7856_v16 }
0x51f6   :  { %9279 = vmatpush3.msra.mxu1 %v7856_v16 }
0x51f7   :  { %9280 = vmatprep.subr.mxu1 %v7855_v11 }
0x51f8   :  { %9281 = vmatpush3.msra.mxu1 %v7855_v11 }
0x51f9   :  { %9282 = vmatprep.subr.mxu1 %v7854_v59 }
0x51fa   :  { %9283 = vmatpush3.msra.mxu1 %v7854_v59 }
0x51fb   :  { %9284 = vmatprep.subr.mxu1 %v7853_v1 }
0x51fc   :  { %9285 = vmatpush3.msra.mxu1 %v7853_v1 }
0x527c   :  { %v7796_v28 = vpop.xlane.xlu1 %7795 }
0x527d   :  { %v7798_v30 = vmul.f32 0.015625, %v7796_v28 }
0x527e   :  { %v7793_v46 = vpop.xlane.xlu0 %7792 }
0x527f   :  { %v7800_v53 = vsub.f32 %v7788_v58, %v7798_v30  ;;  %v7797_v41 = vmul.f32 0.015625, %v7793_v46 }
0x5281   :  { %v7799_v47 = vsub.f32 %v7787_v25, %v7797_v41  ;;  %v7802_v39 = vmul.f32 %v7800_v53, %v7800_v53 }
0x5283   :  { %v7806_v29 = vsel %vm323_vm1, %v7802_v39, 0.0  ;;  %v7801_v31 = vmul.f32 %v7799_v47, %v7799_v47 }
0x5284   :  { %7807 = vadd.xlane.f32.xlu1 %v7806_v29 }
0x5285   :  { %v7803_v33 = vsel %vm323_vm1, %v7801_v31, 0.0 }
0x5286   :  { %7804 = vadd.xlane.f32.xlu0 %v7803_v33 }
0x530d   :  { %v7808_v34 = vpop.xlane.xlu1 %7807 }
0x530e   :  { %v7810_v18 = vmul.f32 0.015625, %v7808_v34 }
0x530f   :  { %v7805_v36 = vpop.xlane.xlu0 %7804 }
0x5310   :  { %v7812_v17 = vadd.f32 1e-05, %v7810_v18  ;;  %v7809_v35 = vmul.f32 0.015625, %v7805_v36 }
0x5312   :  { %9551 = vrsqrt.f32 %v7812_v17  ;;  %v7811_v20 = vadd.f32 1e-05, %v7809_v35 }
0x5314   :  { %9553 = vrsqrt.f32 %v7811_v20 }
0x531f   :  { %v9552_v37 = vpop.eup %9551 }
0x5320   :  { %v7816_v27 = vmul.f32 %v9552_v37, %v7800_v53 }
0x5321   :  { %v9554_v40 = vpop.eup %9553 }
0x5322   :  { %v7818_v19 = vmul.f32 %v7816_v27, %v7789_v38  ;;  %v7815_v44 = vmul.f32 %v9554_v40, %v7799_v47 }
0x5324   :  { %v7820_v10 = vadd.f32 %v7818_v19, %v7790_v42  ;;  %v7817_v57 = vmul.f32 %v7815_v44, %v7789_v38 }
0x5326   :  { %v7826_v61 = vsel %vm323_vm1, %v7820_v10, 0.0  ;;  %v7819_v52 = vadd.f32 %v7817_v57, %v7790_v42 }
0x5327   :  { %7827 = vadd.xlane.f32.xlu1 %v7826_v61 }
0x5328   :  { %v7823_v54 = vsel %vm323_vm1, %v7819_v52, 0.0 }
0x5329   :  { %7824 = vadd.xlane.f32.xlu0 %v7823_v54 }
0x53b0   :  { %v7828_v26 = vpop.xlane.xlu1 %7827 }
0x53b1   :  { %v7830_v14 = vmul.f32 0.015625, %v7828_v26 }
0x53b2   :  { %v7825_v23 = vpop.xlane.xlu0 %7824 }
0x53b3   :  { %v7832_v4 = vsub.f32 %v7820_v10, %v7830_v14  ;;  %v7829_v32 = vmul.f32 0.015625, %v7825_v23 }
0x53b5   :  { %v7831_v15 = vsub.f32 %v7819_v52, %v7829_v32  ;;  %v7834_v50 = vmul.f32 %v7832_v4, %v7832_v4 }
0x53b7   :  { %v7838_v55 = vsel %vm323_vm1, %v7834_v50, 0.0  ;;  %v7833_v56 = vmul.f32 %v7831_v15, %v7831_v15 }
0x53b8   :  { %7839 = vadd.xlane.f32.xlu1 %v7838_v55 }
0x53b9   :  { %v7835_v49 = vsel %vm323_vm1, %v7833_v56, 0.0 }
0x53ba   :  { %7836 = vadd.xlane.f32.xlu0 %v7835_v49 }
0x5441   :  { %v7840_v12 = vpop.xlane.xlu1 %7839 }
0x5442   :  { %v7842_v3 = vmul.f32 0.015625, %v7840_v12 }
0x5443   :  { %v7837_v5 = vpop.xlane.xlu0 %7836 }
0x5444   :  { %v7844_v6 = vadd.f32 1e-05, %v7842_v3  ;;  %v7841_v48 = vmul.f32 0.015625, %v7837_v5 }
0x5446   :  { %9555 = vrsqrt.f32 %v7844_v6  ;;  %v7843_v13 = vadd.f32 1e-05, %v7841_v48 }
0x5448   :  { %9557 = vrsqrt.f32 %v7843_v13 }
0x5453   :  { %v9556_v62 = vpop.eup %9555 }
0x5454   :  { %v7848_v8 = vmul.f32 %v9556_v62, %v7832_v4 }
0x5455   :  { %v9558_v51 = vpop.eup %9557 }
0x5456   :  { %v7847_v21 = vmul.f32 %v9558_v51, %v7831_v15  ;;  %v7850_v22 = vmul.f32 %v7848_v8, %v7821_v7 }
0x5458   :  { %v7849_v58 = vmul.f32 %v7847_v21, %v7821_v7  ;;  %v7852_v25 = vadd.f32 %v7850_v22, %v7822_v9 }
0x545a   :  { %v7851_v24 = vadd.f32 %v7849_v58, %v7822_v9 }
0x545c   :  { %9286 = vmatprep.mubr.msk.f32.mxu1 %vm323_vm1, %v7851_v24 }
0x545d   :  { %9287 = vmatmul.mubr.msk.f32.vlgmr.msra.gmra.mxu1 %vm323_vm1, %v7852_v25 }
0x551d   :  { %v9288_v2 = vpop.f32.mrf.mxu1 }
0x551e   :  { %v7940_v28 = vadd.f32 %v9288_v2, %v7861_v45 }
0x551f   :  { %v7934_v30 = vpop.f32.mrf.mxu1 }
0x5520   :  { %v7935_v46 = vadd.f32 %v7934_v30, %v7861_v45  ;;  %7945 = vst.msk [vmem:[#allocation13 + $0x8] sm:$0xff] %vm7943_vm6, %v7940_v28 }
0x5522   :  { %7944 = vst.msk [vmem:[#allocation13] sm:$0xff] %vm7943_vm6, %v7935_v46 }
0x5523   :  { %9691 = shalt.err (!%p9688_p6)
}
0x5524   :  { %7957 = dma.vmem_to_hbm [thread:$0]  %s7952_s13, 256, %s10858_s6, [#allocation4], %s9712_s26, %s9712_s26, %s9713_s27  }
0x5525   :  { %9708 = dma.done.wait [#allocation4], 256  }
0x5526   :  { %9709 = vsyncadd [#allocation4], 4294967040 }
0x5527   :  { %7961 = vsyncpa [#allocation3], 1 }
0x5528   :  { %7962 = vsyncpa [#allocation6], 1 }
0x5529   :  { %7963 = vsyncpa [#allocation9], 1 }
0x552a   :  { %7964 = vsyncpa [#allocation12], 1 }
0x552b   :  { %7965 = vsyncpa [#allocation4], 1 }

</bundles_post_ra>
